<compile_context>
chip_gen: v6e
topology: v6e:2x2x1
jax: 0.10.0
libtpu: 0.0.40
codegen_flags: <defaults>
</compile_context>

<pallas_src>
import functools

import numpy as np
import jax
import jax.numpy as jnp
from jax.experimental import pallas as pl
from jax.experimental.pallas import tpu as pltpu


Z_DIM = 100
CHANNELS_IMG = 1
FEATURES_G = 8
_VMEM_LIMIT = 32 * 1024 * 1024          # safe on v5e/v6e (128 MiB) and v7x (64 MiB)
_BN_EPS = 1e-5

_BLOCK_CFG = [
    (Z_DIM,           FEATURES_G * 16),   # -> 4x4,   stride 1, pad 0
    (FEATURES_G * 16, FEATURES_G * 8),    # -> 8x8,   stride 2, pad 1
    (FEATURES_G * 8,  FEATURES_G * 4),    # -> 16x16
    (FEATURES_G * 4,  FEATURES_G * 2),    # -> 32x32
]
_FINAL_CFG = (FEATURES_G * 2, CHANNELS_IMG)   # -> 64x64, stride 2, pad 1

# phase r/s -> {3x3 window row/col offset dr/dc : ConvTranspose kernel tap kh/kw}
# derived from: out[2m+r] += in[i] * w[kh] with 2m+r = 2i + kh - 1, i = m+dr-1
_TAPS = {0: {0: 3, 1: 1}, 1: {1: 2, 2: 0}}


def _round_up(x, m):
    return ((x + m - 1) // m) * m


# -----------------------------------------------------------------------------
# Pallas kernels
# -----------------------------------------------------------------------------
def _mm_bn_lrelu_kernel(a_ref, w_ref, gamma_ref, beta_ref, o_ref, *, cout, groups):
    """Block 1: LeakyReLU_0.2(BatchNorm(A @ W)).

    Columns of (A @ W) are `groups` spatial copies of the channel axis
    (cout == 128, so every slice / concat below is 128-lane aligned).
    """
    y = jnp.dot(a_ref[...], w_ref[...], preferred_element_type=jnp.float32)
    m = y.shape[0]
    inv_n = 1.0 / float(m * groups)

    s1 = jnp.sum(y, axis=0, keepdims=True)                     # (1, G*C)
    s1c = s1[:, 0:cout]
    for g in range(1, groups):
        s1c = s1c + s1[:, g * cout:(g + 1) * cout]
    mean = s1c * inv_n                                          # (1, C)
    mean_t = jnp.concatenate([mean] * groups, axis=1)           # (1, G*C)

    d = y - mean_t
    s2 = jnp.sum(d * d, axis=0, keepdims=True)
    s2c = s2[:, 0:cout]
    for g in range(1, groups):
        s2c = s2c + s2[:, g * cout:(g + 1) * cout]
    var = s2c * inv_n                                           # biased variance

    scale = gamma_ref[...] * jax.lax.rsqrt(var + _BN_EPS)       # (1, C)
    scale_t = jnp.concatenate([scale] * groups, axis=1)
    beta_t = jnp.concatenate([beta_ref[...]] * groups, axis=1)

    z = d * scale_t + beta_t
    o_ref[...] = jnp.where(z > 0, z, 0.2 * z).astype(o_ref.dtype)


def _deconv_bn_lrelu_kernel(a_ref, w_ref, fold_ref, gamma_ref, beta_ref,
                            o_ref, acc_ref, *, n_batch, h, w):
    """Fused sub-pixel stride-2 deconv + BatchNorm + LeakyReLU(0.2).

    a_ref   : (N*(H+2)*W, 3*Cin)  bf16  W-expanded, H-padded activation rows
    w_ref   : (3, 3*Cin, GC)      bf16  per-dr tap weights, GC = 4*Cout (128-pad)
    fold_ref: (GC, GC)            f32   averages stats across the 4 phase groups
    gamma/beta_ref: (1, GC)       f32   gamma/beta tiled to the packed columns
    o_ref   : (N*H*W, GC)         bf16
    acc_ref : (N*H*W, GC)         f32   scratch holding the raw matmul result
    """
    hw = h * w
    hpw = (h + 2) * w
    # In-kernel im2col over the dr (row) taps: three row-shifted sub-matmuls.
    for n in range(n_batch):
        base = n * hpw
        yn = jnp.dot(a_ref[base:base + hw, :], w_ref[0],
                     preferred_element_type=jnp.float32)
        yn = yn + jnp.dot(a_ref[base + w:base + w + hw, :], w_ref[1],
                          preferred_element_type=jnp.float32)
        yn = yn + jnp.dot(a_ref[base + 2 * w:base + 2 * w + hw, :], w_ref[2],
                          preferred_element_type=jnp.float32)
        acc_ref[n * hw:(n + 1) * hw, :] = yn

    y = acc_ref[...]                                            # (M, GC) f32
    m = y.shape[0]
    inv_m = 1.0 / float(m)

    # Per-channel batch stats: fold the 4 phase groups with a constant matrix
    # (MXU) so no sub-128-lane slicing is needed; divisor is m*4 samples/channel.
    s1 = jnp.sum(y, axis=0, keepdims=True)                      # (1, GC)
    mean_t = jnp.dot(s1, fold_ref[...],
                     preferred_element_type=jnp.float32) * inv_m
    d = y - mean_t
    s2 = jnp.sum(d * d, axis=0, keepdims=True)
    var_t = jnp.dot(s2, fold_ref[...],
                    preferred_element_type=jnp.float32) * inv_m  # biased variance

    scale_t = gamma_ref[...] * jax.lax.rsqrt(var_t + _BN_EPS)
    z = d * scale_t + beta_ref[...]
    o_ref[...] = jnp.where(z > 0, z, 0.2 * z).astype(o_ref.dtype)


def _deconv_bias_tanh_kernel(a_ref, w_ref, b_ref, o_ref, *, tm, w, hpw):
    """Final layer tile: sub-pixel deconv + bias + tanh, M-tiled over the grid."""
    n = pl.program_id(0)
    t = pl.program_id(1)
    row0 = n * hpw + t * tm
    s0 = pl.multiple_of(row0, 8)
    s1 = pl.multiple_of(row0 + w, 8)
    s2 = pl.multiple_of(row0 + 2 * w, 8)
    acc = jnp.dot(a_ref[pl.ds(s0, tm), :], w_ref[0],
                  preferred_element_type=jnp.float32)
    acc = acc + jnp.dot(a_ref[pl.ds(s1, tm), :], w_ref[1],
                        preferred_element_type=jnp.float32)
    acc = acc + jnp.dot(a_ref[pl.ds(s2, tm), :], w_ref[2],
                        preferred_element_type=jnp.float32)
    o_ref[...] = jnp.tanh(acc + b_ref[...])


# -----------------------------------------------------------------------------
# Pallas wrappers
# -----------------------------------------------------------------------------
def fused_matmul_bn_lrelu(a, w, gamma, beta):
    M, K = a.shape
    GC = w.shape[1]
    cout = gamma.shape[1]
    groups = GC // cout
    kernel = functools.partial(_mm_bn_lrelu_kernel, cout=cout, groups=groups)
    return pl.pallas_call(
        kernel,
        out_shape=jax.ShapeDtypeStruct((M, GC), jnp.bfloat16),
        grid=(1,),
        in_specs=[
            pl.BlockSpec((M, K), lambda i: (0, 0)),
            pl.BlockSpec((K, GC), lambda i: (0, 0)),
            pl.BlockSpec((1, cout), lambda i: (0, 0)),
            pl.BlockSpec((1, cout), lambda i: (0, 0)),
        ],
        out_specs=pl.BlockSpec((M, GC), lambda i: (0, 0)),
        compiler_params=pltpu.CompilerParams(
            dimension_semantics=("arbitrary",), vmem_limit_bytes=_VMEM_LIMIT),
    )(a, w, gamma, beta)


def fused_deconv_bn_lrelu(a, w3, fold, gamma_t, beta_t, *, n_batch, h, w):
    R, K3 = a.shape
    GC = w3.shape[2]
    assert R == n_batch * (h + 2) * w, (R, n_batch, h, w)
    m_out = n_batch * h * w
    kernel = functools.partial(_deconv_bn_lrelu_kernel, n_batch=n_batch, h=h, w=w)
    return pl.pallas_call(
        kernel,
        out_shape=jax.ShapeDtypeStruct((m_out, GC), jnp.bfloat16),
        grid=(1,),
        in_specs=[
            pl.BlockSpec((R, K3), lambda i: (0, 0)),
            pl.BlockSpec((3, K3, GC), lambda i: (0, 0, 0)),
            pl.BlockSpec((GC, GC), lambda i: (0, 0)),
            pl.BlockSpec((1, GC), lambda i: (0, 0)),
            pl.BlockSpec((1, GC), lambda i: (0, 0)),
        ],
        out_specs=pl.BlockSpec((m_out, GC), lambda i: (0, 0)),
        scratch_shapes=[pltpu.VMEM((m_out, GC), jnp.float32)],
        compiler_params=pltpu.CompilerParams(
            dimension_semantics=("arbitrary",), vmem_limit_bytes=_VMEM_LIMIT),
    )(a, w3, fold, gamma_t, beta_t)


def fused_deconv_bias_tanh(a, w3, bias, *, n_batch, h, w):
    R, K3 = a.shape
    GC = w3.shape[2]
    hw = h * w
    hpw = (h + 2) * w
    assert R == n_batch * hpw, (R, n_batch, h, w)
    tm = 256 if (hw % 256 == 0) else hw          # >=4 steps/core for pipelining
    t_per_n = hw // tm
    kernel = functools.partial(_deconv_bias_tanh_kernel, tm=tm, w=w, hpw=hpw)
    return pl.pallas_call(
        kernel,
        out_shape=jax.ShapeDtypeStruct((n_batch * hw, GC), jnp.float32),
        grid=(n_batch, t_per_n),
        in_specs=[
            pl.BlockSpec((R, K3), lambda n, t: (0, 0)),        # resident slab
            pl.BlockSpec((3, K3, GC), lambda n, t: (0, 0, 0)),
            pl.BlockSpec((1, GC), lambda n, t: (0, 0)),
        ],
        out_specs=pl.BlockSpec((tm, GC), lambda n, t: (n * t_per_n + t, 0)),
        compiler_params=pltpu.CompilerParams(
            dimension_semantics=("parallel", "parallel"),
            vmem_limit_bytes=_VMEM_LIMIT),
    )(a, w3, bias)


# -----------------------------------------------------------------------------
# XLA glue (tiny, compact-channel): W-expanded halo slab and pixel shuffle
# -----------------------------------------------------------------------------
def _build_im2col(h):
    """NHWC (N,H,W,C) -> (N*(H+2)*W, 3*C) bf16: rows (n, padded-row p, out col l),
    columns = the 3 dc taps packed along lanes (real C each, no 128 padding)."""
    N, H, W, C = h.shape
    hp = jnp.pad(h, ((0, 0), (1, 1), (1, 1), (0, 0)))
    aw = jnp.concatenate([hp[:, :, dc:dc + W, :] for dc in range(3)], axis=-1)
    return aw.reshape(N * (H + 2) * W, 3 * C).astype(jnp.bfloat16)


def _pixel_shuffle(y, n, h, w, cout):
    """(n*h*w, GC) phase-packed (r, s, c) -> NHWC (n, 2h, 2w, cout)."""
    y = y[:, :4 * cout].reshape(n, h, w, 2, 2, cout).transpose(0, 1, 3, 2, 4, 5)
    return y.reshape(n, 2 * h, 2 * w, cout)


# -----------------------------------------------------------------------------
# One-time weight repacking (outside the jitted forward)
# -----------------------------------------------------------------------------
def _pack_block1_weight(w):
    """(Cin, Cout=128, 4, 4), stride 1 / pad 0 on a 1x1 input -> (Cin, 16*Cout)."""
    cin, cout, k, _ = w.shape
    out = np.zeros((cin, k * k * cout), np.float32)
    for kh in range(k):
        for kw in range(k):
            g = kh * k + kw
            out[:, g * cout:(g + 1) * cout] = w[:, :, kh, kw]
    return out


def _pack_subpixel_weight(w):
    """(Cin, Cout, 4, 4) ConvTranspose2d (s=2, p=1) -> (3, 3*Cin, GC) per-dr weight.

    Columns: phase group g = 2r+s (major) x real channel (minor), zero-padded to
    GC = round_up(4*Cout, 128).  Rows within each dr slab: dc tap (major) x Cin.
    """
    cin, cout = w.shape[:2]
    gc = _round_up(4 * cout, 128)
    out = np.zeros((3, 3 * cin, gc), np.float32)
    for r in (0, 1):
        for s in (0, 1):
            g = r * 2 + s
            for dr, kh in _TAPS[r].items():
                for dc, kw in _TAPS[s].items():
                    out[dr, dc * cin:(dc + 1) * cin,
                        g * cout:(g + 1) * cout] = w[:, :, kh, kw]
    return out


def _fold_matrix(cout, gc):
    """(GC, GC) matrix averaging the 4 phase groups per channel and broadcasting
    the result back to every real column (zero for the padded columns)."""
    f = np.zeros((gc, gc), np.float32)
    blk = np.eye(cout, dtype=np.float32) * 0.25
    for g in range(4):
        for g2 in range(4):
            f[g * cout:(g + 1) * cout, g2 * cout:(g2 + 1) * cout] = blk
    return f


def _tile_vec(v, gc, fill=0.0):
    """(Cout,) -> (1, GC) tiled over the 4 phase groups, pad columns = fill."""
    cout = v.shape[0]
    out = np.full((1, gc), fill, np.float32)
    for g in range(4):
        out[0, g * cout:(g + 1) * cout] = v
    return out


def init_params(key):
    """Raw parameters in PyTorch ConvTranspose2d layout (Cin, Cout, 4, 4)."""
    params = {"blocks": [], "final": None}
    for (cin, cout) in _BLOCK_CFG:
        key, wk = jax.random.split(key)
        w = 0.02 * jax.random.normal(wk, (cin, cout, 4, 4), jnp.float32)
        gamma = jnp.ones((cout,), jnp.float32)      # BatchNorm2d default init
        beta = jnp.zeros((cout,), jnp.float32)
        params["blocks"].append((w, gamma, beta))
    cin, cout = _FINAL_CFG
    key, wk, bk = jax.random.split(key, 3)
    w = 0.02 * jax.random.normal(wk, (cin, cout, 4, 4), jnp.float32)
    b = 0.02 * jax.random.normal(bk, (cout,), jnp.float32)
    params["final"] = (w, b)
    return params


def prepare_params(params):
    """One-time repack into compact, phase-packed bf16 matmul weights."""
    w, gamma, beta = params["blocks"][0]
    prep = {
        "block1": (jnp.asarray(_pack_block1_weight(np.asarray(w)), jnp.bfloat16),
                   jnp.asarray(np.asarray(gamma).reshape(1, -1), jnp.float32),
                   jnp.asarray(np.asarray(beta).reshape(1, -1), jnp.float32)),
        "blocks": [],
    }
    for (w, gamma, beta) in params["blocks"][1:]:
        cout = w.shape[1]
        gc = _round_up(4 * cout, 128)
        prep["blocks"].append((
            jnp.asarray(_pack_subpixel_weight(np.asarray(w)), jnp.bfloat16),
            jnp.asarray(_fold_matrix(cout, gc)),
            jnp.asarray(_tile_vec(np.asarray(gamma), gc, fill=0.0)),
            jnp.asarray(_tile_vec(np.asarray(beta), gc, fill=0.0)),
        ))
    w, b = params["final"]
    cout = w.shape[1]
    gc = _round_up(4 * cout, 128)
    prep["final"] = (jnp.asarray(_pack_subpixel_weight(np.asarray(w)), jnp.bfloat16),
                     jnp.asarray(_tile_vec(np.asarray(b), gc, fill=0.0)))
    return prep


# -----------------------------------------------------------------------------
# Generator forward
# -----------------------------------------------------------------------------
@jax.jit
def generator_forward(prep, x):
    """x: (N, Z_DIM, 1, 1) NCHW f32 -> (N, CHANNELS_IMG, 64, 64) NCHW f32."""
    N = x.shape[0]

    # Block 1: ConvTranspose(z, 128, 4, s=1, p=0) on a 1x1 input == plain matmul.
    x2 = x.reshape(N, Z_DIM).astype(jnp.bfloat16)
    w1, g1, b1 = prep["block1"]
    y = fused_matmul_bn_lrelu(x2, w1, g1, b1)               # (N, 16*128) bf16
    h = y.reshape(N, 4, 4, _BLOCK_CFG[0][1])                # NHWC, real channels

    # Blocks 2-4: fused sub-pixel stride-2 deconv + BN + LeakyReLU.
    for (w3, fold, gamma_t, beta_t), (_, cout) in zip(prep["blocks"], _BLOCK_CFG[1:]):
        nb, hh, ww, _ = h.shape
        a = _build_im2col(h)                                # (nb*(hh+2)*ww, 3*Cin)
        y = fused_deconv_bn_lrelu(a, w3, fold, gamma_t, beta_t,
                                  n_batch=nb, h=hh, w=ww)   # (nb*hh*ww, GC) bf16
        h = _pixel_shuffle(y, nb, hh, ww, cout)             # (nb, 2hh, 2ww, cout)

    # Final layer: fused sub-pixel deconv + bias + Tanh (f32, M-tiled grid).
    w3, bias = prep["final"]
    nb, hh, ww, _ = h.shape
    a = _build_im2col(h)
    y = fused_deconv_bias_tanh(a, w3, bias, n_batch=nb, h=hh, w=ww)
    out = _pixel_shuffle(y, nb, hh, ww, CHANNELS_IMG)       # (nb, 64, 64, 1) f32
    return out.transpose(0, 3, 1, 2)                        # NCHW (N, 1, 64, 64)


if __name__ == "__main__":
    key = jax.random.PRNGKey(0)
    pkey, xkey = jax.random.split(key)
    params = init_params(pkey)
    prep = prepare_params(params)
    x = jax.random.normal(xkey, (2, Z_DIM, 1, 1), jnp.float32)   # (N, z_dim, 1, 1)

    out = generator_forward(prep, x)
    out = jax.block_until_ready(out)

    assert out.shape == (2, CHANNELS_IMG, 64, 64), out.shape
    assert out.dtype == jnp.float32
    assert bool(jnp.all(jnp.isfinite(out)))
    assert bool(jnp.all(jnp.abs(out) <= 1.0))   # Tanh output range
    print("KERNEL_OK")
</pallas_src>

<mosaic_0001>
module attributes {stable_mosaic.version = 11 : i64} {
  func.func @_mm_bn_lrelu_kernel(%arg0: i32, %arg1: memref<2x100xbf16, #tpu.memory_space<vmem>>, %arg2: memref<100x2048xbf16, #tpu.memory_space<vmem>>, %arg3: memref<1x128xf32, #tpu.memory_space<vmem>>, %arg4: memref<1x128xf32, #tpu.memory_space<vmem>>, %arg5: memref<2x2048xbf16, #tpu.memory_space<vmem>>) attributes {dimension_semantics = [#tpu.dimension_semantics<arbitrary>], iteration_bounds = array<i64: 1>, scalar_prefetch = 0 : i64, scratch_operands = 0 : i64, tpu.core_type = #tpu.core_type<tc>, window_params = [{pipeline_mode = #tpu.pipeline_mode<synchronous>, transform_indices = @transform_0, window_bounds = array<i64: 2, 100>}, {pipeline_mode = #tpu.pipeline_mode<synchronous>, transform_indices = @transform_1, window_bounds = array<i64: 100, 2048>}, {pipeline_mode = #tpu.pipeline_mode<synchronous>, transform_indices = @transform_2, window_bounds = array<i64: 1, 128>}, {pipeline_mode = #tpu.pipeline_mode<synchronous>, transform_indices = @transform_3, window_bounds = array<i64: 1, 128>}, {pipeline_mode = #tpu.pipeline_mode<synchronous>, transform_indices = @transform_4, window_bounds = array<i64: 2, 2048>}]} {
    %c0 = arith.constant 0 : index
    %c0_0 = arith.constant 0 : index
    %0 = vector.load %arg1[%c0, %c0_0] : memref<2x100xbf16, #tpu.memory_space<vmem>>, vector<2x100xbf16>
    %c0_1 = arith.constant 0 : index
    %c0_2 = arith.constant 0 : index
    %1 = vector.load %arg2[%c0_1, %c0_2] : memref<100x2048xbf16, #tpu.memory_space<vmem>>, vector<100x2048xbf16>
    %cst = arith.constant dense<0.000000e+00> : vector<2x2048xf32>
    %2 = tpu.matmul %0, %1, %cst {dimension_numbers = #tpu.dot_dimension_numbers<[1], [0], [0], [1], [0, 0, 1, 1], [], []>} : vector<2x100xbf16>, vector<100x2048xbf16>, vector<2x2048xf32> -> vector<2x2048xf32>
    %cst_3 = arith.constant dense<0.000000e+00> : vector<2048xf32>
    %3 = vector.multi_reduction <add>, %2, %cst_3 [0] : vector<2x2048xf32> to vector<2048xf32>
    %4 = vector.shape_cast %3 : vector<2048xf32> to vector<1x2048xf32>
    %5 = vector.extract_strided_slice %4 {offsets = [0, 0], sizes = [1, 128], strides = [1, 1]} : vector<1x2048xf32> to vector<1x128xf32>
    %6 = vector.extract_strided_slice %4 {offsets = [0, 128], sizes = [1, 128], strides = [1, 1]} : vector<1x2048xf32> to vector<1x128xf32>
    %7 = arith.addf %5, %6 : vector<1x128xf32>
    %8 = vector.extract_strided_slice %4 {offsets = [0, 256], sizes = [1, 128], strides = [1, 1]} : vector<1x2048xf32> to vector<1x128xf32>
    %9 = arith.addf %7, %8 : vector<1x128xf32>
    %10 = vector.extract_strided_slice %4 {offsets = [0, 384], sizes = [1, 128], strides = [1, 1]} : vector<1x2048xf32> to vector<1x128xf32>
    %11 = arith.addf %9, %10 : vector<1x128xf32>
    %12 = vector.extract_strided_slice %4 {offsets = [0, 512], sizes = [1, 128], strides = [1, 1]} : vector<1x2048xf32> to vector<1x128xf32>
    %13 = arith.addf %11, %12 : vector<1x128xf32>
    %14 = vector.extract_strided_slice %4 {offsets = [0, 640], sizes = [1, 128], strides = [1, 1]} : vector<1x2048xf32> to vector<1x128xf32>
    %15 = arith.addf %13, %14 : vector<1x128xf32>
    %16 = vector.extract_strided_slice %4 {offsets = [0, 768], sizes = [1, 128], strides = [1, 1]} : vector<1x2048xf32> to vector<1x128xf32>
    %17 = arith.addf %15, %16 : vector<1x128xf32>
    %18 = vector.extract_strided_slice %4 {offsets = [0, 896], sizes = [1, 128], strides = [1, 1]} : vector<1x2048xf32> to vector<1x128xf32>
    %19 = arith.addf %17, %18 : vector<1x128xf32>
    %20 = vector.extract_strided_slice %4 {offsets = [0, 1024], sizes = [1, 128], strides = [1, 1]} : vector<1x2048xf32> to vector<1x128xf32>
    %21 = arith.addf %19, %20 : vector<1x128xf32>
    %22 = vector.extract_strided_slice %4 {offsets = [0, 1152], sizes = [1, 128], strides = [1, 1]} : vector<1x2048xf32> to vector<1x128xf32>
    %23 = arith.addf %21, %22 : vector<1x128xf32>
    %24 = vector.extract_strided_slice %4 {offsets = [0, 1280], sizes = [1, 128], strides = [1, 1]} : vector<1x2048xf32> to vector<1x128xf32>
    %25 = arith.addf %23, %24 : vector<1x128xf32>
    %26 = vector.extract_strided_slice %4 {offsets = [0, 1408], sizes = [1, 128], strides = [1, 1]} : vector<1x2048xf32> to vector<1x128xf32>
    %27 = arith.addf %25, %26 : vector<1x128xf32>
    %28 = vector.extract_strided_slice %4 {offsets = [0, 1536], sizes = [1, 128], strides = [1, 1]} : vector<1x2048xf32> to vector<1x128xf32>
    %29 = arith.addf %27, %28 : vector<1x128xf32>
    %30 = vector.extract_strided_slice %4 {offsets = [0, 1664], sizes = [1, 128], strides = [1, 1]} : vector<1x2048xf32> to vector<1x128xf32>
    %31 = arith.addf %29, %30 : vector<1x128xf32>
    %32 = vector.extract_strided_slice %4 {offsets = [0, 1792], sizes = [1, 128], strides = [1, 1]} : vector<1x2048xf32> to vector<1x128xf32>
    %33 = arith.addf %31, %32 : vector<1x128xf32>
    %34 = vector.extract_strided_slice %4 {offsets = [0, 1920], sizes = [1, 128], strides = [1, 1]} : vector<1x2048xf32> to vector<1x128xf32>
    %35 = arith.addf %33, %34 : vector<1x128xf32>
    %cst_4 = arith.constant 3.125000e-02 : f32
    %36 = vector.broadcast %cst_4 : f32 to vector<1x128xf32>
    %37 = arith.mulf %35, %36 : vector<1x128xf32>
    %38 = tpu.concatenate %37, %37, %37, %37, %37, %37, %37, %37, %37, %37, %37, %37, %37, %37, %37, %37 in 1 : vector<1x128xf32>, vector<1x128xf32>, vector<1x128xf32>, vector<1x128xf32>, vector<1x128xf32>, vector<1x128xf32>, vector<1x128xf32>, vector<1x128xf32>, vector<1x128xf32>, vector<1x128xf32>, vector<1x128xf32>, vector<1x128xf32>, vector<1x128xf32>, vector<1x128xf32>, vector<1x128xf32>, vector<1x128xf32> -> vector<1x2048xf32>
    %39 = vector.broadcast %38 : vector<1x2048xf32> to vector<2x2048xf32>
    %40 = arith.subf %2, %39 : vector<2x2048xf32>
    %41 = arith.mulf %40, %40 : vector<2x2048xf32>
    %cst_5 = arith.constant dense<0.000000e+00> : vector<2048xf32>
    %42 = vector.multi_reduction <add>, %41, %cst_5 [0] : vector<2x2048xf32> to vector<2048xf32>
    %43 = vector.shape_cast %42 : vector<2048xf32> to vector<1x2048xf32>
    %44 = vector.extract_strided_slice %43 {offsets = [0, 0], sizes = [1, 128], strides = [1, 1]} : vector<1x2048xf32> to vector<1x128xf32>
    %45 = vector.extract_strided_slice %43 {offsets = [0, 128], sizes = [1, 128], strides = [1, 1]} : vector<1x2048xf32> to vector<1x128xf32>
    %46 = arith.addf %44, %45 : vector<1x128xf32>
    %47 = vector.extract_strided_slice %43 {offsets = [0, 256], sizes = [1, 128], strides = [1, 1]} : vector<1x2048xf32> to vector<1x128xf32>
    %48 = arith.addf %46, %47 : vector<1x128xf32>
    %49 = vector.extract_strided_slice %43 {offsets = [0, 384], sizes = [1, 128], strides = [1, 1]} : vector<1x2048xf32> to vector<1x128xf32>
    %50 = arith.addf %48, %49 : vector<1x128xf32>
    %51 = vector.extract_strided_slice %43 {offsets = [0, 512], sizes = [1, 128], strides = [1, 1]} : vector<1x2048xf32> to vector<1x128xf32>
    %52 = arith.addf %50, %51 : vector<1x128xf32>
    %53 = vector.extract_strided_slice %43 {offsets = [0, 640], sizes = [1, 128], strides = [1, 1]} : vector<1x2048xf32> to vector<1x128xf32>
    %54 = arith.addf %52, %53 : vector<1x128xf32>
    %55 = vector.extract_strided_slice %43 {offsets = [0, 768], sizes = [1, 128], strides = [1, 1]} : vector<1x2048xf32> to vector<1x128xf32>
    %56 = arith.addf %54, %55 : vector<1x128xf32>
    %57 = vector.extract_strided_slice %43 {offsets = [0, 896], sizes = [1, 128], strides = [1, 1]} : vector<1x2048xf32> to vector<1x128xf32>
    %58 = arith.addf %56, %57 : vector<1x128xf32>
    %59 = vector.extract_strided_slice %43 {offsets = [0, 1024], sizes = [1, 128], strides = [1, 1]} : vector<1x2048xf32> to vector<1x128xf32>
    %60 = arith.addf %58, %59 : vector<1x128xf32>
    %61 = vector.extract_strided_slice %43 {offsets = [0, 1152], sizes = [1, 128], strides = [1, 1]} : vector<1x2048xf32> to vector<1x128xf32>
    %62 = arith.addf %60, %61 : vector<1x128xf32>
    %63 = vector.extract_strided_slice %43 {offsets = [0, 1280], sizes = [1, 128], strides = [1, 1]} : vector<1x2048xf32> to vector<1x128xf32>
    %64 = arith.addf %62, %63 : vector<1x128xf32>
    %65 = vector.extract_strided_slice %43 {offsets = [0, 1408], sizes = [1, 128], strides = [1, 1]} : vector<1x2048xf32> to vector<1x128xf32>
    %66 = arith.addf %64, %65 : vector<1x128xf32>
    %67 = vector.extract_strided_slice %43 {offsets = [0, 1536], sizes = [1, 128], strides = [1, 1]} : vector<1x2048xf32> to vector<1x128xf32>
    %68 = arith.addf %66, %67 : vector<1x128xf32>
    %69 = vector.extract_strided_slice %43 {offsets = [0, 1664], sizes = [1, 128], strides = [1, 1]} : vector<1x2048xf32> to vector<1x128xf32>
    %70 = arith.addf %68, %69 : vector<1x128xf32>
    %71 = vector.extract_strided_slice %43 {offsets = [0, 1792], sizes = [1, 128], strides = [1, 1]} : vector<1x2048xf32> to vector<1x128xf32>
    %72 = arith.addf %70, %71 : vector<1x128xf32>
    %73 = vector.extract_strided_slice %43 {offsets = [0, 1920], sizes = [1, 128], strides = [1, 1]} : vector<1x2048xf32> to vector<1x128xf32>
    %74 = arith.addf %72, %73 : vector<1x128xf32>
    %cst_6 = arith.constant 3.125000e-02 : f32
    %75 = vector.broadcast %cst_6 : f32 to vector<1x128xf32>
    %76 = arith.mulf %74, %75 : vector<1x128xf32>
    %c0_7 = arith.constant 0 : index
    %c0_8 = arith.constant 0 : index
    %77 = vector.load %arg3[%c0_7, %c0_8] : memref<1x128xf32, #tpu.memory_space<vmem>>, vector<1x128xf32>
    %cst_9 = arith.constant 9.99999974E-6 : f32
    %78 = vector.broadcast %cst_9 : f32 to vector<1x128xf32>
    %79 = arith.addf %76, %78 : vector<1x128xf32>
    %80 = math.rsqrt %79 : vector<1x128xf32>
    %81 = arith.mulf %77, %80 : vector<1x128xf32>
    %82 = tpu.concatenate %81, %81, %81, %81, %81, %81, %81, %81, %81, %81, %81, %81, %81, %81, %81, %81 in 1 : vector<1x128xf32>, vector<1x128xf32>, vector<1x128xf32>, vector<1x128xf32>, vector<1x128xf32>, vector<1x128xf32>, vector<1x128xf32>, vector<1x128xf32>, vector<1x128xf32>, vector<1x128xf32>, vector<1x128xf32>, vector<1x128xf32>, vector<1x128xf32>, vector<1x128xf32>, vector<1x128xf32>, vector<1x128xf32> -> vector<1x2048xf32>
    %c0_10 = arith.constant 0 : index
    %c0_11 = arith.constant 0 : index
    %83 = vector.load %arg4[%c0_10, %c0_11] : memref<1x128xf32, #tpu.memory_space<vmem>>, vector<1x128xf32>
    %84 = tpu.concatenate %83, %83, %83, %83, %83, %83, %83, %83, %83, %83, %83, %83, %83, %83, %83, %83 in 1 : vector<1x128xf32>, vector<1x128xf32>, vector<1x128xf32>, vector<1x128xf32>, vector<1x128xf32>, vector<1x128xf32>, vector<1x128xf32>, vector<1x128xf32>, vector<1x128xf32>, vector<1x128xf32>, vector<1x128xf32>, vector<1x128xf32>, vector<1x128xf32>, vector<1x128xf32>, vector<1x128xf32>, vector<1x128xf32> -> vector<1x2048xf32>
    %85 = vector.broadcast %82 : vector<1x2048xf32> to vector<2x2048xf32>
    %86 = arith.mulf %40, %85 : vector<2x2048xf32>
    %87 = vector.broadcast %84 : vector<1x2048xf32> to vector<2x2048xf32>
    %88 = arith.addf %86, %87 : vector<2x2048xf32>
    %cst_12 = arith.constant 0.000000e+00 : f32
    %89 = vector.broadcast %cst_12 : f32 to vector<2x2048xf32>
    %90 = arith.cmpf ogt, %88, %89 : vector<2x2048xf32>
    %cst_13 = arith.constant 2.000000e-01 : f32
    %91 = vector.broadcast %cst_13 : f32 to vector<2x2048xf32>
    %92 = arith.mulf %91, %88 : vector<2x2048xf32>
    %93 = arith.select %90, %88, %92 : vector<2x2048xi1>, vector<2x2048xf32>
    %94 = arith.truncf %93 : vector<2x2048xf32> to vector<2x2048xbf16>
    %c0_14 = arith.constant 0 : index
    %c0_15 = arith.constant 0 : index
    %95 = vector.load %arg5[%c0_14, %c0_15] : memref<2x2048xbf16, #tpu.memory_space<vmem>>, vector<2x2048xbf16>
    tpu.vector_store %arg5[%c0_14, %c0_15], %94 {strides = array<i32>} : memref<2x2048xbf16, #tpu.memory_space<vmem>>, vector<2x2048xbf16>,
    return
  }
  func.func @transform_0(%arg0: i32) -> (i32, i32) {
    %c0_i32 = arith.constant 0 : i32
    %c0_i32_0 = arith.constant 0 : i32
    %c0_i32_1 = arith.constant 0 : i32
    return %c0_i32, %c0_i32_0 : i32, i32
  }
  func.func @transform_1(%arg0: i32) -> (i32, i32) {
    %c0_i32 = arith.constant 0 : i32
    %c0_i32_0 = arith.constant 0 : i32
    %c0_i32_1 = arith.constant 0 : i32
    return %c0_i32, %c0_i32_0 : i32, i32
  }
  func.func @transform_2(%arg0: i32) -> (i32, i32) {
    %c0_i32 = arith.constant 0 : i32
    %c0_i32_0 = arith.constant 0 : i32
    %c0_i32_1 = arith.constant 0 : i32
    return %c0_i32, %c0_i32_0 : i32, i32
  }
  func.func @transform_3(%arg0: i32) -> (i32, i32) {
    %c0_i32 = arith.constant 0 : i32
    %c0_i32_0 = arith.constant 0 : i32
    %c0_i32_1 = arith.constant 0 : i32
    return %c0_i32, %c0_i32_0 : i32, i32
  }
  func.func @transform_4(%arg0: i32) -> (i32, i32) {
    %c0_i32 = arith.constant 0 : i32
    %c0_i32_0 = arith.constant 0 : i32
    %c0_i32_1 = arith.constant 0 : i32
    return %c0_i32, %c0_i32_0 : i32, i32
  }
}

module attributes {stable_mosaic.version = 11 : i64} {
  func.func @_deconv_bn_lrelu_kernel(%arg0: i32, %arg1: memref<48x384xbf16, #tpu.memory_space<vmem>>, %arg2: memref<3x384x256xbf16, #tpu.memory_space<vmem>>, %arg3: memref<256x256xf32, #tpu.memory_space<vmem>>, %arg4: memref<1x256xf32, #tpu.memory_space<vmem>>, %arg5: memref<1x256xf32, #tpu.memory_space<vmem>>, %arg6: memref<32x256xbf16, #tpu.memory_space<vmem>>, %arg7: memref<32x256xf32, #tpu.memory_space<vmem>>) attributes {dimension_semantics = [#tpu.dimension_semantics<arbitrary>], iteration_bounds = array<i64: 1>, scalar_prefetch = 0 : i64, scratch_operands = 1 : i64, tpu.core_type = #tpu.core_type<tc>, window_params = [{pipeline_mode = #tpu.pipeline_mode<synchronous>, transform_indices = @transform_0, window_bounds = array<i64: 48, 384>}, {pipeline_mode = #tpu.pipeline_mode<synchronous>, transform_indices = @transform_1, window_bounds = array<i64: 3, 384, 256>}, {pipeline_mode = #tpu.pipeline_mode<synchronous>, transform_indices = @transform_2, window_bounds = array<i64: 256, 256>}, {pipeline_mode = #tpu.pipeline_mode<synchronous>, transform_indices = @transform_3, window_bounds = array<i64: 1, 256>}, {pipeline_mode = #tpu.pipeline_mode<synchronous>, transform_indices = @transform_4, window_bounds = array<i64: 1, 256>}, {pipeline_mode = #tpu.pipeline_mode<synchronous>, transform_indices = @transform_5, window_bounds = array<i64: 32, 256>}]} {
    %c0 = arith.constant 0 : index
    %c0_0 = arith.constant 0 : index
    %0 = vector.load %arg1[%c0, %c0_0] : memref<48x384xbf16, #tpu.memory_space<vmem>>, vector<16x384xbf16>
    %c0_1 = arith.constant 0 : index
    %c0_2 = arith.constant 0 : index
    %c0_3 = arith.constant 0 : index
    %1 = vector.load %arg2[%c0_1, %c0_2, %c0_3] : memref<3x384x256xbf16, #tpu.memory_space<vmem>>, vector<1x384x256xbf16>
    %2 = vector.shape_cast %1 : vector<1x384x256xbf16> to vector<384x256xbf16>
    %cst = arith.constant dense<0.000000e+00> : vector<16x256xf32>
    %3 = tpu.matmul %0, %2, %cst {dimension_numbers = #tpu.dot_dimension_numbers<[1], [0], [0], [1], [0, 0, 1, 1], [], []>} : vector<16x384xbf16>, vector<384x256xbf16>, vector<16x256xf32> -> vector<16x256xf32>
    %c4 = arith.constant 4 : index
    %c0_4 = arith.constant 0 : index
    %4 = vector.load %arg1[%c4, %c0_4] : memref<48x384xbf16, #tpu.memory_space<vmem>>, vector<16x384xbf16>
    %c1 = arith.constant 1 : index
    %c0_5 = arith.constant 0 : index
    %c0_6 = arith.constant 0 : index
    %5 = vector.load %arg2[%c1, %c0_5, %c0_6] : memref<3x384x256xbf16, #tpu.memory_space<vmem>>, vector<1x384x256xbf16>
    %6 = vector.shape_cast %5 : vector<1x384x256xbf16> to vector<384x256xbf16>
    %cst_7 = arith.constant dense<0.000000e+00> : vector<16x256xf32>
    %7 = tpu.matmul %4, %6, %cst_7 {dimension_numbers = #tpu.dot_dimension_numbers<[1], [0], [0], [1], [0, 0, 1, 1], [], []>} : vector<16x384xbf16>, vector<384x256xbf16>, vector<16x256xf32> -> vector<16x256xf32>
    %8 = arith.addf %3, %7 : vector<16x256xf32>
    %c8 = arith.constant 8 : index
    %c0_8 = arith.constant 0 : index
    %9 = vector.load %arg1[%c8, %c0_8] : memref<48x384xbf16, #tpu.memory_space<vmem>>, vector<16x384xbf16>
    %c2 = arith.constant 2 : index
    %c0_9 = arith.constant 0 : index
    %c0_10 = arith.constant 0 : index
    %10 = vector.load %arg2[%c2, %c0_9, %c0_10] : memref<3x384x256xbf16, #tpu.memory_space<vmem>>, vector<1x384x256xbf16>
    %11 = vector.shape_cast %10 : vector<1x384x256xbf16> to vector<384x256xbf16>
    %cst_11 = arith.constant dense<0.000000e+00> : vector<16x256xf32>
    %12 = tpu.matmul %9, %11, %cst_11 {dimension_numbers = #tpu.dot_dimension_numbers<[1], [0], [0], [1], [0, 0, 1, 1], [], []>} : vector<16x384xbf16>, vector<384x256xbf16>, vector<16x256xf32> -> vector<16x256xf32>
    %13 = arith.addf %8, %12 : vector<16x256xf32>
    %c0_12 = arith.constant 0 : index
    %c0_13 = arith.constant 0 : index
    %14 = vector.load %arg7[%c0_12, %c0_13] : memref<32x256xf32, #tpu.memory_space<vmem>>, vector<16x256xf32>
    tpu.vector_store %arg7[%c0_12, %c0_13], %13 {strides = array<i32>} : memref<32x256xf32, #tpu.memory_space<vmem>>, vector<16x256xf32>,
    %c24 = arith.constant 24 : index
    %c0_14 = arith.constant 0 : index
    %15 = vector.load %arg1[%c24, %c0_14] : memref<48x384xbf16, #tpu.memory_space<vmem>>, vector<16x384xbf16>
    %c0_15 = arith.constant 0 : index
    %c0_16 = arith.constant 0 : index
    %c0_17 = arith.constant 0 : index
    %16 = vector.load %arg2[%c0_15, %c0_16, %c0_17] : memref<3x384x256xbf16, #tpu.memory_space<vmem>>, vector<1x384x256xbf16>
    %17 = vector.shape_cast %16 : vector<1x384x256xbf16> to vector<384x256xbf16>
    %cst_18 = arith.constant dense<0.000000e+00> : vector<16x256xf32>
    %18 = tpu.matmul %15, %17, %cst_18 {dimension_numbers = #tpu.dot_dimension_numbers<[1], [0], [0], [1], [0, 0, 1, 1], [], []>} : vector<16x384xbf16>, vector<384x256xbf16>, vector<16x256xf32> -> vector<16x256xf32>
    %c28 = arith.constant 28 : index
    %c0_19 = arith.constant 0 : index
    %19 = vector.load %arg1[%c28, %c0_19] : memref<48x384xbf16, #tpu.memory_space<vmem>>, vector<16x384xbf16>
    %c1_20 = arith.constant 1 : index
    %c0_21 = arith.constant 0 : index
    %c0_22 = arith.constant 0 : index
    %20 = vector.load %arg2[%c1_20, %c0_21, %c0_22] : memref<3x384x256xbf16, #tpu.memory_space<vmem>>, vector<1x384x256xbf16>
    %21 = vector.shape_cast %20 : vector<1x384x256xbf16> to vector<384x256xbf16>
    %cst_23 = arith.constant dense<0.000000e+00> : vector<16x256xf32>
    %22 = tpu.matmul %19, %21, %cst_23 {dimension_numbers = #tpu.dot_dimension_numbers<[1], [0], [0], [1], [0, 0, 1, 1], [], []>} : vector<16x384xbf16>, vector<384x256xbf16>, vector<16x256xf32> -> vector<16x256xf32>
    %23 = arith.addf %18, %22 : vector<16x256xf32>
    %c32 = arith.constant 32 : index
    %c0_24 = arith.constant 0 : index
    %24 = vector.load %arg1[%c32, %c0_24] : memref<48x384xbf16, #tpu.memory_space<vmem>>, vector<16x384xbf16>
    %c2_25 = arith.constant 2 : index
    %c0_26 = arith.constant 0 : index
    %c0_27 = arith.constant 0 : index
    %25 = vector.load %arg2[%c2_25, %c0_26, %c0_27] : memref<3x384x256xbf16, #tpu.memory_space<vmem>>, vector<1x384x256xbf16>
    %26 = vector.shape_cast %25 : vector<1x384x256xbf16> to vector<384x256xbf16>
    %cst_28 = arith.constant dense<0.000000e+00> : vector<16x256xf32>
    %27 = tpu.matmul %24, %26, %cst_28 {dimension_numbers = #tpu.dot_dimension_numbers<[1], [0], [0], [1], [0, 0, 1, 1], [], []>} : vector<16x384xbf16>, vector<384x256xbf16>, vector<16x256xf32> -> vector<16x256xf32>
    %28 = arith.addf %23, %27 : vector<16x256xf32>
    %c16 = arith.constant 16 : index
    %c0_29 = arith.constant 0 : index
    %29 = vector.load %arg7[%c16, %c0_29] : memref<32x256xf32, #tpu.memory_space<vmem>>, vector<16x256xf32>
    tpu.vector_store %arg7[%c16, %c0_29], %28 {strides = array<i32>} : memref<32x256xf32, #tpu.memory_space<vmem>>, vector<16x256xf32>,
    %c0_30 = arith.constant 0 : index
    %c0_31 = arith.constant 0 : index
    %30 = vector.load %arg7[%c0_30, %c0_31] : memref<32x256xf32, #tpu.memory_space<vmem>>, vector<32x256xf32>
    %cst_32 = arith.constant dense<0.000000e+00> : vector<256xf32>
    %31 = vector.multi_reduction <add>, %30, %cst_32 [0] : vector<32x256xf32> to vector<256xf32>
    %32 = vector.shape_cast %31 : vector<256xf32> to vector<1x256xf32>
    %c0_33 = arith.constant 0 : index
    %c0_34 = arith.constant 0 : index
    %33 = vector.load %arg3[%c0_33, %c0_34] : memref<256x256xf32, #tpu.memory_space<vmem>>, vector<256x256xf32>
    %cst_35 = arith.constant dense<0.000000e+00> : vector<1x256xf32>
    %34 = tpu.matmul %32, %33, %cst_35 {dimension_numbers = #tpu.dot_dimension_numbers<[1], [0], [0], [1], [0, 0, 1, 1], [], []>} : vector<1x256xf32>, vector<256x256xf32>, vector<1x256xf32> -> vector<1x256xf32>
    %cst_36 = arith.constant 3.125000e-02 : f32
    %35 = vector.broadcast %cst_36 : f32 to vector<1x256xf32>
    %36 = arith.mulf %34, %35 : vector<1x256xf32>
    %37 = vector.broadcast %36 : vector<1x256xf32> to vector<32x256xf32>
    %38 = arith.subf %30, %37 : vector<32x256xf32>
    %39 = arith.mulf %38, %38 : vector<32x256xf32>
    %cst_37 = arith.constant dense<0.000000e+00> : vector<256xf32>
    %40 = vector.multi_reduction <add>, %39, %cst_37 [0] : vector<32x256xf32> to vector<256xf32>
    %41 = vector.shape_cast %40 : vector<256xf32> to vector<1x256xf32>
    %c0_38 = arith.constant 0 : index
    %c0_39 = arith.constant 0 : index
    %42 = vector.load %arg3[%c0_38, %c0_39] : memref<256x256xf32, #tpu.memory_space<vmem>>, vector<256x256xf32>
    %cst_40 = arith.constant dense<0.000000e+00> : vector<1x256xf32>
    %43 = tpu.matmul %41, %42, %cst_40 {dimension_numbers = #tpu.dot_dimension_numbers<[1], [0], [0], [1], [0, 0, 1, 1], [], []>} : vector<1x256xf32>, vector<256x256xf32>, vector<1x256xf32> -> vector<1x256xf32>
    %cst_41 = arith.constant 3.125000e-02 : f32
    %44 = vector.broadcast %cst_41 : f32 to vector<1x256xf32>
    %45 = arith.mulf %43, %44 : vector<1x256xf32>
    %c0_42 = arith.constant 0 : index
    %c0_43 = arith.constant 0 : index
    %46 = vector.load %arg4[%c0_42, %c0_43] : memref<1x256xf32, #tpu.memory_space<vmem>>, vector<1x256xf32>
    %cst_44 = arith.constant 9.99999974E-6 : f32
    %47 = vector.broadcast %cst_44 : f32 to vector<1x256xf32>
    %48 = arith.addf %45, %47 : vector<1x256xf32>
    %49 = math.rsqrt %48 : vector<1x256xf32>
    %50 = arith.mulf %46, %49 : vector<1x256xf32>
    %51 = vector.broadcast %50 : vector<1x256xf32> to vector<32x256xf32>
    %52 = arith.mulf %38, %51 : vector<32x256xf32>
    %c0_45 = arith.constant 0 : index
    %c0_46 = arith.constant 0 : index
    %53 = vector.load %arg5[%c0_45, %c0_46] : memref<1x256xf32, #tpu.memory_space<vmem>>, vector<1x256xf32>
    %54 = vector.broadcast %53 : vector<1x256xf32> to vector<32x256xf32>
    %55 = arith.addf %52, %54 : vector<32x256xf32>
    %cst_47 = arith.constant 0.000000e+00 : f32
    %56 = vector.broadcast %cst_47 : f32 to vector<32x256xf32>
    %57 = arith.cmpf ogt, %55, %56 : vector<32x256xf32>
    %cst_48 = arith.constant 2.000000e-01 : f32
    %58 = vector.broadcast %cst_48 : f32 to vector<32x256xf32>
    %59 = arith.mulf %58, %55 : vector<32x256xf32>
    %60 = arith.select %57, %55, %59 : vector<32x256xi1>, vector<32x256xf32>
    %61 = arith.truncf %60 : vector<32x256xf32> to vector<32x256xbf16>
    %c0_49 = arith.constant 0 : index
    %c0_50 = arith.constant 0 : index
    %62 = vector.load %arg6[%c0_49, %c0_50] : memref<32x256xbf16, #tpu.memory_space<vmem>>, vector<32x256xbf16>
    tpu.vector_store %arg6[%c0_49, %c0_50], %61 {strides = array<i32>} : memref<32x256xbf16, #tpu.memory_space<vmem>>, vector<32x256xbf16>,
    return
  }
  func.func @transform_0(%arg0: i32) -> (i32, i32) {
    %c0_i32 = arith.constant 0 : i32
    %c0_i32_0 = arith.constant 0 : i32
    %c0_i32_1 = arith.constant 0 : i32
    return %c0_i32, %c0_i32_0 : i32, i32
  }
  func.func @transform_1(%arg0: i32) -> (i32, i32, i32) {
    %c0_i32 = arith.constant 0 : i32
    %c0_i32_0 = arith.constant 0 : i32
    %c0_i32_1 = arith.constant 0 : i32
    %c0_i32_2 = arith.constant 0 : i32
    return %c0_i32, %c0_i32_0, %c0_i32_1 : i32, i32, i32
  }
  func.func @transform_2(%arg0: i32) -> (i32, i32) {
    %c0_i32 = arith.constant 0 : i32
    %c0_i32_0 = arith.constant 0 : i32
    %c0_i32_1 = arith.constant 0 : i32
    return %c0_i32, %c0_i32_0 : i32, i32
  }
  func.func @transform_3(%arg0: i32) -> (i32, i32) {
    %c0_i32 = arith.constant 0 : i32
    %c0_i32_0 = arith.constant 0 : i32
    %c0_i32_1 = arith.constant 0 : i32
    return %c0_i32, %c0_i32_0 : i32, i32
  }
  func.func @transform_4(%arg0: i32) -> (i32, i32) {
    %c0_i32 = arith.constant 0 : i32
    %c0_i32_0 = arith.constant 0 : i32
    %c0_i32_1 = arith.constant 0 : i32
    return %c0_i32, %c0_i32_0 : i32, i32
  }
  func.func @transform_5(%arg0: i32) -> (i32, i32) {
    %c0_i32 = arith.constant 0 : i32
    %c0_i32_0 = arith.constant 0 : i32
    %c0_i32_1 = arith.constant 0 : i32
    return %c0_i32, %c0_i32_0 : i32, i32
  }
}

module attributes {stable_mosaic.version = 11 : i64} {
  func.func @_deconv_bn_lrelu_kernel(%arg0: i32, %arg1: memref<160x192xbf16, #tpu.memory_space<vmem>>, %arg2: memref<3x192x128xbf16, #tpu.memory_space<vmem>>, %arg3: memref<128x128xf32, #tpu.memory_space<vmem>>, %arg4: memref<1x128xf32, #tpu.memory_space<vmem>>, %arg5: memref<1x128xf32, #tpu.memory_space<vmem>>, %arg6: memref<128x128xbf16, #tpu.memory_space<vmem>>, %arg7: memref<128x128xf32, #tpu.memory_space<vmem>>) attributes {dimension_semantics = [#tpu.dimension_semantics<arbitrary>], iteration_bounds = array<i64: 1>, scalar_prefetch = 0 : i64, scratch_operands = 1 : i64, tpu.core_type = #tpu.core_type<tc>, window_params = [{pipeline_mode = #tpu.pipeline_mode<synchronous>, transform_indices = @transform_0, window_bounds = array<i64: 160, 192>}, {pipeline_mode = #tpu.pipeline_mode<synchronous>, transform_indices = @transform_1, window_bounds = array<i64: 3, 192, 128>}, {pipeline_mode = #tpu.pipeline_mode<synchronous>, transform_indices = @transform_2, window_bounds = array<i64: 128, 128>}, {pipeline_mode = #tpu.pipeline_mode<synchronous>, transform_indices = @transform_3, window_bounds = array<i64: 1, 128>}, {pipeline_mode = #tpu.pipeline_mode<synchronous>, transform_indices = @transform_4, window_bounds = array<i64: 1, 128>}, {pipeline_mode = #tpu.pipeline_mode<synchronous>, transform_indices = @transform_5, window_bounds = array<i64: 128, 128>}]} {
    %c0 = arith.constant 0 : index
    %c0_0 = arith.constant 0 : index
    %0 = vector.load %arg1[%c0, %c0_0] : memref<160x192xbf16, #tpu.memory_space<vmem>>, vector<64x192xbf16>
    %c0_1 = arith.constant 0 : index
    %c0_2 = arith.constant 0 : index
    %c0_3 = arith.constant 0 : index
    %1 = vector.load %arg2[%c0_1, %c0_2, %c0_3] : memref<3x192x128xbf16, #tpu.memory_space<vmem>>, vector<1x192x128xbf16>
    %2 = vector.shape_cast %1 : vector<1x192x128xbf16> to vector<192x128xbf16>
    %cst = arith.constant dense<0.000000e+00> : vector<64x128xf32>
    %3 = tpu.matmul %0, %2, %cst {dimension_numbers = #tpu.dot_dimension_numbers<[1], [0], [0], [1], [0, 0, 1, 1], [], []>} : vector<64x192xbf16>, vector<192x128xbf16>, vector<64x128xf32> -> vector<64x128xf32>
    %c8 = arith.constant 8 : index
    %c0_4 = arith.constant 0 : index
    %4 = vector.load %arg1[%c8, %c0_4] : memref<160x192xbf16, #tpu.memory_space<vmem>>, vector<64x192xbf16>
    %c1 = arith.constant 1 : index
    %c0_5 = arith.constant 0 : index
    %c0_6 = arith.constant 0 : index
    %5 = vector.load %arg2[%c1, %c0_5, %c0_6] : memref<3x192x128xbf16, #tpu.memory_space<vmem>>, vector<1x192x128xbf16>
    %6 = vector.shape_cast %5 : vector<1x192x128xbf16> to vector<192x128xbf16>
    %cst_7 = arith.constant dense<0.000000e+00> : vector<64x128xf32>
    %7 = tpu.matmul %4, %6, %cst_7 {dimension_numbers = #tpu.dot_dimension_numbers<[1], [0], [0], [1], [0, 0, 1, 1], [], []>} : vector<64x192xbf16>, vector<192x128xbf16>, vector<64x128xf32> -> vector<64x128xf32>
    %8 = arith.addf %3, %7 : vector<64x128xf32>
    %c16 = arith.constant 16 : index
    %c0_8 = arith.constant 0 : index
    %9 = vector.load %arg1[%c16, %c0_8] : memref<160x192xbf16, #tpu.memory_space<vmem>>, vector<64x192xbf16>
    %c2 = arith.constant 2 : index
    %c0_9 = arith.constant 0 : index
    %c0_10 = arith.constant 0 : index
    %10 = vector.load %arg2[%c2, %c0_9, %c0_10] : memref<3x192x128xbf16, #tpu.memory_space<vmem>>, vector<1x192x128xbf16>
    %11 = vector.shape_cast %10 : vector<1x192x128xbf16> to vector<192x128xbf16>
    %cst_11 = arith.constant dense<0.000000e+00> : vector<64x128xf32>
    %12 = tpu.matmul %9, %11, %cst_11 {dimension_numbers = #tpu.dot_dimension_numbers<[1], [0], [0], [1], [0, 0, 1, 1], [], []>} : vector<64x192xbf16>, vector<192x128xbf16>, vector<64x128xf32> -> vector<64x128xf32>
    %13 = arith.addf %8, %12 : vector<64x128xf32>
    %c0_12 = arith.constant 0 : index
    %c0_13 = arith.constant 0 : index
    %14 = vector.load %arg7[%c0_12, %c0_13] : memref<128x128xf32, #tpu.memory_space<vmem>>, vector<64x128xf32>
    tpu.vector_store %arg7[%c0_12, %c0_13], %13 {strides = array<i32>} : memref<128x128xf32, #tpu.memory_space<vmem>>, vector<64x128xf32>,
    %c80 = arith.constant 80 : index
    %c0_14 = arith.constant 0 : index
    %15 = vector.load %arg1[%c80, %c0_14] : memref<160x192xbf16, #tpu.memory_space<vmem>>, vector<64x192xbf16>
    %c0_15 = arith.constant 0 : index
    %c0_16 = arith.constant 0 : index
    %c0_17 = arith.constant 0 : index
    %16 = vector.load %arg2[%c0_15, %c0_16, %c0_17] : memref<3x192x128xbf16, #tpu.memory_space<vmem>>, vector<1x192x128xbf16>
    %17 = vector.shape_cast %16 : vector<1x192x128xbf16> to vector<192x128xbf16>
    %cst_18 = arith.constant dense<0.000000e+00> : vector<64x128xf32>
    %18 = tpu.matmul %15, %17, %cst_18 {dimension_numbers = #tpu.dot_dimension_numbers<[1], [0], [0], [1], [0, 0, 1, 1], [], []>} : vector<64x192xbf16>, vector<192x128xbf16>, vector<64x128xf32> -> vector<64x128xf32>
    %c88 = arith.constant 88 : index
    %c0_19 = arith.constant 0 : index
    %19 = vector.load %arg1[%c88, %c0_19] : memref<160x192xbf16, #tpu.memory_space<vmem>>, vector<64x192xbf16>
    %c1_20 = arith.constant 1 : index
    %c0_21 = arith.constant 0 : index
    %c0_22 = arith.constant 0 : index
    %20 = vector.load %arg2[%c1_20, %c0_21, %c0_22] : memref<3x192x128xbf16, #tpu.memory_space<vmem>>, vector<1x192x128xbf16>
    %21 = vector.shape_cast %20 : vector<1x192x128xbf16> to vector<192x128xbf16>
    %cst_23 = arith.constant dense<0.000000e+00> : vector<64x128xf32>
    %22 = tpu.matmul %19, %21, %cst_23 {dimension_numbers = #tpu.dot_dimension_numbers<[1], [0], [0], [1], [0, 0, 1, 1], [], []>} : vector<64x192xbf16>, vector<192x128xbf16>, vector<64x128xf32> -> vector<64x128xf32>
    %23 = arith.addf %18, %22 : vector<64x128xf32>
    %c96 = arith.constant 96 : index
    %c0_24 = arith.constant 0 : index
    %24 = vector.load %arg1[%c96, %c0_24] : memref<160x192xbf16, #tpu.memory_space<vmem>>, vector<64x192xbf16>
    %c2_25 = arith.constant 2 : index
    %c0_26 = arith.constant 0 : index
    %c0_27 = arith.constant 0 : index
    %25 = vector.load %arg2[%c2_25, %c0_26, %c0_27] : memref<3x192x128xbf16, #tpu.memory_space<vmem>>, vector<1x192x128xbf16>
    %26 = vector.shape_cast %25 : vector<1x192x128xbf16> to vector<192x128xbf16>
    %cst_28 = arith.constant dense<0.000000e+00> : vector<64x128xf32>
    %27 = tpu.matmul %24, %26, %cst_28 {dimension_numbers = #tpu.dot_dimension_numbers<[1], [0], [0], [1], [0, 0, 1, 1], [], []>} : vector<64x192xbf16>, vector<192x128xbf16>, vector<64x128xf32> -> vector<64x128xf32>
    %28 = arith.addf %23, %27 : vector<64x128xf32>
    %c64 = arith.constant 64 : index
    %c0_29 = arith.constant 0 : index
    %29 = vector.load %arg7[%c64, %c0_29] : memref<128x128xf32, #tpu.memory_space<vmem>>, vector<64x128xf32>
    tpu.vector_store %arg7[%c64, %c0_29], %28 {strides = array<i32>} : memref<128x128xf32, #tpu.memory_space<vmem>>, vector<64x128xf32>,
    %c0_30 = arith.constant 0 : index
    %c0_31 = arith.constant 0 : index
    %30 = vector.load %arg7[%c0_30, %c0_31] : memref<128x128xf32, #tpu.memory_space<vmem>>, vector<128x128xf32>
    %cst_32 = arith.constant dense<0.000000e+00> : vector<128xf32>
    %31 = vector.multi_reduction <add>, %30, %cst_32 [0] : vector<128x128xf32> to vector<128xf32>
    %32 = vector.shape_cast %31 : vector<128xf32> to vector<1x128xf32>
    %c0_33 = arith.constant 0 : index
    %c0_34 = arith.constant 0 : index
    %33 = vector.load %arg3[%c0_33, %c0_34] : memref<128x128xf32, #tpu.memory_space<vmem>>, vector<128x128xf32>
    %cst_35 = arith.constant dense<0.000000e+00> : vector<1x128xf32>
    %34 = tpu.matmul %32, %33, %cst_35 {dimension_numbers = #tpu.dot_dimension_numbers<[1], [0], [0], [1], [0, 0, 1, 1], [], []>} : vector<1x128xf32>, vector<128x128xf32>, vector<1x128xf32> -> vector<1x128xf32>
    %cst_36 = arith.constant 7.812500e-03 : f32
    %35 = vector.broadcast %cst_36 : f32 to vector<1x128xf32>
    %36 = arith.mulf %34, %35 : vector<1x128xf32>
    %37 = vector.broadcast %36 : vector<1x128xf32> to vector<128x128xf32>
    %38 = arith.subf %30, %37 : vector<128x128xf32>
    %39 = arith.mulf %38, %38 : vector<128x128xf32>
    %cst_37 = arith.constant dense<0.000000e+00> : vector<128xf32>
    %40 = vector.multi_reduction <add>, %39, %cst_37 [0] : vector<128x128xf32> to vector<128xf32>
    %41 = vector.shape_cast %40 : vector<128xf32> to vector<1x128xf32>
    %c0_38 = arith.constant 0 : index
    %c0_39 = arith.constant 0 : index
    %42 = vector.load %arg3[%c0_38, %c0_39] : memref<128x128xf32, #tpu.memory_space<vmem>>, vector<128x128xf32>
    %cst_40 = arith.constant dense<0.000000e+00> : vector<1x128xf32>
    %43 = tpu.matmul %41, %42, %cst_40 {dimension_numbers = #tpu.dot_dimension_numbers<[1], [0], [0], [1], [0, 0, 1, 1], [], []>} : vector<1x128xf32>, vector<128x128xf32>, vector<1x128xf32> -> vector<1x128xf32>
    %cst_41 = arith.constant 7.812500e-03 : f32
    %44 = vector.broadcast %cst_41 : f32 to vector<1x128xf32>
    %45 = arith.mulf %43, %44 : vector<1x128xf32>
    %c0_42 = arith.constant 0 : index
    %c0_43 = arith.constant 0 : index
    %46 = vector.load %arg4[%c0_42, %c0_43] : memref<1x128xf32, #tpu.memory_space<vmem>>, vector<1x128xf32>
    %cst_44 = arith.constant 9.99999974E-6 : f32
    %47 = vector.broadcast %cst_44 : f32 to vector<1x128xf32>
    %48 = arith.addf %45, %47 : vector<1x128xf32>
    %49 = math.rsqrt %48 : vector<1x128xf32>
    %50 = arith.mulf %46, %49 : vector<1x128xf32>
    %51 = vector.broadcast %50 : vector<1x128xf32> to vector<128x128xf32>
    %52 = arith.mulf %38, %51 : vector<128x128xf32>
    %c0_45 = arith.constant 0 : index
    %c0_46 = arith.constant 0 : index
    %53 = vector.load %arg5[%c0_45, %c0_46] : memref<1x128xf32, #tpu.memory_space<vmem>>, vector<1x128xf32>
    %54 = vector.broadcast %53 : vector<1x128xf32> to vector<128x128xf32>
    %55 = arith.addf %52, %54 : vector<128x128xf32>
    %cst_47 = arith.constant 0.000000e+00 : f32
    %56 = vector.broadcast %cst_47 : f32 to vector<128x128xf32>
    %57 = arith.cmpf ogt, %55, %56 : vector<128x128xf32>
    %cst_48 = arith.constant 2.000000e-01 : f32
    %58 = vector.broadcast %cst_48 : f32 to vector<128x128xf32>
    %59 = arith.mulf %58, %55 : vector<128x128xf32>
    %60 = arith.select %57, %55, %59 : vector<128x128xi1>, vector<128x128xf32>
    %61 = arith.truncf %60 : vector<128x128xf32> to vector<128x128xbf16>
    %c0_49 = arith.constant 0 : index
    %c0_50 = arith.constant 0 : index
    %62 = vector.load %arg6[%c0_49, %c0_50] : memref<128x128xbf16, #tpu.memory_space<vmem>>, vector<128x128xbf16>
    tpu.vector_store %arg6[%c0_49, %c0_50], %61 {strides = array<i32>} : memref<128x128xbf16, #tpu.memory_space<vmem>>, vector<128x128xbf16>,
    return
  }
  func.func @transform_0(%arg0: i32) -> (i32, i32) {
    %c0_i32 = arith.constant 0 : i32
    %c0_i32_0 = arith.constant 0 : i32
    %c0_i32_1 = arith.constant 0 : i32
    return %c0_i32, %c0_i32_0 : i32, i32
  }
  func.func @transform_1(%arg0: i32) -> (i32, i32, i32) {
    %c0_i32 = arith.constant 0 : i32
    %c0_i32_0 = arith.constant 0 : i32
    %c0_i32_1 = arith.constant 0 : i32
    %c0_i32_2 = arith.constant 0 : i32
    return %c0_i32, %c0_i32_0, %c0_i32_1 : i32, i32, i32
  }
  func.func @transform_2(%arg0: i32) -> (i32, i32) {
    %c0_i32 = arith.constant 0 : i32
    %c0_i32_0 = arith.constant 0 : i32
    %c0_i32_1 = arith.constant 0 : i32
    return %c0_i32, %c0_i32_0 : i32, i32
  }
  func.func @transform_3(%arg0: i32) -> (i32, i32) {
    %c0_i32 = arith.constant 0 : i32
    %c0_i32_0 = arith.constant 0 : i32
    %c0_i32_1 = arith.constant 0 : i32
    return %c0_i32, %c0_i32_0 : i32, i32
  }
  func.func @transform_4(%arg0: i32) -> (i32, i32) {
    %c0_i32 = arith.constant 0 : i32
    %c0_i32_0 = arith.constant 0 : i32
    %c0_i32_1 = arith.constant 0 : i32
    return %c0_i32, %c0_i32_0 : i32, i32
  }
  func.func @transform_5(%arg0: i32) -> (i32, i32) {
    %c0_i32 = arith.constant 0 : i32
    %c0_i32_0 = arith.constant 0 : i32
    %c0_i32_1 = arith.constant 0 : i32
    return %c0_i32, %c0_i32_0 : i32, i32
  }
}

module attributes {stable_mosaic.version = 11 : i64} {
  func.func @_deconv_bn_lrelu_kernel(%arg0: i32, %arg1: memref<576x96xbf16, #tpu.memory_space<vmem>>, %arg2: memref<3x96x128xbf16, #tpu.memory_space<vmem>>, %arg3: memref<128x128xf32, #tpu.memory_space<vmem>>, %arg4: memref<1x128xf32, #tpu.memory_space<vmem>>, %arg5: memref<1x128xf32, #tpu.memory_space<vmem>>, %arg6: memref<512x128xbf16, #tpu.memory_space<vmem>>, %arg7: memref<512x128xf32, #tpu.memory_space<vmem>>) attributes {dimension_semantics = [#tpu.dimension_semantics<arbitrary>], iteration_bounds = array<i64: 1>, scalar_prefetch = 0 : i64, scratch_operands = 1 : i64, tpu.core_type = #tpu.core_type<tc>, window_params = [{pipeline_mode = #tpu.pipeline_mode<synchronous>, transform_indices = @transform_0, window_bounds = array<i64: 576, 96>}, {pipeline_mode = #tpu.pipeline_mode<synchronous>, transform_indices = @transform_1, window_bounds = array<i64: 3, 96, 128>}, {pipeline_mode = #tpu.pipeline_mode<synchronous>, transform_indices = @transform_2, window_bounds = array<i64: 128, 128>}, {pipeline_mode = #tpu.pipeline_mode<synchronous>, transform_indices = @transform_3, window_bounds = array<i64: 1, 128>}, {pipeline_mode = #tpu.pipeline_mode<synchronous>, transform_indices = @transform_4, window_bounds = array<i64: 1, 128>}, {pipeline_mode = #tpu.pipeline_mode<synchronous>, transform_indices = @transform_5, window_bounds = array<i64: 512, 128>}]} {
    %c0 = arith.constant 0 : index
    %c0_0 = arith.constant 0 : index
    %0 = vector.load %arg1[%c0, %c0_0] : memref<576x96xbf16, #tpu.memory_space<vmem>>, vector<256x96xbf16>
    %c0_1 = arith.constant 0 : index
    %c0_2 = arith.constant 0 : index
    %c0_3 = arith.constant 0 : index
    %1 = vector.load %arg2[%c0_1, %c0_2, %c0_3] : memref<3x96x128xbf16, #tpu.memory_space<vmem>>, vector<1x96x128xbf16>
    %2 = vector.shape_cast %1 : vector<1x96x128xbf16> to vector<96x128xbf16>
    %cst = arith.constant dense<0.000000e+00> : vector<256x128xf32>
    %3 = tpu.matmul %0, %2, %cst {dimension_numbers = #tpu.dot_dimension_numbers<[1], [0], [0], [1], [0, 0, 1, 1], [], []>} : vector<256x96xbf16>, vector<96x128xbf16>, vector<256x128xf32> -> vector<256x128xf32>
    %c16 = arith.constant 16 : index
    %c0_4 = arith.constant 0 : index
    %4 = vector.load %arg1[%c16, %c0_4] : memref<576x96xbf16, #tpu.memory_space<vmem>>, vector<256x96xbf16>
    %c1 = arith.constant 1 : index
    %c0_5 = arith.constant 0 : index
    %c0_6 = arith.constant 0 : index
    %5 = vector.load %arg2[%c1, %c0_5, %c0_6] : memref<3x96x128xbf16, #tpu.memory_space<vmem>>, vector<1x96x128xbf16>
    %6 = vector.shape_cast %5 : vector<1x96x128xbf16> to vector<96x128xbf16>
    %cst_7 = arith.constant dense<0.000000e+00> : vector<256x128xf32>
    %7 = tpu.matmul %4, %6, %cst_7 {dimension_numbers = #tpu.dot_dimension_numbers<[1], [0], [0], [1], [0, 0, 1, 1], [], []>} : vector<256x96xbf16>, vector<96x128xbf16>, vector<256x128xf32> -> vector<256x128xf32>
    %8 = arith.addf %3, %7 : vector<256x128xf32>
    %c32 = arith.constant 32 : index
    %c0_8 = arith.constant 0 : index
    %9 = vector.load %arg1[%c32, %c0_8] : memref<576x96xbf16, #tpu.memory_space<vmem>>, vector<256x96xbf16>
    %c2 = arith.constant 2 : index
    %c0_9 = arith.constant 0 : index
    %c0_10 = arith.constant 0 : index
    %10 = vector.load %arg2[%c2, %c0_9, %c0_10] : memref<3x96x128xbf16, #tpu.memory_space<vmem>>, vector<1x96x128xbf16>
    %11 = vector.shape_cast %10 : vector<1x96x128xbf16> to vector<96x128xbf16>
    %cst_11 = arith.constant dense<0.000000e+00> : vector<256x128xf32>
    %12 = tpu.matmul %9, %11, %cst_11 {dimension_numbers = #tpu.dot_dimension_numbers<[1], [0], [0], [1], [0, 0, 1, 1], [], []>} : vector<256x96xbf16>, vector<96x128xbf16>, vector<256x128xf32> -> vector<256x128xf32>
    %13 = arith.addf %8, %12 : vector<256x128xf32>
    %c0_12 = arith.constant 0 : index
    %c0_13 = arith.constant 0 : index
    %14 = vector.load %arg7[%c0_12, %c0_13] : memref<512x128xf32, #tpu.memory_space<vmem>>, vector<256x128xf32>
    tpu.vector_store %arg7[%c0_12, %c0_13], %13 {strides = array<i32>} : memref<512x128xf32, #tpu.memory_space<vmem>>, vector<256x128xf32>,
    %c288 = arith.constant 288 : index
    %c0_14 = arith.constant 0 : index
    %15 = vector.load %arg1[%c288, %c0_14] : memref<576x96xbf16, #tpu.memory_space<vmem>>, vector<256x96xbf16>
    %c0_15 = arith.constant 0 : index
    %c0_16 = arith.constant 0 : index
    %c0_17 = arith.constant 0 : index
    %16 = vector.load %arg2[%c0_15, %c0_16, %c0_17] : memref<3x96x128xbf16, #tpu.memory_space<vmem>>, vector<1x96x128xbf16>
    %17 = vector.shape_cast %16 : vector<1x96x128xbf16> to vector<96x128xbf16>
    %cst_18 = arith.constant dense<0.000000e+00> : vector<256x128xf32>
    %18 = tpu.matmul %15, %17, %cst_18 {dimension_numbers = #tpu.dot_dimension_numbers<[1], [0], [0], [1], [0, 0, 1, 1], [], []>} : vector<256x96xbf16>, vector<96x128xbf16>, vector<256x128xf32> -> vector<256x128xf32>
    %c304 = arith.constant 304 : index
    %c0_19 = arith.constant 0 : index
    %19 = vector.load %arg1[%c304, %c0_19] : memref<576x96xbf16, #tpu.memory_space<vmem>>, vector<256x96xbf16>
    %c1_20 = arith.constant 1 : index
    %c0_21 = arith.constant 0 : index
    %c0_22 = arith.constant 0 : index
    %20 = vector.load %arg2[%c1_20, %c0_21, %c0_22] : memref<3x96x128xbf16, #tpu.memory_space<vmem>>, vector<1x96x128xbf16>
    %21 = vector.shape_cast %20 : vector<1x96x128xbf16> to vector<96x128xbf16>
    %cst_23 = arith.constant dense<0.000000e+00> : vector<256x128xf32>
    %22 = tpu.matmul %19, %21, %cst_23 {dimension_numbers = #tpu.dot_dimension_numbers<[1], [0], [0], [1], [0, 0, 1, 1], [], []>} : vector<256x96xbf16>, vector<96x128xbf16>, vector<256x128xf32> -> vector<256x128xf32>
    %23 = arith.addf %18, %22 : vector<256x128xf32>
    %c320 = arith.constant 320 : index
    %c0_24 = arith.constant 0 : index
    %24 = vector.load %arg1[%c320, %c0_24] : memref<576x96xbf16, #tpu.memory_space<vmem>>, vector<256x96xbf16>
    %c2_25 = arith.constant 2 : index
    %c0_26 = arith.constant 0 : index
    %c0_27 = arith.constant 0 : index
    %25 = vector.load %arg2[%c2_25, %c0_26, %c0_27] : memref<3x96x128xbf16, #tpu.memory_space<vmem>>, vector<1x96x128xbf16>
    %26 = vector.shape_cast %25 : vector<1x96x128xbf16> to vector<96x128xbf16>
    %cst_28 = arith.constant dense<0.000000e+00> : vector<256x128xf32>
    %27 = tpu.matmul %24, %26, %cst_28 {dimension_numbers = #tpu.dot_dimension_numbers<[1], [0], [0], [1], [0, 0, 1, 1], [], []>} : vector<256x96xbf16>, vector<96x128xbf16>, vector<256x128xf32> -> vector<256x128xf32>
    %28 = arith.addf %23, %27 : vector<256x128xf32>
    %c256 = arith.constant 256 : index
    %c0_29 = arith.constant 0 : index
    %29 = vector.load %arg7[%c256, %c0_29] : memref<512x128xf32, #tpu.memory_space<vmem>>, vector<256x128xf32>
    tpu.vector_store %arg7[%c256, %c0_29], %28 {strides = array<i32>} : memref<512x128xf32, #tpu.memory_space<vmem>>, vector<256x128xf32>,
    %c0_30 = arith.constant 0 : index
    %c0_31 = arith.constant 0 : index
    %30 = vector.load %arg7[%c0_30, %c0_31] : memref<512x128xf32, #tpu.memory_space<vmem>>, vector<512x128xf32>
    %cst_32 = arith.constant dense<0.000000e+00> : vector<128xf32>
    %31 = vector.multi_reduction <add>, %30, %cst_32 [0] : vector<512x128xf32> to vector<128xf32>
    %32 = vector.shape_cast %31 : vector<128xf32> to vector<1x128xf32>
    %c0_33 = arith.constant 0 : index
    %c0_34 = arith.constant 0 : index
    %33 = vector.load %arg3[%c0_33, %c0_34] : memref<128x128xf32, #tpu.memory_space<vmem>>, vector<128x128xf32>
    %cst_35 = arith.constant dense<0.000000e+00> : vector<1x128xf32>
    %34 = tpu.matmul %32, %33, %cst_35 {dimension_numbers = #tpu.dot_dimension_numbers<[1], [0], [0], [1], [0, 0, 1, 1], [], []>} : vector<1x128xf32>, vector<128x128xf32>, vector<1x128xf32> -> vector<1x128xf32>
    %cst_36 = arith.constant 0.001953125 : f32
    %35 = vector.broadcast %cst_36 : f32 to vector<1x128xf32>
    %36 = arith.mulf %34, %35 : vector<1x128xf32>
    %37 = vector.broadcast %36 : vector<1x128xf32> to vector<512x128xf32>
    %38 = arith.subf %30, %37 : vector<512x128xf32>
    %39 = arith.mulf %38, %38 : vector<512x128xf32>
    %cst_37 = arith.constant dense<0.000000e+00> : vector<128xf32>
    %40 = vector.multi_reduction <add>, %39, %cst_37 [0] : vector<512x128xf32> to vector<128xf32>
    %41 = vector.shape_cast %40 : vector<128xf32> to vector<1x128xf32>
    %c0_38 = arith.constant 0 : index
    %c0_39 = arith.constant 0 : index
    %42 = vector.load %arg3[%c0_38, %c0_39] : memref<128x128xf32, #tpu.memory_space<vmem>>, vector<128x128xf32>
    %cst_40 = arith.constant dense<0.000000e+00> : vector<1x128xf32>
    %43 = tpu.matmul %41, %42, %cst_40 {dimension_numbers = #tpu.dot_dimension_numbers<[1], [0], [0], [1], [0, 0, 1, 1], [], []>} : vector<1x128xf32>, vector<128x128xf32>, vector<1x128xf32> -> vector<1x128xf32>
    %cst_41 = arith.constant 0.001953125 : f32
    %44 = vector.broadcast %cst_41 : f32 to vector<1x128xf32>
    %45 = arith.mulf %43, %44 : vector<1x128xf32>
    %c0_42 = arith.constant 0 : index
    %c0_43 = arith.constant 0 : index
    %46 = vector.load %arg4[%c0_42, %c0_43] : memref<1x128xf32, #tpu.memory_space<vmem>>, vector<1x128xf32>
    %cst_44 = arith.constant 9.99999974E-6 : f32
    %47 = vector.broadcast %cst_44 : f32 to vector<1x128xf32>
    %48 = arith.addf %45, %47 : vector<1x128xf32>
    %49 = math.rsqrt %48 : vector<1x128xf32>
    %50 = arith.mulf %46, %49 : vector<1x128xf32>
    %51 = vector.broadcast %50 : vector<1x128xf32> to vector<512x128xf32>
    %52 = arith.mulf %38, %51 : vector<512x128xf32>
    %c0_45 = arith.constant 0 : index
    %c0_46 = arith.constant 0 : index
    %53 = vector.load %arg5[%c0_45, %c0_46] : memref<1x128xf32, #tpu.memory_space<vmem>>, vector<1x128xf32>
    %54 = vector.broadcast %53 : vector<1x128xf32> to vector<512x128xf32>
    %55 = arith.addf %52, %54 : vector<512x128xf32>
    %cst_47 = arith.constant 0.000000e+00 : f32
    %56 = vector.broadcast %cst_47 : f32 to vector<512x128xf32>
    %57 = arith.cmpf ogt, %55, %56 : vector<512x128xf32>
    %cst_48 = arith.constant 2.000000e-01 : f32
    %58 = vector.broadcast %cst_48 : f32 to vector<512x128xf32>
    %59 = arith.mulf %58, %55 : vector<512x128xf32>
    %60 = arith.select %57, %55, %59 : vector<512x128xi1>, vector<512x128xf32>
    %61 = arith.truncf %60 : vector<512x128xf32> to vector<512x128xbf16>
    %c0_49 = arith.constant 0 : index
    %c0_50 = arith.constant 0 : index
    %62 = vector.load %arg6[%c0_49, %c0_50] : memref<512x128xbf16, #tpu.memory_space<vmem>>, vector<512x128xbf16>
    tpu.vector_store %arg6[%c0_49, %c0_50], %61 {strides = array<i32>} : memref<512x128xbf16, #tpu.memory_space<vmem>>, vector<512x128xbf16>,
    return
  }
  func.func @transform_0(%arg0: i32) -> (i32, i32) {
    %c0_i32 = arith.constant 0 : i32
    %c0_i32_0 = arith.constant 0 : i32
    %c0_i32_1 = arith.constant 0 : i32
    return %c0_i32, %c0_i32_0 : i32, i32
  }
  func.func @transform_1(%arg0: i32) -> (i32, i32, i32) {
    %c0_i32 = arith.constant 0 : i32
    %c0_i32_0 = arith.constant 0 : i32
    %c0_i32_1 = arith.constant 0 : i32
    %c0_i32_2 = arith.constant 0 : i32
    return %c0_i32, %c0_i32_0, %c0_i32_1 : i32, i32, i32
  }
  func.func @transform_2(%arg0: i32) -> (i32, i32) {
    %c0_i32 = arith.constant 0 : i32
    %c0_i32_0 = arith.constant 0 : i32
    %c0_i32_1 = arith.constant 0 : i32
    return %c0_i32, %c0_i32_0 : i32, i32
  }
  func.func @transform_3(%arg0: i32) -> (i32, i32) {
    %c0_i32 = arith.constant 0 : i32
    %c0_i32_0 = arith.constant 0 : i32
    %c0_i32_1 = arith.constant 0 : i32
    return %c0_i32, %c0_i32_0 : i32, i32
  }
  func.func @transform_4(%arg0: i32) -> (i32, i32) {
    %c0_i32 = arith.constant 0 : i32
    %c0_i32_0 = arith.constant 0 : i32
    %c0_i32_1 = arith.constant 0 : i32
    return %c0_i32, %c0_i32_0 : i32, i32
  }
  func.func @transform_5(%arg0: i32) -> (i32, i32) {
    %c0_i32 = arith.constant 0 : i32
    %c0_i32_0 = arith.constant 0 : i32
    %c0_i32_1 = arith.constant 0 : i32
    return %c0_i32, %c0_i32_0 : i32, i32
  }
}

module attributes {stable_mosaic.version = 11 : i64} {
  func.func @_deconv_bias_tanh_kernel(%arg0: i32, %arg1: i32, %arg2: memref<2176x48xbf16, #tpu.memory_space<vmem>>, %arg3: memref<3x48x128xbf16, #tpu.memory_space<vmem>>, %arg4: memref<1x128xf32, #tpu.memory_space<vmem>>, %arg5: memref<256x128xf32, #tpu.memory_space<vmem>>) attributes {dimension_semantics = [#tpu.dimension_semantics<parallel>, #tpu.dimension_semantics<parallel>], iteration_bounds = array<i64: 2, 4>, scalar_prefetch = 0 : i64, scratch_operands = 0 : i64, tpu.core_type = #tpu.core_type<tc>, window_params = [{pipeline_mode = #tpu.pipeline_mode<synchronous>, transform_indices = @transform_0, window_bounds = array<i64: 2176, 48>}, {pipeline_mode = #tpu.pipeline_mode<synchronous>, transform_indices = @transform_1, window_bounds = array<i64: 3, 48, 128>}, {pipeline_mode = #tpu.pipeline_mode<synchronous>, transform_indices = @transform_2, window_bounds = array<i64: 1, 128>}, {transform_indices = @transform_3, window_bounds = array<i64: 256, 128>}]} {
    %c1088_i32 = arith.constant 1088 : i32
    %0 = arith.muli %arg0, %c1088_i32 : i32
    %c256_i32 = arith.constant 256 : i32
    %1 = arith.muli %arg1, %c256_i32 : i32
    %2 = arith.addi %0, %1 : i32
    %3 = tpu.assume_multiple %2, 8 : i32
    %c32_i32 = arith.constant 32 : i32
    %4 = arith.addi %2, %c32_i32 : i32
    %5 = tpu.assume_multiple %4, 8 : i32
    %c64_i32 = arith.constant 64 : i32
    %6 = arith.addi %2, %c64_i32 : i32
    %7 = tpu.assume_multiple %6, 8 : i32
    %8 = arith.index_cast %3 : i32 to index
    %c0 = arith.constant 0 : index
    %9 = vector.load %arg2[%8, %c0] : memref<2176x48xbf16, #tpu.memory_space<vmem>>, vector<256x48xbf16>
    %c0_0 = arith.constant 0 : index
    %c0_1 = arith.constant 0 : index
    %c0_2 = arith.constant 0 : index
    %10 = vector.load %arg3[%c0_0, %c0_1, %c0_2] : memref<3x48x128xbf16, #tpu.memory_space<vmem>>, vector<1x48x128xbf16>
    %11 = vector.shape_cast %10 : vector<1x48x128xbf16> to vector<48x128xbf16>
    %cst = arith.constant dense<0.000000e+00> : vector<256x128xf32>
    %12 = tpu.matmul %9, %11, %cst {dimension_numbers = #tpu.dot_dimension_numbers<[1], [0], [0], [1], [0, 0, 1, 1], [], []>} : vector<256x48xbf16>, vector<48x128xbf16>, vector<256x128xf32> -> vector<256x128xf32>
    %13 = arith.index_cast %5 : i32 to index
    %c0_3 = arith.constant 0 : index
    %14 = vector.load %arg2[%13, %c0_3] : memref<2176x48xbf16, #tpu.memory_space<vmem>>, vector<256x48xbf16>
    %c1 = arith.constant 1 : index
    %c0_4 = arith.constant 0 : index
    %c0_5 = arith.constant 0 : index
    %15 = vector.load %arg3[%c1, %c0_4, %c0_5] : memref<3x48x128xbf16, #tpu.memory_space<vmem>>, vector<1x48x128xbf16>
    %16 = vector.shape_cast %15 : vector<1x48x128xbf16> to vector<48x128xbf16>
    %cst_6 = arith.constant dense<0.000000e+00> : vector<256x128xf32>
    %17 = tpu.matmul %14, %16, %cst_6 {dimension_numbers = #tpu.dot_dimension_numbers<[1], [0], [0], [1], [0, 0, 1, 1], [], []>} : vector<256x48xbf16>, vector<48x128xbf16>, vector<256x128xf32> -> vector<256x128xf32>
    %18 = arith.addf %12, %17 : vector<256x128xf32>
    %19 = arith.index_cast %7 : i32 to index
    %c0_7 = arith.constant 0 : index
    %20 = vector.load %arg2[%19, %c0_7] : memref<2176x48xbf16, #tpu.memory_space<vmem>>, vector<256x48xbf16>
    %c2 = arith.constant 2 : index
    %c0_8 = arith.constant 0 : index
    %c0_9 = arith.constant 0 : index
    %21 = vector.load %arg3[%c2, %c0_8, %c0_9] : memref<3x48x128xbf16, #tpu.memory_space<vmem>>, vector<1x48x128xbf16>
    %22 = vector.shape_cast %21 : vector<1x48x128xbf16> to vector<48x128xbf16>
    %cst_10 = arith.constant dense<0.000000e+00> : vector<256x128xf32>
    %23 = tpu.matmul %20, %22, %cst_10 {dimension_numbers = #tpu.dot_dimension_numbers<[1], [0], [0], [1], [0, 0, 1, 1], [], []>} : vector<256x48xbf16>, vector<48x128xbf16>, vector<256x128xf32> -> vector<256x128xf32>
    %24 = arith.addf %18, %23 : vector<256x128xf32>
    %c0_11 = arith.constant 0 : index
    %c0_12 = arith.constant 0 : index
    %25 = vector.load %arg4[%c0_11, %c0_12] : memref<1x128xf32, #tpu.memory_space<vmem>>, vector<1x128xf32>
    %26 = vector.broadcast %25 : vector<1x128xf32> to vector<256x128xf32>
    %27 = arith.addf %24, %26 : vector<256x128xf32>
    %28 = math.tanh %27 : vector<256x128xf32>
    %c0_13 = arith.constant 0 : index
    %c0_14 = arith.constant 0 : index
    %29 = vector.load %arg5[%c0_13, %c0_14] : memref<256x128xf32, #tpu.memory_space<vmem>>, vector<256x128xf32>
    tpu.vector_store %arg5[%c0_13, %c0_14], %28 {strides = array<i32>} : memref<256x128xf32, #tpu.memory_space<vmem>>, vector<256x128xf32>,
    return
  }
  func.func @transform_0(%arg0: i32, %arg1: i32) -> (i32, i32) {
    %c0_i32 = arith.constant 0 : i32
    %c0_i32_0 = arith.constant 0 : i32
    %c0_i32_1 = arith.constant 0 : i32
    return %c0_i32, %c0_i32_0 : i32, i32
  }
  func.func @transform_1(%arg0: i32, %arg1: i32) -> (i32, i32, i32) {
    %c0_i32 = arith.constant 0 : i32
    %c0_i32_0 = arith.constant 0 : i32
    %c0_i32_1 = arith.constant 0 : i32
    %c0_i32_2 = arith.constant 0 : i32
    return %c0_i32, %c0_i32_0, %c0_i32_1 : i32, i32, i32
  }
  func.func @transform_2(%arg0: i32, %arg1: i32) -> (i32, i32) {
    %c0_i32 = arith.constant 0 : i32
    %c0_i32_0 = arith.constant 0 : i32
    %c0_i32_1 = arith.constant 0 : i32
    return %c0_i32, %c0_i32_0 : i32, i32
  }
  func.func @transform_3(%arg0: i32, %arg1: i32) -> (i32, i32) {
    %c4_i32 = arith.constant 4 : i32
    %0 = arith.muli %arg0, %c4_i32 : i32
    %1 = arith.addi %0, %arg1 : i32
    %c0_i32 = arith.constant 0 : i32
    %c0_i32_0 = arith.constant 0 : i32
    return %1, %c0_i32 : i32, i32
  }
}

</mosaic_0001>

<bundles_post_ra>
// kernel: generator_forward.5
= control target key start
LH: loop header
LB: loop body
LE: loop exit
PB: predicated region body
PF: predicated region fallthrough
CT: control target
= control target key end

     0   :  { %9 = vsyncpa [#allocation3], 0  ;;  %s2104_s0 = inlined_call_operand.vmem [shape: bf16[2,100], index: 0, kind: input, shape index: {}]   ;;  %s2105_s1 = inlined_call_operand.hbm [shape: bf16[100,2048], index: 1, kind: input, shape index: {}]   ;;  %s2106_s2 = inlined_call_operand.hbm [shape: f32[1,128], index: 2, kind: input, shape index: {}]   ;;  %s2107_s3 = inlined_call_operand.hbm [shape: f32[1,128], index: 3, kind: input, shape index: {}]   ;;  %s2108_s4 = inlined_call_operand.vmem [shape: bf16[2,2048], index: 4, kind: output, shape index: {}]  }
   0x1   :  { %10 = vsyncpa [#allocation5], 0  ;;  %s1812_s15 = smov [#allocation4]   ;;  %s1813_s17 = smov [#allocation2]  }
   0x2   :  { %s31_s16 = sshll.u32 %s1812_s15, 4  ;;  %s18_s18 = sshll.u32 %s1813_s17, 4  ;;  %s32_s16 = int_to_ptr.vmem [resolvable:$true] %s31_s16  ;;  %s19_s18 = int_to_ptr.vmem [resolvable:$true] %s18_s18 }
   0x3   :  { %s1756_s19 = scalar_lea.vmem %s32_s16, 16  ;;  %s1760_s20 = scalar_lea.vmem %s32_s16, 32 }
   0x4   :  { %p1757_p0 = scmp.ne.s32.totalorder %s32_s16, %s1756_s19  ;;  %p1761_p1 = scmp.lt.s32.totalorder %s32_s16, %s32_s16 }
   0x5   :  { %p1762_p2 = scmp.lt.s32.totalorder %s1760_s20, %s1756_s19 }
   0x7   :  { %p1763_p3 = por %p1762_p2, %p1761_p1 }
   0x9   :  { %p1764_p4 = pnand %p1763_p3, %p1757_p0 }
   0xb   :  { %1767 = shalt.err (!%p1764_p4)
}
   0xc   :  { %34 = dma.hbm_to_vmem [thread:$0]  %s2106_s2, 16, %s32_s16, [#allocation5]  }
   0xd   :  { %s1776_s23 = scalar_lea.vmem %s19_s18, 13312  ;;  %p1781_p6 = scmp.lt.s32.totalorder %s19_s18, %s19_s18 }
   0xe   :  { %p1777_p5 = scmp.ne.s32.totalorder %s19_s18, %s1776_s23  ;;  %p1782_p7 = scmp.lt.s32.totalorder %s1776_s23, %s1776_s23 }
  0x10   :  { %p1783_p8 = por %p1782_p7, %p1781_p6 }
  0x12   :  { %p1784_p9 = pnand %p1783_p8, %p1777_p5 }
  0x14   :  { %1787 = shalt.err (!%p1784_p9)
}
  0x15   :  { %s1814_s24 = smov 1024   ;;  %s1815_s25 = smov 64  }
  0x16   :  { %24 = dma.hbm_to_vmem [thread:$0]  %s2105_s1, 13312, %s19_s18, [#allocation3], %s1814_s24, %s1814_s24, %s1815_s25  }
  0x17   :  { %s1816_s28 = smov [#allocation6]  }
  0x18   :  { %s41_s29 = sshll.u32 %s1816_s28, 4  ;;  %s42_s29 = int_to_ptr.vmem [resolvable:$true] %s41_s29 }
  0x19   :  { %s1796_s30 = scalar_lea.vmem %s42_s29, 16  ;;  %s1800_s5 = scalar_lea.vmem %s42_s29, 32 }
  0x1a   :  { %p1797_p10 = scmp.ne.s32.totalorder %s42_s29, %s1796_s30  ;;  %p1801_p11 = scmp.lt.s32.totalorder %s42_s29, %s42_s29 }
  0x1b   :  { %p1802_p12 = scmp.lt.s32.totalorder %s1800_s5, %s1796_s30 }
  0x1d   :  { %p1803_p13 = por %p1802_p12, %p1801_p11 }
  0x1f   :  { %p1804_p0 = pnand %p1803_p13, %p1797_p10 }
  0x21   :  { %1807 = shalt.err (!%p1804_p0)
}
  0x22   :  { %44 = dma.hbm_to_vmem [thread:$0]  %s2107_s3, 16, %s42_s29, [#allocation5]  }
  0x23   :  { %1808 = dma.done.wait [#allocation3], 13312  }
  0x24   :  { %1809 = vsyncadd [#allocation3], 4294953984 }
  0x25   :  { %1810 = dma.done.wait [#allocation5], 32  }
  0x26   :  { %1811 = vsyncadd [#allocation5], 4294967264  ;;  %v1817_v0 = vmov 0   ;;  %v152_v1 = vld [vmem:[#allocation2 + $0x300] sm:$0x33]  ;;  %vm684_vm0 = vcmask 1041408  }
  0x27   :  { %765 = vmatprep.mubr.bf16.mxu0 %v1817_v0  ;;  %806 = vmatprep.mubr.bf16.mxu1 %v1817_v0  ;;  %v153_v2 = vld [vmem:[#allocation2 + $0x308] sm:$0x33]  ;;  %v136_v3 = vld [vmem:[#allocation2 + $0x280] sm:$0xff]  ;;  %v1683_v4 = vcombine.high %v152_v1, %v152_v1  ;;  %v1682_v6 = vcombine.low %v152_v1, %v152_v1  ;;  %v154_v55 = vld [vmem:[#allocation2 + $0x310] sm:$0x33]  ;;  %vm680_vm1 = vcmask 818176  }
  0x28   :  { %v1685_v5 = vcombine.high %v153_v2, %v153_v2  ;;  %v1684_v7 = vcombine.low %v153_v2, %v153_v2  ;;  %v144_v8 = vld [vmem:[#allocation2 + $0x2c0] sm:$0xff]  ;;  %v137_v9 = vld [vmem:[#allocation2 + $0x288] sm:$0xff]  ;;  %v155_v56 = vld [vmem:[#allocation2 + $0x318] sm:$0x33]  ;;  %v1687_v59 = vcombine.high %v154_v55, %v154_v55  ;;  %v1686_v61 = vcombine.low %v154_v55, %v154_v55 }
  0x29   :  { %v145_v10 = vld [vmem:[#allocation2 + $0x2c8] sm:$0xff]  ;;  %v1667_v11 = vcombine.high %v136_v3, %v144_v8  ;;  %v120_v13 = vld [vmem:[#allocation2 + $0x200] sm:$0xff]  ;;  %1698 = vmatprep.subr.msk.bf16.mxu0 %vm684_vm0, %v1683_v4  ;;  %v686_v16 = vsel %vm684_vm0, %v1682_v6, 0  ;;  %v1666_v19 = vcombine.low %v136_v3, %v144_v8  ;;  %v1689_v60 = vcombine.high %v155_v56, %v155_v56  ;;  %v138_v63 = vld [vmem:[#allocation2 + $0x290] sm:$0xff] }
  0x2a   :  { %v1669_v12 = vcombine.high %v137_v9, %v145_v10  ;;  %v128_v14 = vld [vmem:[#allocation2 + $0x240] sm:$0xff]  ;;  %v121_v15 = vld [vmem:[#allocation2 + $0x208] sm:$0xff]  ;;  %1700 = vmatprep.subr.msk.bf16.mxu1 %vm684_vm0, %v1685_v5  ;;  %v692_v17 = vsel %vm684_vm0, %v1684_v7, 0  ;;  %736 = vmatpush1.bf16.msra.mxu0 %v686_v16  ;;  %v1668_v20 = vcombine.low %v137_v9, %v145_v10  ;;  %v1688_v62 = vcombine.low %v155_v56, %v155_v56  ;;  %v146_v1 = vld [vmem:[#allocation2 + $0x2d0] sm:$0xff] }
  0x2b   :  { %v129_v18 = vld [vmem:[#allocation2 + $0x248] sm:$0xff]  ;;  %777 = vmatpush1.bf16.msra.mxu1 %v692_v17  ;;  %737 = vmatprep.subr.bf16.mxu0 %v1667_v11  ;;  %v1651_v21 = vcombine.high %v120_v13, %v128_v14  ;;  %v104_v23 = vld [vmem:[#allocation2 + $0x180] sm:$0xff]  ;;  %v1650_v27 = vcombine.low %v120_v13, %v128_v14  ;;  %v139_v2 = vld [vmem:[#allocation2 + $0x298] sm:$0xff]  ;;  %v698_v5 = vsel %vm684_vm0, %v1686_v61, 0  ;;  %v1671_v7 = vcombine.high %v138_v63, %v146_v1 }
  0x2c   :  { %778 = vmatprep.subr.bf16.mxu1 %v1669_v12  ;;  %v1653_v22 = vcombine.high %v121_v15, %v129_v18  ;;  %v112_v24 = vld [vmem:[#allocation2 + $0x1c0] sm:$0xff]  ;;  %v105_v25 = vld [vmem:[#allocation2 + $0x188] sm:$0xff]  ;;  %v1652_v28 = vcombine.low %v121_v15, %v129_v18  ;;  %v147_v3 = vld [vmem:[#allocation2 + $0x2d8] sm:$0xff]  ;;  %v704_v6 = vsel %vm684_vm0, %v1688_v62, 0  ;;  %v1670_v13 = vcombine.low %v138_v63, %v146_v1 }
  0x2d   :  { %v113_v26 = vld [vmem:[#allocation2 + $0x1c8] sm:$0xff]  ;;  %v1635_v29 = vcombine.high %v104_v23, %v112_v24  ;;  %v88_v31 = vld [vmem:[#allocation2 + $0x100] sm:$0xff]  ;;  %v1634_v35 = vcombine.low %v104_v23, %v112_v24  ;;  %v1673_v8 = vcombine.high %v139_v2, %v147_v3  ;;  %v122_v9 = vld [vmem:[#allocation2 + $0x210] sm:$0xff]  ;;  %v1672_v14 = vcombine.low %v139_v2, %v147_v3 }
  0x2e   :  { %738 = vmatpush1.bf16.msra.mxu0 %v1666_v19  ;;  %v1637_v30 = vcombine.high %v105_v25, %v113_v26  ;;  %v96_v32 = vld [vmem:[#allocation2 + $0x140] sm:$0xff]  ;;  %v89_v33 = vld [vmem:[#allocation2 + $0x108] sm:$0xff]  ;;  %v1636_v36 = vcombine.low %v105_v25, %v113_v26  ;;  %v130_v10 = vld [vmem:[#allocation2 + $0x250] sm:$0xff] }
  0x2f   :  { %779 = vmatpush1.bf16.msra.mxu1 %v1668_v20  ;;  %739 = vmatprep.subr.bf16.mxu0 %v1651_v21  ;;  %v97_v34 = vld [vmem:[#allocation2 + $0x148] sm:$0xff]  ;;  %v1619_v37 = vcombine.high %v88_v31, %v96_v32  ;;  %v72_v39 = vld [vmem:[#allocation2 + $0x80] sm:$0xff]  ;;  %v1618_v43 = vcombine.low %v88_v31, %v96_v32  ;;  %v123_v11 = vld [vmem:[#allocation2 + $0x218] sm:$0xff]  ;;  %v1655_v15 = vcombine.high %v122_v9, %v130_v10 }
  0x30   :  { %780 = vmatprep.subr.bf16.mxu1 %v1653_v22  ;;  %v1621_v38 = vcombine.high %v89_v33, %v97_v34  ;;  %v80_v40 = vld [vmem:[#allocation2 + $0xc0] sm:$0xff]  ;;  %v73_v41 = vld [vmem:[#allocation2 + $0x88] sm:$0xff]  ;;  %v1620_v44 = vcombine.low %v89_v33, %v97_v34  ;;  %v131_v12 = vld [vmem:[#allocation2 + $0x258] sm:$0xff]  ;;  %v1654_v21 = vcombine.low %v122_v9, %v130_v10 }
  0x31   :  { %v81_v42 = vld [vmem:[#allocation2 + $0xc8] sm:$0xff]  ;;  %v1603_v45 = vcombine.high %v72_v39, %v80_v40  ;;  %v56_v47 = vld [vmem:[#allocation2] sm:$0xff]  ;;  %v1602_v51 = vcombine.low %v72_v39, %v80_v40  ;;  %v1657_v16 = vcombine.high %v123_v11, %v131_v12  ;;  %v106_v17 = vld [vmem:[#allocation2 + $0x190] sm:$0xff]  ;;  %v1656_v22 = vcombine.low %v123_v11, %v131_v12 }
  0x32   :  { %740 = vmatpush1.bf16.msra.mxu0 %v1650_v27  ;;  %v1605_v46 = vcombine.high %v73_v41, %v81_v42  ;;  %v64_v48 = vld [vmem:[#allocation2 + $0x40] sm:$0xff]  ;;  %v57_v49 = vld [vmem:[#allocation2 + $0x8] sm:$0xff]  ;;  %v1604_v52 = vcombine.low %v73_v41, %v81_v42  ;;  %v114_v18 = vld [vmem:[#allocation2 + $0x1d0] sm:$0xff] }
  0x33   :  { %781 = vmatpush1.bf16.msra.mxu1 %v1652_v28  ;;  %741 = vmatprep.subr.bf16.mxu0 %v1635_v29  ;;  %v65_v50 = vld [vmem:[#allocation2 + $0x48] sm:$0xff]  ;;  %v1587_v53 = vcombine.high %v56_v47, %v64_v48  ;;  %v1586_v57 = vcombine.low %v56_v47, %v64_v48  ;;  %v1862_v4 = vld [vmem:[%s2104_s0] sm:$0x1]  ;;  %v107_v19 = vld [vmem:[#allocation2 + $0x198] sm:$0xff]  ;;  %v1639_v23 = vcombine.high %v106_v17, %v114_v18 }
  0x34   :  { %782 = vmatprep.subr.bf16.mxu1 %v1637_v30  ;;  %v1589_v54 = vcombine.high %v57_v49, %v65_v50  ;;  %v1588_v58 = vcombine.low %v57_v49, %v65_v50  ;;  %v115_v20 = vld [vmem:[#allocation2 + $0x1d8] sm:$0xff]  ;;  %v90_v25 = vld [vmem:[#allocation2 + $0x110] sm:$0xff]  ;;  %v1638_v29 = vcombine.low %v106_v17, %v114_v18  ;;  %v156_v49 = vld [vmem:[#allocation2 + $0x320] sm:$0x33] }
  0x35   :  { %v1641_v24 = vcombine.high %v107_v19, %v115_v20  ;;  %v98_v26 = vld [vmem:[#allocation2 + $0x150] sm:$0xff]  ;;  %v91_v27 = vld [vmem:[#allocation2 + $0x118] sm:$0xff]  ;;  %v1640_v30 = vcombine.low %v107_v19, %v115_v20  ;;  %v157_v50 = vld [vmem:[#allocation2 + $0x328] sm:$0x33]  ;;  %v1690_v55 = vcombine.low %v156_v49, %v156_v49 }
  0x36   :  { %742 = vmatpush1.bf16.msra.mxu0 %v1634_v35  ;;  %v99_v28 = vld [vmem:[#allocation2 + $0x158] sm:$0xff]  ;;  %v1623_v31 = vcombine.high %v90_v25, %v98_v26  ;;  %v74_v33 = vld [vmem:[#allocation2 + $0x90] sm:$0xff]  ;;  %v1692_v56 = vcombine.low %v157_v50, %v157_v50  ;;  %v124_v2 = vld [vmem:[#allocation2 + $0x220] sm:$0xff] }
  0x37   :  { %783 = vmatpush1.bf16.msra.mxu1 %v1636_v36  ;;  %743 = vmatprep.subr.bf16.mxu0 %v1619_v37  ;;  %v1625_v32 = vcombine.high %v91_v27, %v99_v28  ;;  %v82_v34 = vld [vmem:[#allocation2 + $0xd0] sm:$0xff]  ;;  %v75_v35 = vld [vmem:[#allocation2 + $0x98] sm:$0xff]  ;;  %v1622_v37 = vcombine.low %v90_v25, %v98_v26  ;;  %v710_v61 = vsel %vm684_vm0, %v1690_v55, 0  ;;  %v132_v3 = vld [vmem:[#allocation2 + $0x260] sm:$0xff] }
  0x38   :  { %784 = vmatprep.subr.bf16.mxu1 %v1621_v38  ;;  %v83_v36 = vld [vmem:[#allocation2 + $0xd8] sm:$0xff]  ;;  %v1624_v38 = vcombine.low %v91_v27, %v99_v28  ;;  %v1607_v39 = vcombine.high %v74_v33, %v82_v34  ;;  %v58_v41 = vld [vmem:[#allocation2 + $0x10] sm:$0xff]  ;;  %v716_v62 = vsel %vm684_vm0, %v1692_v56, 0  ;;  %v1659_v9 = vcombine.high %v124_v2, %v132_v3  ;;  %v108_v11 = vld [vmem:[#allocation2 + $0x1a0] sm:$0xff] }
  0x39   :  { %v1609_v40 = vcombine.high %v75_v35, %v83_v36  ;;  %v66_v42 = vld [vmem:[#allocation2 + $0x50] sm:$0xff]  ;;  %v116_v12 = vld [vmem:[#allocation2 + $0x1e0] sm:$0xff] }
  0x3a   :  { %744 = vmatpush1.bf16.msra.mxu0 %v1618_v43  ;;  %v59_v43 = vld [vmem:[#allocation2 + $0x18] sm:$0xff]  ;;  %v1591_v47 = vcombine.high %v58_v41, %v66_v42  ;;  %v1643_v17 = vcombine.high %v108_v11, %v116_v12  ;;  %v92_v19 = vld [vmem:[#allocation2 + $0x120] sm:$0xff] }
  0x3b   :  { %785 = vmatpush1.bf16.msra.mxu1 %v1620_v44  ;;  %745 = vmatprep.subr.bf16.mxu0 %v1603_v45  ;;  %v67_v44 = vld [vmem:[#allocation2 + $0x58] sm:$0xff]  ;;  %v1606_v45 = vcombine.low %v74_v33, %v82_v34  ;;  %v100_v20 = vld [vmem:[#allocation2 + $0x160] sm:$0xff] }
  0x3c   :  { %786 = vmatprep.subr.bf16.mxu1 %v1605_v46  ;;  %v1608_v46 = vcombine.low %v75_v35, %v83_v36  ;;  %v1593_v48 = vcombine.high %v59_v43, %v67_v44  ;;  %v1627_v25 = vcombine.high %v92_v19, %v100_v20  ;;  %v76_v27 = vld [vmem:[#allocation2 + $0xa0] sm:$0xff] }
  0x3d   :  { %v84_v28 = vld [vmem:[#allocation2 + $0xe0] sm:$0xff] }
  0x3e   :  { %746 = vmatpush1.bf16.msra.mxu0 %v1602_v51  ;;  %v1590_v51 = vcombine.low %v58_v41, %v66_v42  ;;  %v1611_v33 = vcombine.high %v76_v27, %v84_v28  ;;  %v60_v35 = vld [vmem:[#allocation2 + $0x20] sm:$0xff] }
  0x3f   :  { %787 = vmatpush1.bf16.msra.mxu1 %v1604_v52  ;;  %747 = vmatprep.subr.bf16.mxu0 %v1587_v53  ;;  %v1592_v52 = vcombine.low %v59_v43, %v67_v44  ;;  %v1691_v53 = vcombine.high %v156_v49, %v156_v49  ;;  %v68_v36 = vld [vmem:[#allocation2 + $0x60] sm:$0xff]  ;;  %v158_v43 = vld [vmem:[#allocation2 + $0x330] sm:$0x33]  ;;  %v159_v44 = vld [vmem:[#allocation2 + $0x338] sm:$0x33] }
  0x40   :  { %788 = vmatprep.subr.bf16.mxu1 %v1589_v54  ;;  %v1693_v54 = vcombine.high %v157_v50, %v157_v50  ;;  %v1595_v41 = vcombine.high %v60_v35, %v68_v36  ;;  %v1694_v49 = vcombine.low %v158_v43, %v158_v43  ;;  %v1696_v50 = vcombine.low %v159_v44, %v159_v44 }
  0x42   :  { %748 = vmatpush1.bf16.msra.mxu0 %v1586_v57  ;;  %v140_v57 = vld [vmem:[#allocation2 + $0x2a0] sm:$0xff]  ;;  %v722_v55 = vsel %vm684_vm0, %v1694_v49, 0  ;;  %v728_v56 = vsel %vm684_vm0, %v1696_v50, 0 }
  0x43   :  { %789 = vmatpush1.bf16.msra.mxu1 %v1588_v58  ;;  %1702 = vmatprep.subr.msk.bf16.mxu0 %vm684_vm0, %v1687_v59  ;;  %v148_v58 = vld [vmem:[#allocation2 + $0x2e0] sm:$0xff]  ;;  %v141_v59 = vld [vmem:[#allocation2 + $0x2a8] sm:$0xff] }
  0x44   :  { %1704 = vmatprep.subr.msk.bf16.mxu1 %vm684_vm0, %v1689_v60  ;;  %v149_v60 = vld [vmem:[#allocation2 + $0x2e8] sm:$0xff]  ;;  %v1675_v63 = vcombine.high %v140_v57, %v148_v58 }
  0x45   :  { %1699 = vmatmul.mubr.msk.bf16.vlgmr.msra.gmra.mxu0 %vm680_vm1, %v1862_v4  ;;  %v1677_v1 = vcombine.high %v141_v59, %v149_v60 }
  0x46   :  { %1701 = vmatmul.mubr.msk.bf16.vlgmr.msra.gmra.mxu1 %vm680_vm1, %v1862_v4  ;;  %818 = vmatpush1.bf16.msra.mxu0 %v698_v5  ;;  %v125_v5 = vld [vmem:[#allocation2 + $0x228] sm:$0xff] }
  0x47   :  { %859 = vmatpush1.bf16.msra.mxu1 %v704_v6  ;;  %819 = vmatprep.subr.bf16.mxu0 %v1671_v7  ;;  %v133_v6 = vld [vmem:[#allocation2 + $0x268] sm:$0xff]  ;;  %v1674_v7 = vcombine.low %v140_v57, %v148_v58 }
  0x48   :  { %860 = vmatprep.subr.bf16.mxu1 %v1673_v8  ;;  %847 = vmatprep.mubr.bf16.mxu0 %v1817_v0  ;;  %v1676_v8 = vcombine.low %v141_v59, %v149_v60  ;;  %v1661_v10 = vcombine.high %v125_v5, %v133_v6  ;;  %v126_v59 = vld [vmem:[#allocation2 + $0x230] sm:$0xff] }
  0x49   :  { %888 = vmatprep.mubr.bf16.mxu1 %v1817_v0  ;;  %v134_v60 = vld [vmem:[#allocation2 + $0x270] sm:$0xff] }
  0x4a   :  { %820 = vmatpush1.bf16.msra.mxu0 %v1670_v13  ;;  %v109_v13 = vld [vmem:[#allocation2 + $0x1a8] sm:$0xff] }
  0x4b   :  { %861 = vmatpush1.bf16.msra.mxu1 %v1672_v14  ;;  %821 = vmatprep.subr.bf16.mxu0 %v1655_v15  ;;  %v117_v14 = vld [vmem:[#allocation2 + $0x1e8] sm:$0xff]  ;;  %v1658_v15 = vcombine.low %v124_v2, %v132_v3  ;;  %v1663_v2 = vcombine.high %v126_v59, %v134_v60 }
  0x4c   :  { %862 = vmatprep.subr.bf16.mxu1 %v1657_v16  ;;  %v1660_v16 = vcombine.low %v125_v5, %v133_v6  ;;  %v1645_v18 = vcombine.high %v109_v13, %v117_v14  ;;  %v110_v5 = vld [vmem:[#allocation2 + $0x1b0] sm:$0xff] }
  0x4d   :  { %v118_v6 = vld [vmem:[#allocation2 + $0x1f0] sm:$0xff] }
  0x4e   :  { %822 = vmatpush1.bf16.msra.mxu0 %v1654_v21  ;;  %v93_v21 = vld [vmem:[#allocation2 + $0x128] sm:$0xff] }
  0x4f   :  { %863 = vmatpush1.bf16.msra.mxu1 %v1656_v22  ;;  %823 = vmatprep.subr.bf16.mxu0 %v1639_v23  ;;  %v101_v22 = vld [vmem:[#allocation2 + $0x168] sm:$0xff]  ;;  %v1642_v23 = vcombine.low %v108_v11, %v116_v12  ;;  %v1647_v11 = vcombine.high %v110_v5, %v118_v6 }
  0x50   :  { %864 = vmatprep.subr.bf16.mxu1 %v1641_v24  ;;  %v1644_v24 = vcombine.low %v109_v13, %v117_v14  ;;  %v1629_v26 = vcombine.high %v93_v21, %v101_v22  ;;  %v94_v13 = vld [vmem:[#allocation2 + $0x130] sm:$0xff] }
  0x51   :  { %v102_v14 = vld [vmem:[#allocation2 + $0x170] sm:$0xff] }
  0x52   :  { %824 = vmatpush1.bf16.msra.mxu0 %v1638_v29  ;;  %v77_v29 = vld [vmem:[#allocation2 + $0xa8] sm:$0xff] }
  0x53   :  { %865 = vmatpush1.bf16.msra.mxu1 %v1640_v30  ;;  %825 = vmatprep.subr.bf16.mxu0 %v1623_v31  ;;  %v85_v30 = vld [vmem:[#allocation2 + $0xe8] sm:$0xff]  ;;  %v1626_v31 = vcombine.low %v92_v19, %v100_v20  ;;  %v1631_v19 = vcombine.high %v94_v13, %v102_v14  ;;  %v78_v20 = vld [vmem:[#allocation2 + $0xb0] sm:$0xff] }
  0x54   :  { %866 = vmatprep.subr.bf16.mxu1 %v1625_v32  ;;  %v1628_v32 = vcombine.low %v93_v21, %v101_v22  ;;  %v1613_v34 = vcombine.high %v77_v29, %v85_v30  ;;  %v86_v21 = vld [vmem:[#allocation2 + $0xf0] sm:$0xff]  ;;  %v79_v22 = vld [vmem:[#allocation2 + $0xb8] sm:$0xff] }
  0x56   :  { %826 = vmatpush1.bf16.msra.mxu0 %v1622_v37  ;;  %v61_v37 = vld [vmem:[#allocation2 + $0x28] sm:$0xff] }
  0x57   :  { %867 = vmatpush1.bf16.msra.mxu1 %v1624_v38  ;;  %827 = vmatprep.subr.bf16.mxu0 %v1607_v39  ;;  %v69_v38 = vld [vmem:[#allocation2 + $0x68] sm:$0xff]  ;;  %v1610_v39 = vcombine.low %v76_v27, %v84_v28  ;;  %v62_v28 = vld [vmem:[#allocation2 + $0x30] sm:$0xff] }
  0x58   :  { %868 = vmatprep.subr.bf16.mxu1 %v1609_v40  ;;  %v1612_v40 = vcombine.low %v77_v29, %v85_v30  ;;  %v1597_v42 = vcombine.high %v61_v37, %v69_v38  ;;  %v70_v29 = vld [vmem:[#allocation2 + $0x70] sm:$0xff]  ;;  %v63_v30 = vld [vmem:[#allocation2 + $0x38] sm:$0xff] }
  0x5a   :  { %828 = vmatpush1.bf16.msra.mxu0 %v1606_v45  ;;  %v1594_v45 = vcombine.low %v60_v35, %v68_v36  ;;  %v1598_v36 = vcombine.low %v62_v28, %v70_v29 }
  0x5b   :  { %869 = vmatpush1.bf16.msra.mxu1 %v1608_v46  ;;  %829 = vmatprep.subr.bf16.mxu0 %v1591_v47  ;;  %v1596_v46 = vcombine.low %v61_v37, %v69_v38  ;;  %v1695_v47 = vcombine.high %v158_v43, %v158_v43 }
  0x5c   :  { %870 = vmatprep.subr.bf16.mxu1 %v1593_v48  ;;  %v1697_v48 = vcombine.high %v159_v44, %v159_v44 }
  0x5e   :  { %830 = vmatpush1.bf16.msra.mxu0 %v1590_v51  ;;  %v142_v51 = vld [vmem:[#allocation2 + $0x2b0] sm:$0xff] }
  0x5f   :  { %871 = vmatpush1.bf16.msra.mxu1 %v1592_v52  ;;  %1706 = vmatprep.subr.msk.bf16.mxu0 %vm684_vm0, %v1691_v53  ;;  %v150_v52 = vld [vmem:[#allocation2 + $0x2f0] sm:$0xff]  ;;  %v143_v53 = vld [vmem:[#allocation2 + $0x2b8] sm:$0xff] }
  0x60   :  { %1708 = vmatprep.subr.msk.bf16.mxu1 %vm684_vm0, %v1693_v54  ;;  %v151_v54 = vld [vmem:[#allocation2 + $0x2f8] sm:$0xff]  ;;  %v1679_v57 = vcombine.high %v142_v51, %v150_v52 }
  0x61   :  { %1703 = vmatmul.mubr.msk.bf16.vlgmr.msra.gmra.mxu0 %vm680_vm1, %v1862_v4  ;;  %v1681_v58 = vcombine.high %v143_v53, %v151_v54 }
  0x62   :  { %1705 = vmatmul.mubr.msk.bf16.vlgmr.msra.gmra.mxu1 %vm680_vm1, %v1862_v4  ;;  %900 = vmatpush1.bf16.msra.mxu0 %v710_v61  ;;  %v127_v61 = vld [vmem:[#allocation2 + $0x238] sm:$0xff] }
  0x63   :  { %941 = vmatpush1.bf16.msra.mxu1 %v716_v62  ;;  %901 = vmatprep.subr.bf16.mxu0 %v1675_v63  ;;  %v135_v62 = vld [vmem:[#allocation2 + $0x278] sm:$0xff]  ;;  %v1678_v63 = vcombine.low %v142_v51, %v150_v52 }
  0x64   :  { %942 = vmatprep.subr.bf16.mxu1 %v1677_v1  ;;  %929 = vmatprep.mubr.bf16.mxu0 %v1817_v0  ;;  %v1680_v1 = vcombine.low %v143_v53, %v151_v54  ;;  %v1665_v3 = vcombine.high %v127_v61, %v135_v62 }
  0x65   :  { %970 = vmatprep.mubr.bf16.mxu1 %v1817_v0 }
  0x66   :  { %902 = vmatpush1.bf16.msra.mxu0 %v1674_v7  ;;  %v111_v7 = vld [vmem:[#allocation2 + $0x1b8] sm:$0xff] }
  0x67   :  { %943 = vmatpush1.bf16.msra.mxu1 %v1676_v8  ;;  %903 = vmatprep.subr.bf16.mxu0 %v1659_v9  ;;  %v119_v8 = vld [vmem:[#allocation2 + $0x1f8] sm:$0xff]  ;;  %v1662_v9 = vcombine.low %v126_v59, %v134_v60 }
  0x68   :  { %944 = vmatprep.subr.bf16.mxu1 %v1661_v10  ;;  %v1664_v10 = vcombine.low %v127_v61, %v135_v62  ;;  %v1649_v12 = vcombine.high %v111_v7, %v119_v8 }
  0x6a   :  { %904 = vmatpush1.bf16.msra.mxu0 %v1658_v15  ;;  %v95_v15 = vld [vmem:[#allocation2 + $0x138] sm:$0xff] }
  0x6b   :  { %945 = vmatpush1.bf16.msra.mxu1 %v1660_v16  ;;  %905 = vmatprep.subr.bf16.mxu0 %v1643_v17  ;;  %v103_v16 = vld [vmem:[#allocation2 + $0x178] sm:$0xff]  ;;  %v1646_v17 = vcombine.low %v110_v5, %v118_v6 }
  0x6c   :  { %946 = vmatprep.subr.bf16.mxu1 %v1645_v18  ;;  %v1648_v18 = vcombine.low %v111_v7, %v119_v8 }
  0x6e   :  { %906 = vmatpush1.bf16.msra.mxu0 %v1642_v23  ;;  %v87_v23 = vld [vmem:[#allocation2 + $0xf8] sm:$0xff] }
  0x6f   :  { %947 = vmatpush1.bf16.msra.mxu1 %v1644_v24  ;;  %907 = vmatprep.subr.bf16.mxu0 %v1627_v25  ;;  %v1630_v24 = vcombine.low %v94_v13, %v102_v14  ;;  %v1632_v25 = vcombine.low %v95_v15, %v103_v16  ;;  %v1617_v27 = vcombine.high %v79_v22, %v87_v23 }
  0x70   :  { %948 = vmatprep.subr.bf16.mxu1 %v1629_v26  ;;  %v1615_v26 = vcombine.high %v78_v20, %v86_v21 }
  0x72   :  { %908 = vmatpush1.bf16.msra.mxu0 %v1626_v31  ;;  %v71_v31 = vld [vmem:[#allocation2 + $0x78] sm:$0xff] }
  0x73   :  { %949 = vmatpush1.bf16.msra.mxu1 %v1628_v32  ;;  %909 = vmatprep.subr.bf16.mxu0 %v1611_v33  ;;  %v1614_v32 = vcombine.low %v78_v20, %v86_v21  ;;  %v1616_v33 = vcombine.low %v79_v22, %v87_v23  ;;  %v1601_v35 = vcombine.high %v63_v30, %v71_v31 }
  0x74   :  { %950 = vmatprep.subr.bf16.mxu1 %v1613_v34  ;;  %v1599_v34 = vcombine.high %v62_v28, %v70_v29  ;;  %v1600_v37 = vcombine.low %v63_v30, %v71_v31 }
  0x76   :  { %910 = vmatpush1.bf16.msra.mxu0 %v1610_v39 }
  0x77   :  { %951 = vmatpush1.bf16.msra.mxu1 %v1612_v40  ;;  %911 = vmatprep.subr.bf16.mxu0 %v1595_v41 }
  0x78   :  { %952 = vmatprep.subr.bf16.mxu1 %v1597_v42 }
  0x7a   :  { %912 = vmatpush1.bf16.msra.mxu0 %v1594_v45 }
  0x7b   :  { %953 = vmatpush1.bf16.msra.mxu1 %v1596_v46  ;;  %1710 = vmatprep.subr.msk.bf16.mxu0 %vm684_vm0, %v1695_v47 }
  0x7c   :  { %1712 = vmatprep.subr.msk.bf16.mxu1 %vm684_vm0, %v1697_v48 }
  0x7d   :  { %1707 = vmatmul.mubr.msk.bf16.vlgmr.msra.gmra.mxu0 %vm680_vm1, %v1862_v4 }
  0x7e   :  { %1709 = vmatmul.mubr.msk.bf16.vlgmr.msra.gmra.mxu1 %vm680_vm1, %v1862_v4  ;;  %982 = vmatpush1.bf16.msra.mxu0 %v722_v55 }
  0x7f   :  { %1023 = vmatpush1.bf16.msra.mxu1 %v728_v56  ;;  %983 = vmatprep.subr.bf16.mxu0 %v1679_v57 }
  0x80   :  { %1024 = vmatprep.subr.bf16.mxu1 %v1681_v58  ;;  %1011 = vmatprep.mubr.bf16.mxu0 %v1817_v0 }
  0x81   :  { %1052 = vmatprep.mubr.bf16.mxu1 %v1817_v0  ;;  %v1633_v0 = vcombine.high %v95_v15, %v103_v16 }
  0x82   :  { %984 = vmatpush1.bf16.msra.mxu0 %v1678_v63 }
  0x83   :  { %1025 = vmatpush1.bf16.msra.mxu1 %v1680_v1  ;;  %985 = vmatprep.subr.bf16.mxu0 %v1663_v2 }
  0x84   :  { %1026 = vmatprep.subr.bf16.mxu1 %v1665_v3 }
  0x86   :  { %986 = vmatpush1.bf16.msra.mxu0 %v1662_v9 }
  0x87   :  { %1027 = vmatpush1.bf16.msra.mxu1 %v1664_v10  ;;  %987 = vmatprep.subr.bf16.mxu0 %v1647_v11 }
  0x88   :  { %1028 = vmatprep.subr.bf16.mxu1 %v1649_v12 }
  0x8a   :  { %988 = vmatpush1.bf16.msra.mxu0 %v1646_v17 }
  0x8b   :  { %1029 = vmatpush1.bf16.msra.mxu1 %v1648_v18  ;;  %989 = vmatprep.subr.bf16.mxu0 %v1631_v19 }
  0x8c   :  { %1030 = vmatprep.subr.bf16.mxu1 %v1633_v0 }
  0x8e   :  { %990 = vmatpush1.bf16.msra.mxu0 %v1630_v24 }
  0x8f   :  { %1031 = vmatpush1.bf16.msra.mxu1 %v1632_v25  ;;  %991 = vmatprep.subr.bf16.mxu0 %v1615_v26 }
  0x90   :  { %1032 = vmatprep.subr.bf16.mxu1 %v1617_v27 }
  0x92   :  { %992 = vmatpush1.bf16.msra.mxu0 %v1614_v32 }
  0x93   :  { %1033 = vmatpush1.bf16.msra.mxu1 %v1616_v33  ;;  %993 = vmatprep.subr.bf16.mxu0 %v1599_v34 }
  0x94   :  { %1034 = vmatprep.subr.bf16.mxu1 %v1601_v35 }
  0x96   :  { %994 = vmatpush1.bf16.msra.mxu0 %v1598_v36 }
  0x97   :  { %1035 = vmatpush1.bf16.msra.mxu1 %v1600_v37 }
  0x99   :  { %1711 = vmatmul.mubr.msk.bf16.vlgmr.msra.gmra.mxu0 %vm680_vm1, %v1862_v4 }
  0x9a   :  { %1713 = vmatmul.mubr.msk.bf16.vlgmr.msra.gmra.mxu1 %vm680_vm1, %v1862_v4 }
 0x105   :  { %v1898_v38 = vpop.f32.mrf.mxu0 }
 0x106   :  { %v1900_v39 = vpop.f32.mrf.mxu1  ;;  %v1061_v52 = vsel %vm684_vm0, %v1898_v38, 0.0 }
 0x107   :  { %v1902_v40 = vpop.f32.mrf.mxu0  ;;  %v1062_v56 = vrot.slane %v1061_v52, 4  ;;  %v1075_v57 = vsel %vm684_vm0, %v1900_v39, 0.0 }
 0x108   :  { %v1904_v41 = vpop.f32.mrf.mxu1  ;;  %v1068_v4 = vsel %vm684_vm0, %v1902_v40, 0.0  ;;  %v1076_v60 = vrot.slane %v1075_v57, 4 }
 0x109   :  { %v771_v42 = vpop.f32.mrf.mxu0  ;;  %v1069_v53 = vrot.slane %v1068_v4, 4  ;;  %v1063_v59 = vadd.f32 %v1062_v56, %v1061_v52  ;;  %v1082_v61 = vsel %vm684_vm0, %v1904_v41, 0.0 }
 0x10a   :  { %v812_v43 = vpop.f32.mrf.mxu1  ;;  %v1077_v2 = vadd.f32 %v1076_v60, %v1075_v57  ;;  %v1083_v3 = vrot.slane %v1082_v61, 4 }
 0x10b   :  { %v772_v44 = vpop.f32.mrf.mxu0  ;;  %v1070_v58 = vadd.f32 %v1069_v53, %v1068_v4  ;;  %v1064_v1 = vrot.slane %v1063_v59, 2 }
 0x10c   :  { %v813_v45 = vpop.f32.mrf.mxu1  ;;  %v1078_v9 = vrot.slane %v1077_v2, 2  ;;  %v1084_v10 = vadd.f32 %v1083_v3, %v1082_v61 }
 0x10d   :  { %v1071_v62 = vrot.slane %v1070_v58, 2  ;;  %v1065_v8 = vadd.f32 %v1064_v1, %v1063_v59 }
 0x10e   :  { %v1079_v15 = vadd.f32 %v1078_v9, %v1077_v2  ;;  %v1085_v16 = vrot.slane %v1084_v10, 2 }
 0x10f   :  { %v1072_v6 = vadd.f32 %v1071_v62, %v1070_v58  ;;  %v1066_v14 = vrot.slane %v1065_v8, 1 }
 0x110   :  { %v1080_v22 = vrot.slane %v1079_v15, 1  ;;  %v1086_v23 = vadd.f32 %v1085_v16, %v1084_v10 }
 0x111   :  { %v1073_v13 = vrot.slane %v1072_v6, 1  ;;  %v1067_v21 = vadd.f32 %v1066_v14, %v1065_v8 }
 0x112   :  { %v1081_v36 = vadd.f32 %v1080_v22, %v1079_v15  ;;  %v1087_v37 = vrot.slane %v1086_v23, 1 }
 0x113   :  { %v1074_v0 = vadd.f32 %v1073_v13, %v1072_v6 }
 0x114   :  { %v1088_v57 = vadd.f32 %v1087_v37, %v1086_v23 }
 0x115   :  { %v1173_v30 = vadd.f32 %v1074_v0, %v1067_v21 }
 0x121   :  { %v1906_v46 = vpop.f32.mrf.mxu0 }
 0x122   :  { %v1908_v47 = vpop.f32.mrf.mxu1  ;;  %v1089_v63 = vsel %vm684_vm0, %v1906_v46, 0.0 }
 0x123   :  { %v1910_v48 = vpop.f32.mrf.mxu0  ;;  %v1090_v5 = vrot.slane %v1089_v63, 4  ;;  %v1103_v17 = vsel %vm684_vm0, %v1908_v47, 0.0 }
 0x124   :  { %v1912_v49 = vpop.f32.mrf.mxu1  ;;  %v1096_v7 = vsel %vm684_vm0, %v1910_v48, 0.0  ;;  %v1104_v20 = vrot.slane %v1103_v17, 4 }
 0x125   :  { %v853_v50 = vpop.f32.mrf.mxu0  ;;  %v1091_v11 = vadd.f32 %v1090_v5, %v1089_v63  ;;  %v1097_v12 = vrot.slane %v1096_v7, 4  ;;  %v1110_v24 = vsel %vm684_vm0, %v1912_v49, 0.0 }
 0x126   :  { %v894_v51 = vpop.f32.mrf.mxu1  ;;  %v1105_v33 = vadd.f32 %v1104_v20, %v1103_v17  ;;  %v1111_v34 = vrot.slane %v1110_v24, 4  ;;  %v1174_v50 = vadd.f32 %v1173_v30, %v1081_v36 }
 0x127   :  { %v854_v54 = vpop.f32.mrf.mxu0  ;;  %v1092_v18 = vrot.slane %v1091_v11, 2  ;;  %v1098_v19 = vadd.f32 %v1097_v12, %v1096_v7 }
 0x128   :  { %v895_v55 = vpop.f32.mrf.mxu1  ;;  %v1106_v53 = vrot.slane %v1105_v33, 2  ;;  %v1112_v54 = vadd.f32 %v1111_v34, %v1110_v24  ;;  %v1175_v60 = vadd.f32 %v1174_v50, %v1088_v57 }
 0x129   :  { %v1093_v27 = vadd.f32 %v1092_v18, %v1091_v11  ;;  %v1099_v28 = vrot.slane %v1098_v19, 2 }
 0x12a   :  { %v1107_v62 = vadd.f32 %v1106_v53, %v1105_v33  ;;  %v1113_v63 = vrot.slane %v1112_v54, 2 }
 0x12b   :  { %v1094_v45 = vrot.slane %v1093_v27, 1  ;;  %v1100_v4 = vadd.f32 %v1099_v28, %v1098_v19 }
 0x12c   :  { %v1108_v8 = vrot.slane %v1107_v62, 1  ;;  %v1114_v9 = vadd.f32 %v1113_v63, %v1112_v54 }
 0x12d   :  { %v1095_v58 = vadd.f32 %v1094_v45, %v1093_v27  ;;  %v1101_v59 = vrot.slane %v1100_v4, 1 }
 0x12e   :  { %v1109_v15 = vadd.f32 %v1108_v8, %v1107_v62  ;;  %v1115_v16 = vrot.slane %v1114_v9, 1 }
 0x12f   :  { %v1176_v3 = vadd.f32 %v1175_v60, %v1095_v58  ;;  %v1102_v5 = vadd.f32 %v1101_v59, %v1100_v4 }
 0x130   :  { %v1116_v21 = vadd.f32 %v1115_v16, %v1114_v9 }
 0x131   :  { %v1177_v12 = vadd.f32 %v1176_v3, %v1102_v5 }
 0x133   :  { %v1178_v19 = vadd.f32 %v1177_v12, %v1109_v15 }
 0x135   :  { %v1179_v24 = vadd.f32 %v1178_v19, %v1116_v21 }
 0x13d   :  { %v1930_v25 = vpop.f32.mrf.mxu0 }
 0x13e   :  { %v1932_v26 = vpop.f32.mrf.mxu1  ;;  %v1117_v29 = vsel %vm684_vm0, %v1930_v25, 0.0 }
 0x13f   :  { %v1936_v31 = vpop.f32.mrf.mxu0  ;;  %v1118_v35 = vrot.slane %v1117_v29, 4  ;;  %v1131_v61 = vsel %vm684_vm0, %v1932_v26, 0.0 }
 0x140   :  { %v1938_v32 = vpop.f32.mrf.mxu1  ;;  %v1124_v42 = vsel %vm684_vm0, %v1936_v31, 0.0  ;;  %v1132_v6 = vrot.slane %v1131_v61, 4 }
 0x141   :  { %v935_v43 = vpop.f32.mrf.mxu0  ;;  %v1119_v55 = vadd.f32 %v1118_v35, %v1117_v29  ;;  %v1125_v56 = vrot.slane %v1124_v42, 4  ;;  %v1138_v7 = vsel %vm684_vm0, %v1938_v32, 0.0 }
 0x142   :  { %v976_v44 = vpop.f32.mrf.mxu1  ;;  %v1133_v13 = vadd.f32 %v1132_v6, %v1131_v61  ;;  %v1139_v14 = vrot.slane %v1138_v7, 4 }
 0x143   :  { %v936_v51 = vpop.f32.mrf.mxu0  ;;  %v1120_v1 = vrot.slane %v1119_v55, 2  ;;  %v1126_v2 = vadd.f32 %v1125_v56, %v1124_v42 }
 0x144   :  { %v977_v52 = vpop.f32.mrf.mxu1  ;;  %v1134_v0 = vrot.slane %v1133_v13, 2  ;;  %v1140_v20 = vadd.f32 %v1139_v14, %v1138_v7  ;;  %v1189_v14 = vlaneseq }
 0x145   :  { %v1121_v10 = vadd.f32 %v1120_v1, %v1119_v55  ;;  %v1127_v11 = vrot.slane %v1126_v2, 2 }
 0x146   :  { %v1135_v27 = vadd.f32 %v1134_v0, %v1133_v13  ;;  %v1141_v28 = vrot.slane %v1140_v20, 2 }
 0x147   :  { %v1122_v17 = vrot.slane %v1121_v10, 1  ;;  %v1128_v18 = vadd.f32 %v1127_v11, %v1126_v2 }
 0x148   :  { %v1136_v35 = vrot.slane %v1135_v27, 1  ;;  %v1142_v36 = vadd.f32 %v1141_v28, %v1140_v20 }
 0x149   :  { %v1123_v22 = vadd.f32 %v1122_v17, %v1121_v10  ;;  %v1129_v23 = vrot.slane %v1128_v18, 1 }
 0x14a   :  { %v1137_v59 = vadd.f32 %v1136_v35, %v1135_v27  ;;  %v1143_v60 = vrot.slane %v1142_v36, 1 }
 0x14b   :  { %v1180_v29 = vadd.f32 %v1179_v24, %v1123_v22  ;;  %v1130_v30 = vadd.f32 %v1129_v23, %v1128_v18  ;;  %v1962_v23 = vshrl.u32 %v1189_v14, 7 }
 0x14c   :  { %v1144_v10 = vadd.f32 %v1143_v60, %v1142_v36 }
 0x14d   :  { %v1181_v50 = vadd.f32 %v1180_v29, %v1130_v30  ;;  %v1191_v29 = vsub.s32 0, %v1962_v23 }
 0x14f   :  { %v1182_v5 = vadd.f32 %v1181_v50, %v1137_v59 }
 0x151   :  { %v1183_v15 = vadd.f32 %v1182_v5, %v1144_v10 }
 0x159   :  { %v1946_v33 = vpop.f32.mrf.mxu0 }
 0x15a   :  { %v1948_v34 = vpop.f32.mrf.mxu1  ;;  %v1145_v37 = vsel %vm684_vm0, %v1946_v33, 0.0 }
 0x15b   :  { %v1159_v42 = vsel %vm684_vm0, %v1948_v34, 0.0  ;;  %v1146_v43 = vrot.slane %v1145_v37, 4  ;;  %v1954_v45 = vpop.f32.mrf.mxu0 }
 0x15c   :  { %v1160_v44 = vrot.slane %v1159_v42, 4  ;;  %v1956_v4 = vpop.f32.mrf.mxu1  ;;  %v1152_v51 = vsel %vm684_vm0, %v1954_v45, 0.0 }
 0x15d   :  { %v1166_v52 = vsel %vm684_vm0, %v1956_v4, 0.0  ;;  %v1147_v53 = vadd.f32 %v1146_v43, %v1145_v37  ;;  %v1153_v55 = vrot.slane %v1152_v51, 4  ;;  %v1017_v57 = vpop.f32.mrf.mxu0 }
 0x15e   :  { %v1161_v54 = vadd.f32 %v1160_v44, %v1159_v42  ;;  %v1167_v56 = vrot.slane %v1166_v52, 4  ;;  %v1058_v58 = vpop.f32.mrf.mxu1 }
 0x15f   :  { %v1148_v61 = vrot.slane %v1147_v53, 2  ;;  %v1154_v63 = vadd.f32 %v1153_v55, %v1152_v51  ;;  %v1018_v2 = vpop.f32.mrf.mxu0 }
 0x160   :  { %v1162_v62 = vrot.slane %v1161_v54, 2  ;;  %v1168_v1 = vadd.f32 %v1167_v56, %v1166_v52  ;;  %v1059_v3 = vpop.f32.mrf.mxu1 }
 0x161   :  { %v1149_v6 = vadd.f32 %v1148_v61, %v1147_v53  ;;  %v1155_v8 = vrot.slane %v1154_v63, 2 }
 0x162   :  { %v1163_v7 = vadd.f32 %v1162_v62, %v1161_v54  ;;  %v1169_v9 = vrot.slane %v1168_v1, 2 }
 0x163   :  { %v1150_v11 = vrot.slane %v1149_v6, 1  ;;  %v1156_v12 = vadd.f32 %v1155_v8, %v1154_v63 }
 0x164   :  { %v1170_v13 = vadd.f32 %v1169_v9, %v1168_v1  ;;  %v1164_v17 = vrot.slane %v1163_v7, 1 }
 0x165   :  { %v1151_v16 = vadd.f32 %v1150_v11, %v1149_v6  ;;  %v1157_v18 = vrot.slane %v1156_v12, 1 }
 0x166   :  { %v1171_v20 = vrot.slane %v1170_v13, 1  ;;  %v1165_v21 = vadd.f32 %v1164_v17, %v1163_v7 }
 0x167   :  { %v1184_v19 = vadd.f32 %v1183_v15, %v1151_v16  ;;  %v1158_v0 = vadd.f32 %v1157_v18, %v1156_v12 }
 0x168   :  { %v1172_v24 = vadd.f32 %v1171_v20, %v1170_v13 }
 0x169   :  { %v1185_v22 = vadd.f32 %v1184_v19, %v1158_v0 }
 0x16b   :  { %v1186_v27 = vadd.f32 %v1185_v22, %v1165_v21 }
 0x16d   :  { %v1187_v28 = vadd.f32 %v1186_v27, %v1172_v24 }
 0x16f   :  { %v1188_v30 = vmul.f32 0.03125, %v1187_v28 }
 0x171   :  { %v1192_v35 = vrot.slane %v1188_v30, %v1191_v29 }
 0x173   :  { %v1968_v36 = vsub.f32 %v1898_v38, %v1192_v35  ;;  %v1971_v37 = vsub.f32 %v1902_v40, %v1192_v35  ;;  %v1974_v42 = vsub.f32 %v1900_v39, %v1192_v35  ;;  %v1981_v50 = vsub.f32 %v1904_v41, %v1192_v35 }
 0x174   :  { %v1984_v51 = vsub.f32 %v1906_v46, %v1192_v35  ;;  %v1991_v52 = vsub.f32 %v1910_v48, %v1192_v35  ;;  %v1996_v54 = vsub.f32 %v1908_v47, %v1192_v35  ;;  %v2002_v57 = vsub.f32 %v1912_v49, %v1192_v35 }
 0x175   :  { %v1209_v43 = vmul.f32 %v1968_v36, %v1968_v36  ;;  %v1210_v44 = vmul.f32 %v1971_v37, %v1971_v37  ;;  %v1211_v38 = vmul.f32 %v1974_v42, %v1974_v42  ;;  %v1212_v53 = vmul.f32 %v1981_v50, %v1981_v50 }
 0x176   :  { %v1213_v41 = vmul.f32 %v1984_v51, %v1984_v51  ;;  %v1214_v48 = vmul.f32 %v1991_v52, %v1991_v52  ;;  %v1215_v59 = vmul.f32 %v1996_v54, %v1996_v54  ;;  %v2011_v63 = vsub.f32 %v1930_v25, %v1192_v35 }
 0x177   :  { %v1225_v40 = vsel %vm684_vm0, %v1209_v43, 0.0  ;;  %v1232_v39 = vsel %vm684_vm0, %v1210_v44, 0.0  ;;  %v1239_v56 = vsel %vm684_vm0, %v1211_v38, 0.0  ;;  %v1246_v58 = vsel %vm684_vm0, %v1212_v53, 0.0 }
 0x178   :  { %v1226_v46 = vrot.slane %v1225_v40, 4  ;;  %v1233_v55 = vrot.slane %v1232_v39, 4  ;;  %v1240_v47 = vrot.slane %v1239_v56, 4  ;;  %v1253_v62 = vsel %vm684_vm0, %v1213_v41, 0.0 }
 0x179   :  { %v1247_v1 = vrot.slane %v1246_v58, 4  ;;  %v1216_v49 = vmul.f32 %v2002_v57, %v2002_v57  ;;  %v1260_v2 = vsel %vm684_vm0, %v1214_v48, 0.0  ;;  %v2017_v3 = vsub.f32 %v1936_v31, %v1192_v35 }
 0x17a   :  { %v1227_v60 = vadd.f32 %v1226_v46, %v1225_v40  ;;  %v1234_v61 = vadd.f32 %v1233_v55, %v1232_v39  ;;  %v1241_v5 = vadd.f32 %v1240_v47, %v1239_v56  ;;  %v1254_v6 = vrot.slane %v1253_v62, 4 }
 0x17b   :  { %v1267_v7 = vsel %vm684_vm0, %v1215_v59, 0.0  ;;  %v2021_v8 = vsub.f32 %v1932_v26, %v1192_v35  ;;  %v1217_v25 = vmul.f32 %v2011_v63, %v2011_v63  ;;  %v1248_v11 = vadd.f32 %v1247_v1, %v1246_v58 }
 0x17c   :  { %v1228_v9 = vrot.slane %v1227_v60, 2  ;;  %v1235_v10 = vrot.slane %v1234_v61, 2  ;;  %v1261_v12 = vrot.slane %v1260_v2, 4  ;;  %v1268_v13 = vrot.slane %v1267_v7, 4 }
 0x17d   :  { %v1274_v14 = vsel %vm684_vm0, %v1216_v49, 0.0  ;;  %v2027_v31 = vsub.f32 %v1938_v32, %v1192_v35  ;;  %v1218_v15 = vmul.f32 %v2017_v3, %v2017_v3  ;;  %v1242_v16 = vrot.slane %v1241_v5, 2 }
 0x17e   :  { %v1255_v17 = vadd.f32 %v1254_v6, %v1253_v62  ;;  %v2032_v26 = vsub.f32 %v1946_v33, %v1192_v35  ;;  %v1219_v18 = vmul.f32 %v2021_v8, %v2021_v8  ;;  %v1229_v19 = vadd.f32 %v1228_v9, %v1227_v60 }
 0x17f   :  { %v1236_v0 = vadd.f32 %v1235_v10, %v1234_v61  ;;  %v1249_v20 = vrot.slane %v1248_v11, 2  ;;  %v1262_v21 = vadd.f32 %v1261_v12, %v1260_v2  ;;  %v1275_v22 = vrot.slane %v1274_v14, 4 }
 0x180   :  { %v1281_v24 = vsel %vm684_vm0, %v1217_v25, 0.0  ;;  %v2038_v32 = vsub.f32 %v1954_v45, %v1192_v35  ;;  %v2041_v27 = vsub.f32 %v1948_v34, %v1192_v35  ;;  %v2044_v28 = vsub.f32 %v1956_v4, %v1192_v35 }
 0x181   :  { %v1269_v33 = vadd.f32 %v1268_v13, %v1267_v7  ;;  %v1220_v30 = vmul.f32 %v2027_v31, %v2027_v31  ;;  %v1243_v43 = vadd.f32 %v1242_v16, %v1241_v5  ;;  %v1256_v44 = vrot.slane %v1255_v17, 2 }
 0x182   :  { %v1288_v38 = vsel %vm684_vm0, %v1218_v15, 0.0  ;;  %v1221_v40 = vmul.f32 %v2032_v26, %v2032_v26  ;;  %v1230_v39 = vrot.slane %v1229_v19, 1  ;;  %v1237_v45 = vrot.slane %v1236_v0, 1 }
 0x183   :  { %v1282_v53 = vrot.slane %v1281_v24, 4  ;;  %v1250_v41 = vadd.f32 %v1249_v20, %v1248_v11  ;;  %v1263_v34 = vrot.slane %v1262_v21, 2  ;;  %v1276_v46 = vadd.f32 %v1275_v22, %v1274_v14 }
 0x184   :  { %v1295_v4 = vsel %vm684_vm0, %v1219_v18, 0.0  ;;  %v1222_v35 = vmul.f32 %v2038_v32, %v2038_v32  ;;  %v1223_v55 = vmul.f32 %v2041_v27, %v2041_v27  ;;  %v1270_v56 = vrot.slane %v1269_v33, 2 }
 0x185   :  { %v1289_v48 = vrot.slane %v1288_v38, 4  ;;  %v1224_v58 = vmul.f32 %v2044_v28, %v2044_v28  ;;  %v1244_v59 = vrot.slane %v1243_v43, 1  ;;  %v1257_v47 = vadd.f32 %v1256_v44, %v1255_v17 }
 0x186   :  { %v1302_v60 = vsel %vm684_vm0, %v1220_v30, 0.0  ;;  %v1231_v61 = vadd.f32 %v1230_v39, %v1229_v19  ;;  %v1238_v62 = vadd.f32 %v1237_v45, %v1236_v0  ;;  %v1283_v1 = vadd.f32 %v1282_v53, %v1281_v24 }
 0x187   :  { %v1296_v49 = vrot.slane %v1295_v4, 4  ;;  %v1251_v2 = vrot.slane %v1250_v41, 1  ;;  %v1264_v5 = vadd.f32 %v1263_v34, %v1262_v21  ;;  %v1277_v6 = vrot.slane %v1276_v46, 2 }
 0x188   :  { %v1309_v7 = vsel %vm684_vm0, %v1221_v40, 0.0  ;;  %v1271_v9 = vadd.f32 %v1270_v56, %v1269_v33  ;;  %v1290_v10 = vadd.f32 %v1289_v48, %v1288_v38  ;;  %v1303_v25 = vrot.slane %v1302_v60, 4 }
 0x189   :  { %v1245_v11 = vadd.f32 %v1244_v59, %v1243_v43  ;;  %v1258_v12 = vrot.slane %v1257_v47, 1  ;;  %v1316_v13 = vsel %vm684_vm0, %v1222_v35, 0.0  ;;  %v1323_v14 = vsel %vm684_vm0, %v1223_v55, 0.0 }
 0x18a   :  { %v1284_v15 = vrot.slane %v1283_v1, 2  ;;  %v1297_v16 = vadd.f32 %v1296_v49, %v1295_v4  ;;  %v1310_v17 = vrot.slane %v1309_v7, 4  ;;  %v1337_v18 = vadd.f32 %v1238_v62, %v1231_v61 }
 0x18b   :  { %v1252_v19 = vadd.f32 %v1251_v2, %v1250_v41  ;;  %v1265_v0 = vrot.slane %v1264_v5, 1  ;;  %v1278_v20 = vadd.f32 %v1277_v6, %v1276_v46  ;;  %v1330_v21 = vsel %vm684_vm0, %v1224_v58, 0.0 }
 0x18c   :  { %v1291_v22 = vrot.slane %v1290_v10, 2  ;;  %v1304_v24 = vadd.f32 %v1303_v25, %v1302_v60  ;;  %v1317_v33 = vrot.slane %v1316_v13, 4  ;;  %v1338_v30 = vadd.f32 %v1337_v18, %v1245_v11 }
 0x18d   :  { %v1259_v44 = vadd.f32 %v1258_v12, %v1257_v47  ;;  %v1272_v43 = vrot.slane %v1271_v9, 1  ;;  %v1324_v38 = vrot.slane %v1323_v14, 4  ;;  %v1285_v40 = vadd.f32 %v1284_v15, %v1283_v1 }
 0x18e   :  { %v1298_v39 = vrot.slane %v1297_v16, 2  ;;  %v1311_v45 = vadd.f32 %v1310_v17, %v1309_v7  ;;  %v1339_v53 = vadd.f32 %v1338_v30, %v1252_v19  ;;  %v1266_v34 = vadd.f32 %v1265_v0, %v1264_v5 }
 0x18f   :  { %v1279_v4 = vrot.slane %v1278_v20, 1  ;;  %v1331_v35 = vrot.slane %v1330_v21, 4  ;;  %v1292_v55 = vadd.f32 %v1291_v22, %v1290_v10  ;;  %v1305_v41 = vrot.slane %v1304_v24, 2 }
 0x190   :  { %v1318_v56 = vadd.f32 %v1317_v33, %v1316_v13  ;;  %v1340_v46 = vadd.f32 %v1339_v53, %v1259_v44  ;;  %v1273_v48 = vadd.f32 %v1272_v43, %v1271_v9  ;;  %v1325_v58 = vadd.f32 %v1324_v38, %v1323_v14 }
 0x191   :  { %v1286_v59 = vrot.slane %v1285_v40, 1  ;;  %v1299_v60 = vadd.f32 %v1298_v39, %v1297_v16  ;;  %v1312_v61 = vrot.slane %v1311_v45, 2  ;;  %v1280_v47 = vadd.f32 %v1279_v4, %v1278_v20 }
 0x192   :  { %v1341_v62 = vadd.f32 %v1340_v46, %v1266_v34  ;;  %v1332_v49 = vadd.f32 %v1331_v35, %v1330_v21  ;;  %v1293_v2 = vrot.slane %v1292_v55, 1  ;;  %v1306_v1 = vadd.f32 %v1305_v41, %v1304_v24  ;;  %v1353_v41 = vld [vmem:[#allocation4] sm:$0x1] }
 0x193   :  { %v1319_v6 = vrot.slane %v1318_v56, 2  ;;  %v1326_v25 = vrot.slane %v1325_v58, 2  ;;  %v1287_v5 = vadd.f32 %v1286_v59, %v1285_v40  ;;  %v1300_v11 = vrot.slane %v1299_v60, 1 }
 0x194   :  { %v1342_v7 = vadd.f32 %v1341_v62, %v1273_v48  ;;  %v1313_v12 = vadd.f32 %v1312_v61, %v1311_v45  ;;  %v1333_v15 = vrot.slane %v1332_v49, 2  ;;  %v1294_v13 = vadd.f32 %v1293_v2, %v1292_v55  ;;  %v1714_v2 = vld [vmem:[#allocation6] ss:$0 sm:$0xff] }
 0x195   :  { %v1307_v17 = vrot.slane %v1306_v1, 1  ;;  %v1320_v9 = vadd.f32 %v1319_v6, %v1318_v56  ;;  %v1301_v18 = vadd.f32 %v1300_v11, %v1299_v60  ;;  %v1327_v19 = vadd.f32 %v1326_v25, %v1325_v58 }
 0x196   :  { %v1343_v10 = vadd.f32 %v1342_v7, %v1280_v47  ;;  %v1314_v16 = vrot.slane %v1313_v12, 1  ;;  %v1334_v22 = vadd.f32 %v1333_v15, %v1332_v49  ;;  %v1818_v46 = vmov 1966171168  }
 0x197   :  { %v1308_v20 = vadd.f32 %v1307_v17, %v1306_v1  ;;  %v1321_v21 = vrot.slane %v1320_v9, 1  ;;  %v1328_v30 = vrot.slane %v1327_v19, 1  ;;  %v1483_v48 = vunpack.c.l.s4 %v1818_v46 }
 0x198   :  { %v1344_v14 = vadd.f32 %v1343_v10, %v1287_v5  ;;  %v1315_v33 = vadd.f32 %v1314_v16, %v1313_v12  ;;  %v1335_v38 = vrot.slane %v1334_v22, 1 }
 0x199   :  { %v1322_v43 = vadd.f32 %v1321_v21, %v1320_v9  ;;  %v1329_v39 = vadd.f32 %v1328_v30, %v1327_v19  ;;  %v1484_v60 = vunpack.c.0.s8 %v1483_v48 }
 0x19a   :  { %v1345_v0 = vadd.f32 %v1344_v14, %v1294_v13  ;;  %v1336_v53 = vadd.f32 %v1335_v38, %v1334_v22 }
 0x19c   :  { %v1346_v24 = vadd.f32 %v1345_v0, %v1301_v18 }
 0x19e   :  { %v1347_v44 = vadd.f32 %v1346_v24, %v1308_v20  ;;  %v1487_v20 = vsub.s32 %v1484_v60, %v1962_v23 }
 0x1a0   :  { %v1348_v40 = vadd.f32 %v1347_v44, %v1315_v33 }
 0x1a2   :  { %v1349_v45 = vadd.f32 %v1348_v40, %v1322_v43 }
 0x1a4   :  { %v1350_v34 = vadd.f32 %v1349_v45, %v1329_v39 }
 0x1a6   :  { %v1351_v4 = vadd.f32 %v1350_v34, %v1336_v53 }
 0x1a8   :  { %v1352_v35 = vmul.f32 0.03125, %v1351_v4 }
 0x1aa   :  { %v1354_v55 = vadd.f32 1e-05, %v1352_v35 }
 0x1ac   :  { %1746 = vrsqrt.f32 %v1354_v55 }
 0x1b9   :  { %v1747_v56 = vpop.eup %1746 }
 0x1ba   :  { %v1356_v58 = vmul.f32 %v1747_v56, %v1353_v41 }
 0x1bc   :  { %v1361_v59 = vrot.slane %v1356_v58, %v1191_v29 }
 0x1be   :  { %v1362_v61 = vmul.f32 %v1361_v59, %v1968_v36  ;;  %v1363_v62 = vmul.f32 %v1361_v59, %v1971_v37  ;;  %v1364_v47 = vmul.f32 %v1361_v59, %v1974_v42  ;;  %v1365_v49 = vmul.f32 %v1361_v59, %v1981_v50 }
 0x1bf   :  { %v1366_v1 = vmul.f32 %v1361_v59, %v1984_v51  ;;  %v1367_v6 = vmul.f32 %v1361_v59, %v1991_v52  ;;  %v1368_v7 = vmul.f32 %v1361_v59, %v1996_v54  ;;  %v1369_v25 = vmul.f32 %v1361_v59, %v2002_v57 }
 0x1c0   :  { %v1370_v29 = vmul.f32 %v1361_v59, %v2011_v63  ;;  %v1371_v5 = vmul.f32 %v1361_v59, %v2017_v3  ;;  %v1372_v36 = vmul.f32 %v1361_v59, %v2021_v8  ;;  %v1373_v37 = vmul.f32 %v1361_v59, %v2027_v31 }
 0x1c1   :  { %v1374_v42 = vmul.f32 %v1361_v59, %v2032_v26  ;;  %v1375_v50 = vmul.f32 %v1361_v59, %v2038_v32  ;;  %v1376_v51 = vmul.f32 %v1361_v59, %v2041_v27  ;;  %v1377_v52 = vmul.f32 %v1361_v59, %v2044_v28 }
 0x1c2   :  { %v1382_v11 = vadd.f32 %v1714_v2, %v1362_v61  ;;  %v1383_v54 = vadd.f32 %v1714_v2, %v1363_v62  ;;  %v1384_v12 = vadd.f32 %v1714_v2, %v1364_v47  ;;  %v1385_v57 = vadd.f32 %v1714_v2, %v1365_v49 }
 0x1c3   :  { %v1386_v10 = vadd.f32 %v1714_v2, %v1366_v1  ;;  %v1387_v63 = vadd.f32 %v1714_v2, %v1367_v6  ;;  %v1388_v15 = vadd.f32 %v1714_v2, %v1368_v7  ;;  %v1389_v3 = vadd.f32 %v1714_v2, %v1369_v25 }
 0x1c4   :  { %v1390_v13 = vadd.f32 %v1714_v2, %v1370_v29  ;;  %v1391_v8 = vadd.f32 %v1714_v2, %v1371_v5  ;;  %v1392_v17 = vadd.f32 %v1714_v2, %v1372_v36  ;;  %v1393_v31 = vadd.f32 %v1714_v2, %v1373_v37 }
 0x1c5   :  { %v1394_v9 = vadd.f32 %v1714_v2, %v1374_v42  ;;  %v1395_v26 = vadd.f32 %v1714_v2, %v1375_v50  ;;  %v1396_v14 = vadd.f32 %v1714_v2, %v1376_v51  ;;  %v1397_v32 = vadd.f32 %v1714_v2, %v1377_v52 }
 0x1c6   :  { %vm1398_vm2 = vcmp.gt.f32.partialorder %v1382_v11, 0.0  ;;  %vm1399_vm3 = vcmp.gt.f32.partialorder %v1383_v54, 0.0  ;;  %vm1400_vm4 = vcmp.gt.f32.partialorder %v1384_v12, 0.0  ;;  %vm1401_vm5 = vcmp.gt.f32.partialorder %v1385_v57, 0.0 }
 0x1c7   :  { %vm1402_vm6 = vcmp.gt.f32.partialorder %v1386_v10, 0.0  ;;  %vm1403_vm7 = vcmp.gt.f32.partialorder %v1387_v63, 0.0  ;;  %vm1404_vm8 = vcmp.gt.f32.partialorder %v1388_v15, 0.0  ;;  %vm1405_vm9 = vcmp.gt.f32.partialorder %v1389_v3, 0.0 }
 0x1c8   :  { %vm1406_vm10 = vcmp.gt.f32.partialorder %v1390_v13, 0.0  ;;  %vm1407_vm11 = vcmp.gt.f32.partialorder %v1391_v8, 0.0  ;;  %vm1408_vm12 = vcmp.gt.f32.partialorder %v1392_v17, 0.0  ;;  %vm1409_vm13 = vcmp.gt.f32.partialorder %v1393_v31, 0.0 }
 0x1c9   :  { %vm1410_vm14 = vcmp.gt.f32.partialorder %v1394_v9, 0.0  ;;  %vm1411_vm15 = vcmp.gt.f32.partialorder %v1395_v26, 0.0  ;;  %vm1412_vm0 = vcmp.gt.f32.partialorder %v1396_v14, 0.0  ;;  %vm1413_vm1 = vcmp.gt.f32.partialorder %v1397_v32, 0.0 }
 0x1ca   :  { %v1414_v27 = vmul.f32 0.2, %v1382_v11  ;;  %v1415_v28 = vmul.f32 0.2, %v1383_v54  ;;  %v1416_v18 = vmul.f32 0.2, %v1384_v12 }
 0x1cb   :  { %v1417_v16 = vmul.f32 0.2, %v1385_v57  ;;  %v1418_v19 = vmul.f32 0.2, %v1386_v10  ;;  %v1419_v0 = vmul.f32 0.2, %v1387_v63 }
 0x1cc   :  { %v1420_v21 = vmul.f32 0.2, %v1388_v15  ;;  %v1421_v22 = vmul.f32 0.2, %v1389_v3  ;;  %v1422_v24 = vmul.f32 0.2, %v1390_v13  ;;  %v1430_v33 = vsel %vm1398_vm2, %v1382_v11, %v1414_v27 }
 0x1cd   :  { %v1423_v30 = vmul.f32 0.2, %v1391_v8  ;;  %v1424_v44 = vmul.f32 0.2, %v1392_v17  ;;  %v1425_v43 = vmul.f32 0.2, %v1393_v31  ;;  %v1431_v38 = vsel %vm1399_vm3, %v1383_v54, %v1415_v28 }
 0x1ce   :  { %v1426_v40 = vmul.f32 0.2, %v1394_v9  ;;  %v1427_v39 = vmul.f32 0.2, %v1395_v26  ;;  %v1428_v45 = vmul.f32 0.2, %v1396_v14  ;;  %v1432_v53 = vsel %vm1400_vm4, %v1384_v12, %v1416_v18 }
 0x1cf   :  { %v1429_v34 = vmul.f32 0.2, %v1397_v32  ;;  %v1433_v4 = vsel %vm1401_vm5, %v1385_v57, %v1417_v16  ;;  %v1434_v23 = vsel %vm1402_vm6, %v1386_v10, %v1418_v19  ;;  %v1435_v35 = vsel %vm1403_vm7, %v1387_v63, %v1419_v0 }
 0x1d0   :  { %v1436_v55 = vsel %vm1404_vm8, %v1388_v15, %v1420_v21  ;;  %v1437_v41 = vsel %vm1405_vm9, %v1389_v3, %v1421_v22  ;;  %v1438_v56 = vsel %vm1406_vm10, %v1390_v13, %v1422_v24  ;;  %v1439_v46 = vsel %vm1407_vm11, %v1391_v8, %v1423_v30 }
 0x1d1   :  { %v1440_v48 = vsel %vm1408_vm12, %v1392_v17, %v1424_v44  ;;  %v1441_v58 = vsel %vm1409_vm13, %v1393_v31, %v1425_v43  ;;  %v1442_v59 = vsel %vm1410_vm14, %v1394_v9, %v1426_v40  ;;  %v1443_v60 = vsel %vm1411_vm15, %v1395_v26, %v1427_v39 }
 0x1d2   :  { %v1444_v61 = vsel %vm1412_vm0, %v1396_v14, %v1428_v45  ;;  %v1445_v62 = vsel %vm1413_vm1, %v1397_v32, %v1429_v34  ;;  %v1715_v47 = vpack.c.bf16 %v1431_v38, %v1430_v33  ;;  %v1716_v49 = vpack.c.bf16 %v1433_v4, %v1432_v53 }
 0x1d3   :  { %v1717_v2 = vpack.c.bf16 %v1435_v35, %v1434_v23  ;;  %v1718_v1 = vpack.c.bf16 %v1437_v41, %v1436_v55  ;;  %v1719_v6 = vpack.c.bf16 %v1439_v46, %v1438_v56  ;;  %v1720_v7 = vpack.c.bf16 %v1441_v58, %v1440_v48 }
 0x1d4   :  { %v1488_v25 = vrot.slane %v1715_v47, %v1487_v20  ;;  %v1495_v29 = vrot.slane %v1716_v49, %v1487_v20  ;;  %v1721_v5 = vpack.c.bf16 %v1443_v60, %v1442_v59  ;;  %v1722_v36 = vpack.c.bf16 %v1445_v62, %v1444_v61 }
 0x1d5   :  { %v1502_v37 = vrot.slane %v1717_v2, %v1487_v20  ;;  %v1509_v42 = vrot.slane %v1718_v1, %v1487_v20  ;;  %v1537_v50 = vrot.slane %v1719_v6, %v1487_v20  ;;  %v1544_v51 = vrot.slane %v1720_v7, %v1487_v20 }
 0x1d6   :  { %v1510_v52 = vcombine.low %v1488_v25, %v1495_v29  ;;  %v1551_v11 = vrot.slane %v1721_v5, %v1487_v20  ;;  %v1558_v54 = vrot.slane %v1722_v36, %v1487_v20 }
 0x1d7   :  { %v1511_v12 = vcombine.low %v1502_v37, %v1509_v42  ;;  %v1559_v57 = vcombine.low %v1537_v50, %v1544_v51 }
 0x1d8   :  { %v1518_v10 = vrot.slane %v1510_v52, %v1487_v20  ;;  %v1560_v63 = vcombine.low %v1551_v11, %v1558_v54 }
 0x1d9   :  { %v1525_v15 = vrot.slane %v1511_v12, %v1487_v20  ;;  %v1567_v3 = vrot.slane %v1559_v57, %v1487_v20 }
 0x1da   :  { %v1574_v13 = vrot.slane %v1560_v63, %v1487_v20 }
 0x1db   :  { %v1526_v8 = vcombine.low %v1518_v10, %v1525_v15 }
 0x1dc   :  { %v1575_v17 = vcombine.low %v1567_v3, %v1574_v13 }
 0x1dd   :  { %1578 = vst [vmem:[%s2108_s4] sm:$0xff] %v1526_v8 }
 0x1de   :  { %1579 = vst [vmem:[%s2108_s4 + $0x8] sm:$0xff] %v1575_v17 }
 0x1df   :  { %1584 = vsyncpa [#allocation3], 1 }
 0x1e0   :  { %1585 = vsyncpa [#allocation5], 1 }

// kernel: generator_forward.6
= control target key start
LH: loop header
LB: loop body
LE: loop exit
PB: predicated region body
PF: predicated region fallthrough
CT: control target
= control target key end

     0   :  { %10 = vsyncpa [#allocation4], 0  ;;  %s4169_s0 = inlined_call_operand.vmem [shape: bf16[48,384], index: 0, kind: input, shape index: {}]   ;;  %s4170_s1 = inlined_call_operand.hbm [shape: bf16[3,384,256], index: 1, kind: input, shape index: {}]   ;;  %s4171_s2 = inlined_call_operand.hbm [shape: f32[256,256], index: 2, kind: input, shape index: {}]   ;;  %s4172_s3 = inlined_call_operand.hbm [shape: f32[1,256], index: 3, kind: input, shape index: {}]   ;;  %s4173_s4 = inlined_call_operand.hbm [shape: f32[1,256], index: 4, kind: input, shape index: {}]   ;;  %s4174_s5 = inlined_call_operand.vmem [shape: bf16[32,256], index: 5, kind: output, shape index: {}]  }
   0x1   :  { %11 = vsyncpa [#allocation6], 0 }
   0x2   :  { %12 = vsyncpa [#allocation9], 0  ;;  %s3628_s18 = smov [#allocation5]  }
   0x3   :  { %s32_s19 = sshll.u32 %s3628_s18, 4  ;;  %s33_s19 = int_to_ptr.vmem [resolvable:$true] %s32_s19 }
   0x4   :  { %s3550_s20 = scalar_lea.vmem %s33_s19, 8192  ;;  %p3555_p1 = scmp.lt.s32.totalorder %s33_s19, %s33_s19 }
   0x5   :  { %p3551_p0 = scmp.ne.s32.totalorder %s33_s19, %s3550_s20  ;;  %p3556_p2 = scmp.lt.s32.totalorder %s3550_s20, %s3550_s20 }
   0x7   :  { %p3557_p3 = por %p3556_p2, %p3555_p1 }
   0x9   :  { %p3558_p4 = pnand %p3557_p3, %p3551_p0 }
   0xb   :  { %3561 = shalt.err (!%p3558_p4)
}
   0xc   :  { %s3629_s21 = smov 256   ;;  %s3630_s22 = smov 16  }
   0xd   :  { %38 = dma.hbm_to_vmem [thread:$0]  %s4171_s2, 8192, %s33_s19, [#allocation6], %s3629_s21, %s3629_s21, %s3630_s22  }
   0xe   :  { %s3631_s25 = smov [#allocation3]  }
   0xf   :  { %s20_s26 = sshll.u32 %s3631_s25, 4  ;;  %s21_s26 = int_to_ptr.vmem [resolvable:$true] %s20_s26 }
  0x10   :  { %s3570_s27 = scalar_lea.vmem %s21_s26, 18432  ;;  %p3575_p6 = scmp.lt.s32.totalorder %s21_s26, %s21_s26 }
  0x11   :  { %p3571_p5 = scmp.ne.s32.totalorder %s21_s26, %s3570_s27  ;;  %p3576_p7 = scmp.lt.s32.totalorder %s3570_s27, %s3570_s27 }
  0x13   :  { %p3577_p8 = por %p3576_p7, %p3575_p6 }
  0x15   :  { %p3578_p9 = pnand %p3577_p8, %p3571_p5 }
  0x17   :  { %3581 = shalt.err (!%p3578_p9)
}
  0x18   :  { %s3632_s28 = smov 128   ;;  %s3633_s29 = smov 8  }
  0x19   :  { %26 = dma.hbm_to_vmem [thread:$0]  %s4170_s1, 18432, %s21_s26, [#allocation4], %s3632_s28, %s3632_s28, %s3633_s29  }
  0x1a   :  { %s3634_s7 = smov [#allocation7]   ;;  %s3635_s9 = smov [#allocation8]  }
  0x1b   :  { %s45_s8 = sshll.u32 %s3634_s7, 4  ;;  %s55_s2 = sshll.u32 %s3635_s9, 4  ;;  %s46_s8 = int_to_ptr.vmem [resolvable:$true] %s45_s8  ;;  %s56_s2 = int_to_ptr.vmem [resolvable:$true] %s55_s2 }
  0x1c   :  { %s3590_s10 = scalar_lea.vmem %s46_s8, 32  ;;  %p3595_p11 = scmp.lt.s32.totalorder %s46_s8, %s46_s8 }
  0x1d   :  { %p3591_p10 = scmp.ne.s32.totalorder %s46_s8, %s3590_s10  ;;  %p3596_p12 = scmp.lt.s32.totalorder %s3590_s10, %s3590_s10 }
  0x1f   :  { %p3597_p13 = por %p3596_p12, %p3595_p11 }
  0x21   :  { %p3598_p0 = pnand %p3597_p13, %p3591_p10 }
  0x23   :  { %3601 = shalt.err (!%p3598_p0)
}
  0x24   :  { %48 = dma.hbm_to_vmem [thread:$0]  %s4172_s3, 32, %s46_s8, [#allocation6]  }
  0x25   :  { %s3610_s13 = scalar_lea.vmem %s56_s2, 32  ;;  %p3615_p2 = scmp.lt.s32.totalorder %s56_s2, %s56_s2 }
  0x26   :  { %p3611_p1 = scmp.ne.s32.totalorder %s56_s2, %s3610_s13  ;;  %p3616_p3 = scmp.lt.s32.totalorder %s3610_s13, %s3610_s13 }
  0x28   :  { %p3617_p4 = por %p3616_p3, %p3615_p2 }
  0x2a   :  { %p3618_p5 = pnand %p3617_p4, %p3611_p1 }
  0x2c   :  { %3621 = shalt.err (!%p3618_p5)
}
  0x2d   :  { %58 = dma.hbm_to_vmem [thread:$0]  %s4173_s4, 32, %s56_s2, [#allocation9]  }
  0x2e   :  { %3622 = dma.done.wait [#allocation4], 18432  }
  0x2f   :  { %3623 = vsyncadd [#allocation4], 4294948864 }
  0x30   :  { %3624 = dma.done.wait [#allocation6], 8224  }
  0x31   :  { %3625 = vsyncadd [#allocation6], 4294959072 }
  0x32   :  { %3626 = dma.done.wait [#allocation9], 32  }
  0x33   :  { %3627 = vsyncadd [#allocation9], 4294967264  ;;  %v4178_v0 = vmov 0   ;;  %v3681_v1 = vld [vmem:[#allocation3 + $0x1f4] ss:$8 sps:$4 sm:$0xff]   ;;  %vm198_vm0 = vcmask 1045504  }
  0x34   :  { %526 = vmatprep.mubr.bf16.mxu1 %v4178_v0  ;;  %v3204_v2 = vld [vmem:[#allocation3 + $0x2f4] ss:$8 sps:$4 sm:$0xff]   ;;  %451 = vmatprep.subr.bf16.mxu0 %v3681_v1  ;;  %v3684_v3 = vld [vmem:[#allocation3 + $0x1f0] ss:$8 sps:$4 sm:$0xff]   ;;  %v3686_v5 = vld [vmem:[#allocation3 + $0x1e4] ss:$8 sps:$4 sm:$0xff]  }
  0x35   :  { %v3207_v4 = vld [vmem:[#allocation3 + $0x2f0] ss:$8 sps:$4 sm:$0xff]   ;;  %494 = vmatprep.subr.bf16.mxu1 %v3204_v2  ;;  %452 = vmatpush1.bf16.msra.mxu0 %v3684_v3  ;;  %v3210_v6 = vld [vmem:[#allocation3 + $0x2e4] ss:$8 sps:$4 sm:$0xff]   ;;  %v3689_v7 = vld [vmem:[#allocation3 + $0x1e0] ss:$8 sps:$4 sm:$0xff]  }
  0x36   :  { %495 = vmatpush1.bf16.msra.mxu1 %v3207_v4  ;;  %453 = vmatprep.subr.bf16.mxu0 %v3686_v5  ;;  %v3213_v8 = vld [vmem:[#allocation3 + $0x2e0] ss:$8 sps:$4 sm:$0xff]   ;;  %v3692_v9 = vld [vmem:[#allocation3 + $0x1d4] ss:$8 sps:$4 sm:$0xff]   ;;  %v3694_v11 = vld [vmem:[#allocation3 + $0x1d0] ss:$8 sps:$4 sm:$0xff]  }
  0x37   :  { %496 = vmatprep.subr.bf16.mxu1 %v3210_v6  ;;  %v3216_v10 = vld [vmem:[#allocation3 + $0x2d4] ss:$8 sps:$4 sm:$0xff]   ;;  %v3219_v12 = vld [vmem:[#allocation3 + $0x2d0] ss:$8 sps:$4 sm:$0xff]   ;;  %v3697_v13 = vld [vmem:[#allocation3 + $0x1c4] ss:$8 sps:$4 sm:$0xff]  }
  0x38   :  { %v3222_v14 = vld [vmem:[#allocation3 + $0x2c4] ss:$8 sps:$4 sm:$0xff]   ;;  %v3700_v15 = vld [vmem:[#allocation3 + $0x1c0] ss:$8 sps:$4 sm:$0xff]   ;;  %v3703_v17 = vld [vmem:[#allocation3 + $0x1b4] ss:$8 sps:$4 sm:$0xff]  }
  0x39   :  { %454 = vmatpush1.bf16.msra.mxu0 %v3689_v7  ;;  %v3225_v16 = vld [vmem:[#allocation3 + $0x2c0] ss:$8 sps:$4 sm:$0xff]   ;;  %v3228_v18 = vld [vmem:[#allocation3 + $0x2b4] ss:$8 sps:$4 sm:$0xff]   ;;  %v3706_v19 = vld [vmem:[#allocation3 + $0x1b0] ss:$8 sps:$4 sm:$0xff]  }
  0x3a   :  { %497 = vmatpush1.bf16.msra.mxu1 %v3213_v8  ;;  %455 = vmatprep.subr.bf16.mxu0 %v3692_v9  ;;  %v3231_v20 = vld [vmem:[#allocation3 + $0x2b0] ss:$8 sps:$4 sm:$0xff]   ;;  %v3709_v21 = vld [vmem:[#allocation3 + $0x1a4] ss:$8 sps:$4 sm:$0xff]   ;;  %v3712_v23 = vld [vmem:[#allocation3 + $0x1a0] ss:$8 sps:$4 sm:$0xff]  }
  0x3b   :  { %498 = vmatprep.subr.bf16.mxu1 %v3216_v10  ;;  %v3234_v22 = vld [vmem:[#allocation3 + $0x2a4] ss:$8 sps:$4 sm:$0xff]   ;;  %v3237_v24 = vld [vmem:[#allocation3 + $0x2a0] ss:$8 sps:$4 sm:$0xff]   ;;  %v3715_v25 = vld [vmem:[#allocation3 + $0x194] ss:$8 sps:$4 sm:$0xff]  }
  0x3c   :  { %v3240_v26 = vld [vmem:[#allocation3 + $0x294] ss:$8 sps:$4 sm:$0xff]   ;;  %v3718_v27 = vld [vmem:[#allocation3 + $0x190] ss:$8 sps:$4 sm:$0xff]   ;;  %v125_v29 = vld [vmem:[%s4169_s0 + $0x8] sm:$0xc] }
  0x3d   :  { %456 = vmatpush1.bf16.msra.mxu0 %v3694_v11  ;;  %v3723_v28 = vld [vmem:[%s4169_s0 + $0x14] sm:$0xf]  ;;  %v3243_v30 = vld [vmem:[#allocation3 + $0x290] ss:$8 sps:$4 sm:$0xff]   ;;  %v3729_v31 = vld [vmem:[#allocation3 + $0x184] ss:$8 sps:$4 sm:$0xff]  }
  0x3e   :  { %499 = vmatpush1.bf16.msra.mxu1 %v3219_v12  ;;  %457 = vmatprep.subr.bf16.mxu0 %v3697_v13  ;;  %v2874_v32 = vcombine.low %v125_v29, %v3723_v28  ;;  %v3253_v33 = vld [vmem:[%s4169_s0 + $0x20] ss:$0 sps:$4 sm:$0x33]   ;;  %v3246_v34 = vld [vmem:[#allocation3 + $0x284] ss:$8 sps:$4 sm:$0xff]  }
  0x3f   :  { %500 = vmatprep.subr.bf16.mxu1 %v3222_v14  ;;  %v3736_v35 = vld [vmem:[#allocation3 + $0x180] ss:$8 sps:$4 sm:$0xff]   ;;  %v3739_v37 = vld [vmem:[#allocation3 + $0x274] ss:$8 sps:$4 sm:$0xff]   ;;  %v206_v39 = vrot.slane %v3253_v33, 2  ;;  %v3769_v57 = vld [vmem:[%s4169_s0 + $0xc] sm:$0xff] }
  0x40   :  { %v3249_v36 = vld [vmem:[#allocation3 + $0x280] ss:$8 sps:$4 sm:$0xff]   ;;  %v205_v38 = vrot.slane %v2874_v32, 2  ;;  %v3256_v40 = vld [vmem:[#allocation3 + $0x74] ss:$8 sps:$4 sm:$0xff]  }
  0x41   :  { %458 = vmatpush1.bf16.msra.mxu0 %v3700_v15  ;;  %v3254_v41 = vld [vmem:[#allocation3 + $0x70] ss:$8 sps:$4 sm:$0xff]   ;;  %v3746_v44 = vld [vmem:[#allocation3 + $0x264] ss:$8 sps:$4 sm:$0xff]   ;;  %v3260_v46 = vld [vmem:[#allocation3 + $0x60] ss:$8 sps:$4 sm:$0xff]  }
  0x42   :  { %501 = vmatpush1.bf16.msra.mxu1 %v3225_v16  ;;  %459 = vmatprep.subr.bf16.mxu0 %v3703_v17  ;;  %v207_v42 = vsel %vm198_vm0, %v205_v38, %v206_v39  ;;  %v3744_v43 = vld [vmem:[#allocation3 + $0x270] ss:$8 sps:$4 sm:$0xff]   ;;  %v3262_v45 = vld [vmem:[#allocation3 + $0x64] ss:$8 sps:$4 sm:$0xff]   ;;  %v3749_v47 = vld [vmem:[#allocation3 + $0x260] ss:$8 sps:$4 sm:$0xff]  }
  0x43   :  { %502 = vmatprep.subr.bf16.mxu1 %v3228_v18  ;;  %v3752_v48 = vld [vmem:[#allocation3 + $0x254] ss:$8 sps:$4 sm:$0xff]   ;;  %v3266_v50 = vld [vmem:[#allocation3 + $0x50] ss:$8 sps:$4 sm:$0xff]   ;;  %v3758_v52 = vld [vmem:[#allocation3 + $0x244] ss:$8 sps:$4 sm:$0xff]  }
  0x44   :  { %v3268_v49 = vld [vmem:[#allocation3 + $0x54] ss:$8 sps:$4 sm:$0xff]   ;;  %v3756_v51 = vld [vmem:[#allocation3 + $0x250] ss:$8 sps:$4 sm:$0xff]   ;;  %v3274_v53 = vld [vmem:[#allocation3 + $0x44] ss:$8 sps:$4 sm:$0xff]  }
  0x45   :  { %460 = vmatpush1.bf16.msra.mxu0 %v3706_v19  ;;  %v3272_v54 = vld [vmem:[#allocation3 + $0x40] ss:$8 sps:$4 sm:$0xff]   ;;  %v3763_v56 = vld [vmem:[#allocation3 + $0x234] ss:$8 sps:$4 sm:$0xff]   ;;  %v3278_v63 = vld [vmem:[#allocation3 + $0x30] ss:$8 sps:$4 sm:$0xff]  }
  0x46   :  { %503 = vmatpush1.bf16.msra.mxu1 %v3231_v20  ;;  %461 = vmatprep.subr.bf16.mxu0 %v3709_v21  ;;  %v3761_v55 = vld [vmem:[#allocation3 + $0x240] ss:$8 sps:$4 sm:$0xff]   ;;  %v126_v59 = vld [vmem:[%s4169_s0 + $0x18] sm:$0x33]  ;;  %v3782_v8 = vld [vmem:[#allocation3 + $0x224] ss:$8 sps:$4 sm:$0xff]  }
  0x47   :  { %504 = vmatprep.subr.bf16.mxu1 %v3234_v22  ;;  %v124_v58 = vld [vmem:[%s4169_s0] sm:$0xcc]  ;;  %v3280_v60 = vld [vmem:[#allocation3 + $0x34] ss:$8 sps:$4 sm:$0xff]   ;;  %v2876_v62 = vcombine.high %v126_v59, %v126_v59  ;;  %v3780_v6 = vld [vmem:[#allocation3 + $0x230] ss:$8 sps:$4 sm:$0xff]  }
  0x48   :  { %v2873_v61 = vcombine.high %v124_v58, %v3769_v57  ;;  %v3286_v10 = vld [vmem:[#allocation3 + $0x24] ss:$8 sps:$4 sm:$0xff]   ;;  %v3284_v14 = vld [vmem:[#allocation3 + $0x20] ss:$8 sps:$4 sm:$0xff]   ;;  %v3789_v18 = vld [vmem:[#allocation3 + $0x214] ss:$8 sps:$4 sm:$0xff]   ;;  %v2872_v29 = vcombine.low %v124_v58, %v3769_v57 }
  0x49   :  { %462 = vmatpush1.bf16.msra.mxu0 %v3712_v23  ;;  %v203_v4 = vrot.slane %v2876_v62, 2  ;;  %v3786_v16 = vld [vmem:[#allocation3 + $0x220] ss:$8 sps:$4 sm:$0xff]   ;;  %v3292_v20 = vld [vmem:[#allocation3 + $0x14] ss:$8 sps:$4 sm:$0xff]  }
  0x4a   :  { %505 = vmatpush1.bf16.msra.mxu1 %v3237_v24  ;;  %463 = vmatprep.subr.bf16.mxu0 %v3715_v25  ;;  %v202_v2 = vrot.slane %v2873_v61, 2  ;;  %v3290_v22 = vld [vmem:[#allocation3 + $0x10] ss:$8 sps:$4 sm:$0xff]   ;;  %v3298_v32 = vld [vmem:[#allocation3 + $0x4] ss:$8 sps:$4 sm:$0xff]  }
  0x4b   :  { %506 = vmatprep.subr.bf16.mxu1 %v3240_v26  ;;  %v3792_v24 = vld [vmem:[#allocation3 + $0x210] ss:$8 sps:$4 sm:$0xff]   ;;  %v3795_v26 = vld [vmem:[#allocation3 + $0x204] ss:$8 sps:$4 sm:$0xff]   ;;  %v3296_v33 = vld [vmem:[#allocation3] ss:$8 sps:$4 sm:$0xff]  }
  0x4c   :  { %v204_v12 = vsel %vm198_vm0, %v202_v2, %v203_v4  ;;  %v3306_v39 = vld [vmem:[#allocation3 + $0xf4] ss:$8 sps:$4 sm:$0xff]   ;;  %v3820_v58 = vld [vmem:[#allocation3 + $0x160] ss:$8 sps:$4 sm:$0xff]   ;;  %v3316_v61 = vld [vmem:[#allocation3 + $0xd0] ss:$8 sps:$4 sm:$0xff]  }
  0x4d   :  { %464 = vmatpush1.bf16.msra.mxu0 %v3718_v27  ;;  %483 = vmatprep.mubr.bf16.mxu0 %v204_v12  ;;  %v3827_v62 = vld [vmem:[#allocation3 + $0x150] ss:$8 sps:$4 sm:$0xff]   ;;  %v3830_v2 = vld [vmem:[#allocation3 + $0x144] ss:$8 sps:$4 sm:$0xff]   ;;  %v3322_v4 = vld [vmem:[#allocation3 + $0xc0] ss:$8 sps:$4 sm:$0xff]  }
  0x4e   :  { %507 = vmatpush1.bf16.msra.mxu1 %v3243_v30  ;;  %465 = vmatprep.subr.bf16.mxu0 %v3729_v31  ;;  %v2875_v30 = vcombine.low %v126_v59, %v126_v59  ;;  %v3318_v59 = vld [vmem:[#allocation3 + $0xd4] ss:$8 sps:$4 sm:$0xff]  }
  0x4f   :  { %508 = vmatprep.subr.bf16.mxu1 %v3246_v34  ;;  %v3799_v34 = vld [vmem:[#allocation3 + $0x200] ss:$8 sps:$4 sm:$0xff]   ;;  %v3330_v12 = vld [vmem:[#allocation3 + $0xb4] ss:$8 sps:$4 sm:$0xff]  }
  0x50   :  { %v200_v38 = vrot.slane %v2875_v30, 2  ;;  %v3842_v30 = vld [vmem:[#allocation3 + $0x124] ss:$8 sps:$4 sm:$0xff]  }
  0x51   :  { %466 = vmatpush1.bf16.msra.mxu0 %v3736_v35 }
  0x52   :  { %509 = vmatpush1.bf16.msra.mxu1 %v3249_v36  ;;  %467 = vmatprep.subr.bf16.mxu0 %v3739_v37  ;;  %v199_v36 = vrot.slane %v2872_v29, 2  ;;  %v3336_v29 = vld [vmem:[#allocation3 + $0xa4] ss:$8 sps:$4 sm:$0xff]  }
  0x53   :  { %788 = vmatprep.subr.bf16.mxu1 %v3256_v40  ;;  %v3803_v40 = vld [vmem:[#allocation3 + $0x174] ss:$8 sps:$4 sm:$0xff]  }
  0x55   :  { %527 = vmatmul.mubr.bf16.vlgmr.msra.gmra.mxu1 %v207_v42  ;;  %468 = vmatpush2.bf16.msra.mxu0 %v3744_v43  ;;  %v3805_v42 = vld [vmem:[#allocation3 + $0x170] ss:$8 sps:$4 sm:$0xff]  }
  0x56   :  { %789 = vmatpush1.bf16.msra.mxu1 %v3254_v41  ;;  %469 = vmatprep.subr.bf16.mxu0 %v3746_v44  ;;  %v3304_v41 = vld [vmem:[#allocation3 + $0xf0] ss:$8 sps:$4 sm:$0xff]  }
  0x57   :  { %790 = vmatprep.subr.bf16.mxu1 %v3262_v45  ;;  %v201_v45 = vsel %vm198_vm0, %v199_v36, %v200_v38  ;;  %v3342_v36 = vld [vmem:[#allocation3 + $0x94] ss:$8 sps:$4 sm:$0xff]  }
  0x58   :  { %v3848_v38 = vld [vmem:[#allocation3 + $0x114] ss:$8 sps:$4 sm:$0xff]  }
  0x59   :  { %470 = vmatpush2.bf16.msra.mxu0 %v3749_v47  ;;  %4194 = vst [vmem:[#allocation13_spill] sm:$0xff] %v3848_v38 }
  0x5a   :  { %791 = vmatpush1.bf16.msra.mxu1 %v3260_v46  ;;  %471 = vmatprep.subr.bf16.mxu0 %v3752_v48  ;;  %v3312_v46 = vld [vmem:[#allocation3 + $0xe4] ss:$8 sps:$4 sm:$0xff]  }
  0x5b   :  { %792 = vmatprep.subr.bf16.mxu1 %v3268_v49  ;;  %v3810_v49 = vld [vmem:[#allocation3 + $0x164] ss:$8 sps:$4 sm:$0xff]  }
  0x5d   :  { %472 = vmatpush2.bf16.msra.mxu0 %v3756_v51 }
  0x5e   :  { %793 = vmatpush1.bf16.msra.mxu1 %v3266_v50  ;;  %473 = vmatprep.subr.bf16.mxu0 %v3758_v52  ;;  %v3815_v50 = vld [vmem:[%s4169_s0] sm:$0xff] }
  0x5f   :  { %794 = vmatprep.subr.bf16.mxu1 %v3274_v53  ;;  %v2927_v53 = vcombine.high %v3815_v50, %v3769_v57 }
  0x61   :  { %474 = vmatpush2.bf16.msra.mxu0 %v3761_v55  ;;  %820 = vmatprep.mubr.bf16.mxu1 %v2927_v53  ;;  %v3346_v53 = vld [vmem:[#allocation3 + $0x80] ss:$8 sps:$4 sm:$0xff]  }
  0x62   :  { %795 = vmatpush1.bf16.msra.mxu1 %v3272_v54  ;;  %475 = vmatprep.subr.bf16.mxu0 %v3763_v56  ;;  %v3310_v54 = vld [vmem:[#allocation3 + $0xe0] ss:$8 sps:$4 sm:$0xff]  }
  0x63   :  { %796 = vmatprep.subr.bf16.mxu1 %v3280_v60  ;;  %v3823_v60 = vld [vmem:[#allocation3 + $0x154] ss:$8 sps:$4 sm:$0xff]  }
  0x65   :  { %476 = vmatpush2.bf16.msra.mxu0 %v3780_v6 }
  0x66   :  { %797 = vmatpush1.bf16.msra.mxu1 %v3278_v63  ;;  %477 = vmatprep.subr.bf16.mxu0 %v3782_v8  ;;  %v3324_v63 = vld [vmem:[#allocation3 + $0xc4] ss:$8 sps:$4 sm:$0xff]  }
  0x67   :  { %798 = vmatprep.subr.bf16.mxu1 %v3286_v10  ;;  %v3833_v10 = vld [vmem:[#allocation3 + $0x140] ss:$8 sps:$4 sm:$0xff]  }
  0x69   :  { %478 = vmatpush2.bf16.msra.mxu0 %v3786_v16 }
  0x6a   :  { %799 = vmatpush1.bf16.msra.mxu1 %v3284_v14  ;;  %479 = vmatprep.subr.bf16.mxu0 %v3789_v18  ;;  %v3836_v14 = vld [vmem:[#allocation3 + $0x134] ss:$8 sps:$4 sm:$0xff]  }
  0x6b   :  { %800 = vmatprep.subr.bf16.mxu1 %v3292_v20  ;;  %v3328_v20 = vld [vmem:[#allocation3 + $0xb0] ss:$8 sps:$4 sm:$0xff]  }
  0x6d   :  { %480 = vmatpush2.bf16.msra.mxu0 %v3792_v24 }
  0x6e   :  { %801 = vmatpush1.bf16.msra.mxu1 %v3290_v22  ;;  %481 = vmatprep.subr.bf16.mxu0 %v3795_v26  ;;  %v3839_v22 = vld [vmem:[#allocation3 + $0x130] ss:$8 sps:$4 sm:$0xff]  }
  0x6f   :  { %802 = vmatprep.subr.bf16.mxu1 %v3298_v32  ;;  %v3334_v32 = vld [vmem:[#allocation3 + $0xa0] ss:$8 sps:$4 sm:$0xff]  }
  0x71   :  { %482 = vmatpush2.bf16.msra.mxu0 %v3799_v34 }
  0x72   :  { %803 = vmatpush1.bf16.msra.mxu1 %v3296_v33  ;;  %831 = vmatprep.subr.bf16.mxu0 %v3803_v40  ;;  %v3845_v33 = vld [vmem:[#allocation3 + $0x120] ss:$8 sps:$4 sm:$0xff]  }
  0x73   :  { %804 = vmatprep.subr.bf16.mxu1 %v3306_v39  ;;  %v3340_v39 = vld [vmem:[#allocation3 + $0x90] ss:$8 sps:$4 sm:$0xff]  }
  0x74   :  { %484 = vmatmul.mubr.bf16.vlgmr.msra.gmra.mxu0 %v201_v45  ;;  %v3348_v45 = vld [vmem:[#allocation3 + $0x84] ss:$8 sps:$4 sm:$0xff]  }
  0x75   :  { %832 = vmatpush1.bf16.msra.mxu0 %v3805_v42  ;;  %863 = vmatprep.mubr.bf16.mxu0 %v4178_v0 }
  0x76   :  { %805 = vmatpush2.bf16.msra.mxu1 %v3304_v41  ;;  %833 = vmatprep.subr.bf16.mxu0 %v3810_v49  ;;  %v3851_v41 = vld [vmem:[#allocation3 + $0x110] ss:$8 sps:$4 sm:$0xff]  }
  0x77   :  { %806 = vmatprep.subr.bf16.mxu1 %v3312_v46  ;;  %4195 = vst [vmem:[#allocation14_spill] sm:$0xff] %v3851_v41  ;;  %v3854_v46 = vld [vmem:[#allocation3 + $0x104] ss:$8 sps:$4 sm:$0xff]  }
  0x78   :  { %4196 = vst [vmem:[#allocation15_spill] sm:$0xff] %v3854_v46 }
  0x79   :  { %834 = vmatpush1.bf16.msra.mxu0 %v3820_v58 }
  0x7a   :  { %807 = vmatpush2.bf16.msra.mxu1 %v3310_v54  ;;  %835 = vmatprep.subr.bf16.mxu0 %v3823_v60  ;;  %v3856_v54 = vld [vmem:[#allocation3 + $0x100] ss:$8 sps:$4 sm:$0xff]  }
  0x7b   :  { %808 = vmatprep.subr.bf16.mxu1 %v3318_v59  ;;  %4197 = vst [vmem:[#allocation16_spill] sm:$0xff] %v3856_v54  ;;  %v73_v59 = vld [vmem:[%s4169_s0 + $0x8] sm:$0xf] }
  0x7d   :  { %836 = vmatpush1.bf16.msra.mxu0 %v3827_v62 }
  0x7e   :  { %809 = vmatpush2.bf16.msra.mxu1 %v3316_v61  ;;  %837 = vmatprep.subr.bf16.mxu0 %v3830_v2  ;;  %v3862_v61 = vld [vmem:[#allocation3 + $0x374] ss:$8 sps:$4 sm:$0xff]  }
  0x7f   :  { %810 = vmatprep.subr.bf16.mxu1 %v3324_v63  ;;  %4198 = vst [vmem:[#allocation17_spill] sm:$0xff] %v3862_v61  ;;  %v3360_v63 = vld [vmem:[#allocation3 + $0x474] ss:$8 sps:$4 sm:$0xff]  }
  0x81   :  { %838 = vmatpush1.bf16.msra.mxu0 %v3833_v10 }
  0x82   :  { %811 = vmatpush2.bf16.msra.mxu1 %v3322_v4  ;;  %839 = vmatprep.subr.bf16.mxu0 %v3836_v14  ;;  %v2926_v4 = vcombine.low %v3815_v50, %v3769_v57  ;;  %v3879_v50 = vld [vmem:[%s4169_s0 + $0x18] sm:$0xff] }
  0x83   :  { %812 = vmatprep.subr.bf16.mxu1 %v3330_v12  ;;  %v2928_v12 = vcombine.low %v73_v59, %v3723_v28  ;;  %v2978_v59 = vcombine.high %v3769_v57, %v3879_v50 }
  0x85   :  { %840 = vmatpush1.bf16.msra.mxu0 %v3839_v22 }
  0x86   :  { %813 = vmatpush2.bf16.msra.mxu1 %v3328_v20  ;;  %841 = vmatprep.subr.bf16.mxu0 %v3842_v30  ;;  %v3868_v20 = vld [vmem:[#allocation3 + $0x370] ss:$8 sps:$4 sm:$0xff]  }
  0x87   :  { %814 = vmatprep.subr.bf16.mxu1 %v3336_v29  ;;  %4199 = vst [vmem:[#allocation18_spill] sm:$0xff] %v3868_v20  ;;  %v3358_v29 = vld [vmem:[#allocation3 + $0x470] ss:$8 sps:$4 sm:$0xff]  }
  0x89   :  { %842 = vmatpush1.bf16.msra.mxu0 %v3845_v33 }
  0x8a   :  { %815 = vmatpush2.bf16.msra.mxu1 %v3334_v32  ;;  %843 = vmatprep.subr.bf16.mxu0 %v3848_v38  ;;  %v3871_v32 = vld [vmem:[#allocation3 + $0x364] ss:$8 sps:$4 sm:$0xff]   ;;  %v3948_v38 = vld [vmem:[#allocation3 + $0x3f0] ss:$8 sps:$4 sm:$0xff]  }
  0x8b   :  { %816 = vmatprep.subr.bf16.mxu1 %v3342_v36  ;;  %4200 = vst [vmem:[#allocation19_spill] sm:$0xff] %v3871_v32  ;;  %v3366_v36 = vld [vmem:[#allocation3 + $0x464] ss:$8 sps:$4 sm:$0xff]  }
  0x8d   :  { %844 = vmatpush1.bf16.msra.mxu0 %v3851_v41 }
  0x8e   :  { %817 = vmatpush2.bf16.msra.mxu1 %v3340_v39  ;;  %845 = vmatprep.subr.bf16.mxu0 %v3854_v46  ;;  %v3874_v39 = vld [vmem:[#allocation3 + $0x360] ss:$8 sps:$4 sm:$0xff]  }
  0x8f   :  { %818 = vmatprep.subr.bf16.mxu1 %v3348_v45  ;;  %4201 = vst [vmem:[#allocation20_spill] sm:$0xff] %v3874_v39  ;;  %v3364_v45 = vld [vmem:[#allocation3 + $0x460] ss:$8 sps:$4 sm:$0xff]  }
  0x91   :  { %846 = vmatpush1.bf16.msra.mxu0 %v3856_v54 }
  0x92   :  { %819 = vmatpush2.bf16.msra.mxu1 %v3346_v53  ;;  %1176 = vmatprep.subr.bf16.mxu0 %v3862_v61  ;;  %v3882_v53 = vld [vmem:[#allocation3 + $0x354] ss:$8 sps:$4 sm:$0xff]   ;;  %v3894_v61 = vld [vmem:[#allocation3 + $0x340] ss:$8 sps:$4 sm:$0xff]  }
  0x93   :  { %1219 = vmatprep.subr.bf16.mxu1 %v3360_v63  ;;  %4202 = vst [vmem:[#allocation21_spill] sm:$0xff] %v3882_v53  ;;  %v3372_v63 = vld [vmem:[#allocation3 + $0x454] ss:$8 sps:$4 sm:$0xff]   ;;  %4205 = vst [vmem:[#allocation24_spill] sm:$0xff] %v3894_v61 }
  0x94   :  { %864 = vmatmul.mubr.bf16.vlgmr.msra.gmra.mxu0 %v2928_v12  ;;  %v3370_v12 = vld [vmem:[#allocation3 + $0x450] ss:$8 sps:$4 sm:$0xff]  }
  0x95   :  { %821 = vmatmul.mubr.bf16.vlgmr.msra.gmra.mxu1 %v2926_v4  ;;  %1177 = vmatpush1.bf16.msra.mxu0 %v3868_v20  ;;  %v3888_v4 = vld [vmem:[#allocation3 + $0x350] ss:$8 sps:$4 sm:$0xff]   ;;  %v3891_v20 = vld [vmem:[#allocation3 + $0x344] ss:$8 sps:$4 sm:$0xff]  }
  0x96   :  { %1220 = vmatpush1.bf16.msra.mxu1 %v3358_v29  ;;  %1178 = vmatprep.subr.bf16.mxu0 %v3871_v32  ;;  %4203 = vst [vmem:[#allocation22_spill] sm:$0xff] %v3888_v4  ;;  %4204 = vst [vmem:[#allocation23_spill] sm:$0xff] %v3891_v20  ;;  %v3378_v29 = vld [vmem:[#allocation3 + $0x444] ss:$8 sps:$4 sm:$0xff]   ;;  %v3376_v32 = vld [vmem:[#allocation3 + $0x440] ss:$8 sps:$4 sm:$0xff]  }
  0x97   :  { %1221 = vmatprep.subr.bf16.mxu1 %v3366_v36  ;;  %1251 = vmatprep.mubr.bf16.mxu1 %v4178_v0  ;;  %v3897_v36 = vld [vmem:[#allocation3 + $0x334] ss:$8 sps:$4 sm:$0xff]   ;;  %v3900_v0 = vld [vmem:[#allocation3 + $0x330] ss:$8 sps:$4 sm:$0xff]  }
  0x98   :  { %1208 = vmatprep.mubr.bf16.mxu0 %v2978_v59  ;;  %4206 = vst [vmem:[#allocation25_spill] sm:$0xff] %v3897_v36  ;;  %v3384_v59 = vld [vmem:[#allocation3 + $0x434] ss:$8 sps:$4 sm:$0xff]   ;;  %4207 = vst [vmem:[#allocation26_spill] sm:$0xff] %v3900_v0 }
  0x99   :  { %1179 = vmatpush1.bf16.msra.mxu0 %v3874_v39  ;;  %v3400_v39 = vld [vmem:[#allocation3 + $0x400] ss:$8 sps:$4 sm:$0xff]  }
  0x9a   :  { %1222 = vmatpush1.bf16.msra.mxu1 %v3364_v45  ;;  %1180 = vmatprep.subr.bf16.mxu0 %v3882_v53  ;;  %v3382_v45 = vld [vmem:[#allocation3 + $0x430] ss:$8 sps:$4 sm:$0xff]   ;;  %v3390_v53 = vld [vmem:[#allocation3 + $0x424] ss:$8 sps:$4 sm:$0xff]  }
  0x9b   :  { %1223 = vmatprep.subr.bf16.mxu1 %v3372_v63  ;;  %v3904_v63 = vld [vmem:[#allocation3 + $0x324] ss:$8 sps:$4 sm:$0xff]  }
  0x9c   :  { %4208 = vst [vmem:[#allocation27_spill] sm:$0xff] %v3904_v63 }
  0x9d   :  { %1181 = vmatpush1.bf16.msra.mxu0 %v3888_v4  ;;  %v3906_v4 = vld [vmem:[#allocation3 + $0x320] ss:$8 sps:$4 sm:$0xff]  }
  0x9e   :  { %1224 = vmatpush1.bf16.msra.mxu1 %v3370_v12  ;;  %1182 = vmatprep.subr.bf16.mxu0 %v3891_v20  ;;  %4209 = vst [vmem:[#allocation28_spill] sm:$0xff] %v3906_v4  ;;  %v3388_v12 = vld [vmem:[#allocation3 + $0x420] ss:$8 sps:$4 sm:$0xff]   ;;  %v3394_v20 = vld [vmem:[#allocation3 + $0x410] ss:$8 sps:$4 sm:$0xff]  }
  0x9f   :  { %1225 = vmatprep.subr.bf16.mxu1 %v3378_v29  ;;  %v3910_v29 = vld [vmem:[#allocation3 + $0x314] ss:$8 sps:$4 sm:$0xff]  }
  0xa0   :  { %4210 = vst [vmem:[#allocation29_spill] sm:$0xff] %v3910_v29 }
  0xa1   :  { %1183 = vmatpush1.bf16.msra.mxu0 %v3894_v61  ;;  %v3396_v61 = vld [vmem:[#allocation3 + $0x414] ss:$8 sps:$4 sm:$0xff]  }
  0xa2   :  { %1226 = vmatpush1.bf16.msra.mxu1 %v3376_v32  ;;  %1184 = vmatprep.subr.bf16.mxu0 %v3897_v36  ;;  %v3912_v32 = vld [vmem:[#allocation3 + $0x310] ss:$8 sps:$4 sm:$0xff]   ;;  %v3933_v36 = vld [vmem:[#allocation3 + $0x300] ss:$8 sps:$4 sm:$0xff]  }
  0xa3   :  { %1227 = vmatprep.subr.bf16.mxu1 %v3384_v59  ;;  %v3917_v59 = vld [vmem:[%s4169_s0 + $0x24] sm:$0xcc] }
  0xa5   :  { %1185 = vmatpush1.bf16.msra.mxu0 %v3900_v0  ;;  %v3922_v0 = vld [vmem:[%s4169_s0 + $0x30] sm:$0xff] }
  0xa6   :  { %1228 = vmatpush1.bf16.msra.mxu1 %v3382_v45  ;;  %1186 = vmatprep.subr.bf16.mxu0 %v3904_v63  ;;  %v3931_v45 = vld [vmem:[#allocation3 + $0x304] ss:$8 sps:$4 sm:$0xff]   ;;  %v3029_v54 = vcombine.high %v3917_v59, %v3922_v0 }
  0xa7   :  { %1229 = vmatprep.subr.bf16.mxu1 %v3390_v53  ;;  %v3928_v53 = vld [vmem:[%s4169_s0 + $0x3c] sm:$0x33]  ;;  %v3402_v63 = vld [vmem:[#allocation3 + $0x404] ss:$8 sps:$4 sm:$0xff]  }
  0xa8   :  { %v1400_v46 = vrot.slane %v3029_v54, 2  ;;  %v3961_v54 = vld [vmem:[#allocation3 + $0x3d4] ss:$8 sps:$4 sm:$0xff]  }
  0xa9   :  { %1187 = vmatpush1.bf16.msra.mxu0 %v3906_v4 }
  0xaa   :  { %1230 = vmatpush1.bf16.msra.mxu1 %v3388_v12  ;;  %1188 = vmatprep.subr.bf16.mxu0 %v3910_v29  ;;  %v3032_v12 = vcombine.high %v3928_v53, %v3928_v53  ;;  %v875_v29 = vld [vmem:[%s4169_s0 + $0x20] sm:$0xf] }
  0xab   :  { %1231 = vmatprep.subr.bf16.mxu1 %v3396_v61  ;;  %v3944_v61 = vld [vmem:[#allocation3 + $0x3f4] ss:$8 sps:$4 sm:$0xff]   ;;  %v2979_v4 = vcombine.low %v3723_v28, %v875_v29  ;;  %v3957_v28 = vld [vmem:[#allocation3 + $0x3e0] ss:$8 sps:$4 sm:$0xff]   ;;  %v3453_v29 = vld [vmem:[#allocation3 + $0x284] ss:$8 sps:$4 sm:$0xff]  }
  0xac   :  { %v1401_v41 = vrot.slane %v3032_v12, 2 }
  0xad   :  { %1189 = vmatpush1.bf16.msra.mxu0 %v3912_v32 }
  0xae   :  { %1232 = vmatpush1.bf16.msra.mxu1 %v3394_v20  ;;  %1190 = vmatprep.subr.bf16.mxu0 %v3931_v45  ;;  %v3952_v20 = vld [vmem:[#allocation3 + $0x3e4] ss:$8 sps:$4 sm:$0xff]  }
  0xaf   :  { %1233 = vmatprep.subr.bf16.mxu1 %v3402_v63  ;;  %v1402_v63 = vsel %vm198_vm0, %v1400_v46, %v1401_v41  ;;  %v3977_v41 = vld [vmem:[#allocation3 + $0x3b4] ss:$8 sps:$4 sm:$0xff]   ;;  %v3435_v46 = vld [vmem:[#allocation3 + $0x2e4] ss:$8 sps:$4 sm:$0xff]  }
  0xb1   :  { %1191 = vmatpush1.bf16.msra.mxu0 %v3933_v36 }
  0xb2   :  { %1234 = vmatpush1.bf16.msra.mxu1 %v3400_v39  ;;  %1192 = vmatprep.subr.bf16.mxu0 %v3944_v61  ;;  %v4211_v39 = vmov 0  }
  0xb3   :  { %1649 = vmatprep.subr.bf16.mxu1 %v3681_v1  ;;  %v3965_v1 = vld [vmem:[#allocation3 + $0x3d0] ss:$8 sps:$4 sm:$0xff]  }
  0xb5   :  { %1252 = vmatmul.mubr.bf16.vlgmr.msra.gmra.mxu1 %v2979_v4  ;;  %1193 = vmatpush2.bf16.msra.mxu0 %v3948_v38  ;;  %v3459_v4 = vld [vmem:[%s4169_s0 + $0x44] ss:$0 sps:$4 sm:$0x33]  }
  0xb6   :  { %1650 = vmatpush1.bf16.msra.mxu1 %v3684_v3  ;;  %1194 = vmatprep.subr.bf16.mxu0 %v3952_v20  ;;  %v3969_v3 = vld [vmem:[#allocation3 + $0x3c4] ss:$8 sps:$4 sm:$0xff]  }
  0xb7   :  { %1651 = vmatprep.subr.bf16.mxu1 %v3686_v5  ;;  %1681 = vmatprep.mubr.bf16.mxu1 %v1402_v63  ;;  %v3973_v5 = vld [vmem:[#allocation3 + $0x3c0] ss:$8 sps:$4 sm:$0xff]  }
  0xb9   :  { %1195 = vmatpush2.bf16.msra.mxu0 %v3957_v28 }
  0xba   :  { %1652 = vmatpush1.bf16.msra.mxu1 %v3689_v7  ;;  %1196 = vmatprep.subr.bf16.mxu0 %v3961_v54  ;;  %v3981_v7 = vld [vmem:[#allocation3 + $0x3b0] ss:$8 sps:$4 sm:$0xff]  }
  0xbb   :  { %1653 = vmatprep.subr.bf16.mxu1 %v3692_v9  ;;  %v3985_v9 = vld [vmem:[#allocation3 + $0x3a4] ss:$8 sps:$4 sm:$0xff]  }
  0xbd   :  { %1197 = vmatpush2.bf16.msra.mxu0 %v3965_v1 }
  0xbe   :  { %1654 = vmatpush1.bf16.msra.mxu1 %v3694_v11  ;;  %1198 = vmatprep.subr.bf16.mxu0 %v3969_v3  ;;  %v3989_v11 = vld [vmem:[#allocation3 + $0x3a0] ss:$8 sps:$4 sm:$0xff]  }
  0xbf   :  { %1655 = vmatprep.subr.bf16.mxu1 %v3697_v13  ;;  %v3993_v13 = vld [vmem:[#allocation3 + $0x394] ss:$8 sps:$4 sm:$0xff]  }
  0xc1   :  { %1199 = vmatpush2.bf16.msra.mxu0 %v3973_v5 }
  0xc2   :  { %1656 = vmatpush1.bf16.msra.mxu1 %v3700_v15  ;;  %1200 = vmatprep.subr.bf16.mxu0 %v3977_v41  ;;  %v3997_v15 = vld [vmem:[#allocation3 + $0x390] ss:$8 sps:$4 sm:$0xff]  }
  0xc3   :  { %1657 = vmatprep.subr.bf16.mxu1 %v3703_v17  ;;  %v4001_v17 = vld [vmem:[#allocation3 + $0x384] ss:$8 sps:$4 sm:$0xff]  }
  0xc5   :  { %1201 = vmatpush2.bf16.msra.mxu0 %v3981_v7 }
  0xc6   :  { %1658 = vmatpush1.bf16.msra.mxu1 %v3706_v19  ;;  %1202 = vmatprep.subr.bf16.mxu0 %v3985_v9  ;;  %v4005_v19 = vld [vmem:[#allocation3 + $0x380] ss:$8 sps:$4 sm:$0xff]  }
  0xc7   :  { %1659 = vmatprep.subr.bf16.mxu1 %v3709_v21  ;;  %v3432_v21 = vld [vmem:[#allocation3 + $0x2f4] ss:$8 sps:$4 sm:$0xff]  }
  0xc9   :  { %1203 = vmatpush2.bf16.msra.mxu0 %v3989_v11 }
  0xca   :  { %1660 = vmatpush1.bf16.msra.mxu1 %v3712_v23  ;;  %1204 = vmatprep.subr.bf16.mxu0 %v3993_v13  ;;  %v2977_v23 = vcombine.low %v3769_v57, %v3879_v50  ;;  %v3442_v57 = vld [vmem:[#allocation3 + $0x2b0] ss:$8 sps:$4 sm:$0xff]  }
  0xcb   :  { %1661 = vmatprep.subr.bf16.mxu1 %v3715_v25  ;;  %v3430_v25 = vld [vmem:[#allocation3 + $0x2f0] ss:$8 sps:$4 sm:$0xff]  }
  0xcd   :  { %1205 = vmatpush2.bf16.msra.mxu0 %v3997_v15 }
  0xce   :  { %1662 = vmatpush1.bf16.msra.mxu1 %v3718_v27  ;;  %1206 = vmatprep.subr.bf16.mxu0 %v4001_v17  ;;  %v3433_v27 = vld [vmem:[#allocation3 + $0x2e0] ss:$8 sps:$4 sm:$0xff]  }
  0xcf   :  { %1663 = vmatprep.subr.bf16.mxu1 %v3729_v31  ;;  %v3438_v31 = vld [vmem:[#allocation3 + $0x2d4] ss:$8 sps:$4 sm:$0xff]  }
  0xd1   :  { %1207 = vmatpush2.bf16.msra.mxu0 %v4005_v19 }
  0xd2   :  { %1664 = vmatpush1.bf16.msra.mxu1 %v3736_v35  ;;  %1692 = vmatprep.subr.bf16.mxu0 %v3432_v21  ;;  %v3436_v35 = vld [vmem:[#allocation3 + $0x2d0] ss:$8 sps:$4 sm:$0xff]   ;;  %v1404_v21 = vrot.slane %v3459_v4, 2  ;;  %v4219_v4 = vld [vmem:[#allocation20_spill] sm:$0xff] }
  0xd3   :  { %1665 = vmatprep.subr.bf16.mxu1 %v3739_v37  ;;  %v3441_v37 = vld [vmem:[#allocation3 + $0x2c4] ss:$8 sps:$4 sm:$0xff]  }
  0xd4   :  { %1209 = vmatmul.mubr.bf16.vlgmr.msra.gmra.mxu0 %v2977_v23  ;;  %v4048_v23 = vld [vmem:[%s4169_s0 + $0x24] sm:$0xff] }
  0xd5   :  { %1693 = vmatpush1.bf16.msra.mxu0 %v3430_v25  ;;  %1724 = vmatprep.mubr.bf16.mxu0 %v4211_v39  ;;  %v3460_v25 = vld [vmem:[#allocation3 + $0x70] ss:$8 sps:$4 sm:$0xff]  }
  0xd6   :  { %1666 = vmatpush2.bf16.msra.mxu1 %v3744_v43  ;;  %1694 = vmatprep.subr.bf16.mxu0 %v3435_v46  ;;  %v3439_v43 = vld [vmem:[#allocation3 + $0x2c0] ss:$8 sps:$4 sm:$0xff]   ;;  %v3465_v46 = vld [vmem:[#allocation3 + $0x64] ss:$8 sps:$4 sm:$0xff]  }
  0xd7   :  { %1667 = vmatprep.subr.bf16.mxu1 %v3746_v44  ;;  %v3444_v44 = vld [vmem:[#allocation3 + $0x2b4] ss:$8 sps:$4 sm:$0xff]  }
  0xd9   :  { %1695 = vmatpush1.bf16.msra.mxu0 %v3433_v27  ;;  %v3463_v27 = vld [vmem:[#allocation3 + $0x60] ss:$8 sps:$4 sm:$0xff]  }
  0xda   :  { %1668 = vmatpush2.bf16.msra.mxu1 %v3749_v47  ;;  %1696 = vmatprep.subr.bf16.mxu0 %v3438_v31  ;;  %v3447_v47 = vld [vmem:[#allocation3 + $0x2a4] ss:$8 sps:$4 sm:$0xff]  }
  0xdb   :  { %1669 = vmatprep.subr.bf16.mxu1 %v3752_v48  ;;  %v3445_v48 = vld [vmem:[#allocation3 + $0x2a0] ss:$8 sps:$4 sm:$0xff]   ;;  %v3471_v31 = vld [vmem:[#allocation3 + $0x44] ss:$8 sps:$4 sm:$0xff]  }
  0xdd   :  { %1697 = vmatpush1.bf16.msra.mxu0 %v3436_v35  ;;  %v3472_v35 = vld [vmem:[#allocation3 + $0x30] ss:$8 sps:$4 sm:$0xff]  }
  0xde   :  { %1670 = vmatpush2.bf16.msra.mxu1 %v3756_v51  ;;  %1698 = vmatprep.subr.bf16.mxu0 %v3441_v37  ;;  %v3450_v51 = vld [vmem:[#allocation3 + $0x294] ss:$8 sps:$4 sm:$0xff]   ;;  %v4212_v37 = vld [vmem:[#allocation13_spill] sm:$0xff] }
  0xdf   :  { %1671 = vmatprep.subr.bf16.mxu1 %v3758_v52  ;;  %v1323_v52 = vld [vmem:[%s4169_s0 + $0x2c] sm:$0xc] }
  0xe1   :  { %1699 = vmatpush1.bf16.msra.mxu0 %v3439_v43  ;;  %v4213_v43 = vld [vmem:[#allocation14_spill] sm:$0xff] }
  0xe2   :  { %1672 = vmatpush2.bf16.msra.mxu1 %v3761_v55  ;;  %1700 = vmatprep.subr.bf16.mxu0 %v3444_v44  ;;  %v4031_v55 = vld [vmem:[%s4169_s0 + $0x38] sm:$0xf] }
  0xe3   :  { %1673 = vmatprep.subr.bf16.mxu1 %v3763_v56  ;;  %v3448_v56 = vld [vmem:[#allocation3 + $0x290] ss:$8 sps:$4 sm:$0xff]   ;;  %v3030_v50 = vcombine.low %v1323_v52, %v4031_v55 }
  0xe4   :  { %v4214_v44 = vld [vmem:[#allocation15_spill] sm:$0xff] }
  0xe5   :  { %1701 = vmatpush1.bf16.msra.mxu0 %v3442_v57  ;;  %v4215_v57 = vld [vmem:[#allocation16_spill] sm:$0xff] }
  0xe6   :  { %1674 = vmatpush2.bf16.msra.mxu1 %v3780_v6  ;;  %1702 = vmatprep.subr.bf16.mxu0 %v3447_v47  ;;  %v3028_v6 = vcombine.low %v3917_v59, %v3922_v0  ;;  %v1403_v59 = vrot.slane %v3030_v50, 2  ;;  %v3484_v47 = vld [vmem:[#allocation3 + $0xf0] ss:$8 sps:$4 sm:$0xff]   ;;  %v3493_v50 = vld [vmem:[#allocation3 + $0xd4] ss:$8 sps:$4 sm:$0xff]  }
  0xe7   :  { %1675 = vmatprep.subr.bf16.mxu1 %v3782_v8  ;;  %v3031_v8 = vcombine.low %v3928_v53, %v3928_v53  ;;  %v3462_v53 = vld [vmem:[#allocation3 + $0x74] ss:$8 sps:$4 sm:$0xff]  }
  0xe8   :  { %v1397_v12 = vrot.slane %v3028_v6, 2  ;;  %v3488_v6 = vld [vmem:[#allocation3 + $0xe0] ss:$8 sps:$4 sm:$0xff]  }
  0xe9   :  { %1703 = vmatpush1.bf16.msra.mxu0 %v3445_v48  ;;  %v1398_v63 = vrot.slane %v3031_v8, 2  ;;  %v4216_v48 = vld [vmem:[#allocation17_spill] sm:$0xff]  ;;  %v4218_v8 = vld [vmem:[#allocation19_spill] sm:$0xff] }
  0xea   :  { %1676 = vmatpush2.bf16.msra.mxu1 %v3786_v16  ;;  %1704 = vmatprep.subr.bf16.mxu0 %v3450_v51  ;;  %v3451_v16 = vld [vmem:[#allocation3 + $0x280] ss:$8 sps:$4 sm:$0xff]   ;;  %v3490_v51 = vld [vmem:[#allocation3 + $0xe4] ss:$8 sps:$4 sm:$0xff]  }
  0xeb   :  { %1677 = vmatprep.subr.bf16.mxu1 %v3789_v18  ;;  %v1399_v18 = vsel %vm198_vm0, %v1397_v12, %v1398_v63  ;;  %v3496_v12 = vld [vmem:[#allocation3 + $0xc4] ss:$8 sps:$4 sm:$0xff]  }
  0xec   :  { %v4221_v63 = vld [vmem:[#allocation22_spill] sm:$0xff] }
  0xed   :  { %1705 = vmatpush1.bf16.msra.mxu0 %v3448_v56  ;;  %v4217_v56 = vld [vmem:[#allocation18_spill] sm:$0xff] }
  0xee   :  { %1678 = vmatpush2.bf16.msra.mxu1 %v3792_v24  ;;  %1706 = vmatprep.subr.bf16.mxu0 %v3453_v29  ;;  %v1405_v24 = vsel %vm198_vm0, %v1403_v59, %v1404_v21  ;;  %v3491_v29 = vld [vmem:[#allocation3 + $0xd0] ss:$8 sps:$4 sm:$0xff]   ;;  %v3494_v59 = vld [vmem:[#allocation3 + $0xc0] ss:$8 sps:$4 sm:$0xff]  }
  0xef   :  { %1679 = vmatprep.subr.bf16.mxu1 %v3795_v26  ;;  %v3083_v26 = vcombine.high %v4048_v23, %v3922_v0  ;;  %v4222_v21 = vld [vmem:[#allocation23_spill] sm:$0xff] }
  0xf1   :  { %1707 = vmatpush1.bf16.msra.mxu0 %v3451_v16  ;;  %v4220_v16 = vld [vmem:[#allocation21_spill] sm:$0xff] }
  0xf2   :  { %1680 = vmatpush2.bf16.msra.mxu1 %v3799_v34  ;;  %1991 = vmatprep.subr.bf16.mxu0 %v3462_v53  ;;  %v3468_v34 = vld [vmem:[#allocation3 + $0x54] ss:$8 sps:$4 sm:$0xff]  }
  0xf3   :  { %2034 = vmatprep.subr.bf16.mxu1 %v3803_v40  ;;  %v3466_v40 = vld [vmem:[#allocation3 + $0x50] ss:$8 sps:$4 sm:$0xff]   ;;  %v3499_v53 = vld [vmem:[#allocation3 + $0xb4] ss:$8 sps:$4 sm:$0xff]  }
  0xf4   :  { %1725 = vmatmul.mubr.bf16.vlgmr.msra.gmra.mxu0 %v1405_v24  ;;  %v3497_v24 = vld [vmem:[#allocation3 + $0xb0] ss:$8 sps:$4 sm:$0xff]  }
  0xf5   :  { %1682 = vmatmul.mubr.bf16.vlgmr.msra.gmra.mxu1 %v1399_v18  ;;  %1992 = vmatpush1.bf16.msra.mxu0 %v3460_v25  ;;  %v4223_v18 = vld [vmem:[#allocation24_spill] sm:$0xff]  ;;  %v4224_v25 = vld [vmem:[#allocation25_spill] sm:$0xff] }
  0xf6   :  { %2035 = vmatpush1.bf16.msra.mxu1 %v3805_v42  ;;  %1993 = vmatprep.subr.bf16.mxu0 %v3465_v46  ;;  %v3469_v42 = vld [vmem:[#allocation3 + $0x40] ss:$8 sps:$4 sm:$0xff]   ;;  %v3502_v46 = vld [vmem:[#allocation3 + $0xa4] ss:$8 sps:$4 sm:$0xff]  }
  0xf7   :  { %2036 = vmatprep.subr.bf16.mxu1 %v3810_v49  ;;  %2066 = vmatprep.mubr.bf16.mxu1 %v4211_v39  ;;  %v3474_v49 = vld [vmem:[#allocation3 + $0x34] ss:$8 sps:$4 sm:$0xff]  }
  0xf8   :  { %2023 = vmatprep.mubr.bf16.mxu0 %v3083_v26  ;;  %v4225_v26 = vld [vmem:[#allocation26_spill] sm:$0xff] }
  0xf9   :  { %1994 = vmatpush1.bf16.msra.mxu0 %v3463_v27  ;;  %v3500_v27 = vld [vmem:[#allocation3 + $0xa0] ss:$8 sps:$4 sm:$0xff]  }
  0xfa   :  { %2037 = vmatpush1.bf16.msra.mxu1 %v3820_v58  ;;  %1995 = vmatprep.subr.bf16.mxu0 %v3468_v34  ;;  %v3477_v58 = vld [vmem:[#allocation3 + $0x24] ss:$8 sps:$4 sm:$0xff]   ;;  %v4226_v34 = vld [vmem:[#allocation27_spill] sm:$0xff] }
  0xfb   :  { %2038 = vmatprep.subr.bf16.mxu1 %v3823_v60  ;;  %v3475_v60 = vld [vmem:[#allocation3 + $0x20] ss:$8 sps:$4 sm:$0xff]  }
  0xfd   :  { %1996 = vmatpush1.bf16.msra.mxu0 %v3466_v40  ;;  %v3505_v40 = vld [vmem:[#allocation3 + $0x94] ss:$8 sps:$4 sm:$0xff]  }
  0xfe   :  { %2039 = vmatpush1.bf16.msra.mxu1 %v3827_v62  ;;  %1997 = vmatprep.subr.bf16.mxu0 %v3471_v31  ;;  %v3480_v62 = vld [vmem:[#allocation3 + $0x14] ss:$8 sps:$4 sm:$0xff]  }
  0xff   :  { %2040 = vmatprep.subr.bf16.mxu1 %v3830_v2  ;;  %v3478_v2 = vld [vmem:[#allocation3 + $0x10] ss:$8 sps:$4 sm:$0xff]   ;;  %v4227_v31 = vld [vmem:[#allocation28_spill] sm:$0xff] }
 0x101   :  { %1998 = vmatpush1.bf16.msra.mxu0 %v3469_v42  ;;  %v3503_v42 = vld [vmem:[#allocation3 + $0x90] ss:$8 sps:$4 sm:$0xff]  }
 0x102   :  { %2041 = vmatpush1.bf16.msra.mxu1 %v3833_v10  ;;  %1999 = vmatprep.subr.bf16.mxu0 %v3474_v49  ;;  %v3483_v10 = vld [vmem:[#allocation3 + $0x4] ss:$8 sps:$4 sm:$0xff]  }
 0x103   :  { %2042 = vmatprep.subr.bf16.mxu1 %v3836_v14  ;;  %v3481_v14 = vld [vmem:[#allocation3] ss:$8 sps:$4 sm:$0xff]  }
 0x104   :  { %v4228_v49 = vld [vmem:[#allocation29_spill] sm:$0xff] }
 0x105   :  { %2000 = vmatpush1.bf16.msra.mxu0 %v3472_v35  ;;  %v3508_v35 = vld [vmem:[#allocation3 + $0x84] ss:$8 sps:$4 sm:$0xff]  }
 0x106   :  { %2043 = vmatpush1.bf16.msra.mxu1 %v3839_v22  ;;  %2001 = vmatprep.subr.bf16.mxu0 %v3477_v58  ;;  %v3486_v22 = vld [vmem:[#allocation3 + $0xf4] ss:$8 sps:$4 sm:$0xff]   ;;  %v3506_v58 = vld [vmem:[#allocation3 + $0x80] ss:$8 sps:$4 sm:$0xff]  }
 0x107   :  { %2044 = vmatprep.subr.bf16.mxu1 %v3842_v30  ;;  %v3487_v30 = vld [vmem:[%s4169_s0 + $0x2c] ss:$12 sps:$4 sm:$0xff]  }
 0x109   :  { %2002 = vmatpush1.bf16.msra.mxu0 %v3475_v60  ;;  %v3513_v60 = vld [vmem:[#allocation3 + $0x474] ss:$8 sps:$4 sm:$0xff]  }
 0x10a   :  { %2045 = vmatpush1.bf16.msra.mxu1 %v3845_v33  ;;  %2003 = vmatprep.subr.bf16.mxu0 %v3480_v62  ;;  %v4077_v33 = vld [vmem:[%s4169_s0 + $0x3c] sm:$0xff]  ;;  %v3082_v62 = vcombine.low %v4048_v23, %v3922_v0  ;;  %v2527_v23 = vld [vmem:[#allocation5 + $0xe8] sm:$0xff] }
 0x10b   :  { %2046 = vmatprep.subr.bf16.mxu1 %v4212_v37  ;;  %v3134_v52 = vcombine.high %v3922_v0, %v4077_v33  ;;  %v3516_v37 = vld [vmem:[#allocation3 + $0x464] ss:$8 sps:$4 sm:$0xff]  }
 0x10d   :  { %2004 = vmatpush1.bf16.msra.mxu0 %v3478_v2  ;;  %v3511_v2 = vld [vmem:[#allocation3 + $0x470] ss:$8 sps:$4 sm:$0xff]  }
 0x10e   :  { %2047 = vmatpush1.bf16.msra.mxu1 %v4213_v43  ;;  %2005 = vmatprep.subr.bf16.mxu0 %v3483_v10  ;;  %v2526_v10 = vld [vmem:[#allocation5 + $0xe0] sm:$0xff]  ;;  %v2525_v43 = vld [vmem:[#allocation5 + $0xd8] sm:$0xff] }
 0x10f   :  { %2048 = vmatprep.subr.bf16.mxu1 %v4214_v44  ;;  %v2519_v44 = vld [vmem:[#allocation5 + $0xa8] sm:$0xff] }
 0x111   :  { %2006 = vmatpush1.bf16.msra.mxu0 %v3481_v14  ;;  %v2520_v14 = vld [vmem:[#allocation5 + $0xb0] sm:$0xff] }
 0x112   :  { %2049 = vmatpush1.bf16.msra.mxu1 %v4215_v57  ;;  %2007 = vmatprep.subr.bf16.mxu0 %v3486_v22  ;;  %v2518_v22 = vld [vmem:[#allocation5 + $0xa0] sm:$0xff]  ;;  %v2515_v57 = vld [vmem:[#allocation5 + $0x88] sm:$0xff] }
 0x113   :  { %2378 = vmatprep.subr.bf16.mxu1 %v4216_v48  ;;  %v2513_v48 = vld [vmem:[#allocation5 + $0x78] sm:$0xff] }
 0x115   :  { %2067 = vmatmul.mubr.bf16.vlgmr.msra.gmra.mxu1 %v3487_v30  ;;  %2008 = vmatpush2.bf16.msra.mxu0 %v3484_v47  ;;  %v2517_v30 = vld [vmem:[#allocation5 + $0x98] sm:$0xff]  ;;  %v2514_v47 = vld [vmem:[#allocation5 + $0x80] sm:$0xff] }
 0x116   :  { %2379 = vmatpush1.bf16.msra.mxu1 %v4217_v56  ;;  %2009 = vmatprep.subr.bf16.mxu0 %v3490_v51  ;;  %v2512_v51 = vld [vmem:[#allocation5 + $0x70] sm:$0xff]  ;;  %v2510_v56 = vld [vmem:[#allocation5 + $0x60] sm:$0xff] }
 0x117   :  { %2380 = vmatprep.subr.bf16.mxu1 %v4218_v8  ;;  %2410 = vmatprep.mubr.bf16.mxu1 %v3134_v52  ;;  %v2511_v52 = vld [vmem:[#allocation5 + $0x68] sm:$0xff]  ;;  %v2508_v8 = vld [vmem:[#allocation5 + $0x50] sm:$0xff] }
 0x119   :  { %2010 = vmatpush2.bf16.msra.mxu0 %v3488_v6  ;;  %v2509_v6 = vld [vmem:[#allocation5 + $0x58] sm:$0xff] }
 0x11a   :  { %2381 = vmatpush1.bf16.msra.mxu1 %v4219_v4  ;;  %2011 = vmatprep.subr.bf16.mxu0 %v3493_v50  ;;  %v2507_v50 = vld [vmem:[#allocation5 + $0x48] sm:$0xff]  ;;  %v2506_v4 = vld [vmem:[#allocation5 + $0x40] sm:$0xff] }
 0x11b   :  { %2382 = vmatprep.subr.bf16.mxu1 %v4220_v16  ;;  %v2504_v16 = vld [vmem:[#allocation5 + $0x30] sm:$0xff] }
 0x11d   :  { %2012 = vmatpush2.bf16.msra.mxu0 %v3491_v29  ;;  %v2505_v29 = vld [vmem:[#allocation5 + $0x38] sm:$0xff] }
 0x11e   :  { %2383 = vmatpush1.bf16.msra.mxu1 %v4221_v63  ;;  %2013 = vmatprep.subr.bf16.mxu0 %v3496_v12  ;;  %v2503_v12 = vld [vmem:[#allocation5 + $0x28] sm:$0xff]  ;;  %v2502_v63 = vld [vmem:[#allocation5 + $0x20] sm:$0xff] }
 0x11f   :  { %2384 = vmatprep.subr.bf16.mxu1 %v4222_v21  ;;  %v2500_v21 = vld [vmem:[#allocation5 + $0x10] sm:$0xff] }
 0x121   :  { %2014 = vmatpush2.bf16.msra.mxu0 %v3494_v59  ;;  %v2501_v59 = vld [vmem:[#allocation5 + $0x18] sm:$0xff] }
 0x122   :  { %2385 = vmatpush1.bf16.msra.mxu1 %v4223_v18  ;;  %2015 = vmatprep.subr.bf16.mxu0 %v3499_v53  ;;  %v2499_v53 = vld [vmem:[#allocation5 + $0x8] sm:$0xff]  ;;  %v2498_v18 = vld [vmem:[#allocation5] sm:$0xff] }
 0x123   :  { %2386 = vmatprep.subr.bf16.mxu1 %v4224_v25  ;;  %v2560_v25 = vld [vmem:[#allocation5 + $0x1f0] sm:$0xff] }
 0x125   :  { %2016 = vmatpush2.bf16.msra.mxu0 %v3497_v24  ;;  %v2561_v24 = vld [vmem:[#allocation5 + $0x1f8] sm:$0xff] }
 0x126   :  { %2387 = vmatpush1.bf16.msra.mxu1 %v4225_v26  ;;  %2017 = vmatprep.subr.bf16.mxu0 %v3502_v46  ;;  %v2559_v46 = vld [vmem:[#allocation5 + $0x1e8] sm:$0xff]  ;;  %v2558_v26 = vld [vmem:[#allocation5 + $0x1e0] sm:$0xff] }
 0x127   :  { %2388 = vmatprep.subr.bf16.mxu1 %v4226_v34  ;;  %v2556_v34 = vld [vmem:[#allocation5 + $0x1d0] sm:$0xff] }
 0x129   :  { %2018 = vmatpush2.bf16.msra.mxu0 %v3500_v27  ;;  %v2557_v27 = vld [vmem:[#allocation5 + $0x1d8] sm:$0xff] }
 0x12a   :  { %2389 = vmatpush1.bf16.msra.mxu1 %v4227_v31  ;;  %2019 = vmatprep.subr.bf16.mxu0 %v3505_v40  ;;  %v2555_v40 = vld [vmem:[#allocation5 + $0x1c8] sm:$0xff]  ;;  %v2554_v31 = vld [vmem:[#allocation5 + $0x1c0] sm:$0xff] }
 0x12b   :  { %2390 = vmatprep.subr.bf16.mxu1 %v4228_v49  ;;  %v2552_v49 = vld [vmem:[#allocation5 + $0x1b0] sm:$0xff] }
 0x12d   :  { %2020 = vmatpush2.bf16.msra.mxu0 %v3503_v42  ;;  %v2553_v42 = vld [vmem:[#allocation5 + $0x1b8] sm:$0xff] }
 0x12e   :  { %2391 = vmatpush1.bf16.msra.mxu1 %v3912_v32  ;;  %2021 = vmatprep.subr.bf16.mxu0 %v3508_v35  ;;  %v3514_v32 = vld [vmem:[#allocation3 + $0x460] ss:$8 sps:$4 sm:$0xff]  }
 0x12f   :  { %2392 = vmatprep.subr.bf16.mxu1 %v3931_v45  ;;  %v3519_v45 = vld [vmem:[#allocation3 + $0x454] ss:$8 sps:$4 sm:$0xff]   ;;  %v2551_v35 = vld [vmem:[#allocation5 + $0x1a8] sm:$0xff] }
 0x131   :  { %2022 = vmatpush2.bf16.msra.mxu0 %v3506_v58  ;;  %v2550_v58 = vld [vmem:[#allocation5 + $0x1a0] sm:$0xff] }
 0x132   :  { %2393 = vmatpush1.bf16.msra.mxu1 %v3933_v36  ;;  %2421 = vmatprep.subr.bf16.mxu0 %v3513_v60  ;;  %v3517_v36 = vld [vmem:[#allocation3 + $0x450] ss:$8 sps:$4 sm:$0xff]  }
 0x133   :  { %2394 = vmatprep.subr.bf16.mxu1 %v3944_v61  ;;  %v3522_v61 = vld [vmem:[#allocation3 + $0x444] ss:$8 sps:$4 sm:$0xff]   ;;  %v2549_v60 = vld [vmem:[#allocation5 + $0x198] sm:$0xff] }
 0x134   :  { %2024 = vmatmul.mubr.bf16.vlgmr.msra.gmra.mxu0 %v3082_v62  ;;  %v2548_v62 = vld [vmem:[#allocation5 + $0x190] sm:$0xff] }
 0x135   :  { %2422 = vmatpush1.bf16.msra.mxu0 %v3511_v2  ;;  %2453 = vmatprep.mubr.bf16.mxu0 %v4211_v39  ;;  %v3523_v39 = vld [vmem:[#allocation3 + $0x430] ss:$8 sps:$4 sm:$0xff]   ;;  %v2547_v2 = vld [vmem:[#allocation5 + $0x188] sm:$0xff] }
 0x136   :  { %2395 = vmatpush2.bf16.msra.mxu1 %v3948_v38  ;;  %2423 = vmatprep.subr.bf16.mxu0 %v3516_v37  ;;  %v3520_v38 = vld [vmem:[#allocation3 + $0x440] ss:$8 sps:$4 sm:$0xff]  }
 0x137   :  { %2396 = vmatprep.subr.bf16.mxu1 %v3952_v20  ;;  %v3525_v20 = vld [vmem:[#allocation3 + $0x434] ss:$8 sps:$4 sm:$0xff]   ;;  %v2546_v37 = vld [vmem:[#allocation5 + $0x180] sm:$0xff] }
 0x139   :  { %2424 = vmatpush1.bf16.msra.mxu0 %v3514_v32  ;;  %v2545_v32 = vld [vmem:[#allocation5 + $0x178] sm:$0xff] }
 0x13a   :  { %2397 = vmatpush2.bf16.msra.mxu1 %v3957_v28  ;;  %2425 = vmatprep.subr.bf16.mxu0 %v3519_v45  ;;  %v3528_v28 = vld [vmem:[#allocation3 + $0x424] ss:$8 sps:$4 sm:$0xff]   ;;  %v2544_v45 = vld [vmem:[#allocation5 + $0x170] sm:$0xff] }
 0x13b   :  { %2398 = vmatprep.subr.bf16.mxu1 %v3961_v54  ;;  %v3526_v54 = vld [vmem:[#allocation3 + $0x420] ss:$8 sps:$4 sm:$0xff]  }
 0x13d   :  { %2426 = vmatpush1.bf16.msra.mxu0 %v3517_v36  ;;  %v2543_v36 = vld [vmem:[#allocation5 + $0x168] sm:$0xff] }
 0x13e   :  { %2399 = vmatpush2.bf16.msra.mxu1 %v3965_v1  ;;  %2427 = vmatprep.subr.bf16.mxu0 %v3522_v61  ;;  %v3531_v1 = vld [vmem:[#allocation3 + $0x414] ss:$8 sps:$4 sm:$0xff]   ;;  %v2542_v61 = vld [vmem:[#allocation5 + $0x160] sm:$0xff] }
 0x13f   :  { %2400 = vmatprep.subr.bf16.mxu1 %v3969_v3  ;;  %v3529_v3 = vld [vmem:[#allocation3 + $0x410] ss:$8 sps:$4 sm:$0xff]  }
 0x141   :  { %2428 = vmatpush1.bf16.msra.mxu0 %v3520_v38  ;;  %v2541_v38 = vld [vmem:[#allocation5 + $0x158] sm:$0xff] }
 0x142   :  { %2401 = vmatpush2.bf16.msra.mxu1 %v3973_v5  ;;  %2429 = vmatprep.subr.bf16.mxu0 %v3525_v20  ;;  %v3534_v5 = vld [vmem:[#allocation3 + $0x404] ss:$8 sps:$4 sm:$0xff]   ;;  %v2540_v20 = vld [vmem:[#allocation5 + $0x150] sm:$0xff] }
 0x143   :  { %2402 = vmatprep.subr.bf16.mxu1 %v3977_v41  ;;  %v3532_v41 = vld [vmem:[#allocation3 + $0x400] ss:$8 sps:$4 sm:$0xff]  }
 0x145   :  { %2430 = vmatpush1.bf16.msra.mxu0 %v3523_v39  ;;  %v2539_v39 = vld [vmem:[#allocation5 + $0x148] sm:$0xff] }
 0x146   :  { %2403 = vmatpush2.bf16.msra.mxu1 %v3981_v7  ;;  %2431 = vmatprep.subr.bf16.mxu0 %v3528_v28  ;;  %v2078_v7 = vld [vmem:[%s4169_s0 + $0x44] sm:$0xf] }
 0x147   :  { %2404 = vmatprep.subr.bf16.mxu1 %v3985_v9  ;;  %v3133_v9 = vcombine.low %v3922_v0, %v4077_v33  ;;  %v2523_v0 = vld [vmem:[#allocation5 + $0xc8] sm:$0xff]  ;;  %v2516_v33 = vld [vmem:[#allocation5 + $0x90] sm:$0xff]  ;;  %v2538_v28 = vld [vmem:[#allocation5 + $0x140] sm:$0xff] }
 0x149   :  { %2432 = vmatpush1.bf16.msra.mxu0 %v3526_v54  ;;  %v2537_v54 = vld [vmem:[#allocation5 + $0x138] sm:$0xff] }
 0x14a   :  { %2405 = vmatpush2.bf16.msra.mxu1 %v3989_v11  ;;  %2433 = vmatprep.subr.bf16.mxu0 %v3531_v1  ;;  %v3135_v11 = vcombine.low %v4031_v55, %v2078_v7  ;;  %v2521_v55 = vld [vmem:[#allocation5 + $0xb8] sm:$0xff]  ;;  %v2536_v1 = vld [vmem:[#allocation5 + $0x130] sm:$0xff] }
 0x14b   :  { %2406 = vmatprep.subr.bf16.mxu1 %v3993_v13  ;;  %v2529_v13 = vld [vmem:[#allocation5 + $0xf8] sm:$0xff]  ;;  %v2532_v7 = vld [vmem:[#allocation5 + $0x110] sm:$0xff] }
 0x14d   :  { %2434 = vmatpush1.bf16.msra.mxu0 %v3529_v3  ;;  %v2535_v3 = vld [vmem:[#allocation5 + $0x128] sm:$0xff] }
 0x14e   :  { %2407 = vmatpush2.bf16.msra.mxu1 %v3997_v15  ;;  %2435 = vmatprep.subr.bf16.mxu0 %v3534_v5  ;;  %v2528_v15 = vld [vmem:[#allocation5 + $0xf0] sm:$0xff]  ;;  %v2534_v5 = vld [vmem:[#allocation5 + $0x120] sm:$0xff] }
 0x14f   :  { %2408 = vmatprep.subr.bf16.mxu1 %v4001_v17  ;;  %v2524_v17 = vld [vmem:[#allocation5 + $0xd0] sm:$0xff] }
 0x151   :  { %2436 = vmatpush1.bf16.msra.mxu0 %v3532_v41  ;;  %v2533_v41 = vld [vmem:[#allocation5 + $0x118] sm:$0xff] }
 0x152   :  { %2409 = vmatpush2.bf16.msra.mxu1 %v4005_v19  ;;  %2562 = vmatprep.subr.mxu0 %v2529_v13  ;;  %v2522_v19 = vld [vmem:[#allocation5 + $0xc0] sm:$0xff] }
 0x153   :  { %2677 = vmatprep.subr.mxu1 %v2529_v13  ;;  %v528_v13 = vpop.f32.mrf.mxu1 }
 0x154   :  { %2454 = vmatmul.mubr.bf16.vlgmr.msra.gmra.mxu0 %v3135_v11  ;;  %v2530_v11 = vld [vmem:[#allocation5 + $0x100] sm:$0xff] }
 0x155   :  { %2411 = vmatmul.mubr.bf16.vlgmr.msra.gmra.mxu1 %v3133_v9  ;;  %2563 = vmatpush1.msra.mxu0 %v2528_v15  ;;  %v2531_v9 = vld [vmem:[#allocation5 + $0x108] sm:$0xff] }
 0x156   :  { %2678 = vmatpush1.msra.mxu1 %v2528_v15  ;;  %2564 = vmatprep.subr.mxu0 %v2527_v23  ;;  %v485_v15 = vpop.f32.mrf.mxu0 }
 0x157   :  { %2679 = vmatprep.subr.mxu1 %v2527_v23  ;;  %2565 = vmatpush1.msra.mxu0 %v2526_v10  ;;  %v530_v23 = vpop.f32.mrf.mxu1 }
 0x158   :  { %2680 = vmatpush1.msra.mxu1 %v2526_v10  ;;  %2566 = vmatprep.subr.mxu0 %v2525_v43  ;;  %v487_v10 = vpop.f32.mrf.mxu0 }
 0x159   :  { %2681 = vmatprep.subr.mxu1 %v2525_v43  ;;  %2567 = vmatpush1.msra.mxu0 %v2524_v17  ;;  %v532_v43 = vpop.f32.mrf.mxu1 }
 0x15a   :  { %2682 = vmatpush1.msra.mxu1 %v2524_v17  ;;  %2568 = vmatprep.subr.mxu0 %v2523_v0  ;;  %v489_v17 = vpop.f32.mrf.mxu0 }
 0x15b   :  { %2683 = vmatprep.subr.mxu1 %v2523_v0  ;;  %2569 = vmatpush1.msra.mxu0 %v2522_v19  ;;  %v534_v0 = vpop.f32.mrf.mxu1 }
 0x15c   :  { %2684 = vmatpush1.msra.mxu1 %v2522_v19  ;;  %2570 = vmatprep.subr.mxu0 %v2521_v55  ;;  %v491_v19 = vpop.f32.mrf.mxu0 }
 0x15d   :  { %2685 = vmatprep.subr.mxu1 %v2521_v55  ;;  %2571 = vmatpush1.msra.mxu0 %v2520_v14  ;;  %v822_v55 = vpop.f32.mrf.mxu1 }
 0x15e   :  { %2686 = vmatpush1.msra.mxu1 %v2520_v14  ;;  %2572 = vmatprep.subr.mxu0 %v2519_v44  ;;  %v865_v14 = vpop.f32.mrf.mxu0 }
 0x15f   :  { %2687 = vmatprep.subr.mxu1 %v2519_v44  ;;  %2573 = vmatpush1.msra.mxu0 %v2518_v22  ;;  %v824_v44 = vpop.f32.mrf.mxu1 }
 0x160   :  { %2688 = vmatpush1.msra.mxu1 %v2518_v22  ;;  %2574 = vmatprep.subr.mxu0 %v2517_v30  ;;  %v867_v22 = vpop.f32.mrf.mxu0 }
 0x161   :  { %2689 = vmatprep.subr.mxu1 %v2517_v30  ;;  %2575 = vmatpush1.msra.mxu0 %v2516_v33  ;;  %v826_v30 = vpop.f32.mrf.mxu1 }
 0x162   :  { %2690 = vmatpush1.msra.mxu1 %v2516_v33  ;;  %2576 = vmatprep.subr.mxu0 %v2515_v57  ;;  %v869_v33 = vpop.f32.mrf.mxu0 }
 0x163   :  { %2691 = vmatprep.subr.mxu1 %v2515_v57  ;;  %2577 = vmatpush1.msra.mxu0 %v2514_v47  ;;  %v828_v57 = vpop.f32.mrf.mxu1 }
 0x164   :  { %2692 = vmatpush1.msra.mxu1 %v2514_v47  ;;  %2578 = vmatprep.subr.mxu0 %v2513_v48  ;;  %v871_v47 = vpop.f32.mrf.mxu0 }
 0x165   :  { %2693 = vmatprep.subr.mxu1 %v2513_v48  ;;  %2579 = vmatpush1.msra.mxu0 %v2512_v51 }
 0x166   :  { %2694 = vmatpush1.msra.mxu1 %v2512_v51  ;;  %2580 = vmatprep.subr.mxu0 %v2511_v52 }
 0x167   :  { %2695 = vmatprep.subr.mxu1 %v2511_v52  ;;  %2581 = vmatpush1.msra.mxu0 %v2510_v56 }
 0x168   :  { %2696 = vmatpush1.msra.mxu1 %v2510_v56  ;;  %2582 = vmatprep.subr.mxu0 %v2509_v6 }
 0x169   :  { %2697 = vmatprep.subr.mxu1 %v2509_v6  ;;  %2583 = vmatpush1.msra.mxu0 %v2508_v8 }
 0x16a   :  { %2698 = vmatpush1.msra.mxu1 %v2508_v8  ;;  %2584 = vmatprep.subr.mxu0 %v2507_v50 }
 0x16b   :  { %2699 = vmatprep.subr.mxu1 %v2507_v50  ;;  %2585 = vmatpush1.msra.mxu0 %v2506_v4 }
 0x16c   :  { %2700 = vmatpush1.msra.mxu1 %v2506_v4  ;;  %2586 = vmatprep.subr.mxu0 %v2505_v29 }
 0x16d   :  { %2701 = vmatprep.subr.mxu1 %v2505_v29  ;;  %2587 = vmatpush1.msra.mxu0 %v2504_v16 }
 0x16e   :  { %2702 = vmatpush1.msra.mxu1 %v2504_v16  ;;  %2588 = vmatprep.subr.mxu0 %v2503_v12 }
 0x16f   :  { %2703 = vmatprep.subr.mxu1 %v2503_v12  ;;  %2589 = vmatpush1.msra.mxu0 %v2502_v63 }
 0x170   :  { %2704 = vmatpush1.msra.mxu1 %v2502_v63  ;;  %2590 = vmatprep.subr.mxu0 %v2501_v59 }
 0x171   :  { %2705 = vmatprep.subr.mxu1 %v2501_v59  ;;  %2591 = vmatpush1.msra.mxu0 %v2500_v21 }
 0x172   :  { %2706 = vmatpush1.msra.mxu1 %v2500_v21  ;;  %2592 = vmatprep.subr.mxu0 %v2499_v53 }
 0x173   :  { %2707 = vmatprep.subr.mxu1 %v2499_v53  ;;  %2593 = vmatpush1.msra.mxu0 %v2498_v18 }
 0x174   :  { %2708 = vmatpush1.msra.mxu1 %v2498_v18  ;;  %2594 = vmatprep.subr.mxu0 %v2561_v24 }
 0x175   :  { %2709 = vmatprep.subr.mxu1 %v2561_v24  ;;  %2595 = vmatpush2.msra.mxu0 %v2560_v25  ;;  %v1253_v48 = vpop.f32.mrf.mxu1 }
 0x176   :  { %2710 = vmatpush2.msra.mxu1 %v2560_v25  ;;  %2596 = vmatprep.subr.mxu0 %v2559_v46 }
 0x177   :  { %2711 = vmatprep.subr.mxu1 %v2559_v46  ;;  %2597 = vmatpush2.msra.mxu0 %v2558_v26  ;;  %v1255_v52 = vpop.f32.mrf.mxu1 }
 0x178   :  { %2712 = vmatpush2.msra.mxu1 %v2558_v26  ;;  %2598 = vmatprep.subr.mxu0 %v2557_v27 }
 0x179   :  { %2713 = vmatprep.subr.mxu1 %v2557_v27  ;;  %2599 = vmatpush2.msra.mxu0 %v2556_v34  ;;  %v1257_v6 = vpop.f32.mrf.mxu1  ;;  %v533_v27 = vadd.f32 %v532_v43, %v489_v17 }
 0x17a   :  { %2714 = vmatpush2.msra.mxu1 %v2556_v34  ;;  %2600 = vmatprep.subr.mxu0 %v2555_v40  ;;  %v529_v34 = vadd.f32 %v528_v13, %v485_v15 }
 0x17b   :  { %2715 = vmatprep.subr.mxu1 %v2555_v40  ;;  %2601 = vmatpush2.msra.mxu0 %v2554_v31  ;;  %v1259_v50 = vpop.f32.mrf.mxu1  ;;  %v535_v40 = vadd.f32 %v534_v0, %v491_v19 }
 0x17c   :  { %2716 = vmatpush2.msra.mxu1 %v2554_v31  ;;  %2602 = vmatprep.subr.mxu0 %v2553_v42  ;;  %v827_v31 = vadd.f32 %v826_v30, %v533_v27 }
 0x17d   :  { %2717 = vmatprep.subr.mxu1 %v2553_v42  ;;  %2603 = vmatpush2.msra.mxu0 %v2552_v49 }
 0x17e   :  { %2718 = vmatpush2.msra.mxu1 %v2552_v49  ;;  %2604 = vmatprep.subr.mxu0 %v2551_v35 }
 0x17f   :  { %2719 = vmatprep.subr.mxu1 %v2551_v35  ;;  %2605 = vmatpush2.msra.mxu0 %v2550_v58 }
 0x180   :  { %2720 = vmatpush2.msra.mxu1 %v2550_v58  ;;  %2606 = vmatprep.subr.mxu0 %v2549_v60  ;;  %v531_v58 = vadd.f32 %v530_v23, %v487_v10 }
 0x181   :  { %2721 = vmatprep.subr.mxu1 %v2549_v60  ;;  %2607 = vmatpush2.msra.mxu0 %v2548_v62  ;;  %v823_v60 = vadd.f32 %v822_v55, %v529_v34 }
 0x182   :  { %2722 = vmatpush2.msra.mxu1 %v2548_v62  ;;  %2608 = vmatprep.subr.mxu0 %v2547_v2  ;;  %v829_v62 = vadd.f32 %v828_v57, %v535_v40 }
 0x183   :  { %2723 = vmatprep.subr.mxu1 %v2547_v2  ;;  %2609 = vmatpush2.msra.mxu0 %v2546_v37 }
 0x184   :  { %2724 = vmatpush2.msra.mxu1 %v2546_v37  ;;  %2610 = vmatprep.subr.mxu0 %v2545_v32 }
 0x185   :  { %2725 = vmatprep.subr.mxu1 %v2545_v32  ;;  %2611 = vmatpush2.msra.mxu0 %v2544_v45 }
 0x186   :  { %2726 = vmatpush2.msra.mxu1 %v2544_v45  ;;  %2612 = vmatprep.subr.mxu0 %v2543_v36  ;;  %v825_v45 = vadd.f32 %v824_v44, %v531_v58 }
 0x187   :  { %2727 = vmatprep.subr.mxu1 %v2543_v36  ;;  %2613 = vmatpush2.msra.mxu0 %v2542_v61  ;;  %v870_v36 = vadd.f32 %v869_v33, %v827_v31 }
 0x188   :  { %2728 = vmatpush2.msra.mxu1 %v2542_v61  ;;  %2614 = vmatprep.subr.mxu0 %v2541_v38  ;;  %v868_v10 = vadd.f32 %v867_v22, %v825_v45 }
 0x189   :  { %2729 = vmatprep.subr.mxu1 %v2541_v38  ;;  %2615 = vmatpush2.msra.mxu0 %v2540_v20 }
 0x18a   :  { %2730 = vmatpush2.msra.mxu1 %v2540_v20  ;;  %2616 = vmatprep.subr.mxu0 %v2539_v39 }
 0x18b   :  { %2731 = vmatprep.subr.mxu1 %v2539_v39  ;;  %2617 = vmatpush2.msra.mxu0 %v2538_v28 }
 0x18c   :  { %2732 = vmatpush2.msra.mxu1 %v2538_v28  ;;  %2618 = vmatprep.subr.mxu0 %v2537_v54 }
 0x18d   :  { %2733 = vmatprep.subr.mxu1 %v2537_v54  ;;  %2619 = vmatpush2.msra.mxu0 %v2536_v1 }
 0x18e   :  { %2734 = vmatpush2.msra.mxu1 %v2536_v1  ;;  %2620 = vmatprep.subr.mxu0 %v2535_v3  ;;  %v866_v1 = vadd.f32 %v865_v14, %v823_v60 }
 0x18f   :  { %2735 = vmatprep.subr.mxu1 %v2535_v3  ;;  %2621 = vmatpush2.msra.mxu0 %v2534_v5  ;;  %v872_v3 = vadd.f32 %v871_v47, %v829_v62 }
 0x190   :  { %2736 = vmatpush2.msra.mxu1 %v2534_v5  ;;  %2622 = vmatprep.subr.mxu0 %v2533_v41 }
 0x191   :  { %2737 = vmatprep.subr.mxu1 %v2533_v41  ;;  %2623 = vmatpush2.msra.mxu0 %v2532_v7 }
 0x192   :  { %2738 = vmatpush2.msra.mxu1 %v2532_v7  ;;  %2624 = vmatprep.subr.mxu0 %v2531_v9 }
 0x193   :  { %2739 = vmatprep.subr.mxu1 %v2531_v9  ;;  %2625 = vmatpush2.msra.mxu0 %v2530_v11 }
 0x194   :  { %2740 = vmatpush2.msra.mxu1 %v2530_v11  ;;  %v1210_v51 = vpop.f32.mrf.mxu0 }
 0x195   :  { %v1254_v61 = vadd.f32 %v1253_v48, %v1210_v51 }
 0x196   :  { %v1212_v56 = vpop.f32.mrf.mxu0 }
 0x197   :  { %v1256_v5 = vadd.f32 %v1255_v52, %v1212_v56  ;;  %v1262_v43 = vadd.f32 %v1254_v61, %v866_v1 }
 0x198   :  { %v1214_v8 = vpop.f32.mrf.mxu0 }
 0x199   :  { %v1258_v2 = vadd.f32 %v1257_v6, %v1214_v8  ;;  %v1263_v57 = vadd.f32 %v1256_v5, %v868_v10 }
 0x19a   :  { %v1216_v4 = vpop.f32.mrf.mxu0 }
 0x19b   :  { %v1260_v38 = vadd.f32 %v1259_v50, %v1216_v4  ;;  %v1264_v41 = vadd.f32 %v1258_v2, %v870_v36 }
 0x19d   :  { %v1265_v17 = vadd.f32 %v1260_v38, %v872_v3  ;;  %v2480_v48 = vadd.f32 %v1264_v41, %v1262_v43 }
 0x19f   :  { %v2489_v6 = vadd.f32 %v1265_v17, %v1263_v57 }
 0x1b4   :  { %v1726_v16 = vpop.f32.mrf.mxu0 }
 0x1b5   :  { %v1683_v29 = vpop.f32.mrf.mxu1 }
 0x1b6   :  { %v1728_v63 = vpop.f32.mrf.mxu0  ;;  %v1727_v35 = vadd.f32 %v1726_v16, %v1683_v29 }
 0x1b7   :  { %v1685_v12 = vpop.f32.mrf.mxu1 }
 0x1b8   :  { %v1730_v21 = vpop.f32.mrf.mxu0  ;;  %v1729_v37 = vadd.f32 %v1728_v63, %v1685_v12 }
 0x1b9   :  { %v1687_v59 = vpop.f32.mrf.mxu1 }
 0x1ba   :  { %v1732_v18 = vpop.f32.mrf.mxu0  ;;  %v1731_v28 = vadd.f32 %v1730_v21, %v1687_v59 }
 0x1bb   :  { %v1689_v53 = vpop.f32.mrf.mxu1 }
 0x1bc   :  { %v1733_v11 = vadd.f32 %v1732_v18, %v1689_v53 }
 0x1d5   :  { %v2068_v24 = vpop.f32.mrf.mxu1 }
 0x1d7   :  { %v2070_v46 = vpop.f32.mrf.mxu1 }
 0x1d9   :  { %v2072_v42 = vpop.f32.mrf.mxu1 }
 0x1db   :  { %v2074_v20 = vpop.f32.mrf.mxu1 }
 0x1f4   :  { %v2025_v25 = vpop.f32.mrf.mxu0 }
 0x1f5   :  { %v2026_v32 = vadd.f32 %v2025_v25, %v1727_v35  ;;  %v2635_v35 = vlaneseq }
 0x1f6   :  { %v2027_v26 = vpop.f32.mrf.mxu0 }
 0x1f7   :  { %v2028_v54 = vadd.f32 %v2027_v26, %v1729_v37  ;;  %v2069_v13 = vadd.f32 %v2068_v24, %v2026_v32  ;;  %v4123_v58 = vshrl.u32 %v2635_v35, 7 }
 0x1f8   :  { %v2029_v49 = vpop.f32.mrf.mxu0 }
 0x1f9   :  { %v2030_v15 = vadd.f32 %v2029_v49, %v1731_v28  ;;  %v2071_v55 = vadd.f32 %v2070_v46, %v2028_v54  ;;  %v4126_v60 = vsub.s32 0, %v4123_v58 }
 0x1fa   :  { %v2031_v39 = vpop.f32.mrf.mxu0 }
 0x1fb   :  { %v2032_v44 = vadd.f32 %v2031_v39, %v1733_v11  ;;  %v2073_v51 = vadd.f32 %v2072_v42, %v2030_v15 }
 0x1fd   :  { %v2075_v4 = vadd.f32 %v2074_v20, %v2032_v44 }
 0x214   :  { %v2455_v9 = vpop.f32.mrf.mxu0 }
 0x215   :  { %v2412_v7 = vpop.f32.mrf.mxu1 }
 0x216   :  { %v2456_v23 = vadd.f32 %v2455_v9, %v2412_v7  ;;  %v2457_v19 = vpop.f32.mrf.mxu0 }
 0x217   :  { %v2414_v0 = vpop.f32.mrf.mxu1 }
 0x218   :  { %v2464_v30 = vadd.f32 %v2456_v23, %v2069_v13  ;;  %v2458_v33 = vadd.f32 %v2457_v19, %v2414_v0  ;;  %v2459_v47 = vpop.f32.mrf.mxu0 }
 0x219   :  { %v2416_v14 = vpop.f32.mrf.mxu1 }
 0x21a   :  { %v2465_v52 = vadd.f32 %v2458_v33, %v2071_v55  ;;  %v2460_v56 = vadd.f32 %v2459_v47, %v2416_v14  ;;  %v2461_v50 = vpop.f32.mrf.mxu0  ;;  %v2481_v22 = vadd.f32 %v2480_v48, %v2464_v30 }
 0x21b   :  { %v2418_v8 = vpop.f32.mrf.mxu1 }
 0x21c   :  { %v2466_v29 = vadd.f32 %v2460_v56, %v2073_v51  ;;  %v2462_v16 = vadd.f32 %v2461_v50, %v2418_v8  ;;  %v2490_v12 = vadd.f32 %v2489_v6, %v2465_v52 }
 0x21e   :  { %v2482_v63 = vadd.f32 %v2481_v22, %v2466_v29  ;;  %v2467_v59 = vadd.f32 %v2462_v16, %v2075_v4 }
 0x220   :  { %v2483_v21 = vrot.slane %v2482_v63, 4  ;;  %v2491_v53 = vadd.f32 %v2490_v12, %v2467_v59 }
 0x222   :  { %v2484_v18 = vadd.f32 %v2483_v21, %v2482_v63  ;;  %v2492_v24 = vrot.slane %v2491_v53, 4  ;;  %v3637_v63 = vmov 1966171168  }
 0x224   :  { %v2485_v25 = vrot.slane %v2484_v18, 2  ;;  %v2493_v46 = vadd.f32 %v2492_v24, %v2491_v53 }
 0x226   :  { %v2486_v26 = vadd.f32 %v2485_v25, %v2484_v18  ;;  %v2494_v27 = vrot.slane %v2493_v46, 2 }
 0x228   :  { %v2495_v34 = vadd.f32 %v2494_v27, %v2493_v46  ;;  %v2487_v40 = vrot.slane %v2486_v26, 1  ;;  %v2781_v27 = vsub.s32 1, %v4123_v58 }
 0x22a   :  { %v2496_v31 = vrot.slane %v2495_v34, 1  ;;  %v2488_v49 = vadd.f32 %v2487_v40, %v2486_v26  ;;  %v2750_v26 = vld [vmem:[#allocation7] sm:$0x3]  ;;  %v2793_v40 = vld [vmem:[#allocation8] sm:$0x3] }
 0x22c   :  { %v2497_v42 = vadd.f32 %v2496_v31, %v2495_v34 }
 0x22e   :  { %2626 = vmatprep.mubr.f32.mxu0 %v2497_v42  ;;  %v2798_v42 = vrot.slane %v2793_v40, %v4126_v60 }
 0x22f   :  { %2627 = vmatmul.mubr.f32.vlgmr.msra.gmra.mxu0 %v2488_v49  ;;  %v2802_v49 = vrot.slane %v2793_v40, %v2781_v27 }
 0x2ef   :  { %v2628_v62 = vpop.f32.mrf.mxu0 }
 0x2f0   :  { %v2633_v2 = vmul.f32 0.03125, %v2628_v62 }
 0x2f1   :  { %v2630_v37 = vpop.f32.mrf.mxu0 }
 0x2f2   :  { %v2638_v32 = vrot.slane %v2633_v2, %v4126_v60  ;;  %v2634_v45 = vmul.f32 0.03125, %v2630_v37 }
 0x2f4   :  { %v2643_v36 = vsub.f32 %v1262_v43, %v2638_v32  ;;  %v4129_v61 = vsub.f32 %v1264_v41, %v2638_v32  ;;  %v4131_v38 = vsub.f32 %v2464_v30, %v2638_v32  ;;  %v2642_v20 = vrot.slane %v2634_v45, %v4126_v60 }
 0x2f5   :  { %v4134_v39 = vsub.f32 %v2466_v29, %v2638_v32 }
 0x2f6   :  { %v2651_v28 = vmul.f32 %v2643_v36, %v2643_v36  ;;  %v2653_v54 = vmul.f32 %v4129_v61, %v4129_v61  ;;  %v2644_v1 = vsub.f32 %v1263_v57, %v2642_v20  ;;  %v2646_v3 = vsub.f32 %v1265_v17, %v2642_v20 }
 0x2f7   :  { %v2648_v5 = vsub.f32 %v2465_v52, %v2642_v20  ;;  %v2655_v7 = vmul.f32 %v4131_v38, %v4131_v38  ;;  %v2650_v11 = vsub.f32 %v2467_v59, %v2642_v20  ;;  %v2657_v15 = vmul.f32 %v4134_v39, %v4134_v39 }
 0x2f8   :  { %v2659_v9 = vadd.f32 %v2653_v54, %v2651_v28  ;;  %v2652_v41 = vmul.f32 %v2644_v1, %v2644_v1  ;;  %v2654_v13 = vmul.f32 %v2646_v3, %v2646_v3  ;;  %v2759_v59 = vunpack.c.l.s4 %v3637_v63 }
 0x2f9   :  { %v2656_v10 = vmul.f32 %v2648_v5, %v2648_v5  ;;  %v2658_v19 = vmul.f32 %v2650_v11, %v2650_v11 }
 0x2fa   :  { %v2660_v23 = vadd.f32 %v2659_v9, %v2655_v7  ;;  %v2668_v43 = vadd.f32 %v2654_v13, %v2652_v41  ;;  %v2760_v21 = vunpack.c.0.s8 %v2759_v59 }
 0x2fc   :  { %v2661_v0 = vadd.f32 %v2660_v23, %v2657_v15  ;;  %v2669_v55 = vadd.f32 %v2668_v43, %v2656_v10  ;;  %v2763_v18 = vsub.s32 %v2760_v21, %v4123_v58 }
 0x2fe   :  { %v2662_v44 = vrot.slane %v2661_v0, 4  ;;  %v2670_v30 = vadd.f32 %v2669_v55, %v2658_v19 }
 0x300   :  { %v2663_v17 = vadd.f32 %v2662_v44, %v2661_v0  ;;  %v2671_v33 = vrot.slane %v2670_v30, 4 }
 0x302   :  { %v2664_v57 = vrot.slane %v2663_v17, 2  ;;  %v2672_v14 = vadd.f32 %v2671_v33, %v2670_v30 }
 0x304   :  { %v2665_v47 = vadd.f32 %v2664_v57, %v2663_v17  ;;  %v2673_v48 = vrot.slane %v2672_v14, 2 }
 0x306   :  { %v2674_v51 = vadd.f32 %v2673_v48, %v2672_v14  ;;  %v2666_v52 = vrot.slane %v2665_v47, 1 }
 0x308   :  { %v2675_v56 = vrot.slane %v2674_v51, 1  ;;  %v2667_v8 = vadd.f32 %v2666_v52, %v2665_v47 }
 0x30a   :  { %v2676_v6 = vadd.f32 %v2675_v56, %v2674_v51 }
 0x30c   :  { %2741 = vmatprep.mubr.f32.mxu1 %v2676_v6 }
 0x30d   :  { %2742 = vmatmul.mubr.f32.vlgmr.msra.gmra.mxu1 %v2667_v8 }
 0x3cd   :  { %v2743_v50 = vpop.f32.mrf.mxu1 }
 0x3ce   :  { %v2748_v4 = vmul.f32 0.03125, %v2743_v50 }
 0x3cf   :  { %v2745_v22 = vpop.f32.mrf.mxu1 }
 0x3d0   :  { %v2751_v29 = vadd.f32 1e-05, %v2748_v4  ;;  %v2749_v16 = vmul.f32 0.03125, %v2745_v22 }
 0x3d2   :  { %v2752_v12 = vadd.f32 1e-05, %v2749_v16  ;;  %3538 = vrsqrt.f32 %v2751_v29 }
 0x3d4   :  { %3540 = vrsqrt.f32 %v2752_v12 }
 0x3df   :  { %v3539_v53 = vpop.eup %3538 }
 0x3e1   :  { %v3541_v24 = vpop.eup %3540 }
 0x3e2   :  { %v2757_v25 = vcombine.low %v3539_v53, %v3541_v24 }
 0x3e4   :  { %v2764_v46 = vrot.slane %v2757_v25, %v2763_v18 }
 0x3e6   :  { %v2771_v34 = vrot.slane %v2764_v46, %v2763_v18 }
 0x3e8   :  { %v2773_v31 = vmul.f32 %v2771_v34, %v2750_v26 }
 0x3ea   :  { %v2778_v35 = vrot.slane %v2773_v31, %v4126_v60  ;;  %v2782_v62 = vrot.slane %v2773_v31, %v2781_v27 }
 0x3ec   :  { %v2785_v2 = vmul.f32 %v2778_v35, %v2643_v36  ;;  %v2786_v37 = vmul.f32 %v2782_v62, %v2644_v1  ;;  %v2787_v32 = vmul.f32 %v2778_v35, %v4129_v61  ;;  %v2788_v45 = vmul.f32 %v2782_v62, %v2646_v3 }
 0x3ed   :  { %v2789_v20 = vmul.f32 %v2778_v35, %v4131_v38  ;;  %v2790_v28 = vmul.f32 %v2782_v62, %v2648_v5  ;;  %v2791_v54 = vmul.f32 %v2778_v35, %v4134_v39  ;;  %v2792_v58 = vmul.f32 %v2782_v62, %v2650_v11 }
 0x3ee   :  { %v2805_v7 = vadd.f32 %v2798_v42, %v2785_v2  ;;  %v2806_v9 = vadd.f32 %v2802_v49, %v2786_v37  ;;  %v2807_v41 = vadd.f32 %v2798_v42, %v2787_v32  ;;  %v2808_v13 = vadd.f32 %v2802_v49, %v2788_v45 }
 0x3ef   :  { %v2809_v15 = vadd.f32 %v2798_v42, %v2789_v20  ;;  %v2810_v23 = vadd.f32 %v2802_v49, %v2790_v28  ;;  %v2811_v10 = vadd.f32 %v2798_v42, %v2791_v54  ;;  %v2812_v60 = vadd.f32 %v2802_v49, %v2792_v58 }
 0x3f0   :  { %vm2813_vm1 = vcmp.gt.f32.partialorder %v2805_v7, 0.0  ;;  %vm2814_vm2 = vcmp.gt.f32.partialorder %v2806_v9, 0.0  ;;  %vm2815_vm3 = vcmp.gt.f32.partialorder %v2807_v41, 0.0  ;;  %vm2816_vm4 = vcmp.gt.f32.partialorder %v2808_v13, 0.0 }
 0x3f1   :  { %vm2817_vm5 = vcmp.gt.f32.partialorder %v2809_v15, 0.0  ;;  %vm2818_vm6 = vcmp.gt.f32.partialorder %v2810_v23, 0.0  ;;  %vm2819_vm7 = vcmp.gt.f32.partialorder %v2811_v10, 0.0  ;;  %vm2820_vm8 = vcmp.gt.f32.partialorder %v2812_v60, 0.0 }
 0x3f2   :  { %v2821_v36 = vmul.f32 0.2, %v2805_v7  ;;  %v2822_v61 = vmul.f32 0.2, %v2806_v9  ;;  %v2823_v38 = vmul.f32 0.2, %v2807_v41 }
 0x3f3   :  { %v2824_v39 = vmul.f32 0.2, %v2808_v13  ;;  %v2825_v1 = vmul.f32 0.2, %v2809_v15  ;;  %v2826_v3 = vmul.f32 0.2, %v2810_v23 }
 0x3f4   :  { %v2827_v5 = vmul.f32 0.2, %v2811_v10  ;;  %v2828_v11 = vmul.f32 0.2, %v2812_v60  ;;  %v2829_v43 = vsel %vm2813_vm1, %v2805_v7, %v2821_v36  ;;  %v2830_v0 = vsel %vm2814_vm2, %v2806_v9, %v2822_v61 }
 0x3f5   :  { %v2831_v19 = vsel %vm2815_vm3, %v2807_v41, %v2823_v38  ;;  %v2832_v55 = vsel %vm2816_vm4, %v2808_v13, %v2824_v39  ;;  %v2833_v44 = vsel %vm2817_vm5, %v2809_v15, %v2825_v1  ;;  %v2834_v30 = vsel %vm2818_vm6, %v2810_v23, %v2826_v3 }
 0x3f6   :  { %v2835_v17 = vsel %vm2819_vm7, %v2811_v10, %v2827_v5  ;;  %v2836_v33 = vsel %vm2820_vm8, %v2812_v60, %v2828_v11  ;;  %v3188_v57 = vpack.c.bf16 %v2830_v0, %v2829_v43  ;;  %v3189_v14 = vpack.c.bf16 %v2832_v55, %v2831_v19 }
 0x3f7   :  { %v3190_v47 = vpack.c.bf16 %v2834_v30, %v2833_v44  ;;  %v3191_v48 = vpack.c.bf16 %v2836_v33, %v2835_v17 }
 0x3f8   :  { %2861 = vst [vmem:[%s4174_s5] sm:$0xff] %v3188_v57  ;;  %2862 = vst [vmem:[%s4174_s5 + $0x8] sm:$0xff] %v3189_v14 }
 0x3f9   :  { %2863 = vst [vmem:[%s4174_s5 + $0x10] sm:$0xff] %v3190_v47  ;;  %2864 = vst [vmem:[%s4174_s5 + $0x18] sm:$0xff] %v3191_v48 }
 0x3fa   :  { %2869 = vsyncpa [#allocation4], 1 }
 0x3fb   :  { %2870 = vsyncpa [#allocation6], 1 }
 0x3fc   :  { %2871 = vsyncpa [#allocation9], 1 }

// kernel: generator_forward.7
= control target key start
LH: loop header
LB: loop body
LE: loop exit
PB: predicated region body
PF: predicated region fallthrough
CT: control target
= control target key end

     0   :  { %10 = vsyncpa [#allocation4], 0  ;;  %s3056_s0 = inlined_call_operand.vmem [shape: bf16[160,192], index: 0, kind: input, shape index: {}]   ;;  %s3057_s1 = inlined_call_operand.vmem [shape: bf16[3,192,128], index: 1, kind: input, shape index: {}]   ;;  %s3058_s2 = inlined_call_operand.vmem [shape: f32[128,128], index: 2, kind: input, shape index: {}]   ;;  %s3059_s3 = inlined_call_operand.hbm [shape: f32[1,128], index: 3, kind: input, shape index: {}]   ;;  %s3060_s4 = inlined_call_operand.hbm [shape: f32[1,128], index: 4, kind: input, shape index: {}]   ;;  %s3061_s5 = inlined_call_operand.vmem [shape: bf16[128,128], index: 5, kind: output, shape index: {}]  }
   0x1   :  { %11 = vsyncpa [#allocation6], 0  ;;  %s2344_s18 = smov [#allocation3]   ;;  %s2345_s20 = smov [#allocation5]  }
   0x2   :  { %s24_s19 = sshll.u32 %s2344_s18, 4  ;;  %s34_s21 = sshll.u32 %s2345_s20, 4  ;;  %s25_s19 = int_to_ptr.vmem [resolvable:$true] %s24_s19  ;;  %s35_s21 = int_to_ptr.vmem [resolvable:$true] %s34_s21 }
   0x3   :  { %s2308_s22 = scalar_lea.vmem %s25_s19, 16  ;;  %s2312_s23 = scalar_lea.vmem %s25_s19, 32 }
   0x4   :  { %p2309_p0 = scmp.ne.s32.totalorder %s25_s19, %s2308_s22  ;;  %p2313_p1 = scmp.lt.s32.totalorder %s25_s19, %s25_s19 }
   0x5   :  { %p2314_p2 = scmp.lt.s32.totalorder %s2312_s23, %s2308_s22 }
   0x7   :  { %p2315_p3 = por %p2314_p2, %p2313_p1 }
   0x9   :  { %p2316_p4 = pnand %p2315_p3, %p2309_p0 }
   0xb   :  { %2319 = shalt.err (!%p2316_p4)
}
   0xc   :  { %27 = dma.hbm_to_vmem [thread:$0]  %s3059_s3, 16, %s25_s19, [#allocation4]  }
   0xd   :  { %s2328_s26 = scalar_lea.vmem %s35_s21, 16  ;;  %s2332_s27 = scalar_lea.vmem %s35_s21, 32 }
   0xe   :  { %p2329_p5 = scmp.ne.s32.totalorder %s35_s21, %s2328_s26  ;;  %p2333_p6 = scmp.lt.s32.totalorder %s35_s21, %s35_s21 }
   0xf   :  { %p2334_p7 = scmp.lt.s32.totalorder %s2332_s27, %s2328_s26 }
  0x11   :  { %p2335_p8 = por %p2334_p7, %p2333_p6 }
  0x13   :  { %p2336_p9 = pnand %p2335_p8, %p2329_p5 }
  0x15   :  { %2339 = shalt.err (!%p2336_p9)
}
  0x16   :  { %37 = dma.hbm_to_vmem [thread:$0]  %s3060_s4, 16, %s35_s21, [#allocation6]  }
  0x17   :  { %2340 = dma.done.wait [#allocation4], 16  }
  0x18   :  { %2341 = vsyncadd [#allocation4], 4294967280 }
  0x19   :  { %2342 = dma.done.wait [#allocation6], 16  }
  0x1a   :  { %2343 = vsyncadd [#allocation6], 4294967280  ;;  %v2346_v0 = vmov 0   ;;  %v2190_v1 = vld [vmem:[%s3057_s1 + $0x98] sm:$0xff]   ;;  %v2192_v3 = vld [vmem:[%s3057_s1 + $0x90] sm:$0xff]   ;;  %vm211_vm0 = vcmask 523264  }
  0x1b   :  { %224 = vmatprep.subr.bf16.mxu0 %v2346_v0  ;;  %388 = vmatprep.subr.bf16.mxu1 %v2346_v0  ;;  %v2191_v2 = vld [vmem:[%s3057_s1 + $0x38] sm:$0xff]   ;;  %v2193_v4 = vld [vmem:[%s3057_s1 + $0x30] sm:$0xff]   ;;  %v2194_v5 = vld [vmem:[%s3057_s1 + $0x88] sm:$0xff]   ;;  %vm2348_vm1 = vmmov 0  }
  0x1c   :  { %225 = vmatpush1.bf16.msra.mxu0 %v2190_v1  ;;  %389 = vmatpush1.bf16.msra.mxu1 %v2191_v2  ;;  %v2195_v6 = vld [vmem:[%s3057_s1 + $0x28] sm:$0xff]   ;;  %v2196_v7 = vld [vmem:[%s3057_s1 + $0x80] sm:$0xff]   ;;  %v2198_v9 = vld [vmem:[%s3057_s1 + $0x78] sm:$0xff]  }
  0x1d   :  { %226 = vmatprep.subr.bf16.mxu0 %v2346_v0  ;;  %390 = vmatprep.subr.bf16.mxu1 %v2346_v0  ;;  %v2197_v8 = vld [vmem:[%s3057_s1 + $0x20] sm:$0xff]   ;;  %v2199_v10 = vld [vmem:[%s3057_s1 + $0x18] sm:$0xff]   ;;  %v2200_v11 = vld [vmem:[%s3057_s1 + $0x70] sm:$0xff]  }
  0x1e   :  { %v2201_v12 = vld [vmem:[%s3057_s1 + $0x10] sm:$0xff]   ;;  %v2202_v13 = vld [vmem:[%s3057_s1 + $0x68] sm:$0xff]   ;;  %v45_v17 = vld [vmem:[%s3056_s0] sm:$0xff] }
  0x1f   :  { %v2203_v14 = vld [vmem:[%s3057_s1 + $0x8] sm:$0xff]   ;;  %v2447_v16 = vld [vmem:[%s3056_s0 + $0x10] sm:$0xff]  ;;  %v2204_v20 = vld [vmem:[%s3057_s1 + $0x60] sm:$0xff]  }
  0x20   :  { %227 = vmatpush1.bf16.msra.mxu0 %v2192_v3  ;;  %391 = vmatpush1.bf16.msra.mxu1 %v2193_v4  ;;  %v46_v15 = vld [vmem:[%s3056_s0 + $0x8] sm:$0xff]  ;;  %v2205_v21 = vld [vmem:[%s3057_s1] sm:$0xff]   ;;  %v2206_v22 = vld [vmem:[%s3057_s1 + $0xb8] sm:$0xff]  }
  0x21   :  { %228 = vmatprep.subr.bf16.mxu0 %v2346_v0  ;;  %392 = vmatprep.subr.bf16.mxu1 %v2346_v0  ;;  %v1786_v18 = vcombine.high %v46_v15, %v2447_v16  ;;  %v1810_v19 = vcombine.high %v45_v17, %v46_v15  ;;  %v2207_v23 = vld [vmem:[%s3057_s1 + $0x58] sm:$0xff]   ;;  %v2208_v24 = vld [vmem:[%s3057_s1 + $0xb0] sm:$0xff]   ;;  %v2210_v26 = vld [vmem:[%s3057_s1 + $0xa8] sm:$0xff]   ;;  %v1785_v31 = vcombine.low %v46_v15, %v2447_v16 }
  0x22   :  { %v2209_v25 = vld [vmem:[%s3057_s1 + $0x50] sm:$0xff]   ;;  %v2211_v27 = vld [vmem:[%s3057_s1 + $0x48] sm:$0xff]   ;;  %v2212_v28 = vld [vmem:[%s3057_s1 + $0xa0] sm:$0xff]   ;;  %v1809_v33 = vcombine.low %v45_v17, %v46_v15 }
  0x23   :  { %1805 = vmatprep.mubr.msk.bf16.mxu0 %vm211_vm0, %v1786_v18  ;;  %1829 = vmatprep.mubr.msk.bf16.mxu1 %vm211_vm0, %v1810_v19  ;;  %v2213_v29 = vld [vmem:[%s3057_s1 + $0x40] sm:$0xff]   ;;  %v48_v30 = vld [vmem:[%s3056_s0 + $0x18] sm:$0xff]  ;;  %v2220_v38 = vld [vmem:[%s3057_s1 + $0xf0] sm:$0xff]  }
  0x24   :  { %229 = vmatpush1.bf16.msra.mxu0 %v2194_v5  ;;  %393 = vmatpush1.bf16.msra.mxu1 %v2195_v6  ;;  %v49_v32 = vld [vmem:[%s3056_s0 + $0x20] sm:$0xff]  ;;  %v2218_v34 = vld [vmem:[%s3057_s1 + $0xf8] sm:$0xff]   ;;  %v2511_v37 = vcombine.high %v2447_v16, %v48_v30  ;;  %v2221_v39 = vld [vmem:[%s3057_s1 + $0x90] sm:$0xff]   ;;  %v2534_v44 = vcombine.low %v2447_v16, %v48_v30 }
  0x25   :  { %230 = vmatprep.subr.bf16.mxu0 %v2346_v0  ;;  %394 = vmatprep.subr.bf16.mxu1 %v2346_v0  ;;  %v2219_v35 = vld [vmem:[%s3057_s1 + $0x98] sm:$0xff]   ;;  %v1788_v36 = vcombine.high %v48_v30, %v49_v32  ;;  %v50_v40 = vld [vmem:[%s3056_s0 + $0x28] sm:$0xff]  ;;  %v1787_v41 = vcombine.low %v48_v30, %v49_v32  ;;  %v51_v42 = vld [vmem:[%s3056_s0 + $0x30] sm:$0xff] }
  0x26   :  { %v2222_v43 = vld [vmem:[%s3057_s1 + $0xe8] sm:$0xff]   ;;  %v1790_v46 = vcombine.high %v50_v40, %v51_v42  ;;  %v2541_v47 = vcombine.high %v49_v32, %v50_v40  ;;  %v2224_v48 = vld [vmem:[%s3057_s1 + $0xe0] sm:$0xff]   ;;  %v1789_v50 = vcombine.low %v50_v40, %v51_v42  ;;  %v52_v51 = vld [vmem:[%s3056_s0 + $0x38] sm:$0xff]  ;;  %v2566_v54 = vcombine.low %v49_v32, %v50_v40 }
  0x27   :  { %v2223_v45 = vld [vmem:[%s3057_s1 + $0x88] sm:$0xff]   ;;  %v2225_v49 = vld [vmem:[%s3057_s1 + $0x80] sm:$0xff]   ;;  %v2226_v53 = vld [vmem:[%s3057_s1 + $0xd8] sm:$0xff]   ;;  %v2574_v57 = vcombine.high %v51_v42, %v52_v51  ;;  %v2597_v63 = vcombine.low %v51_v42, %v52_v51 }
  0x28   :  { %231 = vmatpush1.bf16.msra.mxu0 %v2196_v7  ;;  %395 = vmatpush1.bf16.msra.mxu1 %v2197_v8  ;;  %v2561_v52 = vld [vmem:[%s3056_s0 + $0x40] sm:$0xff]  ;;  %v2227_v55 = vld [vmem:[%s3057_s1 + $0x78] sm:$0xff]   ;;  %v2232_v58 = vld [vmem:[%s3057_s1 + $0xd0] sm:$0xff]  }
  0x29   :  { %232 = vmatprep.subr.bf16.mxu0 %v2346_v0  ;;  %396 = vmatprep.subr.bf16.mxu1 %v2346_v0  ;;  %v1792_v56 = vcombine.high %v52_v51, %v2561_v52  ;;  %v2233_v59 = vld [vmem:[%s3057_s1 + $0x70] sm:$0xff]   ;;  %v2234_v60 = vld [vmem:[%s3057_s1 + $0xc8] sm:$0xff]   ;;  %v1791_v61 = vcombine.low %v52_v51, %v2561_v52  ;;  %v2595_v62 = vld [vmem:[%s3056_s0 + $0x58] sm:$0xff] }
  0x2a   :  { %v2602_v1 = vld [vmem:[%s3056_s0 + $0x60] sm:$0xff]  ;;  %v2235_v2 = vld [vmem:[%s3057_s1 + $0x68] sm:$0xff]   ;;  %v2242_v6 = vld [vmem:[%s3057_s1 + $0x118] sm:$0xff]  }
  0x2b   :  { %v1906_v3 = vcombine.high %v2595_v62, %v2602_v1  ;;  %v2240_v4 = vld [vmem:[%s3057_s1 + $0xc0] sm:$0xff]   ;;  %v2243_v7 = vld [vmem:[%s3057_s1 + $0xb8] sm:$0xff]   ;;  %v2248_v8 = vld [vmem:[%s3057_s1 + $0x110] sm:$0xff]  }
  0x2c   :  { %233 = vmatpush1.bf16.msra.mxu0 %v2198_v9  ;;  %397 = vmatpush1.bf16.msra.mxu1 %v2199_v10  ;;  %v2241_v5 = vld [vmem:[%s3057_s1 + $0x60] sm:$0xff]   ;;  %v2249_v9 = vld [vmem:[%s3057_s1 + $0xb0] sm:$0xff]   ;;  %v2250_v10 = vld [vmem:[%s3057_s1 + $0x108] sm:$0xff]  }
  0x2d   :  { %234 = vmatprep.subr.bf16.mxu0 %v2346_v0  ;;  %398 = vmatprep.subr.bf16.mxu1 %v2346_v0  ;;  %v2256_v15 = vld [vmem:[%s3057_s1 + $0x38] sm:$0xff]   ;;  %v2663_v16 = vld [vmem:[%s3056_s0 + $0x68] sm:$0xff]  ;;  %v2668_v17 = vld [vmem:[%s3056_s0 + $0x70] sm:$0xff] }
  0x2e   :  { %v2257_v18 = vld [vmem:[%s3057_s1 + $0xf8] sm:$0xff]   ;;  %v1908_v19 = vcombine.high %v2663_v16, %v2668_v17  ;;  %v460_v30 = vld [vmem:[%s3056_s0 + $0x48] sm:$0xff]  ;;  %v687_v40 = vld [vmem:[%s3056_s0 + $0x50] sm:$0xff] }
  0x2f   :  { %v1864_v32 = vcombine.high %v2561_v52, %v460_v30  ;;  %v2272_v42 = vld [vmem:[%s3057_s1 + $0x8] sm:$0xff]   ;;  %v2282_v51 = vld [vmem:[%s3057_s1 + $0x50] sm:$0xff]  }
  0x30   :  { %235 = vmatpush1.bf16.msra.mxu0 %v2200_v11  ;;  %399 = vmatpush1.bf16.msra.mxu1 %v2201_v12  ;;  %v2251_v11 = vld [vmem:[%s3057_s1 + $0xa8] sm:$0xff]   ;;  %v2252_v12 = vld [vmem:[%s3057_s1 + $0x100] sm:$0xff]  }
  0x31   :  { %236 = vmatprep.subr.bf16.mxu0 %v2346_v0  ;;  %400 = vmatprep.subr.bf16.mxu1 %v2346_v0 }
  0x34   :  { %237 = vmatpush1.bf16.msra.mxu0 %v2202_v13  ;;  %401 = vmatpush1.bf16.msra.mxu1 %v2203_v14  ;;  %v2253_v13 = vld [vmem:[%s3057_s1 + $0xa0] sm:$0xff]   ;;  %v1905_v14 = vcombine.low %v2595_v62, %v2602_v1 }
  0x35   :  { %238 = vmatprep.subr.bf16.mxu0 %v2346_v0  ;;  %402 = vmatprep.subr.bf16.mxu1 %v2346_v0 }
  0x38   :  { %239 = vmatpush1.bf16.msra.mxu0 %v2204_v20  ;;  %403 = vmatpush1.bf16.msra.mxu1 %v2205_v21  ;;  %v2258_v20 = vld [vmem:[%s3057_s1 + $0x30] sm:$0xff]  }
  0x39   :  { %248 = vmatprep.subr.bf16.mxu0 %v2346_v0  ;;  %412 = vmatprep.subr.bf16.mxu1 %v2346_v0  ;;  %v2259_v21 = vld [vmem:[%s3057_s1 + $0xf0] sm:$0xff]  }
  0x3c   :  { %249 = vmatpush2.bf16.msra.mxu0 %v2206_v22  ;;  %413 = vmatpush2.bf16.msra.mxu1 %v2207_v23  ;;  %v2260_v22 = vld [vmem:[%s3057_s1 + $0x28] sm:$0xff]   ;;  %v2695_v23 = vld [vmem:[%s3056_s0 + $0x78] sm:$0xff] }
  0x3d   :  { %250 = vmatprep.subr.bf16.mxu0 %v2346_v0  ;;  %414 = vmatprep.subr.bf16.mxu1 %v2346_v0 }
  0x40   :  { %251 = vmatpush2.bf16.msra.mxu0 %v2208_v24  ;;  %415 = vmatpush2.bf16.msra.mxu1 %v2209_v25  ;;  %v2700_v24 = vld [vmem:[%s3056_s0 + $0x80] sm:$0xff]  ;;  %v2261_v25 = vld [vmem:[%s3057_s1 + $0xe8] sm:$0xff]  }
  0x41   :  { %252 = vmatprep.subr.bf16.mxu0 %v2346_v0  ;;  %416 = vmatprep.subr.bf16.mxu1 %v2346_v0 }
  0x44   :  { %253 = vmatpush2.bf16.msra.mxu0 %v2210_v26  ;;  %417 = vmatpush2.bf16.msra.mxu1 %v2211_v27  ;;  %v1907_v26 = vcombine.low %v2663_v16, %v2668_v17  ;;  %v1910_v27 = vcombine.high %v2695_v23, %v2700_v24 }
  0x45   :  { %254 = vmatprep.subr.bf16.mxu0 %v2346_v0  ;;  %418 = vmatprep.subr.bf16.mxu1 %v2346_v0 }
  0x48   :  { %255 = vmatpush2.bf16.msra.mxu0 %v2212_v28  ;;  %419 = vmatpush2.bf16.msra.mxu1 %v2213_v29  ;;  %v2262_v28 = vld [vmem:[%s3057_s1 + $0x20] sm:$0xff]  }
  0x49   :  { %606 = vmatprep.subr.bf16.mxu0 %v2346_v0  ;;  %864 = vmatprep.subr.bf16.mxu1 %v2346_v0  ;;  %v2263_v29 = vld [vmem:[%s3057_s1 + $0xe0] sm:$0xff]  }
  0x4b   :  { %257 = vmatmul.mubr.bf16.vlgmr.msra.gmra.mxu0 %v1785_v31  ;;  %421 = vmatmul.mubr.bf16.vlgmr.msra.gmra.mxu1 %v1809_v33  ;;  %v2264_v31 = vld [vmem:[%s3057_s1 + $0x18] sm:$0xff]   ;;  %v2733_v33 = vld [vmem:[%s3056_s0 + $0x88] sm:$0xff] }
  0x4c   :  { %607 = vmatpush1.bf16.msra.mxu0 %v2218_v34  ;;  %865 = vmatpush1.bf16.msra.mxu1 %v2219_v35  ;;  %v2738_v34 = vld [vmem:[%s3056_s0 + $0x90] sm:$0xff]  ;;  %v2265_v35 = vld [vmem:[%s3057_s1 + $0xd8] sm:$0xff]  }
  0x4d   :  { %608 = vmatprep.subr.bf16.mxu0 %v2346_v0  ;;  %866 = vmatprep.subr.bf16.mxu1 %v2346_v0 }
  0x4e   :  { %1806 = vmatprep.mubr.msk.bf16.mxu0 %vm211_vm0, %v1788_v36  ;;  %1830 = vmatprep.mubr.msk.bf16.mxu1 %vm211_vm0, %v2511_v37  ;;  %v1909_v36 = vcombine.low %v2695_v23, %v2700_v24 }
  0x50   :  { %609 = vmatpush1.bf16.msra.mxu0 %v2220_v38  ;;  %867 = vmatpush1.bf16.msra.mxu1 %v2221_v39  ;;  %v2268_v38 = vld [vmem:[%s3057_s1 + $0x10] sm:$0xff]  }
  0x51   :  { %610 = vmatprep.subr.bf16.mxu0 %v2346_v0  ;;  %868 = vmatprep.subr.bf16.mxu1 %v2346_v0  ;;  %v2269_v39 = vld [vmem:[%s3057_s1 + $0xd0] sm:$0xff]  }
  0x53   :  { %265 = vmatmul.mubr.bf16.gmra.mxu0 %v1787_v41  ;;  %429 = vmatmul.mubr.bf16.gmra.mxu1 %v2534_v44  ;;  %v1863_v41 = vcombine.low %v2561_v52, %v460_v30  ;;  %v2283_v52 = vld [vmem:[%s3057_s1 + $0x110] sm:$0xff]  }
  0x54   :  { %611 = vmatpush1.bf16.msra.mxu0 %v2222_v43  ;;  %869 = vmatpush1.bf16.msra.mxu1 %v2223_v45  ;;  %v1930_v43 = vcombine.high %v687_v40, %v2595_v62  ;;  %v1911_v45 = vcombine.low %v2733_v33, %v2738_v34  ;;  %v1365_v30 = vld [vmem:[%s3058_s2 + $0x10] sm:$0xff] }
  0x55   :  { %612 = vmatprep.subr.bf16.mxu0 %v2346_v0  ;;  %870 = vmatprep.subr.bf16.mxu1 %v2346_v0 }
  0x56   :  { %1807 = vmatprep.mubr.msk.bf16.mxu0 %vm211_vm0, %v1790_v46  ;;  %1831 = vmatprep.mubr.msk.bf16.mxu1 %vm211_vm0, %v2541_v47  ;;  %v1978_v46 = vcombine.high %v2602_v1, %v2663_v16 }
  0x58   :  { %613 = vmatpush1.bf16.msra.mxu0 %v2224_v48  ;;  %871 = vmatpush1.bf16.msra.mxu1 %v2225_v49  ;;  %v2277_v48 = vld [vmem:[%s3057_s1 + $0xc0] sm:$0xff]   ;;  %v2278_v49 = vld [vmem:[%s3057_s1 + $0x58] sm:$0xff]  }
  0x59   :  { %614 = vmatprep.subr.bf16.mxu0 %v2346_v0  ;;  %872 = vmatprep.subr.bf16.mxu1 %v2346_v0 }
  0x5b   :  { %273 = vmatmul.mubr.bf16.gmra.mxu0 %v1789_v50  ;;  %437 = vmatmul.mubr.bf16.gmra.mxu1 %v2566_v54  ;;  %v2279_v50 = vld [vmem:[%s3057_s1 + $0x118] sm:$0xff]  }
  0x5c   :  { %615 = vmatpush1.bf16.msra.mxu0 %v2226_v53  ;;  %873 = vmatpush1.bf16.msra.mxu1 %v2227_v55  ;;  %v2284_v53 = vld [vmem:[%s3057_s1 + $0x48] sm:$0xff]   ;;  %v2286_v55 = vld [vmem:[%s3057_s1 + $0x40] sm:$0xff]  }
  0x5d   :  { %616 = vmatprep.subr.bf16.mxu0 %v2346_v0  ;;  %874 = vmatprep.subr.bf16.mxu1 %v2346_v0 }
  0x5e   :  { %1808 = vmatprep.mubr.msk.bf16.mxu0 %vm211_vm0, %v1792_v56  ;;  %1832 = vmatprep.mubr.msk.bf16.mxu1 %vm211_vm0, %v2574_v57  ;;  %v2287_v56 = vld [vmem:[%s3057_s1 + $0x100] sm:$0xff]  }
  0x60   :  { %617 = vmatpush1.bf16.msra.mxu0 %v2232_v58  ;;  %875 = vmatpush1.bf16.msra.mxu1 %v2233_v59  ;;  %v1977_v58 = vcombine.low %v2602_v1, %v2663_v16  ;;  %v1980_v59 = vcombine.high %v2668_v17, %v2695_v23  ;;  %v1369_v16 = vld [vmem:[%s3058_s2 + $0x30] sm:$0xff] }
  0x61   :  { %618 = vmatprep.subr.bf16.mxu0 %v2346_v0  ;;  %876 = vmatprep.subr.bf16.mxu1 %v2346_v0 }
  0x63   :  { %281 = vmatmul.mubr.bf16.gmra.mxu0 %v1791_v61  ;;  %445 = vmatmul.mubr.bf16.gmra.mxu1 %v2597_v63  ;;  %v1100_v61 = vld [vmem:[%s3056_s0 + $0x98] sm:$0xff] }
  0x64   :  { %619 = vmatpush1.bf16.msra.mxu0 %v2234_v60  ;;  %877 = vmatpush1.bf16.msra.mxu1 %v2235_v2  ;;  %v1979_v60 = vcombine.low %v2668_v17, %v2695_v23  ;;  %v1983_v1 = vcombine.low %v2738_v34, %v1100_v61  ;;  %v2347_v2 = vmov 0.0   ;;  %v1367_v23 = vld [vmem:[%s3058_s2 + $0x20] sm:$0xff] }
  0x65   :  { %620 = vmatprep.subr.bf16.mxu0 %v2346_v0  ;;  %878 = vmatprep.subr.bf16.mxu1 %v2346_v0 }
  0x66   :  { %1877 = vmatprep.mubr.msk.bf16.mxu0 %vm211_vm0, %v2511_v37  ;;  %1925 = vmatprep.mubr.msk.bf16.mxu1 %vm211_vm0, %v1906_v3  ;;  %v1912_v37 = vcombine.high %v2733_v33, %v2738_v34  ;;  %v1378_v3 = vld [vmem:[%s3058_s2 + $0x78] sm:$0xff] }
  0x68   :  { %621 = vmatpush1.bf16.msra.mxu0 %v2240_v4  ;;  %879 = vmatpush1.bf16.msra.mxu1 %v2241_v5  ;;  %v1377_v4 = vld [vmem:[%s3058_s2 + $0x70] sm:$0xff]  ;;  %v1376_v5 = vld [vmem:[%s3058_s2 + $0x68] sm:$0xff] }
  0x69   :  { %630 = vmatprep.subr.bf16.mxu0 %v2346_v0  ;;  %888 = vmatprep.subr.bf16.mxu1 %v2346_v0 }
  0x6c   :  { %631 = vmatpush2.bf16.msra.mxu0 %v2242_v6  ;;  %889 = vmatpush2.bf16.msra.mxu1 %v2243_v7  ;;  %v1375_v6 = vld [vmem:[%s3058_s2 + $0x60] sm:$0xff]  ;;  %v1374_v7 = vld [vmem:[%s3058_s2 + $0x58] sm:$0xff] }
  0x6d   :  { %632 = vmatprep.subr.bf16.mxu0 %v2346_v0  ;;  %890 = vmatprep.subr.bf16.mxu1 %v2346_v0 }
  0x70   :  { %633 = vmatpush2.bf16.msra.mxu0 %v2248_v8  ;;  %891 = vmatpush2.bf16.msra.mxu1 %v2249_v9  ;;  %v1373_v8 = vld [vmem:[%s3058_s2 + $0x50] sm:$0xff]  ;;  %v1372_v9 = vld [vmem:[%s3058_s2 + $0x48] sm:$0xff] }
  0x71   :  { %634 = vmatprep.subr.bf16.mxu0 %v2346_v0  ;;  %892 = vmatprep.subr.bf16.mxu1 %v2346_v0 }
  0x74   :  { %635 = vmatpush2.bf16.msra.mxu0 %v2250_v10  ;;  %893 = vmatpush2.bf16.msra.mxu1 %v2251_v11  ;;  %v1371_v10 = vld [vmem:[%s3058_s2 + $0x40] sm:$0xff] }
  0x75   :  { %636 = vmatprep.subr.bf16.mxu0 %v2346_v0  ;;  %894 = vmatprep.subr.bf16.mxu1 %v2346_v0 }
  0x78   :  { %637 = vmatpush2.bf16.msra.mxu0 %v2252_v12  ;;  %895 = vmatpush2.bf16.msra.mxu1 %v2253_v13  ;;  %v1370_v12 = vld [vmem:[%s3058_s2 + $0x38] sm:$0xff] }
  0x79   :  { %1028 = vmatprep.subr.bf16.mxu0 %v2346_v0  ;;  %1245 = vmatprep.subr.bf16.mxu1 %v2346_v0 }
  0x7b   :  { %639 = vmatmul.mubr.bf16.vlgmr.msra.gmra.mxu0 %v2534_v44  ;;  %897 = vmatmul.mubr.bf16.vlgmr.msra.gmra.mxu1 %v1905_v14  ;;  %v2273_v44 = vld [vmem:[%s3057_s1 + $0xc8] sm:$0xff]  }
  0x7c   :  { %1029 = vmatpush1.bf16.msra.mxu0 %v2256_v15  ;;  %1246 = vmatpush1.bf16.msra.mxu1 %v2257_v18 }
  0x7d   :  { %1030 = vmatprep.subr.bf16.mxu0 %v2346_v0  ;;  %1247 = vmatprep.subr.bf16.mxu1 %v2346_v0 }
  0x7e   :  { %1878 = vmatprep.mubr.msk.bf16.mxu0 %vm211_vm0, %v2541_v47  ;;  %1926 = vmatprep.mubr.msk.bf16.mxu1 %vm211_vm0, %v1908_v19  ;;  %v2276_v47 = vld [vmem:[%s3057_s1] sm:$0xff]   ;;  %v1368_v19 = vld [vmem:[%s3058_s2 + $0x28] sm:$0xff] }
  0x80   :  { %1031 = vmatpush1.bf16.msra.mxu0 %v2258_v20  ;;  %1248 = vmatpush1.bf16.msra.mxu1 %v2259_v21 }
  0x81   :  { %1032 = vmatprep.subr.bf16.mxu0 %v2346_v0  ;;  %1249 = vmatprep.subr.bf16.mxu1 %v2346_v0 }
  0x83   :  { %647 = vmatmul.mubr.bf16.gmra.mxu0 %v2566_v54  ;;  %905 = vmatmul.mubr.bf16.gmra.mxu1 %v1907_v26  ;;  %v2285_v54 = vld [vmem:[%s3057_s1 + $0x108] sm:$0xff]   ;;  %v1366_v26 = vld [vmem:[%s3058_s2 + $0x18] sm:$0xff] }
  0x84   :  { %1033 = vmatpush1.bf16.msra.mxu0 %v2260_v22  ;;  %1879 = vmatprep.mubr.msk.bf16.mxu0 %vm211_vm0, %v2574_v57  ;;  %v1929_v57 = vcombine.low %v687_v40, %v2595_v62  ;;  %v1981_v62 = vcombine.low %v2700_v24, %v2733_v33 }
  0x85   :  { %1250 = vmatpush1.bf16.msra.mxu1 %v2261_v25  ;;  %1034 = vmatprep.subr.bf16.mxu0 %v2346_v0 }
  0x86   :  { %1251 = vmatprep.subr.bf16.mxu1 %v2346_v0  ;;  %1927 = vmatprep.mubr.msk.bf16.mxu1 %vm211_vm0, %v1910_v27 }
  0x88   :  { %1035 = vmatpush1.bf16.msra.mxu0 %v2262_v28 }
  0x89   :  { %1252 = vmatpush1.bf16.msra.mxu1 %v2263_v29  ;;  %1036 = vmatprep.subr.bf16.mxu0 %v2346_v0 }
  0x8a   :  { %1253 = vmatprep.subr.bf16.mxu1 %v2346_v0 }
  0x8b   :  { %655 = vmatmul.mubr.bf16.gmra.mxu0 %v2597_v63  ;;  %913 = vmatmul.mubr.bf16.gmra.mxu1 %v1909_v36  ;;  %v1984_v63 = vcombine.high %v2738_v34, %v1100_v61 }
  0x8c   :  { %1037 = vmatpush1.bf16.msra.mxu0 %v2264_v31  ;;  %1880 = vmatprep.mubr.msk.bf16.mxu0 %vm211_vm0, %v1864_v32 }
  0x8d   :  { %1254 = vmatpush1.bf16.msra.mxu1 %v2265_v35  ;;  %1038 = vmatprep.subr.bf16.mxu0 %v2346_v0  ;;  %v1363_v35 = vld [vmem:[%s3058_s2] sm:$0xff] }
  0x8e   :  { %1255 = vmatprep.subr.bf16.mxu1 %v2346_v0  ;;  %1928 = vmatprep.mubr.msk.bf16.mxu1 %vm211_vm0, %v1912_v37 }
  0x90   :  { %1039 = vmatpush1.bf16.msra.mxu0 %v2268_v38 }
  0x91   :  { %1256 = vmatpush1.bf16.msra.mxu1 %v2269_v39  ;;  %1040 = vmatprep.subr.bf16.mxu0 %v2346_v0 }
  0x92   :  { %1257 = vmatprep.subr.bf16.mxu1 %v2346_v0 }
  0x93   :  { %663 = vmatmul.mubr.bf16.gmra.mxu0 %v1863_v41  ;;  %921 = vmatmul.mubr.bf16.gmra.mxu1 %v1911_v45 }
  0x94   :  { %1041 = vmatpush1.bf16.msra.mxu0 %v2272_v42  ;;  %1949 = vmatprep.mubr.msk.bf16.mxu0 %vm211_vm0, %v1930_v43 }
  0x95   :  { %1258 = vmatpush1.bf16.msra.mxu1 %v2273_v44  ;;  %1042 = vmatprep.subr.bf16.mxu0 %v2346_v0 }
  0x96   :  { %1259 = vmatprep.subr.bf16.mxu1 %v2346_v0  ;;  %1997 = vmatprep.mubr.msk.bf16.mxu1 %vm211_vm0, %v1978_v46 }
  0x98   :  { %1043 = vmatpush1.bf16.msra.mxu0 %v2276_v47 }
  0x99   :  { %1260 = vmatpush1.bf16.msra.mxu1 %v2277_v48  ;;  %1052 = vmatprep.subr.bf16.mxu0 %v2346_v0 }
  0x9a   :  { %1269 = vmatprep.subr.bf16.mxu1 %v2346_v0 }
  0x9c   :  { %1053 = vmatpush2.bf16.msra.mxu0 %v2278_v49 }
  0x9d   :  { %1270 = vmatpush2.bf16.msra.mxu1 %v2279_v50  ;;  %1054 = vmatprep.subr.bf16.mxu0 %v2346_v0 }
  0x9e   :  { %1271 = vmatprep.subr.bf16.mxu1 %v2346_v0 }
  0xa0   :  { %1055 = vmatpush2.bf16.msra.mxu0 %v2282_v51 }
  0xa1   :  { %1272 = vmatpush2.bf16.msra.mxu1 %v2283_v52  ;;  %1056 = vmatprep.subr.bf16.mxu0 %v2346_v0 }
  0xa2   :  { %1273 = vmatprep.subr.bf16.mxu1 %v2346_v0 }
  0xa4   :  { %1057 = vmatpush2.bf16.msra.mxu0 %v2284_v53 }
  0xa5   :  { %1274 = vmatpush2.bf16.msra.mxu1 %v2285_v54  ;;  %1058 = vmatprep.subr.bf16.mxu0 %v2346_v0 }
  0xa6   :  { %1275 = vmatprep.subr.bf16.mxu1 %v2346_v0  ;;  %v1982_v0 = vcombine.high %v2700_v24, %v2733_v33  ;;  %v1364_v33 = vld [vmem:[%s3058_s2 + $0x8] sm:$0xff] }
  0xa8   :  { %1059 = vmatpush2.bf16.msra.mxu0 %v2286_v55 }
  0xa9   :  { %1276 = vmatpush2.bf16.msra.mxu1 %v2287_v56  ;;  %2115 = vmatprep.subr.mxu0 %v2347_v2 }
  0xaa   :  { %2150 = vmatprep.subr.mxu1 %v2347_v2 }
  0xab   :  { %1061 = vmatmul.mubr.bf16.vlgmr.msra.gmra.mxu0 %v1929_v57 }
  0xac   :  { %1278 = vmatmul.mubr.bf16.vlgmr.msra.gmra.mxu1 %v1977_v58  ;;  %1950 = vmatprep.mubr.msk.bf16.mxu0 %vm211_vm0, %v1978_v46 }
  0xad   :  { %1998 = vmatprep.mubr.msk.bf16.mxu1 %vm211_vm0, %v1980_v59  ;;  %2116 = vmatpush3.msra.mxu0 %v1378_v3 }
  0xae   :  { %2151 = vmatpush3.msra.mxu1 %v1378_v3  ;;  %2117 = vmatprep.subr.mxu0 %v2347_v2 }
  0xaf   :  { %2152 = vmatprep.subr.mxu1 %v2347_v2  ;;  %2118 = vmatpush3.msra.mxu0 %v1377_v4 }
  0xb0   :  { %2153 = vmatpush3.msra.mxu1 %v1377_v4  ;;  %2119 = vmatprep.subr.mxu0 %v2347_v2 }
  0xb1   :  { %2154 = vmatprep.subr.mxu1 %v2347_v2  ;;  %2120 = vmatpush3.msra.mxu0 %v1376_v5 }
  0xb2   :  { %2155 = vmatpush3.msra.mxu1 %v1376_v5  ;;  %2121 = vmatprep.subr.mxu0 %v2347_v2 }
  0xb3   :  { %1069 = vmatmul.mubr.bf16.gmra.mxu0 %v1977_v58  ;;  %2156 = vmatprep.subr.mxu1 %v2347_v2 }
  0xb4   :  { %1286 = vmatmul.mubr.bf16.gmra.mxu1 %v1979_v60  ;;  %1951 = vmatprep.mubr.msk.bf16.mxu0 %vm211_vm0, %v1980_v59 }
  0xb5   :  { %1999 = vmatprep.mubr.msk.bf16.mxu1 %vm211_vm0, %v1982_v0  ;;  %2122 = vmatpush3.msra.mxu0 %v1375_v6 }
  0xb6   :  { %2157 = vmatpush3.msra.mxu1 %v1375_v6  ;;  %2123 = vmatprep.subr.mxu0 %v2347_v2 }
  0xb7   :  { %2158 = vmatprep.subr.mxu1 %v2347_v2  ;;  %2124 = vmatpush3.msra.mxu0 %v1374_v7 }
  0xb8   :  { %2159 = vmatpush3.msra.mxu1 %v1374_v7  ;;  %2125 = vmatprep.subr.mxu0 %v2347_v2 }
  0xb9   :  { %2160 = vmatprep.subr.mxu1 %v2347_v2  ;;  %2126 = vmatpush3.msra.mxu0 %v1373_v8 }
  0xba   :  { %2161 = vmatpush3.msra.mxu1 %v1373_v8  ;;  %2127 = vmatprep.subr.mxu0 %v2347_v2 }
  0xbb   :  { %1077 = vmatmul.mubr.bf16.gmra.mxu0 %v1979_v60  ;;  %2162 = vmatprep.subr.mxu1 %v2347_v2 }
  0xbc   :  { %1294 = vmatmul.mubr.bf16.gmra.mxu1 %v1981_v62  ;;  %1952 = vmatprep.mubr.msk.bf16.mxu0 %vm211_vm0, %v1982_v0 }
  0xbd   :  { %2000 = vmatprep.mubr.msk.bf16.mxu1 %vm211_vm0, %v1984_v63  ;;  %2128 = vmatpush3.msra.mxu0 %v1372_v9 }
  0xbe   :  { %2163 = vmatpush3.msra.mxu1 %v1372_v9  ;;  %2129 = vmatprep.subr.mxu0 %v2347_v2 }
  0xbf   :  { %2164 = vmatprep.subr.mxu1 %v2347_v2  ;;  %2130 = vmatpush3.msra.mxu0 %v1371_v10 }
  0xc0   :  { %2165 = vmatpush3.msra.mxu1 %v1371_v10  ;;  %2131 = vmatprep.subr.mxu0 %v2347_v2 }
  0xc1   :  { %2166 = vmatprep.subr.mxu1 %v2347_v2  ;;  %2132 = vmatpush3.msra.mxu0 %v1370_v12 }
  0xc2   :  { %2167 = vmatpush3.msra.mxu1 %v1370_v12  ;;  %2133 = vmatprep.subr.mxu0 %v2347_v2 }
  0xc3   :  { %1085 = vmatmul.mubr.bf16.gmra.mxu0 %v1981_v62  ;;  %2168 = vmatprep.subr.mxu1 %v2347_v2 }
  0xc4   :  { %1302 = vmatmul.mubr.bf16.gmra.mxu1 %v1983_v1  ;;  %2134 = vmatpush3.msra.mxu0 %v1369_v16 }
  0xc5   :  { %2169 = vmatpush3.msra.mxu1 %v1369_v16  ;;  %2135 = vmatprep.subr.mxu0 %v2347_v2 }
  0xc6   :  { %2170 = vmatprep.subr.mxu1 %v2347_v2  ;;  %2136 = vmatpush3.msra.mxu0 %v1368_v19 }
  0xc7   :  { %2171 = vmatpush3.msra.mxu1 %v1368_v19  ;;  %2137 = vmatprep.subr.mxu0 %v2347_v2 }
  0xc8   :  { %2172 = vmatprep.subr.mxu1 %v2347_v2  ;;  %2138 = vmatpush3.msra.mxu0 %v1367_v23 }
  0xc9   :  { %2173 = vmatpush3.msra.mxu1 %v1367_v23  ;;  %2139 = vmatprep.subr.mxu0 %v2347_v2 }
  0xca   :  { %2174 = vmatprep.subr.mxu1 %v2347_v2  ;;  %2140 = vmatpush3.msra.mxu0 %v1366_v26 }
  0xcb   :  { %2175 = vmatpush3.msra.mxu1 %v1366_v26  ;;  %2141 = vmatprep.subr.mxu0 %v2347_v2 }
  0xcc   :  { %2176 = vmatprep.subr.mxu1 %v2347_v2  ;;  %2142 = vmatpush3.msra.mxu0 %v1365_v30 }
  0xcd   :  { %2177 = vmatpush3.msra.mxu1 %v1365_v30  ;;  %2143 = vmatprep.subr.mxu0 %v2347_v2 }
  0xce   :  { %2178 = vmatprep.subr.mxu1 %v2347_v2  ;;  %2144 = vmatpush3.msra.mxu0 %v1364_v33 }
  0xcf   :  { %2179 = vmatpush3.msra.mxu1 %v1364_v33  ;;  %2145 = vmatprep.subr.mxu0 %v2347_v2 }
  0xd0   :  { %2147 = vmatprep.mubr.msk.f32.mxu0 %vm2348_vm1, %v2347_v2  ;;  %2146 = vmatpush3.msra.mxu0 %v1363_v35 }
  0xd1   :  { %2180 = vmatprep.subr.mxu1 %v2347_v2  ;;  %2182 = vmatprep.mubr.msk.f32.mxu1 %vm2348_vm1, %v2347_v2 }
  0xd2   :  { %2181 = vmatpush3.msra.mxu1 %v1363_v35 }
 0x10b   :  { %v258_v11 = vpop.f32.mrf.mxu0  ;;  %v422_v13 = vpop.f32.mrf.mxu1 }
 0x10c   :  { %v2886_v14 = vadd.f32 %v422_v13, %v258_v11 }
 0x10d   :  { %v260_v15 = vpop.f32.mrf.mxu0  ;;  %v424_v17 = vpop.f32.mrf.mxu1 }
 0x10f   :  { %v261_v18 = vpop.f32.mrf.mxu0  ;;  %v425_v20 = vpop.f32.mrf.mxu1 }
 0x110   :  { %v2898_v21 = vadd.f32 %v425_v20, %v261_v18 }
 0x111   :  { %v263_v22 = vpop.f32.mrf.mxu0  ;;  %v427_v24 = vpop.f32.mrf.mxu1 }
 0x113   :  { %v266_v25 = vpop.f32.mrf.mxu0  ;;  %v430_v27 = vpop.f32.mrf.mxu1 }
 0x114   :  { %v2910_v29 = vadd.f32 %v430_v27, %v266_v25 }
 0x115   :  { %v268_v28 = vpop.f32.mrf.mxu0  ;;  %v432_v31 = vpop.f32.mrf.mxu1 }
 0x117   :  { %v269_v32 = vpop.f32.mrf.mxu0  ;;  %v433_v34 = vpop.f32.mrf.mxu1 }
 0x118   :  { %v2925_v37 = vadd.f32 %v433_v34, %v269_v32 }
 0x119   :  { %v271_v36 = vpop.f32.mrf.mxu0  ;;  %v435_v38 = vpop.f32.mrf.mxu1 }
 0x11b   :  { %v274_v39 = vpop.f32.mrf.mxu0  ;;  %v438_v40 = vpop.f32.mrf.mxu1 }
 0x11c   :  { %v439_v42 = vadd.f32 %v438_v40, %v274_v39 }
 0x11d   :  { %v276_v41 = vpop.f32.mrf.mxu0  ;;  %v440_v43 = vpop.f32.mrf.mxu1 }
 0x11f   :  { %v277_v44 = vpop.f32.mrf.mxu0  ;;  %v441_v45 = vpop.f32.mrf.mxu1 }
 0x120   :  { %v442_v47 = vadd.f32 %v441_v45, %v277_v44 }
 0x121   :  { %v279_v46 = vpop.f32.mrf.mxu0  ;;  %v443_v48 = vpop.f32.mrf.mxu1 }
 0x123   :  { %v282_v49 = vpop.f32.mrf.mxu0  ;;  %v446_v50 = vpop.f32.mrf.mxu1 }
 0x124   :  { %v447_v52 = vadd.f32 %v446_v50, %v282_v49 }
 0x125   :  { %v284_v51 = vpop.f32.mrf.mxu0  ;;  %v448_v53 = vpop.f32.mrf.mxu1 }
 0x127   :  { %v285_v54 = vpop.f32.mrf.mxu0  ;;  %v449_v55 = vpop.f32.mrf.mxu1 }
 0x128   :  { %v450_v57 = vadd.f32 %v449_v55, %v285_v54 }
 0x129   :  { %v287_v56 = vpop.f32.mrf.mxu0  ;;  %v451_v58 = vpop.f32.mrf.mxu1 }
 0x13b   :  { %v640_v59 = vpop.f32.mrf.mxu0  ;;  %v898_v60 = vpop.f32.mrf.mxu1 }
 0x13c   :  { %v2937_v34 = vadd.f32 %v640_v59, %v2886_v14 }
 0x13d   :  { %v642_v0 = vpop.f32.mrf.mxu0  ;;  %v900_v61 = vpop.f32.mrf.mxu1 }
 0x13f   :  { %v643_v62 = vpop.f32.mrf.mxu0  ;;  %v901_v63 = vpop.f32.mrf.mxu1 }
 0x140   :  { %v2934_v31 = vadd.f32 %v643_v62, %v2898_v21 }
 0x141   :  { %v645_v1 = vpop.f32.mrf.mxu0  ;;  %v903_v2 = vpop.f32.mrf.mxu1 }
 0x142   :  { %v1342_v39 = vadd.f32 %v2934_v31, %v2937_v34 }
 0x143   :  { %v648_v3 = vpop.f32.mrf.mxu0  ;;  %v906_v5 = vpop.f32.mrf.mxu1 }
 0x144   :  { %v2940_v35 = vadd.f32 %v648_v3, %v2910_v29 }
 0x145   :  { %v650_v4 = vpop.f32.mrf.mxu0  ;;  %v908_v7 = vpop.f32.mrf.mxu1 }
 0x146   :  { %v1343_v21 = vadd.f32 %v1342_v39, %v2940_v35 }
 0x147   :  { %v651_v6 = vpop.f32.mrf.mxu0  ;;  %v909_v9 = vpop.f32.mrf.mxu1 }
 0x148   :  { %v2945_v40 = vadd.f32 %v651_v6, %v2925_v37 }
 0x149   :  { %v653_v8 = vpop.f32.mrf.mxu0  ;;  %v911_v11 = vpop.f32.mrf.mxu1 }
 0x14a   :  { %v1344_v46 = vadd.f32 %v1343_v21, %v2945_v40 }
 0x14b   :  { %v656_v10 = vpop.f32.mrf.mxu0  ;;  %v914_v13 = vpop.f32.mrf.mxu1 }
 0x14c   :  { %v2948_v44 = vadd.f32 %v656_v10, %v439_v42 }
 0x14d   :  { %v658_v12 = vpop.f32.mrf.mxu0  ;;  %v916_v16 = vpop.f32.mrf.mxu1 }
 0x14e   :  { %v1345_v50 = vadd.f32 %v1344_v46, %v2948_v44 }
 0x14f   :  { %v659_v15 = vpop.f32.mrf.mxu0  ;;  %v917_v18 = vpop.f32.mrf.mxu1 }
 0x150   :  { %v2951_v29 = vadd.f32 %v659_v15, %v442_v47 }
 0x151   :  { %v661_v17 = vpop.f32.mrf.mxu0  ;;  %v919_v20 = vpop.f32.mrf.mxu1 }
 0x152   :  { %v1346_v55 = vadd.f32 %v1345_v50, %v2951_v29  ;;  %v1450_v50 = vlaneseq }
 0x153   :  { %v664_v19 = vpop.f32.mrf.mxu0  ;;  %v922_v23 = vpop.f32.mrf.mxu1 }
 0x154   :  { %v2954_v51 = vadd.f32 %v664_v19, %v447_v52 }
 0x155   :  { %v666_v22 = vpop.f32.mrf.mxu0  ;;  %v924_v25 = vpop.f32.mrf.mxu1 }
 0x156   :  { %v1347_v0 = vadd.f32 %v1346_v55, %v2954_v51 }
 0x157   :  { %v667_v24 = vpop.f32.mrf.mxu0  ;;  %v2931_v27 = vpop.f32.mrf.mxu1 }
 0x158   :  { %v2957_v56 = vadd.f32 %v667_v24, %v450_v57 }
 0x159   :  { %v669_v26 = vpop.f32.mrf.mxu0  ;;  %v927_v28 = vpop.f32.mrf.mxu1 }
 0x15a   :  { %v1348_v52 = vadd.f32 %v1347_v0, %v2957_v56 }
 0x16b   :  { %v1062_v30 = vpop.f32.mrf.mxu0 }
 0x16c   :  { %v1279_v32 = vpop.f32.mrf.mxu1  ;;  %v1063_v37 = vadd.f32 %v1062_v30, %v898_v60 }
 0x16d   :  { %v1064_v33 = vpop.f32.mrf.mxu0 }
 0x16e   :  { %v1281_v36 = vpop.f32.mrf.mxu1  ;;  %v2960_v47 = vadd.f32 %v1279_v32, %v1063_v37  ;;  %v2980_v37 = vshrl.u32 %v1450_v50, 7 }
 0x16f   :  { %v1065_v38 = vpop.f32.mrf.mxu0 }
 0x170   :  { %v1282_v41 = vpop.f32.mrf.mxu1  ;;  %v1066_v42 = vadd.f32 %v1065_v38, %v901_v63  ;;  %v1349_v57 = vadd.f32 %v1348_v52, %v2960_v47 }
 0x171   :  { %v1067_v43 = vpop.f32.mrf.mxu0 }
 0x172   :  { %v1284_v45 = vpop.f32.mrf.mxu1  ;;  %v2963_v2 = vadd.f32 %v1282_v41, %v1066_v42 }
 0x173   :  { %v1070_v14 = vpop.f32.mrf.mxu0 }
 0x174   :  { %v1287_v48 = vpop.f32.mrf.mxu1  ;;  %v1071_v61 = vadd.f32 %v1070_v14, %v906_v5  ;;  %v1350_v10 = vadd.f32 %v1349_v57, %v2963_v2 }
 0x175   :  { %v1072_v49 = vpop.f32.mrf.mxu0 }
 0x176   :  { %v1289_v53 = vpop.f32.mrf.mxu1  ;;  %v2966_v6 = vadd.f32 %v1287_v48, %v1071_v61 }
 0x177   :  { %v1073_v54 = vpop.f32.mrf.mxu0  ;;  %v1452_v53 = vsub.s32 0, %v2980_v37 }
 0x178   :  { %v1290_v58 = vpop.f32.mrf.mxu1  ;;  %v1074_v60 = vadd.f32 %v1073_v54, %v909_v9  ;;  %v1351_v16 = vadd.f32 %v1350_v10, %v2966_v6 }
 0x179   :  { %v1075_v59 = vpop.f32.mrf.mxu0 }
 0x17a   :  { %v1292_v62 = vpop.f32.mrf.mxu1  ;;  %v2969_v11 = vadd.f32 %v1290_v58, %v1074_v60 }
 0x17b   :  { %v1078_v1 = vpop.f32.mrf.mxu0 }
 0x17c   :  { %v1295_v3 = vpop.f32.mrf.mxu1  ;;  %v1079_v63 = vadd.f32 %v1078_v1, %v914_v13  ;;  %v1352_v20 = vadd.f32 %v1351_v16, %v2969_v11 }
 0x17d   :  { %v1080_v4 = vpop.f32.mrf.mxu0 }
 0x17e   :  { %v1297_v7 = vpop.f32.mrf.mxu1  ;;  %v2972_v17 = vadd.f32 %v1295_v3, %v1079_v63 }
 0x17f   :  { %v1081_v8 = vpop.f32.mrf.mxu0 }
 0x180   :  { %v1082_v5 = vadd.f32 %v1081_v8, %v917_v18  ;;  %v1298_v12 = vpop.f32.mrf.mxu1  ;;  %v1353_v26 = vadd.f32 %v1352_v20, %v2972_v17 }
 0x181   :  { %v1083_v15 = vpop.f32.mrf.mxu0 }
 0x182   :  { %v1300_v9 = vpop.f32.mrf.mxu1  ;;  %v2975_v22 = vadd.f32 %v1298_v12, %v1082_v5 }
 0x183   :  { %v1086_v19 = vpop.f32.mrf.mxu0 }
 0x184   :  { %v1087_v13 = vadd.f32 %v1086_v19, %v922_v23  ;;  %v1303_v24 = vpop.f32.mrf.mxu1  ;;  %v1354_v32 = vadd.f32 %v1353_v26, %v2975_v22 }
 0x185   :  { %v1088_v25 = vpop.f32.mrf.mxu0 }
 0x186   :  { %v1316_v28 = vadd.f32 %v1303_v24, %v1087_v13  ;;  %v1305_v30 = vpop.f32.mrf.mxu1 }
 0x187   :  { %v1089_v18 = vpop.f32.mrf.mxu0 }
 0x188   :  { %v1090_v33 = vadd.f32 %v1089_v18, %v2931_v27  ;;  %v1306_v36 = vpop.f32.mrf.mxu1  ;;  %v1355_v39 = vadd.f32 %v1354_v32, %v1316_v28 }
 0x189   :  { %v1091_v38 = vpop.f32.mrf.mxu0 }
 0x18a   :  { %v1317_v41 = vadd.f32 %v1306_v36, %v1090_v33  ;;  %v1308_v43 = vpop.f32.mrf.mxu1 }
 0x18c   :  { %v1356_v21 = vadd.f32 %v1355_v39, %v1317_v41 }
 0x18e   :  { %v1357_v45 = vrot.slane %v1356_v21, 4 }
 0x190   :  { %v1358_v14 = vadd.f32 %v1357_v45, %v1356_v21 }
 0x192   :  { %v1359_v23 = vrot.slane %v1358_v14, 2 }
 0x194   :  { %v1360_v46 = vadd.f32 %v1359_v23, %v1358_v14 }
 0x196   :  { %v1361_v48 = vrot.slane %v1360_v46, 1 }
 0x198   :  { %v1362_v49 = vadd.f32 %v1361_v48, %v1360_v46 }
 0x19a   :  { %2148 = vmatmul.mubr.f32.vlgmr.msra.gmra.mxu0 %v1362_v49 }
 0x25a   :  { %v1445_v54 = vpop.f32.mrf.mxu0 }
 0x25b   :  { %v1449_v27 = vmul.f32 0.0078125, %v1445_v54 }
 0x25c   :  { %v2149_v55 = vpop.f32.mrf.mxu0 }
 0x25d   :  { %v1453_v42 = vrot.slane %v1449_v27, %v1452_v53 }
 0x25f   :  { %v2986_v58 = vsub.f32 %v2937_v34, %v1453_v42  ;;  %v2989_v59 = vsub.f32 %v2934_v31, %v1453_v42  ;;  %v2992_v0 = vsub.f32 %v2940_v35, %v1453_v42  ;;  %v1457_v1 = vsub.f32 %v2945_v40, %v1453_v42 }
 0x260   :  { %v1458_v52 = vsub.f32 %v2948_v44, %v1453_v42  ;;  %v1459_v31 = vsub.f32 %v2951_v29, %v1453_v42  ;;  %v1460_v35 = vsub.f32 %v2954_v51, %v1453_v42  ;;  %v1461_v7 = vsub.f32 %v2957_v56, %v1453_v42 }
 0x261   :  { %v1470_v61 = vmul.f32 %v2986_v58, %v2986_v58  ;;  %v1471_v62 = vmul.f32 %v2989_v59, %v2989_v59  ;;  %v1472_v34 = vmul.f32 %v2992_v0, %v2992_v0  ;;  %v1473_v3 = vmul.f32 %v1457_v1, %v1457_v1 }
 0x262   :  { %v1474_v57 = vmul.f32 %v1458_v52, %v1458_v52  ;;  %v1475_v8 = vmul.f32 %v1459_v31, %v1459_v31  ;;  %v1462_v40 = vsub.f32 %v2960_v47, %v1453_v42  ;;  %v1476_v5 = vmul.f32 %v1460_v35, %v1460_v35 }
 0x263   :  { %v1486_v60 = vadd.f32 %v1471_v62, %v1470_v61  ;;  %v1463_v12 = vsub.f32 %v2963_v2, %v1453_v42  ;;  %v1477_v15 = vmul.f32 %v1461_v7, %v1461_v7  ;;  %v1464_v29 = vsub.f32 %v2966_v6, %v1453_v42 }
 0x264   :  { %v1478_v9 = vmul.f32 %v1462_v40, %v1462_v40  ;;  %v1465_v51 = vsub.f32 %v2969_v11, %v1453_v42  ;;  %v1466_v56 = vsub.f32 %v2972_v17, %v1453_v42  ;;  %v1467_v47 = vsub.f32 %v2975_v22, %v1453_v42 }
 0x265   :  { %v1487_v4 = vadd.f32 %v1486_v60, %v1472_v34  ;;  %v1479_v20 = vmul.f32 %v1463_v12, %v1463_v12  ;;  %v1480_v24 = vmul.f32 %v1464_v29, %v1464_v29  ;;  %v1468_v18 = vsub.f32 %v1316_v28, %v1453_v42 }
 0x266   :  { %v1481_v26 = vmul.f32 %v1465_v51, %v1465_v51  ;;  %v1482_v2 = vmul.f32 %v1466_v56, %v1466_v56  ;;  %v1469_v33 = vsub.f32 %v1317_v41, %v1453_v42  ;;  %v1483_v36 = vmul.f32 %v1467_v47, %v1467_v47  ;;  %v1578_v41 = vld [vmem:[#allocation3] sm:$0x1] }
 0x267   :  { %v1488_v63 = vadd.f32 %v1487_v4, %v1473_v3  ;;  %v1484_v38 = vmul.f32 %v1468_v18, %v1468_v18 }
 0x268   :  { %v1485_v43 = vmul.f32 %v1469_v33, %v1469_v33 }
 0x269   :  { %v1489_v10 = vadd.f32 %v1488_v63, %v1474_v57  ;;  %v2001_v63 = vld [vmem:[#allocation5] ss:$0 sm:$0xff] }
 0x26b   :  { %v1490_v44 = vadd.f32 %v1489_v10, %v1475_v8 }
 0x26d   :  { %v1491_v16 = vadd.f32 %v1490_v44, %v1476_v5 }
 0x26f   :  { %v1492_v19 = vadd.f32 %v1491_v16, %v1477_v15 }
 0x271   :  { %v1493_v13 = vadd.f32 %v1492_v19, %v1478_v9 }
 0x273   :  { %v1494_v25 = vadd.f32 %v1493_v13, %v1479_v20 }
 0x275   :  { %v1495_v30 = vadd.f32 %v1494_v25, %v1480_v24 }
 0x277   :  { %v1496_v32 = vadd.f32 %v1495_v30, %v1481_v26 }
 0x279   :  { %v1497_v6 = vadd.f32 %v1496_v32, %v1482_v2 }
 0x27b   :  { %v1498_v39 = vadd.f32 %v1497_v6, %v1483_v36 }
 0x27d   :  { %v1499_v11 = vadd.f32 %v1498_v39, %v1484_v38 }
 0x27f   :  { %v1500_v21 = vadd.f32 %v1499_v11, %v1485_v43 }
 0x281   :  { %v1501_v45 = vrot.slane %v1500_v21, 4 }
 0x283   :  { %v1502_v14 = vadd.f32 %v1501_v45, %v1500_v21 }
 0x285   :  { %v1503_v17 = vrot.slane %v1502_v14, 2 }
 0x287   :  { %v1504_v23 = vadd.f32 %v1503_v17, %v1502_v14 }
 0x289   :  { %v1505_v46 = vrot.slane %v1504_v23, 1 }
 0x28b   :  { %v1506_v48 = vadd.f32 %v1505_v46, %v1504_v23 }
 0x28d   :  { %2183 = vmatmul.mubr.f32.vlgmr.msra.gmra.mxu1 %v1506_v48 }
 0x34d   :  { %v1573_v22 = vpop.f32.mrf.mxu1 }
 0x34e   :  { %v1577_v49 = vmul.f32 0.0078125, %v1573_v22 }
 0x34f   :  { %v2184_v28 = vpop.f32.mrf.mxu1 }
 0x350   :  { %v1579_v50 = vadd.f32 1e-05, %v1577_v49 }
 0x352   :  { %2298 = vrsqrt.f32 %v1579_v50 }
 0x35f   :  { %v2299_v54 = vpop.eup %2298 }
 0x360   :  { %v1581_v27 = vmul.f32 %v2299_v54, %v1578_v41 }
 0x362   :  { %v1586_v55 = vrot.slane %v1581_v27, %v1452_v53 }
 0x364   :  { %v1588_v42 = vmul.f32 %v1586_v55, %v2986_v58  ;;  %v1589_v61 = vmul.f32 %v1586_v55, %v2989_v59  ;;  %v1590_v62 = vmul.f32 %v1586_v55, %v2992_v0  ;;  %v1591_v34 = vmul.f32 %v1586_v55, %v1457_v1 }
 0x365   :  { %v1592_v60 = vmul.f32 %v1586_v55, %v1458_v52  ;;  %v1593_v3 = vmul.f32 %v1586_v55, %v1459_v31  ;;  %v1594_v4 = vmul.f32 %v1586_v55, %v1460_v35  ;;  %v1595_v57 = vmul.f32 %v1586_v55, %v1461_v7 }
 0x366   :  { %v1596_v8 = vmul.f32 %v1586_v55, %v1462_v40  ;;  %v1597_v10 = vmul.f32 %v1586_v55, %v1463_v12  ;;  %v1598_v5 = vmul.f32 %v1586_v55, %v1464_v29  ;;  %v1599_v44 = vmul.f32 %v1586_v55, %v1465_v51 }
 0x367   :  { %v1600_v15 = vmul.f32 %v1586_v55, %v1466_v56  ;;  %v1601_v16 = vmul.f32 %v1586_v55, %v1467_v47  ;;  %v1602_v37 = vmul.f32 %v1586_v55, %v1468_v18  ;;  %v1603_v53 = vmul.f32 %v1586_v55, %v1469_v33 }
 0x368   :  { %v1611_v9 = vadd.f32 %v2001_v63, %v1588_v42  ;;  %v1612_v58 = vadd.f32 %v2001_v63, %v1589_v61  ;;  %v1613_v19 = vadd.f32 %v2001_v63, %v1590_v62  ;;  %v1614_v59 = vadd.f32 %v2001_v63, %v1591_v34 }
 0x369   :  { %v1615_v20 = vadd.f32 %v2001_v63, %v1592_v60  ;;  %v1616_v0 = vadd.f32 %v2001_v63, %v1593_v3  ;;  %v1617_v1 = vadd.f32 %v2001_v63, %v1594_v4  ;;  %v1618_v52 = vadd.f32 %v2001_v63, %v1595_v57 }
 0x36a   :  { %v1619_v31 = vadd.f32 %v2001_v63, %v1596_v8  ;;  %v1620_v35 = vadd.f32 %v2001_v63, %v1597_v10  ;;  %v1621_v7 = vadd.f32 %v2001_v63, %v1598_v5  ;;  %v1622_v13 = vadd.f32 %v2001_v63, %v1599_v44 }
 0x36b   :  { %v1623_v40 = vadd.f32 %v2001_v63, %v1600_v15  ;;  %v1624_v12 = vadd.f32 %v2001_v63, %v1601_v16  ;;  %v1625_v29 = vadd.f32 %v2001_v63, %v1602_v37  ;;  %v1626_v51 = vadd.f32 %v2001_v63, %v1603_v53 }
 0x36c   :  { %vm1627_vm2 = vcmp.gt.f32.partialorder %v1611_v9, 0.0  ;;  %vm1628_vm3 = vcmp.gt.f32.partialorder %v1612_v58, 0.0  ;;  %vm1629_vm4 = vcmp.gt.f32.partialorder %v1613_v19, 0.0  ;;  %vm1630_vm5 = vcmp.gt.f32.partialorder %v1614_v59, 0.0 }
 0x36d   :  { %vm1631_vm6 = vcmp.gt.f32.partialorder %v1615_v20, 0.0  ;;  %vm1632_vm7 = vcmp.gt.f32.partialorder %v1616_v0, 0.0  ;;  %vm1633_vm8 = vcmp.gt.f32.partialorder %v1617_v1, 0.0  ;;  %vm1634_vm9 = vcmp.gt.f32.partialorder %v1618_v52, 0.0 }
 0x36e   :  { %vm1635_vm10 = vcmp.gt.f32.partialorder %v1619_v31, 0.0  ;;  %vm1636_vm11 = vcmp.gt.f32.partialorder %v1620_v35, 0.0  ;;  %vm1637_vm12 = vcmp.gt.f32.partialorder %v1621_v7, 0.0  ;;  %vm1638_vm13 = vcmp.gt.f32.partialorder %v1622_v13, 0.0 }
 0x36f   :  { %vm1639_vm14 = vcmp.gt.f32.partialorder %v1623_v40, 0.0  ;;  %vm1640_vm15 = vcmp.gt.f32.partialorder %v1624_v12, 0.0  ;;  %vm1641_vm0 = vcmp.gt.f32.partialorder %v1625_v29, 0.0  ;;  %vm1642_vm1 = vcmp.gt.f32.partialorder %v1626_v51, 0.0 }
 0x370   :  { %v1643_v56 = vmul.f32 0.2, %v1611_v9  ;;  %v1644_v24 = vmul.f32 0.2, %v1612_v58  ;;  %v1645_v25 = vmul.f32 0.2, %v1613_v19 }
 0x371   :  { %v1646_v47 = vmul.f32 0.2, %v1614_v59  ;;  %v1647_v26 = vmul.f32 0.2, %v1615_v20  ;;  %v1648_v30 = vmul.f32 0.2, %v1616_v0 }
 0x372   :  { %v1649_v18 = vmul.f32 0.2, %v1617_v1  ;;  %v1650_v2 = vmul.f32 0.2, %v1618_v52  ;;  %v1651_v32 = vmul.f32 0.2, %v1619_v31  ;;  %v1659_v33 = vsel %vm1627_vm2, %v1611_v9, %v1643_v56 }
 0x373   :  { %v1652_v36 = vmul.f32 0.2, %v1620_v35  ;;  %v1653_v6 = vmul.f32 0.2, %v1621_v7  ;;  %v1654_v38 = vmul.f32 0.2, %v1622_v13  ;;  %v1660_v39 = vsel %vm1628_vm3, %v1612_v58, %v1644_v24 }
 0x374   :  { %v1655_v43 = vmul.f32 0.2, %v1623_v40  ;;  %v1656_v11 = vmul.f32 0.2, %v1624_v12  ;;  %v1657_v21 = vmul.f32 0.2, %v1625_v29  ;;  %v1661_v45 = vsel %vm1629_vm4, %v1613_v19, %v1645_v25 }
 0x375   :  { %v1658_v14 = vmul.f32 0.2, %v1626_v51  ;;  %v1662_v17 = vsel %vm1630_vm5, %v1614_v59, %v1646_v47  ;;  %v1663_v23 = vsel %vm1631_vm6, %v1615_v20, %v1647_v26  ;;  %v1664_v46 = vsel %vm1632_vm7, %v1616_v0, %v1648_v30 }
 0x376   :  { %v1665_v48 = vsel %vm1633_vm8, %v1617_v1, %v1649_v18  ;;  %v1666_v22 = vsel %vm1634_vm9, %v1618_v52, %v1650_v2  ;;  %v1667_v49 = vsel %vm1635_vm10, %v1619_v31, %v1651_v32  ;;  %v1668_v28 = vsel %vm1636_vm11, %v1620_v35, %v1652_v36 }
 0x377   :  { %v1669_v50 = vsel %vm1637_vm12, %v1621_v7, %v1653_v6  ;;  %v1670_v41 = vsel %vm1638_vm13, %v1622_v13, %v1654_v38  ;;  %v1671_v54 = vsel %vm1639_vm14, %v1623_v40, %v1655_v43  ;;  %v1672_v27 = vsel %vm1640_vm15, %v1624_v12, %v1656_v11 }
 0x378   :  { %v1673_v55 = vsel %vm1641_vm0, %v1625_v29, %v1657_v21  ;;  %v1674_v42 = vsel %vm1642_vm1, %v1626_v51, %v1658_v14  ;;  %v2037_v61 = vpack.c.bf16 %v1660_v39, %v1659_v33  ;;  %v2042_v62 = vpack.c.bf16 %v1662_v17, %v1661_v45 }
 0x379   :  { %v2047_v34 = vpack.c.bf16 %v1664_v46, %v1663_v23  ;;  %v2052_v60 = vpack.c.bf16 %v1666_v22, %v1665_v48  ;;  %v2057_v3 = vpack.c.bf16 %v1668_v28, %v1667_v49  ;;  %v2062_v4 = vpack.c.bf16 %v1670_v41, %v1669_v50 }
 0x37a   :  { %2038 = vst [vmem:[%s3061_s5] sm:$0xff] %v2037_v61   ;;  %2074 = vst [vmem:[%s3061_s5 + $0x8] sm:$0xff] %v2042_v62   ;;  %v2067_v57 = vpack.c.bf16 %v1672_v27, %v1671_v54  ;;  %v2072_v63 = vpack.c.bf16 %v1674_v42, %v1673_v55 }
 0x37b   :  { %2075 = vst [vmem:[%s3061_s5 + $0x10] sm:$0xff] %v2047_v34   ;;  %2076 = vst [vmem:[%s3061_s5 + $0x18] sm:$0xff] %v2052_v60  }
 0x37c   :  { %2077 = vst [vmem:[%s3061_s5 + $0x20] sm:$0xff] %v2057_v3   ;;  %2078 = vst [vmem:[%s3061_s5 + $0x28] sm:$0xff] %v2062_v4  }
 0x37d   :  { %2079 = vst [vmem:[%s3061_s5 + $0x30] sm:$0xff] %v2067_v57   ;;  %2080 = vst [vmem:[%s3061_s5 + $0x38] sm:$0xff] %v2072_v63  }
 0x37e   :  { %1759 = vsyncpa [#allocation4], 1 }
 0x37f   :  { %1760 = vsyncpa [#allocation6], 1 }

// kernel: generator_forward.8
= control target key start
LH: loop header
LB: loop body
LE: loop exit
PB: predicated region body
PF: predicated region fallthrough
CT: control target
= control target key end

     0   :  { %vm196_vm0 = vcmask 785408   ;;  %vm4392_vm1 = vmmov 0   ;;  %s7005_s1 = inlined_call_operand.vmem [shape: bf16[3,96,128], index: 1, kind: input, shape index: {}]   ;;  %s7006_s0 = inlined_call_operand.vmem [shape: bf16[576,96], index: 0, kind: input, shape index: {}]   ;;  %s7007_s2 = inlined_call_operand.vmem [shape: f32[128,128], index: 2, kind: input, shape index: {}]   ;;  %s7008_s3 = inlined_call_operand.vmem [shape: f32[1,128], index: 3, kind: input, shape index: {}]   ;;  %s7009_s4 = inlined_call_operand.vmem [shape: f32[1,128], index: 4, kind: input, shape index: {}]   ;;  %s7010_s5 = inlined_call_operand.vmem [shape: bf16[512,128], index: 5, kind: output, shape index: {}]  }
   0x1   :  { %v4287_v0 = vld [vmem:[%s7005_s1 + $0x58] sm:$0xff]   ;;  %v4288_v1 = vld [vmem:[%s7005_s1 + $0x28] sm:$0xff]   ;;  %v4289_v2 = vld [vmem:[%s7005_s1 + $0x50] sm:$0xff]  }
   0x2   :  { %3951 = vmatprep.subr.bf16.mxu0 %v4287_v0  ;;  %3995 = vmatprep.subr.bf16.mxu1 %v4288_v1  ;;  %v4290_v3 = vld [vmem:[%s7005_s1 + $0x20] sm:$0xff]   ;;  %v4291_v4 = vld [vmem:[%s7005_s1 + $0x48] sm:$0xff]   ;;  %v4292_v5 = vld [vmem:[%s7005_s1 + $0x18] sm:$0xff]  }
   0x3   :  { %3952 = vmatpush3.bf16.msra.mxu0 %v4287_v0  ;;  %3996 = vmatpush3.bf16.msra.mxu1 %v4288_v1  ;;  %v4293_v6 = vld [vmem:[%s7005_s1 + $0x40] sm:$0xff]   ;;  %v4294_v7 = vld [vmem:[%s7005_s1 + $0x10] sm:$0xff]   ;;  %v4295_v8 = vld [vmem:[%s7005_s1 + $0x38] sm:$0xff]  }
   0x4   :  { %3953 = vmatprep.subr.bf16.mxu0 %v4289_v2  ;;  %3997 = vmatprep.subr.bf16.mxu1 %v4290_v3  ;;  %v4296_v9 = vld [vmem:[%s7005_s1 + $0x8] sm:$0xff]   ;;  %v4300_v11 = vld [vmem:[%s7006_s0] sm:$0xff]   ;;  %v4297_v12 = vld [vmem:[%s7005_s1 + $0x30] sm:$0xff]  }
   0x5   :  { %v4299_v10 = vld [vmem:[%s7006_s0 + $0x8] sm:$0xff]   ;;  %4007 = vmatprep.mubr.msk.bf16.mxu1 %vm196_vm0, %v4300_v11  ;;  %v4298_v13 = vld [vmem:[%s7005_s1] sm:$0xff]   ;;  %v4303_v15 = vld [vmem:[%s7005_s1 + $0x58] sm:$0xff]  }
   0x6   :  { %3963 = vmatprep.mubr.msk.bf16.mxu0 %vm196_vm0, %v4299_v10  ;;  %v4302_v14 = vld [vmem:[%s7005_s1 + $0x88] sm:$0xff]   ;;  %v4301_v16 = vld [vmem:[%s7006_s0 + $0x10] sm:$0xff]   ;;  %v4304_v17 = vld [vmem:[%s7006_s0 + $0x18] sm:$0xff]  }
   0x7   :  { %3954 = vmatpush3.bf16.msra.mxu0 %v4289_v2  ;;  %3998 = vmatpush3.bf16.msra.mxu1 %v4290_v3  ;;  %v4306_v18 = vld [vmem:[%s7005_s1 + $0x80] sm:$0xff]   ;;  %v4307_v19 = vld [vmem:[%s7005_s1 + $0x50] sm:$0xff]   ;;  %v4310_v20 = vld [vmem:[%s7005_s1 + $0x78] sm:$0xff]  }
   0x8   :  { %3955 = vmatprep.subr.bf16.mxu0 %v4291_v4  ;;  %3999 = vmatprep.subr.bf16.mxu1 %v4292_v5  ;;  %v4313_v21 = vld [vmem:[%s7005_s1 + $0x48] sm:$0xff]   ;;  %v4305_v22 = vld [vmem:[%s7006_s0 + $0x20] sm:$0xff]   ;;  %v4316_v24 = vld [vmem:[%s7005_s1 + $0x70] sm:$0xff]  }
   0x9   :  { %v4308_v23 = vld [vmem:[%s7006_s0 + $0x28] sm:$0xff]   ;;  %v4317_v25 = vld [vmem:[%s7005_s1 + $0x40] sm:$0xff]   ;;  %v4309_v26 = vld [vmem:[%s7006_s0 + $0x30] sm:$0xff]  }
   0xa   :  { %v4320_v27 = vld [vmem:[%s7005_s1 + $0x68] sm:$0xff]   ;;  %v4321_v28 = vld [vmem:[%s7005_s1 + $0x38] sm:$0xff]   ;;  %v4324_v30 = vld [vmem:[%s7005_s1 + $0x60] sm:$0xff]  }
   0xb   :  { %3956 = vmatpush3.bf16.msra.mxu0 %v4291_v4  ;;  %4000 = vmatpush3.bf16.msra.mxu1 %v4292_v5  ;;  %v4311_v29 = vld [vmem:[%s7006_s0 + $0x38] sm:$0xff]   ;;  %v4327_v31 = vld [vmem:[%s7005_s1 + $0x30] sm:$0xff]   ;;  %v4312_v32 = vld [vmem:[%s7006_s0 + $0x40] sm:$0xff]  }
   0xc   :  { %3957 = vmatprep.subr.bf16.mxu0 %v4293_v6  ;;  %4001 = vmatprep.subr.bf16.mxu1 %v4294_v7  ;;  %v4332_v33 = vld [vmem:[%s7005_s1 + $0x28] sm:$0xff]   ;;  %v4315_v36 = vld [vmem:[%s7006_s0 + $0x50] sm:$0xff]   ;;  %v4318_v37 = vld [vmem:[%s7006_s0 + $0x58] sm:$0xff]  }
   0xd   :  { %v4333_v34 = vld [vmem:[%s7005_s1 + $0x88] sm:$0xff]   ;;  %v4319_v38 = vld [vmem:[%s7006_s0 + $0x60] sm:$0xff]   ;;  %v4323_v40 = vld [vmem:[%s7006_s0 + $0x70] sm:$0xff]  }
   0xe   :  { %v4314_v35 = vld [vmem:[%s7006_s0 + $0x48] sm:$0xff]   ;;  %v4325_v41 = vld [vmem:[%s7006_s0 + $0x78] sm:$0xff]   ;;  %v4326_v42 = vld [vmem:[%s7006_s0 + $0x80] sm:$0xff]  }
   0xf   :  { %3958 = vmatpush3.bf16.msra.mxu0 %v4293_v6  ;;  %4002 = vmatpush3.bf16.msra.mxu1 %v4294_v7  ;;  %v4322_v39 = vld [vmem:[%s7006_s0 + $0x68] sm:$0xff]   ;;  %v4328_v43 = vld [vmem:[%s7006_s0 + $0x10] sm:$0xff]   ;;  %v4588_v44 = vld [vmem:[%s7006_s0 + $0x98] sm:$0xff]  }
  0x10   :  { %3959 = vmatprep.subr.bf16.mxu0 %v4295_v8  ;;  %4003 = vmatprep.subr.bf16.mxu1 %v4296_v9  ;;  %v4330_v45 = vld [vmem:[%s7006_s0 + $0x18] sm:$0xff]   ;;  %v4601_v46 = vld [vmem:[%s7006_s0 + $0xa0] sm:$0xff]   ;;  %v4609_v48 = vld [vmem:[%s7006_s0 + $0xa8] sm:$0xff]  }
  0x11   :  { %v4334_v47 = vld [vmem:[%s7006_s0 + $0x20] sm:$0xff]   ;;  %v4336_v51 = vld [vmem:[%s7006_s0 + $0x28] sm:$0xff]   ;;  %v4344_v52 = vld [vmem:[%s7005_s1 + $0x18] sm:$0xff]  }
  0x12   :  { %v4338_v49 = vld [vmem:[%s7005_s1 + $0x20] sm:$0xff]   ;;  %v4349_v53 = vld [vmem:[%s7005_s1 + $0x78] sm:$0xff]   ;;  %v4635_v54 = vld [vmem:[%s7006_s0 + $0xb0] sm:$0xff]  }
  0x13   :  { %3960 = vmatpush3.bf16.msra.mxu0 %v4295_v8  ;;  %4004 = vmatpush3.bf16.msra.mxu1 %v4296_v9  ;;  %v4339_v50 = vld [vmem:[%s7005_s1 + $0x80] sm:$0xff]   ;;  %v4340_v55 = vld [vmem:[%s7006_s0 + $0x30] sm:$0xff]   ;;  %v4643_v56 = vld [vmem:[%s7006_s0 + $0xb8] sm:$0xff]  }
  0x14   :  { %3961 = vmatprep.subr.bf16.mxu0 %v4297_v12  ;;  %4005 = vmatprep.subr.bf16.mxu1 %v4298_v13  ;;  %v4354_v57 = vld [vmem:[%s7005_s1 + $0x10] sm:$0xff]   ;;  %v4360_v59 = vld [vmem:[%s7005_s1 + $0x8] sm:$0xff]   ;;  %v4342_v60 = vld [vmem:[%s7006_s0 + $0x38] sm:$0xff]  }
  0x15   :  { %v4355_v58 = vld [vmem:[%s7005_s1 + $0x70] sm:$0xff]   ;;  %v4361_v61 = vld [vmem:[%s7005_s1 + $0x68] sm:$0xff]   ;;  %v4669_v62 = vld [vmem:[%s7006_s0 + $0xc0] sm:$0xff]  }
  0x16   :  { %v4345_v63 = vld [vmem:[%s7006_s0 + $0x40] sm:$0xff]   ;;  %v4677_v0 = vld [vmem:[%s7006_s0 + $0xc8] sm:$0xff]   ;;  %v4697_v4 = vld [vmem:[%s7006_s0 + $0xd0] sm:$0xff]  }
  0x17   :  { %3962 = vmatpush3.bf16.msra.mxu0 %v4297_v12  ;;  %4006 = vmatpush3.bf16.msra.mxu1 %v4298_v13  ;;  %v4366_v1 = vld [vmem:[%s7005_s1] sm:$0xff]   ;;  %v4347_v3 = vld [vmem:[%s7006_s0 + $0x48] sm:$0xff]   ;;  %v4350_v5 = vld [vmem:[%s7006_s0 + $0x50] sm:$0xff]  }
  0x18   :  { %4039 = vmatprep.subr.bf16.mxu0 %v4302_v14  ;;  %4083 = vmatprep.subr.bf16.mxu1 %v4303_v15  ;;  %v4371_v2 = vld [vmem:[%s7005_s1 + $0x60] sm:$0xff]   ;;  %v4705_v6 = vld [vmem:[%s7006_s0 + $0xd8] sm:$0xff]   ;;  %v4358_v11 = vld [vmem:[%s7006_s0 + $0x68] sm:$0xff]  }
  0x19   :  { %v4352_v7 = vld [vmem:[%s7006_s0 + $0x58] sm:$0xff]   ;;  %v4353_v8 = vld [vmem:[%s7006_s0 + $0xe0] sm:$0xff]   ;;  %v4359_v12 = vld [vmem:[%s7006_s0 + $0xf0] sm:$0xff]  }
  0x1a   :  { %3964 = vmatmul.mubr.msk.bf16.vlgmr.msra.gmra.mxu0 %vm196_vm0, %v4301_v16  ;;  %4008 = vmatmul.mubr.msk.bf16.vlgmr.msra.gmra.mxu1 %vm196_vm0, %v4299_v10  ;;  %v4356_v9 = vld [vmem:[%s7006_s0 + $0x60] sm:$0xff]   ;;  %v4357_v10 = vld [vmem:[%s7006_s0 + $0xe8] sm:$0xff]   ;;  %v4362_v13 = vld [vmem:[%s7006_s0 + $0x70] sm:$0xff]  }
  0x1b   :  { %4040 = vmatpush3.bf16.msra.mxu0 %v4302_v14  ;;  %4084 = vmatpush3.bf16.msra.mxu1 %v4303_v15  ;;  %v4363_v14 = vld [vmem:[%s7006_s0 + $0xf8] sm:$0xff]  }
  0x1c   :  { %3967 = vmatprep.mubr.msk.bf16.mxu0 %vm196_vm0, %v4304_v17  ;;  %4011 = vmatprep.mubr.msk.bf16.mxu1 %vm196_vm0, %v4301_v16  ;;  %v4364_v15 = vld [vmem:[%s7006_s0 + $0x78] sm:$0xff]   ;;  %v4365_v16 = vld [vmem:[%s7006_s0 + $0x100] sm:$0xff]  }
  0x1d   :  { %4041 = vmatprep.subr.bf16.mxu0 %v4306_v18  ;;  %4085 = vmatprep.subr.bf16.mxu1 %v4307_v19 }
  0x1f   :  { %4042 = vmatpush3.bf16.msra.mxu0 %v4306_v18  ;;  %4086 = vmatpush3.bf16.msra.mxu1 %v4307_v19  ;;  %v4368_v18 = vld [vmem:[%s7006_s0 + $0x108] sm:$0xff]  }
  0x20   :  { %4043 = vmatprep.subr.bf16.mxu0 %v4310_v20  ;;  %4087 = vmatprep.subr.bf16.mxu1 %v4313_v21  ;;  %v4369_v19 = vld [vmem:[%s7006_s0 + $0x88] sm:$0xff]  }
  0x22   :  { %3968 = vmatmul.mubr.msk.bf16.gmra.mxu0 %vm196_vm0, %v4305_v22  ;;  %4012 = vmatmul.mubr.msk.bf16.gmra.mxu1 %vm196_vm0, %v4304_v17  ;;  %v4367_v17 = vld [vmem:[%s7006_s0 + $0x80] sm:$0xff]  }
  0x23   :  { %3971 = vmatprep.mubr.msk.bf16.mxu0 %vm196_vm0, %v4308_v23  ;;  %4015 = vmatprep.mubr.msk.bf16.mxu1 %vm196_vm0, %v4305_v22  ;;  %v4373_v22 = vld [vmem:[%s7006_s0 + $0xa0] sm:$0xff]  }
  0x24   :  { %4044 = vmatpush3.bf16.msra.mxu0 %v4310_v20  ;;  %4088 = vmatpush3.bf16.msra.mxu1 %v4313_v21  ;;  %v4370_v20 = vld [vmem:[%s7006_s0 + $0x110] sm:$0xff]  }
  0x25   :  { %4045 = vmatprep.subr.bf16.mxu0 %v4316_v24  ;;  %4089 = vmatprep.subr.bf16.mxu1 %v4317_v25  ;;  %v4372_v21 = vld [vmem:[%s7006_s0 + $0x90] sm:$0xff]  }
  0x28   :  { %4046 = vmatpush3.bf16.msra.mxu0 %v4316_v24  ;;  %4090 = vmatpush3.bf16.msra.mxu1 %v4317_v25  ;;  %v4375_v24 = vld [vmem:[%s7006_s0 + $0xb0] sm:$0xff]   ;;  %v4376_v25 = vld [vmem:[%s7006_s0 + $0xb8] sm:$0xff]  }
  0x29   :  { %4047 = vmatprep.subr.bf16.mxu0 %v4320_v27  ;;  %4091 = vmatprep.subr.bf16.mxu1 %v4321_v28 }
  0x2a   :  { %3972 = vmatmul.mubr.msk.bf16.gmra.mxu0 %vm196_vm0, %v4309_v26  ;;  %4016 = vmatmul.mubr.msk.bf16.gmra.mxu1 %vm196_vm0, %v4308_v23  ;;  %v4374_v23 = vld [vmem:[%s7006_s0 + $0xa8] sm:$0xff]  }
  0x2b   :  { %3975 = vmatprep.mubr.msk.bf16.mxu0 %vm196_vm0, %v4311_v29  ;;  %4019 = vmatprep.mubr.msk.bf16.mxu1 %vm196_vm0, %v4309_v26  ;;  %v4377_v26 = vld [vmem:[%s7006_s0 + $0xc0] sm:$0xff]  }
  0x2c   :  { %4048 = vmatpush3.bf16.msra.mxu0 %v4320_v27  ;;  %4092 = vmatpush3.bf16.msra.mxu1 %v4321_v28  ;;  %v4378_v27 = vld [vmem:[%s7006_s0 + $0xc8] sm:$0xff]   ;;  %v4379_v28 = vld [vmem:[%s7006_s0 + $0xd0] sm:$0xff]  }
  0x2d   :  { %4049 = vmatprep.subr.bf16.mxu0 %v4324_v30  ;;  %4093 = vmatprep.subr.bf16.mxu1 %v4327_v31 }
  0x30   :  { %4050 = vmatpush3.bf16.msra.mxu0 %v4324_v30  ;;  %4094 = vmatpush3.bf16.msra.mxu1 %v4327_v31  ;;  %v4381_v30 = vld [vmem:[%s7006_s0 + $0xe0] sm:$0xff]   ;;  %v4382_v31 = vld [vmem:[%s7006_s0 + $0xe8] sm:$0xff]  }
  0x31   :  { %4127 = vmatprep.subr.bf16.mxu0 %v4332_v33  ;;  %4171 = vmatprep.subr.bf16.mxu1 %v4333_v34 }
  0x32   :  { %3976 = vmatmul.mubr.msk.bf16.gmra.mxu0 %vm196_vm0, %v4312_v32  ;;  %4020 = vmatmul.mubr.msk.bf16.gmra.mxu1 %vm196_vm0, %v4311_v29  ;;  %v4380_v29 = vld [vmem:[%s7006_s0 + $0xd8] sm:$0xff]  }
  0x33   :  { %3979 = vmatprep.mubr.msk.bf16.mxu0 %vm196_vm0, %v4314_v35  ;;  %4023 = vmatprep.mubr.msk.bf16.mxu1 %vm196_vm0, %v4312_v32  ;;  %v4383_v32 = vld [vmem:[%s7006_s0 + $0xf0] sm:$0xff]  }
  0x3a   :  { %3980 = vmatmul.mubr.msk.bf16.gmra.mxu0 %vm196_vm0, %v4315_v36  ;;  %4024 = vmatmul.mubr.msk.bf16.gmra.mxu1 %vm196_vm0, %v4314_v35  ;;  %v4386_v35 = vld [vmem:[%s7006_s0 + $0x108] sm:$0xff]  }
  0x3b   :  { %3983 = vmatprep.mubr.msk.bf16.mxu0 %vm196_vm0, %v4318_v37  ;;  %4027 = vmatprep.mubr.msk.bf16.mxu1 %vm196_vm0, %v4315_v36  ;;  %v4387_v36 = vld [vmem:[%s7006_s0 + $0x110] sm:$0xff]  }
  0x42   :  { %3984 = vmatmul.mubr.msk.bf16.gmra.mxu0 %vm196_vm0, %v4319_v38  ;;  %4028 = vmatmul.mubr.msk.bf16.gmra.mxu1 %vm196_vm0, %v4318_v37  ;;  %v4388_v37 = vld [vmem:[%s7006_s0 + $0x118] sm:$0xff]  }
  0x43   :  { %3987 = vmatprep.mubr.msk.bf16.mxu0 %vm196_vm0, %v4322_v39  ;;  %4031 = vmatprep.mubr.msk.bf16.mxu1 %vm196_vm0, %v4319_v38 }
  0x4a   :  { %3988 = vmatmul.mubr.msk.bf16.gmra.mxu0 %vm196_vm0, %v4323_v40  ;;  %4032 = vmatmul.mubr.msk.bf16.gmra.mxu1 %vm196_vm0, %v4322_v39 }
  0x4b   :  { %3991 = vmatprep.mubr.msk.bf16.mxu0 %vm196_vm0, %v4325_v41  ;;  %4035 = vmatprep.mubr.msk.bf16.mxu1 %vm196_vm0, %v4323_v40 }
  0x52   :  { %3992 = vmatmul.mubr.msk.bf16.gmra.mxu0 %vm196_vm0, %v4326_v42  ;;  %4036 = vmatmul.mubr.msk.bf16.gmra.mxu1 %vm196_vm0, %v4325_v41 }
  0x53   :  { %4051 = vmatprep.mubr.msk.bf16.mxu0 %vm196_vm0, %v4328_v43  ;;  %4095 = vmatprep.mubr.msk.bf16.mxu1 %vm196_vm0, %v4588_v44 }
  0x5a   :  { %4052 = vmatmul.mubr.msk.bf16.vlgmr.msra.gmra.mxu0 %vm196_vm0, %v4330_v45  ;;  %4096 = vmatmul.mubr.msk.bf16.vlgmr.msra.gmra.mxu1 %vm196_vm0, %v4601_v46 }
  0x5b   :  { %4128 = vmatpush3.bf16.msra.mxu0 %v4332_v33  ;;  %4172 = vmatpush3.bf16.msra.mxu1 %v4333_v34  ;;  %v4384_v33 = vld [vmem:[%s7006_s0 + $0xf8] sm:$0xff]   ;;  %v4385_v34 = vld [vmem:[%s7006_s0 + $0x100] sm:$0xff]  }
  0x5c   :  { %4055 = vmatprep.mubr.msk.bf16.mxu0 %vm196_vm0, %v4334_v47  ;;  %4099 = vmatprep.mubr.msk.bf16.mxu1 %vm196_vm0, %v4609_v48 }
  0x5d   :  { %4129 = vmatprep.subr.bf16.mxu0 %v4338_v49  ;;  %4173 = vmatprep.subr.bf16.mxu1 %v4339_v50 }
  0x5f   :  { %4130 = vmatpush3.bf16.msra.mxu0 %v4338_v49  ;;  %4174 = vmatpush3.bf16.msra.mxu1 %v4339_v50 }
  0x60   :  { %4131 = vmatprep.subr.bf16.mxu0 %v4344_v52  ;;  %4175 = vmatprep.subr.bf16.mxu1 %v4349_v53 }
  0x62   :  { %4056 = vmatmul.mubr.msk.bf16.gmra.mxu0 %vm196_vm0, %v4336_v51  ;;  %4100 = vmatmul.mubr.msk.bf16.gmra.mxu1 %vm196_vm0, %v4635_v54 }
  0x63   :  { %4059 = vmatprep.mubr.msk.bf16.mxu0 %vm196_vm0, %v4340_v55  ;;  %4103 = vmatprep.mubr.msk.bf16.mxu1 %vm196_vm0, %v4643_v56 }
  0x64   :  { %4132 = vmatpush3.bf16.msra.mxu0 %v4344_v52  ;;  %4176 = vmatpush3.bf16.msra.mxu1 %v4349_v53 }
  0x65   :  { %4133 = vmatprep.subr.bf16.mxu0 %v4354_v57  ;;  %4177 = vmatprep.subr.bf16.mxu1 %v4355_v58 }
  0x68   :  { %4134 = vmatpush3.bf16.msra.mxu0 %v4354_v57  ;;  %4178 = vmatpush3.bf16.msra.mxu1 %v4355_v58 }
  0x69   :  { %4135 = vmatprep.subr.bf16.mxu0 %v4360_v59  ;;  %4179 = vmatprep.subr.bf16.mxu1 %v4361_v61 }
  0x6a   :  { %4060 = vmatmul.mubr.msk.bf16.gmra.mxu0 %vm196_vm0, %v4342_v60  ;;  %4104 = vmatmul.mubr.msk.bf16.gmra.mxu1 %vm196_vm0, %v4669_v62 }
  0x6b   :  { %4063 = vmatprep.mubr.msk.bf16.mxu0 %vm196_vm0, %v4345_v63  ;;  %4107 = vmatprep.mubr.msk.bf16.mxu1 %vm196_vm0, %v4677_v0 }
  0x6c   :  { %4136 = vmatpush3.bf16.msra.mxu0 %v4360_v59  ;;  %4180 = vmatpush3.bf16.msra.mxu1 %v4361_v61 }
  0x6d   :  { %4137 = vmatprep.subr.bf16.mxu0 %v4366_v1  ;;  %4181 = vmatprep.subr.bf16.mxu1 %v4371_v2 }
  0x70   :  { %4138 = vmatpush3.bf16.msra.mxu0 %v4366_v1  ;;  %4182 = vmatpush3.bf16.msra.mxu1 %v4371_v2 }
  0x72   :  { %4064 = vmatmul.mubr.msk.bf16.gmra.mxu0 %vm196_vm0, %v4347_v3  ;;  %4108 = vmatmul.mubr.msk.bf16.gmra.mxu1 %vm196_vm0, %v4697_v4 }
  0x73   :  { %4067 = vmatprep.mubr.msk.bf16.mxu0 %vm196_vm0, %v4350_v5  ;;  %4111 = vmatprep.mubr.msk.bf16.mxu1 %vm196_vm0, %v4705_v6 }
  0x7a   :  { %4068 = vmatmul.mubr.msk.bf16.gmra.mxu0 %vm196_vm0, %v4352_v7  ;;  %4112 = vmatmul.mubr.msk.bf16.gmra.mxu1 %vm196_vm0, %v4353_v8 }
  0x7b   :  { %4071 = vmatprep.mubr.msk.bf16.mxu0 %vm196_vm0, %v4356_v9  ;;  %4115 = vmatprep.mubr.msk.bf16.mxu1 %vm196_vm0, %v4357_v10 }
  0x82   :  { %4072 = vmatmul.mubr.msk.bf16.gmra.mxu0 %vm196_vm0, %v4358_v11  ;;  %4116 = vmatmul.mubr.msk.bf16.gmra.mxu1 %vm196_vm0, %v4359_v12  ;;  %v4391_v11 = vmov 0.0  }
  0x83   :  { %4075 = vmatprep.mubr.msk.bf16.mxu0 %vm196_vm0, %v4362_v13  ;;  %4119 = vmatprep.mubr.msk.bf16.mxu1 %vm196_vm0, %v4363_v14 }
  0x84   :  { %4215 = vmatprep.subr.mxu0 %v4391_v11  ;;  %4250 = vmatprep.subr.mxu1 %v4391_v11 }
  0x8a   :  { %4076 = vmatmul.mubr.msk.bf16.gmra.mxu0 %vm196_vm0, %v4364_v15  ;;  %4120 = vmatmul.mubr.msk.bf16.gmra.mxu1 %vm196_vm0, %v4365_v16 }
  0x8b   :  { %4079 = vmatprep.mubr.msk.bf16.mxu0 %vm196_vm0, %v4367_v17  ;;  %4123 = vmatprep.mubr.msk.bf16.mxu1 %vm196_vm0, %v4368_v18 }
  0x92   :  { %4080 = vmatmul.mubr.msk.bf16.gmra.mxu0 %vm196_vm0, %v4369_v19  ;;  %4124 = vmatmul.mubr.msk.bf16.gmra.mxu1 %vm196_vm0, %v4370_v20 }
  0x93   :  { %4139 = vmatprep.mubr.msk.bf16.mxu0 %vm196_vm0, %v4372_v21  ;;  %4183 = vmatprep.mubr.msk.bf16.mxu1 %vm196_vm0, %v4373_v22  ;;  %v2213_v22 = vld [vmem:[%s7007_s2 + $0x70] sm:$0xff] }
  0x9a   :  { %4140 = vmatmul.mubr.msk.bf16.vlgmr.msra.gmra.mxu0 %vm196_vm0, %v4588_v44  ;;  %4184 = vmatmul.mubr.msk.bf16.vlgmr.msra.gmra.mxu1 %vm196_vm0, %v4374_v23 }
  0x9b   :  { %4143 = vmatprep.mubr.msk.bf16.mxu0 %vm196_vm0, %v4601_v46  ;;  %4187 = vmatprep.mubr.msk.bf16.mxu1 %vm196_vm0, %v4375_v24 }
  0xa2   :  { %4144 = vmatmul.mubr.msk.bf16.gmra.mxu0 %vm196_vm0, %v4609_v48  ;;  %4188 = vmatmul.mubr.msk.bf16.gmra.mxu1 %vm196_vm0, %v4376_v25 }
  0xa3   :  { %4147 = vmatprep.mubr.msk.bf16.mxu0 %vm196_vm0, %v4635_v54  ;;  %4191 = vmatprep.mubr.msk.bf16.mxu1 %vm196_vm0, %v4377_v26 }
  0xaa   :  { %4148 = vmatmul.mubr.msk.bf16.gmra.mxu0 %vm196_vm0, %v4643_v56  ;;  %4192 = vmatmul.mubr.msk.bf16.gmra.mxu1 %vm196_vm0, %v4378_v27 }
  0xab   :  { %4151 = vmatprep.mubr.msk.bf16.mxu0 %vm196_vm0, %v4669_v62  ;;  %4195 = vmatprep.mubr.msk.bf16.mxu1 %vm196_vm0, %v4379_v28 }
  0xb2   :  { %4152 = vmatmul.mubr.msk.bf16.gmra.mxu0 %vm196_vm0, %v4677_v0  ;;  %4196 = vmatmul.mubr.msk.bf16.gmra.mxu1 %vm196_vm0, %v4380_v29  ;;  %v2212_v29 = vld [vmem:[%s7007_s2 + $0x68] sm:$0xff] }
  0xb3   :  { %4155 = vmatprep.mubr.msk.bf16.mxu0 %vm196_vm0, %v4697_v4  ;;  %4199 = vmatprep.mubr.msk.bf16.mxu1 %vm196_vm0, %v4381_v30 }
  0xba   :  { %4156 = vmatmul.mubr.msk.bf16.gmra.mxu0 %vm196_vm0, %v4705_v6  ;;  %4200 = vmatmul.mubr.msk.bf16.gmra.mxu1 %vm196_vm0, %v4382_v31 }
  0xbb   :  { %4159 = vmatprep.mubr.msk.bf16.mxu0 %vm196_vm0, %v4353_v8  ;;  %4203 = vmatprep.mubr.msk.bf16.mxu1 %vm196_vm0, %v4383_v32 }
  0xc2   :  { %4160 = vmatmul.mubr.msk.bf16.gmra.mxu0 %vm196_vm0, %v4357_v10  ;;  %4204 = vmatmul.mubr.msk.bf16.gmra.mxu1 %vm196_vm0, %v4384_v33 }
  0xc3   :  { %4163 = vmatprep.mubr.msk.bf16.mxu0 %vm196_vm0, %v4359_v12  ;;  %4207 = vmatprep.mubr.msk.bf16.mxu1 %vm196_vm0, %v4385_v34 }
  0xca   :  { %4164 = vmatmul.mubr.msk.bf16.gmra.mxu0 %vm196_vm0, %v4363_v14  ;;  %4208 = vmatmul.mubr.msk.bf16.gmra.mxu1 %vm196_vm0, %v4386_v35  ;;  %v2211_v35 = vld [vmem:[%s7007_s2 + $0x60] sm:$0xff] }
  0xcb   :  { %4167 = vmatprep.mubr.msk.bf16.mxu0 %vm196_vm0, %v4365_v16  ;;  %4211 = vmatprep.mubr.msk.bf16.mxu1 %vm196_vm0, %v4387_v36 }
  0xd2   :  { %4168 = vmatmul.mubr.msk.bf16.gmra.mxu0 %vm196_vm0, %v4368_v18  ;;  %4212 = vmatmul.mubr.msk.bf16.gmra.mxu1 %vm196_vm0, %v4388_v37  ;;  %v2214_v18 = vld [vmem:[%s7007_s2 + $0x78] sm:$0xff] }
  0xd3   :  { %4216 = vmatpush3.msra.mxu0 %v2214_v18  ;;  %4251 = vmatpush3.msra.mxu1 %v2214_v18 }
  0xd4   :  { %4217 = vmatprep.subr.mxu0 %v4391_v11  ;;  %4252 = vmatprep.subr.mxu1 %v4391_v11 }
  0xd5   :  { %4218 = vmatpush3.msra.mxu0 %v2213_v22  ;;  %4253 = vmatpush3.msra.mxu1 %v2213_v22 }
  0xd6   :  { %4219 = vmatprep.subr.mxu0 %v4391_v11  ;;  %4254 = vmatprep.subr.mxu1 %v4391_v11 }
  0xd7   :  { %4220 = vmatpush3.msra.mxu0 %v2212_v29  ;;  %4255 = vmatpush3.msra.mxu1 %v2212_v29 }
  0xd8   :  { %4221 = vmatprep.subr.mxu0 %v4391_v11  ;;  %4256 = vmatprep.subr.mxu1 %v4391_v11 }
  0xd9   :  { %4222 = vmatpush3.msra.mxu0 %v2211_v35  ;;  %4257 = vmatpush3.msra.mxu1 %v2211_v35 }
  0xda   :  { %v3965_v38 = vpop.f32.mrf.mxu0  ;;  %v4009_v39 = vpop.f32.mrf.mxu1  ;;  %4223 = vmatprep.subr.mxu0 %v4391_v11  ;;  %4258 = vmatprep.subr.mxu1 %v4391_v11 }
  0xdb   :  { %v4861_v40 = vadd.f32 %v4009_v39, %v3965_v38  ;;  %4247 = vmatprep.mubr.msk.f32.mxu0 %vm4392_vm1, %v4391_v11  ;;  %4282 = vmatprep.mubr.msk.f32.mxu1 %vm4392_vm1, %v4391_v11 }
  0xdc   :  { %v279_v41 = vpop.f32.mrf.mxu0  ;;  %v484_v42 = vpop.f32.mrf.mxu1 }
  0xdd   :  { %v4863_v43 = vadd.f32 %v484_v42, %v279_v41 }
  0xde   :  { %v3966_v44 = vpop.f32.mrf.mxu0  ;;  %v4010_v45 = vpop.f32.mrf.mxu1 }
  0xdf   :  { %v4865_v46 = vadd.f32 %v4010_v45, %v3966_v44  ;;  %v2210_v44 = vld [vmem:[%s7007_s2 + $0x58] sm:$0xff] }
  0xe0   :  { %v4867_v47 = vpop.f32.mrf.mxu0  ;;  %v4869_v48 = vpop.f32.mrf.mxu1  ;;  %4224 = vmatpush3.msra.mxu0 %v2210_v44  ;;  %4259 = vmatpush3.msra.mxu1 %v2210_v44 }
  0xe1   :  { %4225 = vmatprep.subr.mxu0 %v4391_v11  ;;  %4260 = vmatprep.subr.mxu1 %v4391_v11  ;;  %v488_v44 = vadd.f32 %v4869_v48, %v4867_v47  ;;  %v2204_v48 = vld [vmem:[%s7007_s2 + $0x28] sm:$0xff] }
  0xe2   :  { %v3969_v49 = vpop.f32.mrf.mxu0  ;;  %v4013_v50 = vpop.f32.mrf.mxu1 }
  0xe3   :  { %v4871_v51 = vadd.f32 %v4013_v50, %v3969_v49 }
  0xe4   :  { %v295_v52 = vpop.f32.mrf.mxu0  ;;  %v500_v53 = vpop.f32.mrf.mxu1 }
  0xe5   :  { %v4873_v54 = vadd.f32 %v500_v53, %v295_v52 }
  0xe6   :  { %v3970_v55 = vpop.f32.mrf.mxu0  ;;  %v4014_v56 = vpop.f32.mrf.mxu1 }
  0xe7   :  { %v4875_v57 = vadd.f32 %v4014_v56, %v3970_v55  ;;  %v2209_v55 = vld [vmem:[%s7007_s2 + $0x50] sm:$0xff] }
  0xe8   :  { %v4877_v58 = vpop.f32.mrf.mxu0  ;;  %v4879_v59 = vpop.f32.mrf.mxu1  ;;  %4226 = vmatpush3.msra.mxu0 %v2209_v55  ;;  %4261 = vmatpush3.msra.mxu1 %v2209_v55 }
  0xe9   :  { %4227 = vmatprep.subr.mxu0 %v4391_v11  ;;  %4262 = vmatprep.subr.mxu1 %v4391_v11 }
  0xea   :  { %v3973_v60 = vpop.f32.mrf.mxu0  ;;  %v4017_v61 = vpop.f32.mrf.mxu1 }
  0xeb   :  { %v4881_v62 = vadd.f32 %v4017_v61, %v3973_v60 }
  0xec   :  { %v311_v63 = vpop.f32.mrf.mxu0  ;;  %v516_v0 = vpop.f32.mrf.mxu1 }
  0xed   :  { %v4883_v1 = vadd.f32 %v516_v0, %v311_v63 }
  0xee   :  { %v3974_v2 = vpop.f32.mrf.mxu0  ;;  %v4018_v3 = vpop.f32.mrf.mxu1 }
  0xef   :  { %v4885_v4 = vadd.f32 %v4018_v3, %v3974_v2  ;;  %v2208_v3 = vld [vmem:[%s7007_s2 + $0x48] sm:$0xff] }
  0xf0   :  { %v4887_v5 = vpop.f32.mrf.mxu0  ;;  %v4889_v6 = vpop.f32.mrf.mxu1  ;;  %4228 = vmatpush3.msra.mxu0 %v2208_v3  ;;  %4263 = vmatpush3.msra.mxu1 %v2208_v3 }
  0xf1   :  { %4229 = vmatprep.subr.mxu0 %v4391_v11  ;;  %4264 = vmatprep.subr.mxu1 %v4391_v11 }
  0xf2   :  { %v3977_v7 = vpop.f32.mrf.mxu0  ;;  %v4021_v8 = vpop.f32.mrf.mxu1 }
  0xf3   :  { %v4891_v9 = vadd.f32 %v4021_v8, %v3977_v7 }
  0xf4   :  { %v327_v10 = vpop.f32.mrf.mxu0  ;;  %v532_v12 = vpop.f32.mrf.mxu1 }
  0xf5   :  { %v4895_v13 = vadd.f32 %v532_v12, %v327_v10 }
  0xf6   :  { %v3978_v14 = vpop.f32.mrf.mxu0  ;;  %v4022_v15 = vpop.f32.mrf.mxu1 }
  0xf7   :  { %v4897_v16 = vadd.f32 %v4022_v15, %v3978_v14  ;;  %v2207_v15 = vld [vmem:[%s7007_s2 + $0x40] sm:$0xff] }
  0xf8   :  { %v4899_v17 = vpop.f32.mrf.mxu0  ;;  %v4904_v19 = vpop.f32.mrf.mxu1  ;;  %4230 = vmatpush3.msra.mxu0 %v2207_v15  ;;  %4265 = vmatpush3.msra.mxu1 %v2207_v15 }
  0xf9   :  { %4231 = vmatprep.subr.mxu0 %v4391_v11  ;;  %4266 = vmatprep.subr.mxu1 %v4391_v11 }
  0xfa   :  { %v3981_v20 = vpop.f32.mrf.mxu0  ;;  %v4025_v21 = vpop.f32.mrf.mxu1 }
  0xfb   :  { %v4911_v23 = vadd.f32 %v4025_v21, %v3981_v20 }
  0xfc   :  { %v343_v24 = vpop.f32.mrf.mxu0  ;;  %v548_v25 = vpop.f32.mrf.mxu1 }
  0xfd   :  { %v4915_v26 = vadd.f32 %v548_v25, %v343_v24 }
  0xfe   :  { %v3982_v27 = vpop.f32.mrf.mxu0  ;;  %v4026_v28 = vpop.f32.mrf.mxu1 }
  0xff   :  { %v4920_v30 = vadd.f32 %v4026_v28, %v3982_v27  ;;  %v2206_v27 = vld [vmem:[%s7007_s2 + $0x38] sm:$0xff] }
 0x100   :  { %v4922_v31 = vpop.f32.mrf.mxu0  ;;  %v4924_v32 = vpop.f32.mrf.mxu1  ;;  %4232 = vmatpush3.msra.mxu0 %v2206_v27  ;;  %4267 = vmatpush3.msra.mxu1 %v2206_v27 }
 0x101   :  { %4233 = vmatprep.subr.mxu0 %v4391_v11  ;;  %4268 = vmatprep.subr.mxu1 %v4391_v11 }
 0x102   :  { %v3985_v33 = vpop.f32.mrf.mxu0  ;;  %v4029_v34 = vpop.f32.mrf.mxu1 }
 0x103   :  { %v4931_v36 = vadd.f32 %v4029_v34, %v3985_v33 }
 0x104   :  { %v359_v37 = vpop.f32.mrf.mxu0  ;;  %v564_v38 = vpop.f32.mrf.mxu1 }
 0x105   :  { %v4935_v39 = vadd.f32 %v564_v38, %v359_v37  ;;  %v2205_v37 = vld [vmem:[%s7007_s2 + $0x30] sm:$0xff] }
 0x106   :  { %v3986_v41 = vpop.f32.mrf.mxu0  ;;  %v4030_v42 = vpop.f32.mrf.mxu1  ;;  %4234 = vmatpush3.msra.mxu0 %v2205_v37  ;;  %4269 = vmatpush3.msra.mxu1 %v2205_v37 }
 0x107   :  { %v4940_v45 = vadd.f32 %v4030_v42, %v3986_v41  ;;  %4235 = vmatprep.subr.mxu0 %v4391_v11  ;;  %4270 = vmatprep.subr.mxu1 %v4391_v11 }
 0x108   :  { %v4942_v49 = vpop.f32.mrf.mxu0  ;;  %v4944_v50 = vpop.f32.mrf.mxu1  ;;  %4236 = vmatpush3.msra.mxu0 %v2204_v48  ;;  %4271 = vmatpush3.msra.mxu1 %v2204_v48  ;;  %v2199_v48 = vld [vmem:[%s7007_s2] sm:$0xff] }
 0x109   :  { %4237 = vmatprep.subr.mxu0 %v4391_v11  ;;  %4272 = vmatprep.subr.mxu1 %v4391_v11 }
 0x10a   :  { %v3989_v52 = vpop.f32.mrf.mxu0  ;;  %v4033_v53 = vpop.f32.mrf.mxu1 }
 0x10b   :  { %v4951_v56 = vadd.f32 %v4033_v53, %v3989_v52 }
 0x10c   :  { %v375_v60 = vpop.f32.mrf.mxu0  ;;  %v580_v61 = vpop.f32.mrf.mxu1 }
 0x10d   :  { %v4955_v63 = vadd.f32 %v580_v61, %v375_v60 }
 0x10e   :  { %v3990_v0 = vpop.f32.mrf.mxu0  ;;  %v4034_v2 = vpop.f32.mrf.mxu1 }
 0x10f   :  { %v4960_v7 = vadd.f32 %v4034_v2, %v3990_v0 }
 0x110   :  { %v4962_v8 = vpop.f32.mrf.mxu0  ;;  %v4964_v10 = vpop.f32.mrf.mxu1 }
 0x112   :  { %v3993_v12 = vpop.f32.mrf.mxu0  ;;  %v4037_v14 = vpop.f32.mrf.mxu1 }
 0x113   :  { %v4971_v18 = vadd.f32 %v4037_v14, %v3993_v12 }
 0x114   :  { %v391_v20 = vpop.f32.mrf.mxu0  ;;  %v596_v21 = vpop.f32.mrf.mxu1 }
 0x115   :  { %v4975_v22 = vadd.f32 %v596_v21, %v391_v20  ;;  %v2203_v20 = vld [vmem:[%s7007_s2 + $0x20] sm:$0xff]  ;;  %v504_v21 = vadd.f32 %v4879_v59, %v4877_v58 }
 0x116   :  { %v3994_v24 = vpop.f32.mrf.mxu0  ;;  %v4038_v25 = vpop.f32.mrf.mxu1  ;;  %4238 = vmatpush3.msra.mxu0 %v2203_v20  ;;  %4273 = vmatpush3.msra.mxu1 %v2203_v20 }
 0x117   :  { %v4980_v28 = vadd.f32 %v4038_v25, %v3994_v24  ;;  %4239 = vmatprep.subr.mxu0 %v4391_v11  ;;  %4274 = vmatprep.subr.mxu1 %v4391_v11 }
 0x118   :  { %v4982_v29 = vpop.f32.mrf.mxu0  ;;  %v4984_v33 = vpop.f32.mrf.mxu1 }
 0x11a   :  { %v4053_v34 = vpop.f32.mrf.mxu0  ;;  %v4988_v35 = vpop.f32.mrf.mxu1 }
 0x11b   :  { %v5009_v2 = vadd.f32 %v4053_v34, %v4861_v40  ;;  %v2202_v34 = vld [vmem:[%s7007_s2 + $0x18] sm:$0xff] }
 0x11c   :  { %v854_v38 = vpop.f32.mrf.mxu0  ;;  %v4993_v41 = vpop.f32.mrf.mxu1  ;;  %4240 = vmatpush3.msra.mxu0 %v2202_v34  ;;  %4275 = vmatpush3.msra.mxu1 %v2202_v34 }
 0x11d   :  { %v5002_v55 = vadd.f32 %v854_v38, %v4863_v43  ;;  %4241 = vmatprep.subr.mxu0 %v4391_v11  ;;  %v2201_v38 = vld [vmem:[%s7007_s2 + $0x10] sm:$0xff]  ;;  %4276 = vmatprep.subr.mxu1 %v4391_v11 }
 0x11e   :  { %v4054_v42 = vpop.f32.mrf.mxu0  ;;  %v4999_v52 = vpop.f32.mrf.mxu1  ;;  %4242 = vmatpush3.msra.mxu0 %v2201_v38  ;;  %4277 = vmatpush3.msra.mxu1 %v2201_v38 }
 0x11f   :  { %v5019_v43 = vadd.f32 %v4054_v42, %v4865_v46  ;;  %4243 = vmatprep.subr.mxu0 %v4391_v11  ;;  %4278 = vmatprep.subr.mxu1 %v4391_v11 }
 0x120   :  { %v857_v53 = vpop.f32.mrf.mxu0  ;;  %v5006_v61 = vpop.f32.mrf.mxu1 }
 0x121   :  { %v5004_v60 = vadd.f32 %v857_v53, %v488_v44 }
 0x122   :  { %v4057_v0 = vpop.f32.mrf.mxu0  ;;  %v5013_v12 = vpop.f32.mrf.mxu1 }
 0x123   :  { %v2130_v3 = vadd.f32 %v5004_v60, %v5002_v55  ;;  %v5053_v42 = vadd.f32 %v4057_v0, %v4871_v51 }
 0x124   :  { %v870_v47 = vpop.f32.mrf.mxu0  ;;  %v5022_v15 = vpop.f32.mrf.mxu1 }
 0x125   :  { %v2131_v14 = vadd.f32 %v2130_v3, %v5009_v2  ;;  %v5032_v46 = vadd.f32 %v870_v47, %v4873_v54  ;;  %v2200_v3 = vld [vmem:[%s7007_s2 + $0x8] sm:$0xff] }
 0x126   :  { %v4058_v40 = vpop.f32.mrf.mxu0  ;;  %v5035_v25 = vpop.f32.mrf.mxu1  ;;  %4244 = vmatpush3.msra.mxu0 %v2200_v3  ;;  %4279 = vmatpush3.msra.mxu1 %v2200_v3 }
 0x127   :  { %v2132_v24 = vadd.f32 %v2131_v14, %v5019_v43  ;;  %v5068_v51 = vadd.f32 %v4058_v40, %v4875_v57  ;;  %4245 = vmatprep.subr.mxu0 %v4391_v11  ;;  %4280 = vmatprep.subr.mxu1 %v4391_v11 }
 0x128   :  { %v873_v27 = vpop.f32.mrf.mxu0  ;;  %v5045_v54 = vpop.f32.mrf.mxu1  ;;  %4246 = vmatpush3.msra.mxu0 %v2199_v48  ;;  %4281 = vmatpush3.msra.mxu1 %v2199_v48 }
 0x129   :  { %v2133_v58 = vadd.f32 %v2132_v24, %v5032_v46  ;;  %v5043_v59 = vadd.f32 %v873_v27, %v504_v21  ;;  %v520_v21 = vadd.f32 %v4889_v6, %v4887_v5 }
 0x12a   :  { %v4061_v37 = vpop.f32.mrf.mxu0  ;;  %v5056_v53 = vpop.f32.mrf.mxu1 }
 0x12b   :  { %v2134_v44 = vadd.f32 %v2133_v58, %v5043_v59  ;;  %v5092_v6 = vadd.f32 %v4061_v37, %v4881_v62 }
 0x12c   :  { %v886_v47 = vpop.f32.mrf.mxu0  ;;  %v5071_v14 = vpop.f32.mrf.mxu1 }
 0x12d   :  { %v2135_v0 = vadd.f32 %v2134_v44, %v5053_v42  ;;  %v5078_v24 = vadd.f32 %v886_v47, %v4883_v1  ;;  %7082 = vst [vmem:[#allocation3_spill] sm:$0xff] %v5092_v6 }
 0x12e   :  { %v4062_v20 = vpop.f32.mrf.mxu0  ;;  %v5081_v40 = vpop.f32.mrf.mxu1 }
 0x12f   :  { %v2136_v57 = vadd.f32 %v2135_v0, %v5068_v51  ;;  %v5098_v47 = vadd.f32 %v4062_v20, %v4885_v4 }
 0x130   :  { %v889_v27 = vpop.f32.mrf.mxu0  ;;  %v5089_v5 = vpop.f32.mrf.mxu1 }
 0x131   :  { %v2137_v34 = vadd.f32 %v2136_v57, %v5078_v24  ;;  %v5087_v58 = vadd.f32 %v889_v27, %v520_v21  ;;  %7083 = vst [vmem:[#allocation4_spill] sm:$0xff] %v5098_v47  ;;  %v536_v21 = vadd.f32 %v4904_v19, %v4899_v17 }
 0x132   :  { %v4065_v1 = vpop.f32.mrf.mxu0  ;;  %v5095_v44 = vpop.f32.mrf.mxu1 }
 0x133   :  { %v2138_v38 = vadd.f32 %v2137_v34, %v5087_v58 }
 0x134   :  { %v902_v3 = vpop.f32.mrf.mxu0  ;;  %v5101_v48 = vpop.f32.mrf.mxu1 }
 0x135   :  { %v2139_v11 = vadd.f32 %v2138_v38, %v5092_v6  ;;  %v5106_v57 = vadd.f32 %v902_v3, %v4895_v13  ;;  %v5117_v6 = vadd.f32 %v4065_v1, %v4891_v9 }
 0x136   :  { %v4066_v0 = vpop.f32.mrf.mxu0  ;;  %v5109_v37 = vpop.f32.mrf.mxu1 }
 0x137   :  { %v2140_v62 = vadd.f32 %v2139_v11, %v5098_v47  ;;  %7085 = vst [vmem:[#allocation6_spill] sm:$0xff] %v5117_v6  ;;  %v5123_v3 = vadd.f32 %v4066_v0, %v4897_v16 }
 0x138   :  { %v905_v27 = vpop.f32.mrf.mxu0  ;;  %v5114_v20 = vpop.f32.mrf.mxu1 }
 0x139   :  { %v2141_v34 = vadd.f32 %v2140_v62, %v5106_v57  ;;  %v5112_v4 = vadd.f32 %v905_v27, %v536_v21  ;;  %7086 = vst [vmem:[#allocation7_spill] sm:$0xff] %v5123_v3  ;;  %v552_v62 = vadd.f32 %v4924_v32, %v4922_v31 }
 0x13a   :  { %v4069_v38 = vpop.f32.mrf.mxu0  ;;  %v5120_v19 = vpop.f32.mrf.mxu1 }
 0x13b   :  { %7084 = vst [vmem:[#allocation5_spill] sm:$0xff] %v5112_v4  ;;  %v2142_v17 = vadd.f32 %v2141_v34, %v5112_v4 }
 0x13c   :  { %v918_v13 = vpop.f32.mrf.mxu0  ;;  %v5126_v47 = vpop.f32.mrf.mxu1 }
 0x13d   :  { %v2143_v11 = vadd.f32 %v2142_v17, %v5117_v6  ;;  %v5131_v27 = vadd.f32 %v918_v13, %v4915_v26  ;;  %v5142_v6 = vadd.f32 %v4069_v38, %v4911_v23 }
 0x13e   :  { %v4070_v21 = vpop.f32.mrf.mxu0  ;;  %v5134_v1 = vpop.f32.mrf.mxu1 }
 0x13f   :  { %v2144_v9 = vadd.f32 %v2143_v11, %v5123_v3  ;;  %7088 = vst [vmem:[#allocation9_spill] sm:$0xff] %v5142_v6  ;;  %v5148_v13 = vadd.f32 %v4070_v21, %v4920_v30 }
 0x140   :  { %v921_v34 = vpop.f32.mrf.mxu0  ;;  %v5139_v0 = vpop.f32.mrf.mxu1 }
 0x141   :  { %v2145_v4 = vadd.f32 %v2144_v9, %v5131_v27  ;;  %v5137_v16 = vadd.f32 %v921_v34, %v552_v62  ;;  %7089 = vst [vmem:[#allocation10_spill] sm:$0xff] %v5148_v13  ;;  %v568_v9 = vadd.f32 %v4944_v50, %v4942_v49 }
 0x142   :  { %v4073_v17 = vpop.f32.mrf.mxu0  ;;  %v5145_v32 = vpop.f32.mrf.mxu1 }
 0x143   :  { %7087 = vst [vmem:[#allocation8_spill] sm:$0xff] %v5137_v16  ;;  %v2146_v31 = vadd.f32 %v2145_v4, %v5137_v16 }
 0x144   :  { %v934_v26 = vpop.f32.mrf.mxu0  ;;  %v5151_v3 = vpop.f32.mrf.mxu1 }
 0x145   :  { %v2147_v11 = vadd.f32 %v2146_v31, %v5142_v6  ;;  %v5156_v34 = vadd.f32 %v934_v26, %v4935_v39  ;;  %v5167_v6 = vadd.f32 %v4073_v17, %v4931_v36 }
 0x146   :  { %v4074_v62 = vpop.f32.mrf.mxu0  ;;  %v5159_v4 = vpop.f32.mrf.mxu1 }
 0x147   :  { %7090 = vst [vmem:[#allocation11_spill] sm:$0xff] %v5156_v34  ;;  %v2148_v23 = vadd.f32 %v2147_v11, %v5148_v13  ;;  %7092 = vst [vmem:[#allocation13_spill] sm:$0xff] %v5167_v6  ;;  %v5173_v26 = vadd.f32 %v4074_v62, %v4940_v45 }
 0x148   :  { %v937_v38 = vpop.f32.mrf.mxu0  ;;  %v5164_v21 = vpop.f32.mrf.mxu1 }
 0x149   :  { %v2149_v16 = vadd.f32 %v2148_v23, %v5156_v34  ;;  %v5162_v30 = vadd.f32 %v937_v38, %v568_v9  ;;  %7093 = vst [vmem:[#allocation14_spill] sm:$0xff] %v5173_v26  ;;  %v584_v23 = vadd.f32 %v4964_v10, %v4962_v8 }
 0x14a   :  { %v4077_v31 = vpop.f32.mrf.mxu0  ;;  %v5170_v50 = vpop.f32.mrf.mxu1 }
 0x14b   :  { %7091 = vst [vmem:[#allocation12_spill] sm:$0xff] %v5162_v30  ;;  %v2150_v49 = vadd.f32 %v2149_v16, %v5162_v30 }
 0x14c   :  { %v950_v39 = vpop.f32.mrf.mxu0  ;;  %v5176_v13 = vpop.f32.mrf.mxu1 }
 0x14d   :  { %v2151_v11 = vadd.f32 %v2150_v49, %v5167_v6  ;;  %v5181_v38 = vadd.f32 %v950_v39, %v4955_v63  ;;  %v5192_v6 = vadd.f32 %v4077_v31, %v4951_v56 }
 0x14e   :  { %v4078_v9 = vpop.f32.mrf.mxu0  ;;  %v5184_v16 = vpop.f32.mrf.mxu1 }
 0x14f   :  { %7094 = vst [vmem:[#allocation15_spill] sm:$0xff] %v5181_v38  ;;  %v2152_v36 = vadd.f32 %v2151_v11, %v5173_v26  ;;  %7096 = vst [vmem:[#allocation17_spill] sm:$0xff] %v5192_v6  ;;  %v5198_v39 = vadd.f32 %v4078_v9, %v4960_v7 }
 0x150   :  { %v953_v17 = vpop.f32.mrf.mxu0  ;;  %v5189_v62 = vpop.f32.mrf.mxu1 }
 0x151   :  { %v2153_v30 = vadd.f32 %v2152_v36, %v5181_v38  ;;  %v5187_v45 = vadd.f32 %v953_v17, %v584_v23  ;;  %7097 = vst [vmem:[#allocation18_spill] sm:$0xff] %v5198_v39  ;;  %v600_v36 = vadd.f32 %v4984_v33, %v4982_v29 }
 0x152   :  { %v4081_v49 = vpop.f32.mrf.mxu0  ;;  %v5195_v10 = vpop.f32.mrf.mxu1 }
 0x153   :  { %7095 = vst [vmem:[#allocation16_spill] sm:$0xff] %v5187_v45  ;;  %v2154_v8 = vadd.f32 %v2153_v30, %v5187_v45 }
 0x154   :  { %v966_v63 = vpop.f32.mrf.mxu0  ;;  %v5201_v26 = vpop.f32.mrf.mxu1 }
 0x155   :  { %v2155_v11 = vadd.f32 %v2154_v8, %v5192_v6  ;;  %v5206_v17 = vadd.f32 %v966_v63, %v4975_v22  ;;  %v5217_v6 = vadd.f32 %v4081_v49, %v4971_v18 }
 0x156   :  { %v4082_v23 = vpop.f32.mrf.mxu0  ;;  %v5209_v30 = vpop.f32.mrf.mxu1 }
 0x157   :  { %7098 = vst [vmem:[#allocation19_spill] sm:$0xff] %v5206_v17  ;;  %v2156_v56 = vadd.f32 %v2155_v11, %v5198_v39  ;;  %v5221_v63 = vadd.f32 %v4082_v23, %v4980_v28 }
 0x158   :  { %v969_v31 = vpop.f32.mrf.mxu0  ;;  %v5214_v9 = vpop.f32.mrf.mxu1 }
 0x159   :  { %v2157_v45 = vadd.f32 %v2156_v56, %v5206_v17  ;;  %v5212_v7 = vadd.f32 %v969_v31, %v600_v36  ;;  %7100 = vst [vmem:[#allocation21_spill] sm:$0xff] %v5221_v63 }
 0x15a   :  { %v4141_v8 = vpop.f32.mrf.mxu0  ;;  %v4185_v33 = vpop.f32.mrf.mxu1 }
 0x15b   :  { %7099 = vst [vmem:[#allocation20_spill] sm:$0xff] %v5212_v7  ;;  %v2158_v29 = vadd.f32 %v2157_v45, %v5212_v7  ;;  %v1515_v49 = vadd.f32 %v4141_v8, %v4988_v35 }
 0x15c   :  { %v1506_v22 = vpop.f32.mrf.mxu0  ;;  %v1875_v56 = vpop.f32.mrf.mxu1 }
 0x15d   :  { %v2159_v11 = vadd.f32 %v2158_v29, %v5217_v6  ;;  %v1507_v39 = vadd.f32 %v1506_v22, %v4993_v41 }
 0x15e   :  { %v4142_v36 = vpop.f32.mrf.mxu0  ;;  %v4186_v38 = vpop.f32.mrf.mxu1 }
 0x15f   :  { %v5225_v31 = vadd.f32 %v1875_v56, %v1507_v39  ;;  %v2160_v17 = vadd.f32 %v2159_v11, %v5221_v63  ;;  %v1518_v23 = vadd.f32 %v4142_v36, %v4999_v52  ;;  %v5234_v39 = vadd.f32 %v4185_v33, %v1515_v49 }
 0x160   :  { %v1509_v18 = vpop.f32.mrf.mxu0  ;;  %v1878_v7 = vpop.f32.mrf.mxu1 }
 0x161   :  { %v1510_v45 = vadd.f32 %v1509_v18, %v5006_v61  ;;  %v2161_v28 = vadd.f32 %v2160_v17, %v5225_v31  ;;  %v5238_v8 = vadd.f32 %v4186_v38, %v1518_v23 }
 0x162   :  { %v4145_v34 = vpop.f32.mrf.mxu0  ;;  %v4189_v41 = vpop.f32.mrf.mxu1 }
 0x163   :  { %v5232_v29 = vadd.f32 %v1878_v7, %v1510_v45  ;;  %v1531_v52 = vadd.f32 %v4145_v34, %v5013_v12 }
 0x164   :  { %v1522_v22 = vpop.f32.mrf.mxu0  ;;  %v1891_v63 = vpop.f32.mrf.mxu1 }
 0x165   :  { %v2162_v11 = vadd.f32 %v2161_v28, %v5232_v29  ;;  %v1523_v56 = vadd.f32 %v1522_v22, %v5022_v15 }
 0x166   :  { %v4146_v35 = vpop.f32.mrf.mxu0  ;;  %v4190_v18 = vpop.f32.mrf.mxu1 }
 0x167   :  { %v2163_v61 = vadd.f32 %v2162_v11, %v5234_v39  ;;  %v5242_v7 = vadd.f32 %v1891_v63, %v1523_v56  ;;  %v1534_v28 = vadd.f32 %v4146_v35, %v5035_v25  ;;  %v5250_v11 = vadd.f32 %v4189_v41, %v1531_v52 }
 0x168   :  { %v1525_v17 = vpop.f32.mrf.mxu0  ;;  %v1894_v49 = vpop.f32.mrf.mxu1 }
 0x169   :  { %v2164_v36 = vadd.f32 %v2163_v61, %v5238_v8  ;;  %v1526_v33 = vadd.f32 %v1525_v17, %v5045_v54  ;;  %v5254_v61 = vadd.f32 %v4190_v18, %v1534_v28 }
 0x16a   :  { %v4149_v45 = vpop.f32.mrf.mxu0  ;;  %v4193_v23 = vpop.f32.mrf.mxu1 }
 0x16b   :  { %v2165_v15 = vadd.f32 %v2164_v36, %v5242_v7  ;;  %v5248_v38 = vadd.f32 %v1894_v49, %v1526_v33  ;;  %v1547_v25 = vadd.f32 %v4149_v45, %v5056_v53 }
 0x16c   :  { %v1538_v22 = vpop.f32.mrf.mxu0  ;;  %v1907_v63 = vpop.f32.mrf.mxu1 }
 0x16d   :  { %v2166_v12 = vadd.f32 %v2165_v15, %v5248_v38  ;;  %v1539_v34 = vadd.f32 %v1538_v22, %v5071_v14 }
 0x16e   :  { %v4150_v56 = vpop.f32.mrf.mxu0  ;;  %v4194_v17 = vpop.f32.mrf.mxu1 }
 0x16f   :  { %v2167_v54 = vadd.f32 %v2166_v12, %v5250_v11  ;;  %v5258_v35 = vadd.f32 %v1907_v63, %v1539_v34  ;;  %v1550_v15 = vadd.f32 %v4150_v56, %v5081_v40  ;;  %v5266_v12 = vadd.f32 %v4193_v23, %v1547_v25 }
 0x170   :  { %v1541_v36 = vpop.f32.mrf.mxu0  ;;  %v1910_v52 = vpop.f32.mrf.mxu1 }
 0x171   :  { %v2168_v33 = vadd.f32 %v2167_v54, %v5254_v61  ;;  %v1542_v41 = vadd.f32 %v1541_v36, %v5089_v5  ;;  %v5270_v54 = vadd.f32 %v4194_v17, %v1550_v15 }
 0x172   :  { %v4153_v49 = vpop.f32.mrf.mxu0  ;;  %v4197_v28 = vpop.f32.mrf.mxu1 }
 0x173   :  { %v2169_v14 = vadd.f32 %v2168_v33, %v5258_v35  ;;  %v5264_v18 = vadd.f32 %v1910_v52, %v1542_v41  ;;  %v1563_v40 = vadd.f32 %v4153_v49, %v5095_v44 }
 0x174   :  { %v1554_v22 = vpop.f32.mrf.mxu0  ;;  %v1923_v34 = vpop.f32.mrf.mxu1 }
 0x175   :  { %v2170_v53 = vadd.f32 %v2169_v14, %v5264_v18  ;;  %v1555_v45 = vadd.f32 %v1554_v22, %v5101_v48 }
 0x176   :  { %v4154_v63 = vpop.f32.mrf.mxu0  ;;  %v4198_v36 = vpop.f32.mrf.mxu1 }
 0x177   :  { %v2171_v5 = vadd.f32 %v2170_v53, %v5266_v12  ;;  %v5274_v56 = vadd.f32 %v1923_v34, %v1555_v45  ;;  %v1566_v14 = vadd.f32 %v4154_v63, %v5109_v37  ;;  %v5282_v53 = vadd.f32 %v4197_v28, %v1563_v40 }
 0x178   :  { %v1557_v33 = vpop.f32.mrf.mxu0  ;;  %v1926_v25 = vpop.f32.mrf.mxu1 }
 0x179   :  { %v2172_v41 = vadd.f32 %v2171_v5, %v5270_v54  ;;  %v1558_v23 = vadd.f32 %v1557_v33, %v5114_v20  ;;  %v5286_v5 = vadd.f32 %v4198_v36, %v1566_v14 }
 0x17a   :  { %v4157_v52 = vpop.f32.mrf.mxu0  ;;  %v4201_v15 = vpop.f32.mrf.mxu1 }
 0x17b   :  { %v2173_v48 = vadd.f32 %v2172_v41, %v5274_v56  ;;  %v5280_v17 = vadd.f32 %v1926_v25, %v1558_v23  ;;  %v1579_v37 = vadd.f32 %v4157_v52, %v5120_v19 }
 0x17c   :  { %v1570_v22 = vpop.f32.mrf.mxu0  ;;  %v1939_v45 = vpop.f32.mrf.mxu1 }
 0x17d   :  { %v2174_v44 = vadd.f32 %v2173_v48, %v5280_v17  ;;  %v1571_v49 = vadd.f32 %v1570_v22, %v5126_v47 }
 0x17e   :  { %v4158_v34 = vpop.f32.mrf.mxu0  ;;  %v4202_v33 = vpop.f32.mrf.mxu1 }
 0x17f   :  { %v2175_v20 = vadd.f32 %v2174_v44, %v5282_v53  ;;  %v5290_v63 = vadd.f32 %v1939_v45, %v1571_v49  ;;  %v1582_v48 = vadd.f32 %v4158_v34, %v5134_v1  ;;  %v5298_v44 = vadd.f32 %v4201_v15, %v1579_v37 }
 0x180   :  { %v1573_v41 = vpop.f32.mrf.mxu0  ;;  %v1942_v40 = vpop.f32.mrf.mxu1 }
 0x181   :  { %v2176_v23 = vadd.f32 %v2175_v20, %v5286_v5  ;;  %v1574_v28 = vadd.f32 %v1573_v41, %v5139_v0  ;;  %v5302_v20 = vadd.f32 %v4202_v33, %v1582_v48 }
 0x182   :  { %v4161_v25 = vpop.f32.mrf.mxu0  ;;  %v4205_v14 = vpop.f32.mrf.mxu1 }
 0x183   :  { %v2177_v47 = vadd.f32 %v2176_v23, %v5290_v63  ;;  %v5296_v36 = vadd.f32 %v1942_v40, %v1574_v28  ;;  %v1595_v1 = vadd.f32 %v4161_v25, %v5145_v32 }
 0x184   :  { %v1586_v22 = vpop.f32.mrf.mxu0  ;;  %v1955_v49 = vpop.f32.mrf.mxu1 }
 0x185   :  { %v2178_v19 = vadd.f32 %v2177_v47, %v5296_v36  ;;  %v1587_v52 = vadd.f32 %v1586_v22, %v5151_v3 }
 0x186   :  { %v4162_v45 = vpop.f32.mrf.mxu0  ;;  %v4206_v41 = vpop.f32.mrf.mxu1 }
 0x187   :  { %v2179_v0 = vadd.f32 %v2178_v19, %v5298_v44  ;;  %v5306_v34 = vadd.f32 %v1955_v49, %v1587_v52  ;;  %v1598_v47 = vadd.f32 %v4162_v45, %v5159_v4  ;;  %v5314_v19 = vadd.f32 %v4205_v14, %v1595_v1 }
 0x188   :  { %v1589_v23 = vpop.f32.mrf.mxu0  ;;  %v1958_v37 = vpop.f32.mrf.mxu1 }
 0x189   :  { %v2180_v28 = vadd.f32 %v2179_v0, %v5302_v20  ;;  %v1590_v15 = vadd.f32 %v1589_v23, %v5164_v21  ;;  %v5318_v0 = vadd.f32 %v4206_v41, %v1598_v47 }
 0x18a   :  { %v4165_v40 = vpop.f32.mrf.mxu0  ;;  %v4209_v48 = vpop.f32.mrf.mxu1 }
 0x18b   :  { %v2181_v3 = vadd.f32 %v2180_v28, %v5306_v34  ;;  %v5312_v33 = vadd.f32 %v1958_v37, %v1590_v15  ;;  %v1611_v4 = vadd.f32 %v4165_v40, %v5170_v50 }
 0x18c   :  { %v1602_v22 = vpop.f32.mrf.mxu0  ;;  %v1971_v52 = vpop.f32.mrf.mxu1 }
 0x18d   :  { %v2182_v32 = vadd.f32 %v2181_v3, %v5312_v33  ;;  %v1603_v25 = vadd.f32 %v1602_v22, %v5176_v13 }
 0x18e   :  { %v4166_v49 = vpop.f32.mrf.mxu0  ;;  %v4210_v23 = vpop.f32.mrf.mxu1 }
 0x18f   :  { %v2183_v21 = vadd.f32 %v2182_v32, %v5314_v19  ;;  %v5322_v45 = vadd.f32 %v1971_v52, %v1603_v25  ;;  %v1614_v3 = vadd.f32 %v4166_v49, %v5184_v16  ;;  %v5330_v32 = vadd.f32 %v4209_v48, %v1611_v4 }
 0x190   :  { %v1605_v28 = vpop.f32.mrf.mxu0  ;;  %v1974_v1 = vpop.f32.mrf.mxu1 }
 0x191   :  { %v2184_v15 = vadd.f32 %v2183_v21, %v5318_v0  ;;  %v1606_v14 = vadd.f32 %v1605_v28, %v5189_v62  ;;  %v5334_v21 = vadd.f32 %v4210_v23, %v1614_v3 }
 0x192   :  { %v4169_v37 = vpop.f32.mrf.mxu0  ;;  %v4213_v47 = vpop.f32.mrf.mxu1 }
 0x193   :  { %v2185_v13 = vadd.f32 %v2184_v15, %v5322_v45  ;;  %v5328_v41 = vadd.f32 %v1974_v1, %v1606_v14  ;;  %v1627_v16 = vadd.f32 %v4169_v37, %v5195_v10 }
 0x194   :  { %v1618_v22 = vpop.f32.mrf.mxu0  ;;  %v1987_v25 = vpop.f32.mrf.mxu1 }
 0x195   :  { %v2186_v50 = vadd.f32 %v2185_v13, %v5328_v41  ;;  %v1619_v40 = vadd.f32 %v1618_v22, %v5201_v26  ;;  %v5346_v23 = vadd.f32 %v4213_v47, %v1627_v16 }
 0x196   :  { %v4170_v52 = vpop.f32.mrf.mxu0  ;;  %v4214_v28 = vpop.f32.mrf.mxu1 }
 0x197   :  { %v2187_v62 = vadd.f32 %v2186_v50, %v5330_v32  ;;  %v5338_v49 = vadd.f32 %v1987_v25, %v1619_v40  ;;  %v1630_v26 = vadd.f32 %v4170_v52, %v5209_v30 }
 0x198   :  { %v1621_v15 = vpop.f32.mrf.mxu0  ;;  %v1990_v4 = vpop.f32.mrf.mxu1 }
 0x199   :  { %v2188_v14 = vadd.f32 %v2187_v62, %v5334_v21  ;;  %v1622_v48 = vadd.f32 %v1621_v15, %v5214_v9  ;;  %v5349_v22 = vadd.f32 %v4214_v28, %v1630_v26 }
 0x19b   :  { %v2189_v1 = vadd.f32 %v2188_v14, %v5338_v49  ;;  %v5344_v13 = vadd.f32 %v1990_v4, %v1622_v48  ;;  %v2286_v14 = vlaneseq }
 0x19d   :  { %v2190_v3 = vadd.f32 %v2189_v1, %v5344_v13  ;;  %v5353_v47 = vshrl.u32 %v2286_v14, 7 }
 0x19f   :  { %v2191_v10 = vadd.f32 %v2190_v3, %v5346_v23  ;;  %v7030_v28 = vsub.s32 0, %v5353_v47 }
 0x1a1   :  { %v2192_v37 = vadd.f32 %v2191_v10, %v5349_v22 }
 0x1a3   :  { %v2193_v50 = vrot.slane %v2192_v37, 4 }
 0x1a5   :  { %v2194_v40 = vadd.f32 %v2193_v50, %v2192_v37 }
 0x1a7   :  { %v2195_v9 = vrot.slane %v2194_v40, 2 }
 0x1a9   :  { %v2196_v25 = vadd.f32 %v2195_v9, %v2194_v40 }
 0x1ab   :  { %v2197_v62 = vrot.slane %v2196_v25, 1 }
 0x1ad   :  { %v2198_v15 = vadd.f32 %v2197_v62, %v2196_v25 }
 0x1af   :  { %4248 = vmatmul.mubr.f32.vlgmr.msra.gmra.mxu0 %v2198_v15 }
 0x26f   :  { %v2281_v30 = vpop.f32.mrf.mxu0 }
 0x270   :  { %v2285_v16 = vmul.f32 0.001953125, %v2281_v30 }
 0x271   :  { %v4249_v52 = vpop.f32.mrf.mxu0 }
 0x272   :  { %v5358_v48 = vrot.slane %v2285_v16, %v7030_v28 }
 0x274   :  { %v5362_v4 = vsub.f32 %v5002_v55, %v5358_v48  ;;  %v5366_v1 = vsub.f32 %v5004_v60, %v5358_v48  ;;  %v5370_v26 = vsub.f32 %v5009_v2, %v5358_v48  ;;  %v5378_v37 = vsub.f32 %v5019_v43, %v5358_v48 }
 0x275   :  { %v5382_v55 = vsub.f32 %v5032_v46, %v5358_v48  ;;  %v5388_v2 = vsub.f32 %v5043_v59, %v5358_v48  ;;  %v5394_v43 = vsub.f32 %v5053_v42, %v5358_v48  ;;  %v5400_v62 = vsub.f32 %v5068_v51, %v5358_v48 }
 0x276   :  { %v2354_v3 = vmul.f32 %v5362_v4, %v5362_v4  ;;  %v2355_v10 = vmul.f32 %v5366_v1, %v5366_v1  ;;  %v2356_v60 = vmul.f32 %v5370_v26, %v5370_v26  ;;  %v2357_v40 = vmul.f32 %v5378_v37, %v5378_v37 }
 0x277   :  { %v2358_v46 = vmul.f32 %v5382_v55, %v5382_v55  ;;  %v2359_v59 = vmul.f32 %v5388_v2, %v5388_v2  ;;  %v5406_v30 = vsub.f32 %v5078_v24, %v5358_v48  ;;  %v2360_v42 = vmul.f32 %v5394_v43, %v5394_v43 }
 0x278   :  { %v2418_v50 = vadd.f32 %v2355_v10, %v2354_v3  ;;  %v5412_v14 = vsub.f32 %v5087_v58, %v5358_v48  ;;  %v2361_v51 = vmul.f32 %v5400_v62, %v5400_v62  ;;  %v7101_v3 = vld [vmem:[#allocation3_spill] sm:$0xff] }
 0x279   :  { %v5418_v10 = vsub.f32 %v7101_v3, %v5358_v48  ;;  %v2362_v24 = vmul.f32 %v5406_v30, %v5406_v30 }
 0x27a   :  { %v2419_v9 = vadd.f32 %v2418_v50, %v2356_v60  ;;  %v7102_v50 = vld [vmem:[#allocation4_spill] sm:$0xff]  ;;  %v2363_v58 = vmul.f32 %v5412_v14, %v5412_v14 }
 0x27c   :  { %v2420_v25 = vadd.f32 %v2419_v9, %v2357_v40  ;;  %v5424_v40 = vsub.f32 %v7102_v50, %v5358_v48 }
 0x27e   :  { %v2421_v15 = vadd.f32 %v2420_v25, %v2358_v46  ;;  %v5430_v46 = vsub.f32 %v5106_v57, %v5358_v48  ;;  %v2364_v25 = vmul.f32 %v5418_v10, %v5418_v10 }
 0x280   :  { %v2422_v52 = vadd.f32 %v2421_v15, %v2359_v59  ;;  %v7103_v15 = vld [vmem:[#allocation5_spill] sm:$0xff]  ;;  %v2366_v57 = vmul.f32 %v5430_v46, %v5430_v46 }
 0x282   :  { %v2423_v16 = vadd.f32 %v2422_v52, %v2360_v42  ;;  %v5436_v42 = vsub.f32 %v7103_v15, %v5358_v48  ;;  %v2365_v52 = vmul.f32 %v5424_v40, %v5424_v40  ;;  %v5454_v15 = vsub.f32 %v5131_v27, %v5358_v48 }
 0x284   :  { %v2424_v60 = vadd.f32 %v2423_v16, %v2361_v51  ;;  %7104 = vst [vmem:[#allocation3_spill] sm:$0xff] %v5436_v42  ;;  %v7105_v16 = vld [vmem:[#allocation6_spill] sm:$0xff]  ;;  %v2370_v27 = vmul.f32 %v5454_v15, %v5454_v15 }
 0x285   :  { %v5442_v3 = vsub.f32 %v7105_v16, %v5358_v48  ;;  %7109 = vst [vmem:[#allocation6_spill] sm:$0xff] %v5454_v15  ;;  %v7110_v16 = vld [vmem:[#allocation8_spill] sm:$0xff] }
 0x286   :  { %v2425_v9 = vadd.f32 %v2424_v60, %v2362_v24  ;;  %v7107_v60 = vld [vmem:[#allocation7_spill] sm:$0xff]  ;;  %v5460_v28 = vsub.f32 %v7110_v16, %v5358_v48 }
 0x287   :  { %7106 = vst [vmem:[#allocation4_spill] sm:$0xff] %v5442_v3  ;;  %v5448_v50 = vsub.f32 %v7107_v60, %v5358_v48  ;;  %v7112_v60 = vld [vmem:[#allocation9_spill] sm:$0xff]  ;;  %v7116_v16 = vld [vmem:[#allocation11_spill] sm:$0xff] }
 0x288   :  { %v2426_v59 = vadd.f32 %v2425_v9, %v2363_v58  ;;  %v2367_v58 = vmul.f32 %v5436_v42, %v5436_v42  ;;  %7111 = vst [vmem:[#allocation7_spill] sm:$0xff] %v5460_v28  ;;  %v5466_v42 = vsub.f32 %v7112_v60, %v5358_v48  ;;  %v7118_v60 = vld [vmem:[#allocation12_spill] sm:$0xff] }
 0x289   :  { %7108 = vst [vmem:[#allocation5_spill] sm:$0xff] %v5448_v50  ;;  %v5484_v15 = vsub.f32 %v7118_v60, %v5358_v48  ;;  %v7124_v60 = vld [vmem:[#allocation15_spill] sm:$0xff] }
 0x28a   :  { %v2427_v51 = vadd.f32 %v2426_v59, %v2364_v25  ;;  %v2368_v25 = vmul.f32 %v5442_v3, %v5442_v3  ;;  %7113 = vst [vmem:[#allocation8_spill] sm:$0xff] %v5466_v42 }
 0x28b   :  { %7119 = vst [vmem:[#allocation11_spill] sm:$0xff] %v5484_v15 }
 0x28c   :  { %v2428_v24 = vadd.f32 %v2427_v51, %v2365_v52  ;;  %v2369_v52 = vmul.f32 %v5448_v50, %v5448_v50  ;;  %v5478_v50 = vsub.f32 %v7116_v16, %v5358_v48  ;;  %v7122_v16 = vld [vmem:[#allocation14_spill] sm:$0xff] }
 0x28e   :  { %v2429_v9 = vadd.f32 %v2428_v24, %v2366_v57  ;;  %v7114_v24 = vld [vmem:[#allocation10_spill] sm:$0xff] }
 0x28f   :  { %v5472_v3 = vsub.f32 %v7114_v24, %v5358_v48  ;;  %7117 = vst [vmem:[#allocation10_spill] sm:$0xff] %v5478_v50  ;;  %v7120_v24 = vld [vmem:[#allocation13_spill] sm:$0xff] }
 0x290   :  { %v2430_v59 = vadd.f32 %v2429_v9, %v2367_v58  ;;  %v2371_v58 = vmul.f32 %v5460_v28, %v5460_v28  ;;  %v5490_v28 = vsub.f32 %v7120_v24, %v5358_v48  ;;  %v7126_v24 = vld [vmem:[#allocation16_spill] sm:$0xff] }
 0x291   :  { %7115 = vst [vmem:[#allocation9_spill] sm:$0xff] %v5472_v3 }
 0x292   :  { %v2431_v51 = vadd.f32 %v2430_v59, %v2368_v25  ;;  %v2372_v25 = vmul.f32 %v5466_v42, %v5466_v42  ;;  %7121 = vst [vmem:[#allocation12_spill] sm:$0xff] %v5490_v28  ;;  %v5496_v42 = vsub.f32 %v7122_v16, %v5358_v48  ;;  %v7127_v16 = vld [vmem:[#allocation17_spill] sm:$0xff] }
 0x294   :  { %v2432_v57 = vadd.f32 %v2431_v51, %v2369_v52  ;;  %v2373_v52 = vmul.f32 %v5472_v3, %v5472_v3  ;;  %7123 = vst [vmem:[#allocation13_spill] sm:$0xff] %v5496_v42  ;;  %v5502_v3 = vsub.f32 %v7124_v60, %v5358_v48  ;;  %v7129_v60 = vld [vmem:[#allocation18_spill] sm:$0xff] }
 0x296   :  { %v2433_v9 = vadd.f32 %v2432_v57, %v2370_v27  ;;  %v2374_v27 = vmul.f32 %v5478_v50, %v5478_v50  ;;  %7125 = vst [vmem:[#allocation14_spill] sm:$0xff] %v5502_v3  ;;  %v5508_v50 = vsub.f32 %v7126_v24, %v5358_v48  ;;  %v7130_v24 = vld [vmem:[#allocation19_spill] sm:$0xff] }
 0x298   :  { %v2434_v59 = vadd.f32 %v2433_v9, %v2371_v58  ;;  %v2375_v58 = vmul.f32 %v5484_v15, %v5484_v15  ;;  %v5514_v15 = vsub.f32 %v7127_v16, %v5358_v48  ;;  %v7131_v16 = vld [vmem:[#allocation20_spill] sm:$0xff] }
 0x29a   :  { %v2435_v51 = vadd.f32 %v2434_v59, %v2372_v25  ;;  %v2376_v25 = vmul.f32 %v5490_v28, %v5490_v28  ;;  %7128 = vst [vmem:[#allocation15_spill] sm:$0xff] %v5514_v15  ;;  %v5520_v28 = vsub.f32 %v7129_v60, %v5358_v48  ;;  %v5538_v60 = vsub.f32 %v5217_v6, %v5358_v48 }
 0x29c   :  { %v2436_v57 = vadd.f32 %v2435_v51, %v2373_v52  ;;  %v2377_v52 = vmul.f32 %v5496_v42, %v5496_v42  ;;  %v5526_v42 = vsub.f32 %v7130_v24, %v5358_v48  ;;  %v7132_v24 = vld [vmem:[#allocation21_spill] sm:$0xff]  ;;  %v2384_v6 = vmul.f32 %v5538_v60, %v5538_v60 }
 0x29e   :  { %v2437_v9 = vadd.f32 %v2436_v57, %v2374_v27  ;;  %v2378_v27 = vmul.f32 %v5502_v3, %v5502_v3  ;;  %v5532_v3 = vsub.f32 %v7131_v16, %v5358_v48  ;;  %v5550_v16 = vsub.f32 %v5225_v31, %v5358_v48 }
 0x2a0   :  { %v2438_v59 = vadd.f32 %v2437_v9, %v2375_v58  ;;  %v2379_v58 = vmul.f32 %v5508_v50, %v5508_v50  ;;  %v2386_v31 = vmul.f32 %v5550_v16, %v5550_v16 }
 0x2a2   :  { %v2439_v51 = vadd.f32 %v2438_v59, %v2376_v25  ;;  %v2380_v25 = vmul.f32 %v5514_v15, %v5514_v15  ;;  %v5544_v15 = vsub.f32 %v7132_v24, %v5358_v48  ;;  %v5562_v24 = vsub.f32 %v5234_v39, %v5358_v48 }
 0x2a4   :  { %v2440_v57 = vadd.f32 %v2439_v51, %v2377_v52  ;;  %v2381_v52 = vmul.f32 %v5520_v28, %v5520_v28  ;;  %v2388_v39 = vmul.f32 %v5562_v24, %v5562_v24 }
 0x2a6   :  { %v2441_v9 = vadd.f32 %v2440_v57, %v2378_v27  ;;  %v2382_v27 = vmul.f32 %v5526_v42, %v5526_v42 }
 0x2a8   :  { %v2442_v59 = vadd.f32 %v2441_v9, %v2379_v58  ;;  %v2383_v58 = vmul.f32 %v5532_v3, %v5532_v3 }
 0x2aa   :  { %v2443_v51 = vadd.f32 %v2442_v59, %v2380_v25  ;;  %v5556_v59 = vsub.f32 %v5232_v29, %v5358_v48 }
 0x2ac   :  { %v2444_v57 = vadd.f32 %v2443_v51, %v2381_v52  ;;  %v2385_v52 = vmul.f32 %v5544_v15, %v5544_v15  ;;  %v2387_v29 = vmul.f32 %v5556_v59, %v5556_v59 }
 0x2ae   :  { %v2445_v9 = vadd.f32 %v2444_v57, %v2382_v27  ;;  %v5568_v57 = vsub.f32 %v5238_v8, %v5358_v48 }
 0x2b0   :  { %v2446_v25 = vadd.f32 %v2445_v9, %v2383_v58  ;;  %v5574_v9 = vsub.f32 %v5242_v7, %v5358_v48  ;;  %v2389_v8 = vmul.f32 %v5568_v57, %v5568_v57 }
 0x2b2   :  { %v2447_v51 = vadd.f32 %v2446_v25, %v2384_v6  ;;  %v5580_v25 = vsub.f32 %v5248_v38, %v5358_v48  ;;  %v2390_v7 = vmul.f32 %v5574_v9, %v5574_v9 }
 0x2b4   :  { %v2448_v27 = vadd.f32 %v2447_v51, %v2385_v52  ;;  %v5586_v51 = vsub.f32 %v5250_v11, %v5358_v48  ;;  %v2391_v38 = vmul.f32 %v5580_v25, %v5580_v25 }
 0x2b6   :  { %v2449_v58 = vadd.f32 %v2448_v27, %v2386_v31  ;;  %v5592_v27 = vsub.f32 %v5254_v61, %v5358_v48  ;;  %v2392_v11 = vmul.f32 %v5586_v51, %v5586_v51 }
 0x2b8   :  { %v2450_v6 = vadd.f32 %v2449_v58, %v2387_v29  ;;  %v5598_v58 = vsub.f32 %v5258_v35, %v5358_v48  ;;  %v2393_v61 = vmul.f32 %v5592_v27, %v5592_v27 }
 0x2ba   :  { %v2451_v52 = vadd.f32 %v2450_v6, %v2388_v39  ;;  %v5604_v6 = vsub.f32 %v5264_v18, %v5358_v48  ;;  %v2394_v35 = vmul.f32 %v5598_v58, %v5598_v58 }
 0x2bc   :  { %v2452_v31 = vadd.f32 %v2451_v52, %v2389_v8  ;;  %v5610_v52 = vsub.f32 %v5266_v12, %v5358_v48  ;;  %v2395_v18 = vmul.f32 %v5604_v6, %v5604_v6 }
 0x2be   :  { %v2453_v29 = vadd.f32 %v2452_v31, %v2390_v7  ;;  %v5616_v31 = vsub.f32 %v5270_v54, %v5358_v48  ;;  %v2396_v12 = vmul.f32 %v5610_v52, %v5610_v52 }
 0x2c0   :  { %v2454_v39 = vadd.f32 %v2453_v29, %v2391_v38  ;;  %v5622_v29 = vsub.f32 %v5274_v56, %v5358_v48  ;;  %v2397_v54 = vmul.f32 %v5616_v31, %v5616_v31 }
 0x2c2   :  { %v2455_v8 = vadd.f32 %v2454_v39, %v2392_v11  ;;  %v5628_v39 = vsub.f32 %v5280_v17, %v5358_v48  ;;  %v2398_v56 = vmul.f32 %v5622_v29, %v5622_v29 }
 0x2c4   :  { %v2456_v7 = vadd.f32 %v2455_v8, %v2393_v61  ;;  %v5634_v8 = vsub.f32 %v5282_v53, %v5358_v48  ;;  %v2399_v17 = vmul.f32 %v5628_v39, %v5628_v39 }
 0x2c6   :  { %v2457_v38 = vadd.f32 %v2456_v7, %v2394_v35  ;;  %v5640_v7 = vsub.f32 %v5286_v5, %v5358_v48  ;;  %v2400_v53 = vmul.f32 %v5634_v8, %v5634_v8 }
 0x2c8   :  { %v2458_v11 = vadd.f32 %v2457_v38, %v2395_v18  ;;  %v5646_v38 = vsub.f32 %v5290_v63, %v5358_v48  ;;  %v2401_v5 = vmul.f32 %v5640_v7, %v5640_v7 }
 0x2ca   :  { %v2459_v61 = vadd.f32 %v2458_v11, %v2396_v12  ;;  %v5652_v11 = vsub.f32 %v5296_v36, %v5358_v48  ;;  %v2402_v63 = vmul.f32 %v5646_v38, %v5646_v38 }
 0x2cc   :  { %v2460_v35 = vadd.f32 %v2459_v61, %v2397_v54  ;;  %v5658_v61 = vsub.f32 %v5298_v44, %v5358_v48  ;;  %v2403_v36 = vmul.f32 %v5652_v11, %v5652_v11 }
 0x2ce   :  { %v2461_v18 = vadd.f32 %v2460_v35, %v2398_v56  ;;  %v5664_v35 = vsub.f32 %v5302_v20, %v5358_v48  ;;  %v2404_v44 = vmul.f32 %v5658_v61, %v5658_v61 }
 0x2d0   :  { %v2462_v12 = vadd.f32 %v2461_v18, %v2399_v17  ;;  %v5670_v18 = vsub.f32 %v5306_v34, %v5358_v48  ;;  %v2405_v20 = vmul.f32 %v5664_v35, %v5664_v35 }
 0x2d2   :  { %v2463_v54 = vadd.f32 %v2462_v12, %v2400_v53  ;;  %v5676_v12 = vsub.f32 %v5312_v33, %v5358_v48  ;;  %v2406_v34 = vmul.f32 %v5670_v18, %v5670_v18 }
 0x2d4   :  { %v2464_v56 = vadd.f32 %v2463_v54, %v2401_v5  ;;  %v5682_v54 = vsub.f32 %v5314_v19, %v5358_v48  ;;  %v2407_v33 = vmul.f32 %v5676_v12, %v5676_v12 }
 0x2d6   :  { %v2465_v17 = vadd.f32 %v2464_v56, %v2402_v63  ;;  %v5688_v56 = vsub.f32 %v5318_v0, %v5358_v48  ;;  %v2408_v19 = vmul.f32 %v5682_v54, %v5682_v54 }
 0x2d8   :  { %v2466_v53 = vadd.f32 %v2465_v17, %v2403_v36  ;;  %v5694_v17 = vsub.f32 %v5322_v45, %v5358_v48  ;;  %v2409_v0 = vmul.f32 %v5688_v56, %v5688_v56 }
 0x2da   :  { %v2467_v5 = vadd.f32 %v2466_v53, %v2404_v44  ;;  %7133 = vst [vmem:[#allocation16_spill] sm:$0xff] %v5694_v17  ;;  %v5700_v53 = vsub.f32 %v5328_v41, %v5358_v48  ;;  %v2410_v45 = vmul.f32 %v5694_v17, %v5694_v17 }
 0x2dc   :  { %v2468_v63 = vadd.f32 %v2467_v5, %v2405_v20  ;;  %7134 = vst [vmem:[#allocation17_spill] sm:$0xff] %v5700_v53  ;;  %v5706_v5 = vsub.f32 %v5330_v32, %v5358_v48  ;;  %v2411_v41 = vmul.f32 %v5700_v53, %v5700_v53 }
 0x2de   :  { %v2469_v36 = vadd.f32 %v2468_v63, %v2406_v34  ;;  %7135 = vst [vmem:[#allocation18_spill] sm:$0xff] %v5706_v5  ;;  %v5712_v63 = vsub.f32 %v5334_v21, %v5358_v48  ;;  %v2412_v32 = vmul.f32 %v5706_v5, %v5706_v5 }
 0x2e0   :  { %v2470_v44 = vadd.f32 %v2469_v36, %v2407_v33  ;;  %7136 = vst [vmem:[#allocation19_spill] sm:$0xff] %v5712_v63  ;;  %v5718_v36 = vsub.f32 %v5338_v49, %v5358_v48  ;;  %v2413_v21 = vmul.f32 %v5712_v63, %v5712_v63 }
 0x2e2   :  { %v2471_v20 = vadd.f32 %v2470_v44, %v2408_v19  ;;  %7137 = vst [vmem:[#allocation20_spill] sm:$0xff] %v5718_v36  ;;  %v5724_v44 = vsub.f32 %v5344_v13, %v5358_v48  ;;  %v2414_v49 = vmul.f32 %v5718_v36, %v5718_v36 }
 0x2e4   :  { %v2472_v34 = vadd.f32 %v2471_v20, %v2409_v0  ;;  %7138 = vst [vmem:[#allocation21_spill] sm:$0xff] %v5724_v44  ;;  %v5730_v20 = vsub.f32 %v5346_v23, %v5358_v48  ;;  %v2415_v13 = vmul.f32 %v5724_v44, %v5724_v44 }
 0x2e6   :  { %v2473_v33 = vadd.f32 %v2472_v34, %v2410_v45  ;;  %v5736_v34 = vsub.f32 %v5349_v22, %v5358_v48 }
 0x2e8   :  { %v2474_v19 = vadd.f32 %v2473_v33, %v2411_v41  ;;  %v2416_v33 = vmul.f32 %v5730_v20, %v5730_v20  ;;  %v2417_v23 = vmul.f32 %v5736_v34, %v5736_v34 }
 0x2ea   :  { %v2475_v0 = vadd.f32 %v2474_v19, %v2412_v32 }
 0x2ec   :  { %v2476_v45 = vadd.f32 %v2475_v0, %v2413_v21 }
 0x2ee   :  { %v2477_v41 = vadd.f32 %v2476_v45, %v2414_v49 }
 0x2f0   :  { %v2478_v32 = vadd.f32 %v2477_v41, %v2415_v13  ;;  %v2558_v13 = vld [vmem:[%s7008_s3] sm:$0x1] }
 0x2f2   :  { %v2479_v19 = vadd.f32 %v2478_v32, %v2416_v33  ;;  %v7139_v33 = vsub.s32 0, %v5353_v47 }
 0x2f4   :  { %v2480_v63 = vadd.f32 %v2479_v19, %v2417_v23  ;;  %v7142_v23 = vld [vmem:[#allocation5_spill] sm:$0xff]  ;;  %v7143_v19 = vld [vmem:[#allocation6_spill] sm:$0xff] }
 0x2f6   :  { %v2481_v5 = vrot.slane %v2480_v63, 4 }
 0x2f8   :  { %v2482_v36 = vadd.f32 %v2481_v5, %v2480_v63 }
 0x2fa   :  { %v2483_v21 = vrot.slane %v2482_v36, 2 }
 0x2fc   :  { %v2484_v0 = vadd.f32 %v2483_v21, %v2482_v36  ;;  %v7140_v36 = vld [vmem:[#allocation3_spill] sm:$0xff] }
 0x2fd   :  { %v7144_v21 = vld [vmem:[#allocation7_spill] sm:$0xff] }
 0x2fe   :  { %v2485_v53 = vrot.slane %v2484_v0, 1 }
 0x300   :  { %v2486_v22 = vadd.f32 %v2485_v53, %v2484_v0  ;;  %v7145_v0 = vld [vmem:[#allocation8_spill] sm:$0xff] }
 0x302   :  { %4283 = vmatmul.mubr.f32.vlgmr.msra.gmra.mxu1 %v2486_v22 }
 0x3c2   :  { %v2553_v48 = vpop.f32.mrf.mxu1 }
 0x3c3   :  { %v2557_v44 = vmul.f32 0.001953125, %v2553_v48  ;;  %v7146_v48 = vld [vmem:[#allocation9_spill] sm:$0xff] }
 0x3c4   :  { %v4284_v17 = vpop.f32.mrf.mxu1 }
 0x3c5   :  { %v2559_v49 = vadd.f32 1e-05, %v2557_v44  ;;  %v7141_v44 = vld [vmem:[#allocation4_spill] sm:$0xff] }
 0x3c7   :  { %4389 = vrsqrt.f32 %v2559_v49 }
 0x3d4   :  { %v4390_v45 = vpop.eup %4389 }
 0x3d5   :  { %v2561_v41 = vmul.f32 %v4390_v45, %v2558_v13  ;;  %v7147_v45 = vld [vmem:[#allocation10_spill] sm:$0xff] }
 0x3d7   :  { %v5749_v32 = vrot.slane %v2561_v41, %v7139_v33  ;;  %v7148_v41 = vld [vmem:[#allocation11_spill] sm:$0xff] }
 0x3d9   :  { %v5753_v5 = vmul.f32 %v5749_v32, %v5362_v4  ;;  %v5757_v17 = vmul.f32 %v5749_v32, %v5366_v1  ;;  %v5761_v53 = vmul.f32 %v5749_v32, %v5370_v26  ;;  %v5765_v63 = vmul.f32 %v5749_v32, %v5378_v37 }
 0x3da   :  { %v5769_v47 = vmul.f32 %v5749_v32, %v5382_v55  ;;  %v5773_v4 = vmul.f32 %v5749_v32, %v5388_v2  ;;  %v5777_v1 = vmul.f32 %v5749_v32, %v5394_v43  ;;  %v5781_v26 = vmul.f32 %v5749_v32, %v5400_v62 }
 0x3db   :  { %v5785_v37 = vmul.f32 %v5749_v32, %v5406_v30  ;;  %v5789_v55 = vmul.f32 %v5749_v32, %v5412_v14  ;;  %v5793_v2 = vmul.f32 %v5749_v32, %v5418_v10  ;;  %v5797_v43 = vmul.f32 %v5749_v32, %v5424_v40 }
 0x3dc   :  { %v5801_v62 = vmul.f32 %v5749_v32, %v5430_v46  ;;  %v5805_v30 = vmul.f32 %v5749_v32, %v7140_v36  ;;  %v5809_v14 = vmul.f32 %v5749_v32, %v7141_v44  ;;  %v5813_v10 = vmul.f32 %v5749_v32, %v7142_v23  ;;  %v7149_v36 = vld [vmem:[#allocation12_spill] sm:$0xff]  ;;  %v7150_v23 = vld [vmem:[#allocation13_spill] sm:$0xff] }
 0x3dd   :  { %v5817_v40 = vmul.f32 %v5749_v32, %v7143_v19  ;;  %v5821_v46 = vmul.f32 %v5749_v32, %v7144_v21  ;;  %v5825_v22 = vmul.f32 %v5749_v32, %v7145_v0  ;;  %v5829_v49 = vmul.f32 %v5749_v32, %v7146_v48  ;;  %v7151_v21 = vld [vmem:[#allocation14_spill] sm:$0xff] }
 0x3de   :  { %v5833_v13 = vmul.f32 %v5749_v32, %v7147_v45  ;;  %v5837_v33 = vmul.f32 %v5749_v32, %v7148_v41  ;;  %v5841_v44 = vmul.f32 %v5749_v32, %v7149_v36  ;;  %v5845_v19 = vmul.f32 %v5749_v32, %v7150_v23  ;;  %v7152_v45 = vld [vmem:[#allocation15_spill] sm:$0xff] }
 0x3df   :  { %v5849_v0 = vmul.f32 %v5749_v32, %v7151_v21  ;;  %v5853_v48 = vmul.f32 %v5749_v32, %v5508_v50  ;;  %v5857_v41 = vmul.f32 %v5749_v32, %v7152_v45  ;;  %v5861_v36 = vmul.f32 %v5749_v32, %v5520_v28 }
 0x3e0   :  { %v5865_v23 = vmul.f32 %v5749_v32, %v5526_v42  ;;  %v5869_v21 = vmul.f32 %v5749_v32, %v5532_v3  ;;  %v5873_v50 = vmul.f32 %v5749_v32, %v5538_v60  ;;  %v5877_v45 = vmul.f32 %v5749_v32, %v5544_v15 }
 0x3e1   :  { %v5881_v28 = vmul.f32 %v5749_v32, %v5550_v16  ;;  %v5885_v42 = vmul.f32 %v5749_v32, %v5556_v59  ;;  %v5889_v3 = vmul.f32 %v5749_v32, %v5562_v24  ;;  %v5893_v60 = vmul.f32 %v5749_v32, %v5568_v57 }
 0x3e2   :  { %v5897_v15 = vmul.f32 %v5749_v32, %v5574_v9  ;;  %v5901_v16 = vmul.f32 %v5749_v32, %v5580_v25  ;;  %v5905_v59 = vmul.f32 %v5749_v32, %v5586_v51  ;;  %v5909_v24 = vmul.f32 %v5749_v32, %v5592_v27 }
 0x3e3   :  { %v5913_v57 = vmul.f32 %v5749_v32, %v5598_v58  ;;  %v5917_v9 = vmul.f32 %v5749_v32, %v5604_v6  ;;  %v5921_v25 = vmul.f32 %v5749_v32, %v5610_v52  ;;  %v5925_v51 = vmul.f32 %v5749_v32, %v5616_v31 }
 0x3e4   :  { %v5929_v27 = vmul.f32 %v5749_v32, %v5622_v29  ;;  %v5933_v58 = vmul.f32 %v5749_v32, %v5628_v39  ;;  %v5937_v6 = vmul.f32 %v5749_v32, %v5634_v8  ;;  %v5941_v52 = vmul.f32 %v5749_v32, %v5640_v7 }
 0x3e5   :  { %v5945_v31 = vmul.f32 %v5749_v32, %v5646_v38  ;;  %v5949_v29 = vmul.f32 %v5749_v32, %v5652_v11  ;;  %v5953_v39 = vmul.f32 %v5749_v32, %v5658_v61  ;;  %v5957_v8 = vmul.f32 %v5749_v32, %v5664_v35  ;;  %v5974_v61 = vld [vmem:[%s7009_s4] ss:$0 sm:$0xff] }
 0x3e6   :  { %v5961_v7 = vmul.f32 %v5749_v32, %v5670_v18  ;;  %v5965_v38 = vmul.f32 %v5749_v32, %v5676_v12  ;;  %v5969_v11 = vmul.f32 %v5749_v32, %v5682_v54  ;;  %v5978_v35 = vmul.f32 %v5749_v32, %v5688_v56 }
 0x3e7   :  { %7153 = vst [vmem:[#allocation3_spill] sm:$0xff] %v5949_v29  ;;  %7154 = vst [vmem:[#allocation4_spill] sm:$0xff] %v5953_v39  ;;  %v7164_v29 = vld [vmem:[#allocation20_spill] sm:$0xff] }
 0x3e8   :  { %7155 = vst [vmem:[#allocation5_spill] sm:$0xff] %v5957_v8  ;;  %7156 = vst [vmem:[#allocation6_spill] sm:$0xff] %v5961_v7  ;;  %v7160_v8 = vld [vmem:[#allocation16_spill] sm:$0xff]  ;;  %v7161_v7 = vld [vmem:[#allocation17_spill] sm:$0xff]  ;;  %v5998_v56 = vmul.f32 %v5749_v32, %v7164_v29  ;;  %v6018_v29 = vadd.f32 %v5974_v61, %v5757_v17  ;;  %v6042_v17 = vadd.f32 %v5974_v61, %v5781_v26 }
 0x3e9   :  { %7157 = vst [vmem:[#allocation7_spill] sm:$0xff] %v5965_v38  ;;  %7158 = vst [vmem:[#allocation8_spill] sm:$0xff] %v5969_v11  ;;  %v5982_v18 = vmul.f32 %v5749_v32, %v7160_v8  ;;  %v5986_v12 = vmul.f32 %v5749_v32, %v7161_v7  ;;  %v7162_v38 = vld [vmem:[#allocation18_spill] sm:$0xff]  ;;  %v7163_v11 = vld [vmem:[#allocation19_spill] sm:$0xff]  ;;  %v6006_v7 = vmul.f32 %v5749_v32, %v5730_v20 }
 0x3ea   :  { %7159 = vst [vmem:[#allocation9_spill] sm:$0xff] %v5978_v35  ;;  %v5990_v54 = vmul.f32 %v5749_v32, %v7162_v38  ;;  %v5994_v39 = vmul.f32 %v5749_v32, %v7163_v11  ;;  %v7165_v35 = vld [vmem:[#allocation21_spill] sm:$0xff]  ;;  %v6010_v38 = vmul.f32 %v5749_v32, %v5736_v34  ;;  %v6014_v11 = vadd.f32 %v5974_v61, %v5753_v5 }
 0x3eb   :  { %v6002_v8 = vmul.f32 %v5749_v32, %v7165_v35  ;;  %v6022_v35 = vadd.f32 %v5974_v61, %v5761_v53  ;;  %v6026_v20 = vadd.f32 %v5974_v61, %v5765_v63  ;;  %v6030_v34 = vadd.f32 %v5974_v61, %v5769_v47 }
 0x3ec   :  { %v6034_v32 = vadd.f32 %v5974_v61, %v5773_v4  ;;  %v6038_v5 = vadd.f32 %v5974_v61, %v5777_v1  ;;  %v6046_v53 = vadd.f32 %v5974_v61, %v5785_v37  ;;  %v6050_v63 = vadd.f32 %v5974_v61, %v5789_v55 }
 0x3ed   :  { %v6054_v47 = vadd.f32 %v5974_v61, %v5793_v2  ;;  %v6058_v4 = vadd.f32 %v5974_v61, %v5797_v43  ;;  %v6062_v1 = vadd.f32 %v5974_v61, %v5801_v62  ;;  %v6066_v26 = vadd.f32 %v5974_v61, %v5805_v30 }
 0x3ee   :  { %v6070_v37 = vadd.f32 %v5974_v61, %v5809_v14  ;;  %v6074_v55 = vadd.f32 %v5974_v61, %v5813_v10  ;;  %v6078_v2 = vadd.f32 %v5974_v61, %v5817_v40  ;;  %v6082_v43 = vadd.f32 %v5974_v61, %v5821_v46 }
 0x3ef   :  { %v6086_v62 = vadd.f32 %v5974_v61, %v5825_v22  ;;  %v6090_v30 = vadd.f32 %v5974_v61, %v5829_v49  ;;  %v6094_v14 = vadd.f32 %v5974_v61, %v5833_v13  ;;  %v6098_v10 = vadd.f32 %v5974_v61, %v5837_v33 }
 0x3f0   :  { %v6102_v40 = vadd.f32 %v5974_v61, %v5841_v44  ;;  %v6106_v46 = vadd.f32 %v5974_v61, %v5845_v19  ;;  %v6110_v22 = vadd.f32 %v5974_v61, %v5849_v0  ;;  %v6114_v49 = vadd.f32 %v5974_v61, %v5853_v48 }
 0x3f1   :  { %v6118_v13 = vadd.f32 %v5974_v61, %v5857_v41  ;;  %v6122_v33 = vadd.f32 %v5974_v61, %v5861_v36  ;;  %v6126_v44 = vadd.f32 %v5974_v61, %v5865_v23  ;;  %v6130_v19 = vadd.f32 %v5974_v61, %v5869_v21 }
 0x3f2   :  { %v6134_v0 = vadd.f32 %v5974_v61, %v5873_v50  ;;  %v6138_v48 = vadd.f32 %v5974_v61, %v5877_v45  ;;  %v6142_v41 = vadd.f32 %v5974_v61, %v5881_v28  ;;  %v6146_v36 = vadd.f32 %v5974_v61, %v5885_v42 }
 0x3f3   :  { %v6150_v23 = vadd.f32 %v5974_v61, %v5889_v3  ;;  %v6154_v21 = vadd.f32 %v5974_v61, %v5893_v60  ;;  %v6158_v50 = vadd.f32 %v5974_v61, %v5897_v15  ;;  %v6162_v45 = vadd.f32 %v5974_v61, %v5901_v16 }
 0x3f4   :  { %v6166_v28 = vadd.f32 %v5974_v61, %v5905_v59  ;;  %v6170_v42 = vadd.f32 %v5974_v61, %v5909_v24  ;;  %v6174_v3 = vadd.f32 %v5974_v61, %v5913_v57  ;;  %v6178_v60 = vadd.f32 %v5974_v61, %v5917_v9 }
 0x3f5   :  { %v6182_v15 = vadd.f32 %v5974_v61, %v5921_v25  ;;  %v6186_v16 = vadd.f32 %v5974_v61, %v5925_v51  ;;  %v6190_v59 = vadd.f32 %v5974_v61, %v5929_v27  ;;  %v6194_v24 = vadd.f32 %v5974_v61, %v5933_v58  ;;  %v7171_v51 = vld [vmem:[#allocation3_spill] sm:$0xff] }
 0x3f6   :  { %v6198_v57 = vadd.f32 %v5974_v61, %v5937_v6  ;;  %v6202_v9 = vadd.f32 %v5974_v61, %v5941_v52  ;;  %v6206_v25 = vadd.f32 %v5974_v61, %v5945_v31  ;;  %v6210_v27 = vadd.f32 %v5974_v61, %v7171_v51 }
 0x3f7   :  { %7166 = vst [vmem:[#allocation10_spill] sm:$0xff] %v6190_v59  ;;  %7167 = vst [vmem:[#allocation11_spill] sm:$0xff] %v6194_v24  ;;  %v7173_v59 = vld [vmem:[#allocation4_spill] sm:$0xff]  ;;  %v7175_v24 = vld [vmem:[#allocation5_spill] sm:$0xff]  ;;  %vm2703_vm2 = vcmp.gt.f32.partialorder %v6014_v11, 0.0  ;;  %vm2704_vm3 = vcmp.gt.f32.partialorder %v6018_v29, 0.0 }
 0x3f8   :  { %7168 = vst [vmem:[#allocation12_spill] sm:$0xff] %v6198_v57  ;;  %7169 = vst [vmem:[#allocation13_spill] sm:$0xff] %v6202_v9  ;;  %v6214_v58 = vadd.f32 %v5974_v61, %v7173_v59  ;;  %v6218_v6 = vadd.f32 %v5974_v61, %v7175_v24  ;;  %v7177_v57 = vld [vmem:[#allocation6_spill] sm:$0xff]  ;;  %v7179_v9 = vld [vmem:[#allocation7_spill] sm:$0xff]  ;;  %v6238_v24 = vadd.f32 %v5974_v61, %v5982_v18  ;;  %vm2705_vm4 = vcmp.gt.f32.partialorder %v6022_v35, 0.0 }
 0x3f9   :  { %7170 = vst [vmem:[#allocation14_spill] sm:$0xff] %v6206_v25  ;;  %7172 = vst [vmem:[#allocation15_spill] sm:$0xff] %v6210_v27  ;;  %v6222_v52 = vadd.f32 %v5974_v61, %v7177_v57  ;;  %v6226_v31 = vadd.f32 %v5974_v61, %v7179_v9  ;;  %v7181_v25 = vld [vmem:[#allocation8_spill] sm:$0xff]  ;;  %v7183_v27 = vld [vmem:[#allocation9_spill] sm:$0xff]  ;;  %v6242_v57 = vadd.f32 %v5974_v61, %v5986_v12  ;;  %vm2706_vm5 = vcmp.gt.f32.partialorder %v6026_v20, 0.0 }
 0x3fa   :  { %7174 = vst [vmem:[#allocation16_spill] sm:$0xff] %v6214_v58  ;;  %7176 = vst [vmem:[#allocation17_spill] sm:$0xff] %v6218_v6  ;;  %v6230_v51 = vadd.f32 %v5974_v61, %v7181_v25  ;;  %v6234_v59 = vadd.f32 %v5974_v61, %v7183_v27  ;;  %v6246_v9 = vadd.f32 %v5974_v61, %v5990_v54  ;;  %vm2707_vm6 = vcmp.gt.f32.partialorder %v6030_v34, 0.0 }
 0x3fb   :  { %7178 = vst [vmem:[#allocation18_spill] sm:$0xff] %v6222_v52  ;;  %7180 = vst [vmem:[#allocation19_spill] sm:$0xff] %v6226_v31  ;;  %v6250_v25 = vadd.f32 %v5974_v61, %v5994_v39  ;;  %v6254_v27 = vadd.f32 %v5974_v61, %v5998_v56  ;;  %v6258_v18 = vadd.f32 %v5974_v61, %v6002_v8  ;;  %vm2708_vm7 = vcmp.gt.f32.partialorder %v6034_v32, 0.0 }
 0x3fc   :  { %7182 = vst [vmem:[#allocation20_spill] sm:$0xff] %v6230_v51  ;;  %7184 = vst [vmem:[#allocation21_spill] sm:$0xff] %v6234_v59  ;;  %vm2709_vm8 = vcmp.gt.f32.partialorder %v6038_v5, 0.0  ;;  %vm2710_vm9 = vcmp.gt.f32.partialorder %v6042_v17, 0.0  ;;  %vm2711_vm10 = vcmp.gt.f32.partialorder %v6046_v53, 0.0  ;;  %v6271_v39 = vadd.f32 %v5974_v61, %v6006_v7 }
 0x3fd   :  { %7185 = vst [vmem:[#allocation3_spill] sm:$0xff] %v6238_v24  ;;  %7186 = vst [vmem:[#allocation4_spill] sm:$0xff] %v6242_v57  ;;  %vm2712_vm11 = vcmp.gt.f32.partialorder %v6050_v63, 0.0  ;;  %v2767_v12 = vmul.f32 0.2, %v6014_v11  ;;  %v6279_v8 = vadd.f32 %v5974_v61, %v6010_v38  ;;  %vm2713_vm12 = vcmp.gt.f32.partialorder %v6054_v47, 0.0 }
 0x3fe   :  { %7187 = vst [vmem:[#allocation5_spill] sm:$0xff] %v6246_v9  ;;  %7188 = vst [vmem:[#allocation6_spill] sm:$0xff] %v6250_v25  ;;  %v2768_v54 = vmul.f32 0.2, %v6018_v29  ;;  %v2769_v56 = vmul.f32 0.2, %v6022_v35 }
 0x3ff   :  { %7189 = vst [vmem:[#allocation7_spill] sm:$0xff] %v6254_v27  ;;  %7190 = vst [vmem:[#allocation8_spill] sm:$0xff] %v6258_v18  ;;  %v2770_v18 = vmul.f32 0.2, %v6026_v20  ;;  %v2771_v27 = vmul.f32 0.2, %v6030_v34  ;;  %v6292_v61 = vsel %vm2703_vm2, %v6014_v11, %v2767_v12 }
 0x400   :  { %7191 = vst [vmem:[#allocation9_spill] sm:$0xff] %v6271_v39  ;;  %7192 = vst [vmem:[#allocation22_spill] sm:$0xff] %v6279_v8  ;;  %v2772_v7 = vmul.f32 0.2, %v6034_v32  ;;  %vm2714_vm13 = vcmp.gt.f32.partialorder %v6058_v4, 0.0  ;;  %vm2715_vm14 = vcmp.gt.f32.partialorder %v6062_v1, 0.0  ;;  %v6303_v24 = vsel %vm2704_vm3, %v6018_v29, %v2768_v54 }
 0x401   :  { %v2773_v39 = vmul.f32 0.2, %v6038_v5  ;;  %v2774_v25 = vmul.f32 0.2, %v6042_v17  ;;  %v2775_v9 = vmul.f32 0.2, %v6046_v53  ;;  %v6333_v51 = vsel %vm2706_vm5, %v6026_v20, %v2770_v18 }
 0x402   :  { %7193 = vst [vmem:[#allocation23_spill] sm:$0xff] %v6292_v61  ;;  %v2776_v38 = vmul.f32 0.2, %v6050_v63  ;;  %v2777_v8 = vmul.f32 0.2, %v6054_v47  ;;  %7194 = vst [vmem:[#allocation24_spill] sm:$0xff] %v6303_v24  ;;  %v6318_v61 = vsel %vm2705_vm4, %v6022_v35, %v2769_v56 }
 0x403   :  { %v6298_v57 = vmul.f32 0.2, %v6058_v4  ;;  %vm2716_vm15 = vcmp.gt.f32.partialorder %v6066_v26, 0.0  ;;  %v6307_v59 = vmul.f32 0.2, %v6062_v1  ;;  %7195 = vst [vmem:[#allocation25_spill] sm:$0xff] %v6318_v61 }
 0x404   :  { %v6310_v11 = vmul.f32 0.2, %v6066_v26  ;;  %v6313_v12 = vmul.f32 0.2, %v6070_v37  ;;  %vm2717_vm0 = vcmp.gt.f32.partialorder %v6070_v37, 0.0  ;;  %7197 = vst [vmem:[#allocation27_spill] sm:$0xff] %v6333_v51 }
 0x405   :  { %v6322_v29 = vmul.f32 0.2, %v6074_v55  ;;  %v6325_v54 = vmul.f32 0.2, %v6078_v2  ;;  %v6328_v24 = vmul.f32 0.2, %v6082_v43 }
 0x406   :  { %vm2718_vm1 = vcmp.gt.f32.partialorder %v6074_v55, 0.0  ;;  %v6337_v35 = vmul.f32 0.2, %v6086_v62  ;;  %v6340_v56 = vmul.f32 0.2, %v6090_v30  ;;  %vm2719_vm2 = vcmp.gt.f32.partialorder %v6078_v2, 0.0 }
 0x407   :  { %7196 = vst [vmem:[#allocation26_spill] sm:$0xff] %v6328_v24  ;;  %v6343_v61 = vmul.f32 0.2, %v6094_v14  ;;  %v6348_v24 = vsel %vm2707_vm6, %v6030_v34, %v2771_v27  ;;  %v6352_v20 = vmul.f32 0.2, %v6098_v10  ;;  %vm2720_vm3 = vcmp.gt.f32.partialorder %v6082_v43, 0.0 }
 0x408   :  { %7199 = vst [vmem:[#allocation29_spill] sm:$0xff] %v6348_v24  ;;  %v6355_v18 = vmul.f32 0.2, %v6102_v40  ;;  %v6358_v51 = vmul.f32 0.2, %v6106_v46  ;;  %vm2721_vm4 = vcmp.gt.f32.partialorder %v6086_v62, 0.0 }
 0x409   :  { %7198 = vst [vmem:[#allocation28_spill] sm:$0xff] %v6343_v61  ;;  %v6363_v61 = vsel %vm2708_vm7, %v6034_v32, %v2772_v7  ;;  %v6367_v34 = vmul.f32 0.2, %v6110_v22  ;;  %v6370_v27 = vmul.f32 0.2, %v6114_v49  ;;  %vm2722_vm5 = vcmp.gt.f32.partialorder %v6090_v30, 0.0 }
 0x40a   :  { %7200 = vst [vmem:[#allocation30_spill] sm:$0xff] %v6358_v51  ;;  %7201 = vst [vmem:[#allocation31_spill] sm:$0xff] %v6363_v61  ;;  %v6373_v24 = vmul.f32 0.2, %v6118_v13  ;;  %v6378_v51 = vsel %vm2709_vm8, %v6038_v5, %v2773_v39  ;;  %v6382_v32 = vmul.f32 0.2, %v6122_v33 }
 0x40b   :  { %7203 = vst [vmem:[#allocation33_spill] sm:$0xff] %v6378_v51  ;;  %v6385_v7 = vmul.f32 0.2, %v6126_v44  ;;  %v6388_v61 = vmul.f32 0.2, %v6130_v19  ;;  %vm2725_vm8 = vcmp.gt.f32.partialorder %v6102_v40, 0.0 }
 0x40c   :  { %7202 = vst [vmem:[#allocation32_spill] sm:$0xff] %v6373_v24  ;;  %v6393_v24 = vsel %vm2710_vm9, %v6042_v17, %v2774_v25  ;;  %v6399_v5 = vmul.f32 0.2, %v6134_v0  ;;  %v6402_v39 = vmul.f32 0.2, %v6138_v48  ;;  %v6410_v17 = vsel %vm2711_vm10, %v6046_v53, %v2775_v9 }
 0x40d   :  { %7204 = vst [vmem:[#allocation34_spill] sm:$0xff] %v6393_v24  ;;  %v6405_v51 = vmul.f32 0.2, %v6142_v41  ;;  %7206 = vst [vmem:[#allocation36_spill] sm:$0xff] %v6410_v17  ;;  %v6417_v25 = vmul.f32 0.2, %v6146_v36  ;;  %v6428_v53 = vsel %vm2712_vm11, %v6050_v63, %v2776_v38  ;;  %v6446_v63 = vsel %vm2713_vm12, %v6054_v47, %v2777_v8 }
 0x40e   :  { %v6420_v24 = vmul.f32 0.2, %v6150_v23  ;;  %7208 = vst [vmem:[#allocation38_spill] sm:$0xff] %v6428_v53  ;;  %vm2729_vm10 = vcmp.gt.f32.partialorder %v6118_v13, 0.0  ;;  %v6435_v9 = vmul.f32 0.2, %v6158_v50  ;;  %v6465_v47 = vsel %vm2714_vm13, %v6058_v4, %v6298_v57 }
 0x40f   :  { %7205 = vst [vmem:[#allocation35_spill] sm:$0xff] %v6405_v51  ;;  %v6423_v51 = vmul.f32 0.2, %v6154_v21  ;;  %v6438_v17 = vmul.f32 0.2, %v6162_v45  ;;  %7210 = vst [vmem:[#allocation40_spill] sm:$0xff] %v6446_v63  ;;  %v6484_v4 = vsel %vm2715_vm14, %v6062_v1, %v6307_v59  ;;  %v6503_v1 = vsel %vm2716_vm15, %v6066_v26, %v6310_v11 }
 0x410   :  { %vm2733_vm11 = vcmp.gt.f32.partialorder %v6134_v0, 0.0  ;;  %v6453_v38 = vmul.f32 0.2, %v6170_v42  ;;  %v6456_v53 = vmul.f32 0.2, %v6174_v3  ;;  %7214 = vst [vmem:[#allocation44_spill] sm:$0xff] %v6465_v47  ;;  %v6522_v26 = vsel %vm2717_vm0, %v6070_v37, %v6313_v12 }
 0x411   :  { %7207 = vst [vmem:[#allocation37_spill] sm:$0xff] %v6423_v51  ;;  %v6441_v51 = vmul.f32 0.2, %v6166_v28  ;;  %vm2737_vm12 = vcmp.gt.f32.partialorder %v6150_v23, 0.0  ;;  %v6472_v8 = vmul.f32 0.2, %v6182_v15  ;;  %v6541_v37 = vsel %vm2718_vm1, %v6074_v55, %v6322_v29 }
 0x412   :  { %7211 = vst [vmem:[#allocation41_spill] sm:$0xff] %v6453_v38  ;;  %7212 = vst [vmem:[#allocation42_spill] sm:$0xff] %v6456_v53  ;;  %v6475_v63 = vmul.f32 0.2, %v6186_v16  ;;  %vm2741_vm13 = vcmp.gt.f32.partialorder %v6166_v28, 0.0  ;;  %v7220_v57 = vld [vmem:[#allocation11_spill] sm:$0xff]  ;;  %v6554_v55 = vsel %vm2719_vm2, %v6078_v2, %v6325_v54 }
 0x413   :  { %7209 = vst [vmem:[#allocation39_spill] sm:$0xff] %v6441_v51  ;;  %v6459_v51 = vmul.f32 0.2, %v6178_v60  ;;  %7215 = vst [vmem:[#allocation45_spill] sm:$0xff] %v6472_v8  ;;  %v6491_v47 = vmul.f32 0.2, %v7220_v57 }
 0x414   :  { %7216 = vst [vmem:[#allocation46_spill] sm:$0xff] %v6475_v63  ;;  %7219 = vst [vmem:[#allocation47_spill] sm:$0xff] %v6484_v4  ;;  %v7222_v63 = vld [vmem:[#allocation12_spill] sm:$0xff]  ;;  %vm2745_vm14 = vcmp.gt.f32.partialorder %v6182_v15, 0.0  ;;  %v7227_v59 = vld [vmem:[#allocation14_spill] sm:$0xff]  ;;  %vm2753_vm0 = vcmp.gt.f32.partialorder %v6214_v58, 0.0 }
 0x415   :  { %7213 = vst [vmem:[#allocation43_spill] sm:$0xff] %v6459_v51  ;;  %v7217_v51 = vld [vmem:[#allocation10_spill] sm:$0xff]  ;;  %7221 = vst [vmem:[#allocation11_spill] sm:$0xff] %v6491_v47  ;;  %v6494_v8 = vmul.f32 0.2, %v7222_v63  ;;  %vm2749_vm15 = vcmp.gt.f32.partialorder %v7222_v63, 0.0 }
 0x416   :  { %v6478_v53 = vmul.f32 0.2, %v7217_v51  ;;  %7226 = vst [vmem:[#allocation48_spill] sm:$0xff] %v6503_v1  ;;  %v6510_v4 = vmul.f32 0.2, %v7227_v59  ;;  %7231 = vst [vmem:[#allocation50_spill] sm:$0xff] %v6522_v26 }
 0x417   :  { %7223 = vst [vmem:[#allocation12_spill] sm:$0xff] %v6494_v8  ;;  %v7228_v8 = vld [vmem:[#allocation15_spill] sm:$0xff]  ;;  %v6529_v11 = vmul.f32 0.2, %v6218_v6  ;;  %v6532_v1 = vmul.f32 0.2, %v6222_v52 }
 0x418   :  { %7218 = vst [vmem:[#allocation10_spill] sm:$0xff] %v6478_v53  ;;  %v7224_v53 = vld [vmem:[#allocation13_spill] sm:$0xff]  ;;  %v6513_v47 = vmul.f32 0.2, %v7228_v8  ;;  %7235 = vst [vmem:[#allocation54_spill] sm:$0xff] %v6541_v37  ;;  %v7236_v12 = vld [vmem:[#allocation20_spill] sm:$0xff] }
 0x419   :  { %v6497_v38 = vmul.f32 0.2, %v7224_v53  ;;  %7232 = vst [vmem:[#allocation51_spill] sm:$0xff] %v6529_v11  ;;  %7233 = vst [vmem:[#allocation52_spill] sm:$0xff] %v6532_v1  ;;  %v2821_v26 = vmul.f32 0.2, %v7236_v12 }
 0x41a   :  { %7229 = vst [vmem:[#allocation14_spill] sm:$0xff] %v6513_v47  ;;  %v7237_v1 = vld [vmem:[#allocation21_spill] sm:$0xff]  ;;  %v7238_v8 = vld [vmem:[#allocation3_spill] sm:$0xff]  ;;  %7239 = vst [vmem:[#allocation55_spill] sm:$0xff] %v6554_v55  ;;  %vm2757_vm1 = vcmp.gt.f32.partialorder %v7236_v12, 0.0  ;;  %vm7250_vm9 = vcmp.gt.f32.partialorder %v6094_v14, 0.0 }
 0x41b   :  { %7225 = vst [vmem:[#allocation13_spill] sm:$0xff] %v6497_v38  ;;  %v6516_v38 = vmul.f32 0.2, %v6214_v58  ;;  %v2822_v11 = vmul.f32 0.2, %v7237_v1  ;;  %v7240_v29 = vld [vmem:[#allocation4_spill] sm:$0xff] }
 0x41c   :  { %v2824_v37 = vmul.f32 0.2, %v7240_v29  ;;  %v7242_v6 = vld [vmem:[#allocation6_spill] sm:$0xff]  ;;  %v7245_v54 = vld [vmem:[#allocation7_spill] sm:$0xff]  ;;  %v7246_v55 = vld [vmem:[#allocation8_spill] sm:$0xff] }
 0x41d   :  { %7230 = vst [vmem:[#allocation49_spill] sm:$0xff] %v6516_v38  ;;  %v6535_v38 = vmul.f32 0.2, %v6226_v31  ;;  %v7241_v31 = vld [vmem:[#allocation5_spill] sm:$0xff]  ;;  %v2826_v58 = vmul.f32 0.2, %v7242_v6 }
 0x41e   :  { %v2825_v52 = vmul.f32 0.2, %v7241_v31  ;;  %v7243_v47 = vld [vmem:[#allocation26_spill] sm:$0xff]  ;;  %vm2761_vm2 = vcmp.gt.f32.partialorder %v7241_v31, 0.0  ;;  %vm2763_vm6 = vcmp.gt.f32.partialorder %v7245_v54, 0.0  ;;  %v7247_v1 = vld [vmem:[#allocation9_spill] sm:$0xff] }
 0x41f   :  { %7234 = vst [vmem:[#allocation53_spill] sm:$0xff] %v6535_v38  ;;  %v2823_v38 = vmul.f32 0.2, %v7238_v8  ;;  %v6567_v2 = vsel %vm2720_vm3, %v6082_v43, %v7243_v47  ;;  %v2827_v29 = vmul.f32 0.2, %v7245_v54  ;;  %v6580_v43 = vsel %vm2721_vm4, %v6086_v62, %v6337_v35  ;;  %v7248_v47 = vld [vmem:[#allocation22_spill] sm:$0xff] }
 0x420   :  { %7244 = vst [vmem:[#allocation5_spill] sm:$0xff] %v6567_v2  ;;  %v2828_v8 = vmul.f32 0.2, %v7246_v55  ;;  %v2829_v12 = vmul.f32 0.2, %v7247_v1  ;;  %vm2765_vm3 = vcmp.gt.f32.partialorder %v7247_v1, 0.0  ;;  %v6589_v54 = vsel %vm2722_vm5, %v6090_v30, %v6340_v56 }
 0x421   :  { %vm2766_vm7 = vcmp.gt.f32.partialorder %v7248_v47, 0.0  ;;  %v2830_v2 = vmul.f32 0.2, %v7248_v47  ;;  %v7249_v55 = vld [vmem:[#allocation28_spill] sm:$0xff]  ;;  %vm7251_vm4 = vcmp.gt.f32.partialorder %v6098_v10, 0.0  ;;  %v6607_v35 = vsel %vm2725_vm8, %v6102_v40, %v6355_v18  ;;  %v7252_v30 = vld [vmem:[#allocation30_spill] sm:$0xff] }
 0x422   :  { %v6595_v6 = vsel %vm7250_vm9, %v6094_v14, %v7249_v55  ;;  %v6601_v62 = vsel %vm7251_vm4, %v6098_v10, %v6352_v20  ;;  %vm7253_vm5 = vcmp.gt.f32.partialorder %v6106_v46, 0.0  ;;  %vm7254_vm9 = vcmp.gt.f32.partialorder %v6110_v22, 0.0  ;;  %v7256_v40 = vld [vmem:[#allocation32_spill] sm:$0xff]  ;;  %v7287_v55 = vld [vmem:[#allocation15_spill] sm:$0xff] }
 0x423   :  { %v6613_v56 = vsel %vm7253_vm5, %v6106_v46, %v7252_v30  ;;  %v6619_v14 = vsel %vm7254_vm9, %v6110_v22, %v6367_v34  ;;  %vm7255_vm4 = vcmp.gt.f32.partialorder %v6114_v49, 0.0  ;;  %v6631_v20 = vsel %vm2729_vm10, %v6118_v13, %v7256_v40  ;;  %v7290_v40 = vld [vmem:[#allocation16_spill] sm:$0xff] }
 0x424   :  { %v6625_v10 = vsel %vm7255_vm4, %v6114_v49, %v6370_v27  ;;  %vm7257_vm8 = vcmp.gt.f32.partialorder %v6122_v33, 0.0  ;;  %vm7258_vm5 = vcmp.gt.f32.partialorder %v6126_v44, 0.0  ;;  %vm7259_vm9 = vcmp.gt.f32.partialorder %v6130_v19, 0.0 }
 0x425   :  { %v6637_v46 = vsel %vm7257_vm8, %v6122_v33, %v6382_v32  ;;  %v6643_v22 = vsel %vm7258_vm5, %v6126_v44, %v6385_v7  ;;  %v6649_v49 = vsel %vm7259_vm9, %v6130_v19, %v6388_v61  ;;  %v6655_v13 = vsel %vm2733_vm11, %v6134_v0, %v6399_v5  ;;  %v7261_v44 = vld [vmem:[#allocation35_spill] sm:$0xff] }
 0x426   :  { %vm7260_vm10 = vcmp.gt.f32.partialorder %v6138_v48, 0.0  ;;  %vm7262_vm4 = vcmp.gt.f32.partialorder %v6142_v41, 0.0  ;;  %vm7263_vm8 = vcmp.gt.f32.partialorder %v6146_v36, 0.0  ;;  %v6679_v0 = vsel %vm2737_vm12, %v6150_v23, %v6420_v24  ;;  %v7268_v23 = vld [vmem:[#allocation39_spill] sm:$0xff] }
 0x427   :  { %v6661_v33 = vsel %vm7260_vm10, %v6138_v48, %v6402_v39  ;;  %v6667_v18 = vsel %vm7262_vm4, %v6142_v41, %v7261_v44  ;;  %v6673_v19 = vsel %vm7263_vm8, %v6146_v36, %v6417_v25  ;;  %v7264_v48 = vld [vmem:[#allocation37_spill] sm:$0xff]  ;;  %vm7265_vm11 = vcmp.gt.f32.partialorder %v6154_v21, 0.0 }
 0x428   :  { %v6685_v61 = vsel %vm7265_vm11, %v6154_v21, %v7264_v48  ;;  %vm7266_vm5 = vcmp.gt.f32.partialorder %v6158_v50, 0.0  ;;  %vm7267_vm9 = vcmp.gt.f32.partialorder %v6162_v45, 0.0  ;;  %v6703_v24 = vsel %vm2741_vm13, %v6166_v28, %v7268_v23  ;;  %v7269_v21 = vld [vmem:[#allocation41_spill] sm:$0xff] }
 0x429   :  { %v6691_v41 = vsel %vm7266_vm5, %v6158_v50, %v6435_v9  ;;  %v6697_v36 = vsel %vm7267_vm9, %v6162_v45, %v6438_v17  ;;  %vm7270_vm12 = vcmp.gt.f32.partialorder %v6170_v42, 0.0  ;;  %v7271_v50 = vld [vmem:[#allocation42_spill] sm:$0xff]  ;;  %vm7272_vm10 = vcmp.gt.f32.partialorder %v6174_v3, 0.0  ;;  %v7273_v45 = vld [vmem:[#allocation43_spill] sm:$0xff]  ;;  %v7275_v28 = vld [vmem:[#allocation45_spill] sm:$0xff] }
 0x42a   :  { %v6709_v34 = vsel %vm7270_vm12, %v6170_v42, %v7269_v21  ;;  %v6715_v27 = vsel %vm7272_vm10, %v6174_v3, %v7271_v50  ;;  %vm7274_vm4 = vcmp.gt.f32.partialorder %v6178_v60, 0.0  ;;  %v6727_v7 = vsel %vm2745_vm14, %v6182_v15, %v7275_v28  ;;  %v7276_v42 = vld [vmem:[#allocation46_spill] sm:$0xff]  ;;  %v7282_v15 = vld [vmem:[#allocation12_spill] sm:$0xff]  ;;  %v7292_v48 = vld [vmem:[#allocation17_spill] sm:$0xff] }
 0x42b   :  { %v6721_v32 = vsel %vm7274_vm4, %v6178_v60, %v7273_v45  ;;  %vm7277_vm13 = vcmp.gt.f32.partialorder %v6186_v16, 0.0  ;;  %v7278_v3 = vld [vmem:[#allocation10_spill] sm:$0xff]  ;;  %vm7279_vm8 = vcmp.gt.f32.partialorder %v7217_v51, 0.0  ;;  %v7280_v60 = vld [vmem:[#allocation11_spill] sm:$0xff]  ;;  %vm7281_vm11 = vcmp.gt.f32.partialorder %v7220_v57, 0.0  ;;  %v7297_v50 = vld [vmem:[#allocation53_spill] sm:$0xff] }
 0x42c   :  { %v6733_v5 = vsel %vm7277_vm13, %v6186_v16, %v7276_v42  ;;  %v6739_v39 = vsel %vm7279_vm8, %v7217_v51, %v7278_v3  ;;  %v6745_v17 = vsel %vm7281_vm11, %v7220_v57, %v7280_v60  ;;  %v6751_v25 = vsel %vm2749_vm15, %v7222_v63, %v7282_v15  ;;  %v7283_v16 = vld [vmem:[#allocation13_spill] sm:$0xff]  ;;  %v7286_v57 = vld [vmem:[#allocation14_spill] sm:$0xff]  ;;  %v7298_v45 = vld [vmem:[#allocation19_spill] sm:$0xff] }
 0x42d   :  { %vm7284_vm14 = vcmp.gt.f32.partialorder %v7224_v53, 0.0  ;;  %vm7285_vm5 = vcmp.gt.f32.partialorder %v7227_v59, 0.0  ;;  %vm7288_vm9 = vcmp.gt.f32.partialorder %v7287_v55, 0.0  ;;  %v7289_v63 = vld [vmem:[#allocation49_spill] sm:$0xff]  ;;  %vm7293_vm15 = vcmp.gt.f32.partialorder %v7292_v48, 0.0  ;;  %v7300_v42 = vld [vmem:[#allocation20_spill] sm:$0xff] }
 0x42e   :  { %v6757_v9 = vsel %vm7284_vm14, %v7224_v53, %v7283_v16  ;;  %v6763_v51 = vsel %vm7285_vm5, %v7227_v59, %v6510_v4  ;;  %v6769_v30 = vsel %vm7288_vm9, %v7287_v55, %v7286_v57  ;;  %v6775_v44 = vsel %vm2753_vm0, %v7290_v40, %v7289_v63  ;;  %v7291_v53 = vld [vmem:[#allocation51_spill] sm:$0xff]  ;;  %v7294_v4 = vld [vmem:[#allocation52_spill] sm:$0xff]  ;;  %v7295_v59 = vld [vmem:[#allocation18_spill] sm:$0xff] }
 0x42f   :  { %v6781_v23 = vsel %vm7293_vm15, %v7292_v48, %v7291_v53  ;;  %vm7296_vm12 = vcmp.gt.f32.partialorder %v7295_v59, 0.0  ;;  %vm7299_vm10 = vcmp.gt.f32.partialorder %v7298_v45, 0.0  ;;  %v6798_v3 = vsel %vm2757_vm1, %v7300_v42, %v2821_v26  ;;  %v7301_v60 = vld [vmem:[#allocation21_spill] sm:$0xff]  ;;  %v7303_v16 = vld [vmem:[#allocation3_spill] sm:$0xff]  ;;  %v7305_v55 = vld [vmem:[#allocation4_spill] sm:$0xff] }
 0x430   :  { %v6787_v21 = vsel %vm7296_vm12, %v7295_v59, %v7294_v4  ;;  %v6793_v28 = vsel %vm7299_vm10, %v7298_v45, %v7297_v50  ;;  %vm7302_vm0 = vcmp.gt.f32.partialorder %v7301_v60, 0.0  ;;  %vm7304_vm4 = vcmp.gt.f32.partialorder %v7303_v16, 0.0  ;;  %v7307_v40 = vld [vmem:[#allocation6_spill] sm:$0xff]  ;;  %v7309_v53 = vld [vmem:[#allocation7_spill] sm:$0xff]  ;;  %v7310_v48 = vld [vmem:[#allocation8_spill] sm:$0xff] }
 0x431   :  { %v6803_v15 = vsel %vm7302_vm0, %v7301_v60, %v2822_v11  ;;  %v6808_v57 = vsel %vm7304_vm4, %v7303_v16, %v2823_v38  ;;  %vm7306_vm13 = vcmp.gt.f32.partialorder %v7305_v55, 0.0  ;;  %v6818_v26 = vsel %vm2761_vm2, %v7241_v31, %v2825_v52  ;;  %v7314_v31 = vld [vmem:[#allocation23_spill] sm:$0xff]  ;;  %v7315_v4 = vld [vmem:[#allocation24_spill] sm:$0xff]  ;;  %v7318_v42 = vld [vmem:[#allocation29_spill] sm:$0xff] }
 0x432   :  { %v6813_v63 = vsel %vm7306_vm13, %v7305_v55, %v2824_v37  ;;  %vm7308_vm1 = vcmp.gt.f32.partialorder %v7307_v40, 0.0  ;;  %v6828_v38 = vsel %vm2763_vm6, %v7309_v53, %v2827_v29  ;;  %vm7311_vm8 = vcmp.gt.f32.partialorder %v7310_v48, 0.0  ;;  %v7316_v29 = vld [vmem:[#allocation25_spill] sm:$0xff]  ;;  %v7317_v50 = vld [vmem:[#allocation27_spill] sm:$0xff]  ;;  %v7321_v55 = vld [vmem:[#allocation34_spill] sm:$0xff] }
 0x433   :  { %v6823_v11 = vsel %vm7308_vm1, %v7307_v40, %v2826_v58  ;;  %v6833_v37 = vsel %vm7311_vm8, %v7310_v48, %v2828_v8  ;;  %v6838_v52 = vsel %vm2765_vm3, %v7247_v1, %v2829_v12  ;;  %v6843_v58 = vsel %vm2766_vm7, %v7248_v47, %v2830_v2  ;;  %v7319_v60 = vld [vmem:[#allocation31_spill] sm:$0xff]  ;;  %v7320_v16 = vld [vmem:[#allocation33_spill] sm:$0xff]  ;;  %v7322_v53 = vld [vmem:[#allocation36_spill] sm:$0xff] }
 0x434   :  { %7312 = vst [vmem:[#allocation26_spill] sm:$0xff] %v6833_v37  ;;  %7313 = vst [vmem:[#allocation9_spill] sm:$0xff] %v6838_v52  ;;  %v3597_v59 = vpack.c.bf16 %v7315_v4, %v7314_v31  ;;  %v3602_v45 = vpack.c.bf16 %v7317_v50, %v7316_v29  ;;  %v3607_v8 = vpack.c.bf16 %v7319_v60, %v7318_v42  ;;  %v7323_v1 = vld [vmem:[#allocation38_spill] sm:$0xff]  ;;  %v7324_v48 = vld [vmem:[#allocation40_spill] sm:$0xff] }
 0x435   :  { %v3612_v40 = vpack.c.bf16 %v7321_v55, %v7320_v16  ;;  %v3617_v12 = vpack.c.bf16 %v7323_v1, %v7322_v53  ;;  %v7325_v52 = vld [vmem:[#allocation44_spill] sm:$0xff]  ;;  %v7326_v2 = vld [vmem:[#allocation47_spill] sm:$0xff]  ;;  %v7328_v4 = vld [vmem:[#allocation50_spill] sm:$0xff] }
 0x436   :  { %v3622_v37 = vpack.c.bf16 %v7325_v52, %v7324_v48  ;;  %3598 = vst [vmem:[%s7010_s5] sm:$0xff] %v3597_v59   ;;  %3754 = vst [vmem:[%s7010_s5 + $0x8] sm:$0xff] %v3602_v45   ;;  %v7327_v47 = vld [vmem:[#allocation48_spill] sm:$0xff]  ;;  %v7329_v29 = vld [vmem:[#allocation54_spill] sm:$0xff]  ;;  %v3642_v52 = vpack.c.bf16 %v6589_v54, %v6580_v43  ;;  %v3647_v59 = vpack.c.bf16 %v6601_v62, %v6595_v6 }
 0x437   :  { %v3627_v31 = vpack.c.bf16 %v7327_v47, %v7326_v2  ;;  %v3632_v50 = vpack.c.bf16 %v7329_v29, %v7328_v4  ;;  %v7330_v42 = vld [vmem:[#allocation55_spill] sm:$0xff]  ;;  %v7331_v60 = vld [vmem:[#allocation5_spill] sm:$0xff]  ;;  %3755 = vst [vmem:[%s7010_s5 + $0x10] sm:$0xff] %v3607_v8   ;;  %3756 = vst [vmem:[%s7010_s5 + $0x18] sm:$0xff] %v3612_v40   ;;  %v3652_v54 = vpack.c.bf16 %v6613_v56, %v6607_v35 }
 0x438   :  { %v3637_v16 = vpack.c.bf16 %v7331_v60, %v7330_v42  ;;  %3757 = vst [vmem:[%s7010_s5 + $0x20] sm:$0xff] %v3617_v12   ;;  %3758 = vst [vmem:[%s7010_s5 + $0x28] sm:$0xff] %v3622_v37   ;;  %v3657_v43 = vpack.c.bf16 %v6625_v10, %v6619_v14  ;;  %v3662_v45 = vpack.c.bf16 %v6637_v46, %v6631_v20 }
 0x439   :  { %3759 = vst [vmem:[%s7010_s5 + $0x30] sm:$0xff] %v3627_v31   ;;  %3760 = vst [vmem:[%s7010_s5 + $0x38] sm:$0xff] %v3632_v50   ;;  %v3667_v6 = vpack.c.bf16 %v6649_v49, %v6643_v22  ;;  %v3672_v62 = vpack.c.bf16 %v6661_v33, %v6655_v13  ;;  %v3677_v35 = vpack.c.bf16 %v6673_v19, %v6667_v18 }
 0x43a   :  { %3761 = vst [vmem:[%s7010_s5 + $0x40] sm:$0xff] %v3637_v16   ;;  %3762 = vst [vmem:[%s7010_s5 + $0x48] sm:$0xff] %v3642_v52   ;;  %v3682_v56 = vpack.c.bf16 %v6685_v61, %v6679_v0  ;;  %v3687_v14 = vpack.c.bf16 %v6697_v36, %v6691_v41  ;;  %v3692_v10 = vpack.c.bf16 %v6709_v34, %v6703_v24 }
 0x43b   :  { %3763 = vst [vmem:[%s7010_s5 + $0x50] sm:$0xff] %v3647_v59   ;;  %3764 = vst [vmem:[%s7010_s5 + $0x58] sm:$0xff] %v3652_v54   ;;  %v3697_v20 = vpack.c.bf16 %v6721_v32, %v6715_v27  ;;  %v3702_v46 = vpack.c.bf16 %v6733_v5, %v6727_v7  ;;  %v3707_v22 = vpack.c.bf16 %v6745_v17, %v6739_v39  ;;  %v7332_v41 = vld [vmem:[#allocation26_spill] sm:$0xff]  ;;  %v7333_v24 = vld [vmem:[#allocation9_spill] sm:$0xff] }
 0x43c   :  { %3765 = vst [vmem:[%s7010_s5 + $0x60] sm:$0xff] %v3657_v43   ;;  %3766 = vst [vmem:[%s7010_s5 + $0x68] sm:$0xff] %v3662_v45   ;;  %v3712_v49 = vpack.c.bf16 %v6757_v9, %v6751_v25  ;;  %v3717_v13 = vpack.c.bf16 %v6769_v30, %v6763_v51  ;;  %v3722_v33 = vpack.c.bf16 %v6781_v23, %v6775_v44 }
 0x43d   :  { %3767 = vst [vmem:[%s7010_s5 + $0x70] sm:$0xff] %v3667_v6   ;;  %3768 = vst [vmem:[%s7010_s5 + $0x78] sm:$0xff] %v3672_v62   ;;  %v3727_v18 = vpack.c.bf16 %v6793_v28, %v6787_v21  ;;  %v3732_v19 = vpack.c.bf16 %v6803_v15, %v6798_v3  ;;  %v3737_v0 = vpack.c.bf16 %v6813_v63, %v6808_v57 }
 0x43e   :  { %3769 = vst [vmem:[%s7010_s5 + $0x80] sm:$0xff] %v3677_v35   ;;  %3770 = vst [vmem:[%s7010_s5 + $0x88] sm:$0xff] %v3682_v56   ;;  %v3742_v61 = vpack.c.bf16 %v6823_v11, %v6818_v26  ;;  %v3747_v36 = vpack.c.bf16 %v7332_v41, %v6828_v38  ;;  %v3752_v34 = vpack.c.bf16 %v6843_v58, %v7333_v24 }
 0x43f   :  { %3771 = vst [vmem:[%s7010_s5 + $0x90] sm:$0xff] %v3687_v14   ;;  %3772 = vst [vmem:[%s7010_s5 + $0x98] sm:$0xff] %v3692_v10  }
 0x440   :  { %3773 = vst [vmem:[%s7010_s5 + $0xa0] sm:$0xff] %v3697_v20   ;;  %3774 = vst [vmem:[%s7010_s5 + $0xa8] sm:$0xff] %v3702_v46  }
 0x441   :  { %3775 = vst [vmem:[%s7010_s5 + $0xb0] sm:$0xff] %v3707_v22   ;;  %3776 = vst [vmem:[%s7010_s5 + $0xb8] sm:$0xff] %v3712_v49  }
 0x442   :  { %3777 = vst [vmem:[%s7010_s5 + $0xc0] sm:$0xff] %v3717_v13   ;;  %3778 = vst [vmem:[%s7010_s5 + $0xc8] sm:$0xff] %v3722_v33  }
 0x443   :  { %3779 = vst [vmem:[%s7010_s5 + $0xd0] sm:$0xff] %v3727_v18   ;;  %3780 = vst [vmem:[%s7010_s5 + $0xd8] sm:$0xff] %v3732_v19  }
 0x444   :  { %3781 = vst [vmem:[%s7010_s5 + $0xe0] sm:$0xff] %v3737_v0   ;;  %3782 = vst [vmem:[%s7010_s5 + $0xe8] sm:$0xff] %v3742_v61  }
 0x445   :  { %3783 = vst [vmem:[%s7010_s5 + $0xf0] sm:$0xff] %v3747_v36   ;;  %3784 = vst [vmem:[%s7010_s5 + $0xf8] sm:$0xff] %v3752_v34  }

// kernel: generator_forward.9
= control target key start
LH: loop header
LB: loop body
LE: loop exit
PB: predicated region body
PF: predicated region fallthrough
CT: control target
= control target key end

     0   :  { %s1964_s12 = smov 0   ;;  %s1966_s13 = smov 0   ;;  %s2309_s0 = inlined_call_operand.vmem [shape: bf16[2176,48], index: 0, kind: input, shape index: {}]   ;;  %s2310_s1 = inlined_call_operand.vmem [shape: bf16[3,48,128], index: 1, kind: input, shape index: {}]   ;;  %s2311_s2 = inlined_call_operand.vmem [shape: f32[1,128], index: 2, kind: input, shape index: {}]   ;;  %s2312_s3 = inlined_call_operand.vmem [shape: f32[2048,128], index: 3, kind: output, shape index: {}]  }
   0x1   :  { %s1968_s14 = smov 0   ;;  %s1970_s15 = smov 0  }
   0x2   :  { %s1972_s16 = smov 0  }
   0x3 LB: > { %s22_s17 = sadd.s32 1, %s1934_s14  ;;  %s25_s18 = sadd.s32 1, %s1938_s15  ;;  %s1942_s16 = sphi %s1972_s16, %s13_s16   ;;  %s1938_s15 = sphi %s1970_s15, %s2316_s15   ;;  %s1934_s14 = sphi %s1968_s14, %s2315_s14   ;;  %s1930_s13 = sphi %s1966_s13, %s2314_s13   ;;  %s1926_s12 = sphi %s1964_s12, %s2313_s12  }
   0x4   : > { %p23_p0 = scmp.ge.s32.totalorder %s22_s17, 4  ;;  %p1438_p1 = scmp.ge.s32.totalorder %s1942_s16, 1 }
   0x5   : > { %p143_p2 = scmp.lt.s32.totalorder %s1942_s16, 9 }
   0x6   : > { %s2318_s17 = smov (%p23_p0, %s22_s17), 0  ;;  %s2320_s18 = smov (!%p23_p0, %s25_s18), %s1938_s15 }
   0x7   : > { %p144_p3 = pnand %p1438_p1, %p143_p2  ;;  %p27_p4 = scmp.ge.s32.totalorder %s2320_s18, 2 }
   0x8   : > { %s175_s21 = smul.u32 (!%p144_p3), 1088, %s1930_s13  ;;  %s1442_s24 = sshll.u32 (!%p144_p3), %s1926_s12, 8 }
   0x9   : > { %s2322_s18 = smov (%p27_p4, %s2320_s18), 0  ;;  %147 = sbr.rel (%p144_p3) target bundleno = 335 (0x14f), region = 32 }
   0xa   : > { %s2006_s25 = sadd.s32 (!%p144_p3), %s1442_s24, %s175_s21 }
   0xb   : > { %s178_s26 = sadd.s32 (!%p144_p3), 32, %s2006_s25  ;;  %s179_s22 = sadd.s32 (!%p144_p3), 64, %s2006_s25 }
   0xc   : > { %s222_s29 = sshra.s32 (!%p144_p3), %s178_s26, 3  ;;  %s180_s23 = sshra.s32 (!%p144_p3), %s2006_s25, 3 }
   0xd   : > { %s1444_s30 = sshll.u32 (!%p144_p3), %s222_s29, 2  ;;  %s880_s24 = sshra.s32 (!%p144_p3), %s179_s22, 3 }
   0xe   : > { %v1783_v0 = vld [vmem:[%s2310_s1 + $0x28] sm:$0xff]   ;;  %v1784_v1 = vld [vmem:[%s2310_s1 + $0x20] sm:$0xff]   ;;  %v1785_v2 = vld [vmem:[%s2310_s1 + $0x18] sm:$0xff]   ;;  %s2015_s6 = scalar_lea.vmem %s2309_s0, %s1444_s30  ;;  %vm363_vm0 = vcmask 392192   ;;  %s1443_s28 = sshll.u32 %s180_s23, 2 }
   0xf   : > { %1623 = vmatprep.subr.bf16.mxu0 %v1783_v0  ;;  %1737 = vmatprep.subr.bf16.mxu1 %v1783_v0  ;;  %v1790_v3 = vld [vmem:[%s2310_s1 + $0x10] sm:$0xff]   ;;  %v1791_v4 = vld [vmem:[%s2310_s1 + $0x40] sm:$0xff]   ;;  %v1788_v7 = vld [vmem:[%s2015_s6 + $0x8] sm:$0xff]   ;;  %s1521_s29 = sshll.u32 %s880_s24, 2  ;;  %s2057_s4 = scalar_lea.vmem %s2309_s0, %s1443_s28 }
  0x10   : > { %1624 = vmatpush3.bf16.msra.mxu0 %v1783_v0  ;;  %1740 = vmatpush3.bf16.msra.mxu1 %v1783_v0  ;;  %v1786_v5 = vld [vmem:[%s2015_s6] sm:$0xff]   ;;  %v1789_v8 = vld [vmem:[%s2015_s6 + $0x48] sm:$0xff]   ;;  %v1792_v9 = vld [vmem:[%s2015_s6 + $0x10] sm:$0xff]   ;;  %s2067_s10 = scalar_lea.vmem %s2309_s0, %s1521_s29 }
  0x11   : > { %1625 = vmatprep.subr.bf16.mxu0 %v1784_v1  ;;  %1738 = vmatprep.subr.bf16.mxu1 %v1784_v1  ;;  %v1787_v6 = vld [vmem:[%s2015_s6 + $0x40] sm:$0xff]   ;;  %v1793_v10 = vld [vmem:[%s2015_s6 + $0x50] sm:$0xff]   ;;  %v1796_v11 = vld [vmem:[%s2310_s1 + $0x8] sm:$0xff]  }
  0x12   : > { %1629 = vmatprep.mubr.msk.bf16.mxu0 %vm363_vm0, %v1786_v5  ;;  %1645 = vmatprep.mubr.msk.bf16.mxu1 %vm363_vm0, %v1787_v6  ;;  %v1797_v12 = vld [vmem:[%s2310_s1 + $0x38] sm:$0xff]   ;;  %v1798_v15 = vld [vmem:[%s2015_s6 + $0x20] sm:$0xff]   ;;  %v1800_v18 = vld [vmem:[%s2015_s6 + $0x28] sm:$0xff]  }
  0x13   : > { %v1794_v13 = vld [vmem:[%s2015_s6 + $0x18] sm:$0xff]   ;;  %v1799_v16 = vld [vmem:[%s2015_s6 + $0x60] sm:$0xff]   ;;  %v1801_v19 = vld [vmem:[%s2015_s6 + $0x68] sm:$0xff]  }
  0x14   : > { %1626 = vmatpush3.bf16.msra.mxu0 %v1784_v1  ;;  %1741 = vmatpush3.bf16.msra.mxu1 %v1784_v1  ;;  %v1795_v14 = vld [vmem:[%s2015_s6 + $0x58] sm:$0xff]   ;;  %v1802_v17 = vld [vmem:[%s2310_s1] sm:$0xff]   ;;  %v1807_v20 = vld [vmem:[%s2310_s1 + $0x30] sm:$0xff]  }
  0x15   : > { %1627 = vmatprep.subr.bf16.mxu0 %v1785_v2  ;;  %1739 = vmatprep.subr.bf16.mxu1 %v1785_v2  ;;  %v1803_v21 = vld [vmem:[%s2015_s6 + $0x30] sm:$0xff]   ;;  %v1805_v23 = vld [vmem:[%s2015_s6 + $0x38] sm:$0xff]   ;;  %v1808_v25 = vld [vmem:[%s2057_s4] sm:$0xff]  }
  0x16   : > { %v1804_v22 = vld [vmem:[%s2015_s6 + $0x70] sm:$0xff]   ;;  %v1806_v24 = vld [vmem:[%s2015_s6 + $0x78] sm:$0xff]   ;;  %v1809_v26 = vld [vmem:[%s2067_s10] sm:$0xff]   ;;  %s1439_s6 = sshll.u32 %s1930_s13, 2 }
  0x17   : > { %v1810_v27 = vld [vmem:[%s2057_s4 + $0x8] sm:$0xff]   ;;  %v1812_v29 = vld [vmem:[%s2057_s4 + $0x10] sm:$0xff]   ;;  %v1814_v31 = vld [vmem:[%s2057_s4 + $0x18] sm:$0xff]   ;;  %s165_s11 = sadd.s32 %s1926_s12, %s1439_s6 }
  0x18   : > { %1628 = vmatpush3.bf16.msra.mxu0 %v1785_v2  ;;  %1742 = vmatpush3.bf16.msra.mxu1 %v1785_v2  ;;  %v1811_v28 = vld [vmem:[%s2067_s10 + $0x8] sm:$0xff]   ;;  %v1813_v30 = vld [vmem:[%s2067_s10 + $0x10] sm:$0xff]   ;;  %v1815_v32 = vld [vmem:[%s2067_s10 + $0x18] sm:$0xff]   ;;  %s1440_s21 = sshll.u32 %s165_s11, 5 }
  0x19   : > { %1661 = vmatprep.subr.bf16.mxu1 %v1790_v3  ;;  %1699 = vmatprep.subr.bf16.mxu0 %v1791_v4  ;;  %v1816_v33 = vld [vmem:[%s2057_s4 + $0x20] sm:$0xff]   ;;  %v1818_v35 = vld [vmem:[%s2057_s4 + $0x28] sm:$0xff]   ;;  %v1820_v37 = vld [vmem:[%s2057_s4 + $0x30] sm:$0xff]   ;;  %p167_p5 = scmp.lt.s32.totalorder %s1440_s21, 255 }
  0x1a   : > { %v1817_v34 = vld [vmem:[%s2067_s10 + $0x20] sm:$0xff]   ;;  %v1819_v36 = vld [vmem:[%s2067_s10 + $0x28] sm:$0xff]   ;;  %v1821_v38 = vld [vmem:[%s2067_s10 + $0x30] sm:$0xff]  }
  0x1b   : > { %1630 = vmatmul.mubr.msk.bf16.vlgmr.msra.gmra.mxu0 %vm363_vm0, %v1788_v7  ;;  %1646 = vmatmul.mubr.msk.bf16.vlgmr.msra.gmra.mxu1 %vm363_vm0, %v1789_v8  ;;  %v1822_v39 = vld [vmem:[%s2057_s4 + $0x38] sm:$0xff]   ;;  %v1824_v41 = vld [vmem:[%s2057_s4 + $0x40] sm:$0xff]   ;;  %v1826_v43 = vld [vmem:[%s2057_s4 + $0x48] sm:$0xff]   ;;  %s2324_s21 = smov (!%p167_p5, %s1440_s21), 255 }
  0x1c   : > { %1662 = vmatpush3.bf16.msra.mxu1 %v1790_v3  ;;  %1700 = vmatpush3.bf16.msra.mxu0 %v1791_v4  ;;  %v1823_v40 = vld [vmem:[%s2067_s10 + $0x38] sm:$0xff]   ;;  %v1825_v42 = vld [vmem:[%s2067_s10 + $0x40] sm:$0xff]   ;;  %v1827_v44 = vld [vmem:[%s2067_s10 + $0x48] sm:$0xff]   ;;  %s1441_s12 = sshll.u32 %s2324_s21, 3 }
  0x1d   : > { %1633 = vmatprep.mubr.msk.bf16.mxu0 %vm363_vm0, %v1792_v9  ;;  %1649 = vmatprep.mubr.msk.bf16.mxu1 %vm363_vm0, %v1793_v10  ;;  %v1828_v45 = vld [vmem:[%s2057_s4 + $0x50] sm:$0xff]   ;;  %v1830_v47 = vld [vmem:[%s2057_s4 + $0x58] sm:$0xff]   ;;  %v1832_v49 = vld [vmem:[%s2057_s4 + $0x60] sm:$0xff]   ;;  %s2212_s23 = scalar_lea.vmem %s2312_s3, %s1441_s12 }
  0x1e   : > { %1663 = vmatprep.subr.bf16.mxu1 %v1796_v11  ;;  %1701 = vmatprep.subr.bf16.mxu0 %v1797_v12  ;;  %v1829_v46 = vld [vmem:[%s2067_s10 + $0x50] sm:$0xff]   ;;  %v1831_v48 = vld [vmem:[%s2067_s10 + $0x58] sm:$0xff]   ;;  %v1833_v50 = vld [vmem:[%s2067_s10 + $0x60] sm:$0xff]  }
  0x1f   : > { %v1834_v51 = vld [vmem:[%s2057_s4 + $0x68] sm:$0xff]   ;;  %v1836_v53 = vld [vmem:[%s2057_s4 + $0x70] sm:$0xff]   ;;  %v1838_v55 = vld [vmem:[%s2057_s4 + $0x78] sm:$0xff]  }
  0x20   : > { %1664 = vmatpush3.bf16.msra.mxu1 %v1796_v11  ;;  %1702 = vmatpush3.bf16.msra.mxu0 %v1797_v12  ;;  %v1835_v52 = vld [vmem:[%s2067_s10 + $0x68] sm:$0xff]   ;;  %v1837_v54 = vld [vmem:[%s2067_s10 + $0x70] sm:$0xff]   ;;  %v1839_v56 = vld [vmem:[%s2067_s10 + $0x78] sm:$0xff]  }
  0x21   : > { %1665 = vmatprep.subr.bf16.mxu1 %v1802_v17  ;;  %1703 = vmatprep.subr.bf16.mxu0 %v1807_v20 }
  0x23   : > { %1634 = vmatmul.mubr.msk.bf16.gmra.mxu0 %vm363_vm0, %v1794_v13  ;;  %1650 = vmatmul.mubr.msk.bf16.gmra.mxu1 %vm363_vm0, %v1795_v14 }
  0x24   : > { %1637 = vmatprep.mubr.msk.bf16.mxu0 %vm363_vm0, %v1798_v15  ;;  %1653 = vmatprep.mubr.msk.bf16.mxu1 %vm363_vm0, %v1799_v16 }
  0x25   : > { %1666 = vmatpush3.bf16.msra.mxu1 %v1802_v17  ;;  %1704 = vmatpush3.bf16.msra.mxu0 %v1807_v20 }
  0x2b   : > { %1638 = vmatmul.mubr.msk.bf16.gmra.mxu0 %vm363_vm0, %v1800_v18  ;;  %1654 = vmatmul.mubr.msk.bf16.gmra.mxu1 %vm363_vm0, %v1801_v19 }
  0x2c   : > { %1641 = vmatprep.mubr.msk.bf16.mxu0 %vm363_vm0, %v1803_v21  ;;  %1657 = vmatprep.mubr.msk.bf16.mxu1 %vm363_vm0, %v1804_v22 }
  0x33   : > { %1642 = vmatmul.mubr.msk.bf16.gmra.mxu0 %vm363_vm0, %v1805_v23  ;;  %1658 = vmatmul.mubr.msk.bf16.gmra.mxu1 %vm363_vm0, %v1806_v24 }
  0x34   : > { %1667 = vmatprep.mubr.msk.bf16.mxu1 %vm363_vm0, %v1808_v25  ;;  %1705 = vmatprep.mubr.msk.bf16.mxu0 %vm363_vm0, %v1809_v26 }
  0x3b   : > { %1668 = vmatmul.mubr.msk.bf16.vlgmr.msra.gmra.mxu1 %vm363_vm0, %v1810_v27  ;;  %1706 = vmatmul.mubr.msk.bf16.vlgmr.msra.gmra.mxu0 %vm363_vm0, %v1811_v28  ;;  %v2198_v28 = vld [vmem:[%s2311_s2] ss:$0 sm:$0xff] }
  0x3c   : > { %1671 = vmatprep.mubr.msk.bf16.mxu1 %vm363_vm0, %v1812_v29  ;;  %1709 = vmatprep.mubr.msk.bf16.mxu0 %vm363_vm0, %v1813_v30 }
  0x43   : > { %1672 = vmatmul.mubr.msk.bf16.gmra.mxu1 %vm363_vm0, %v1814_v31  ;;  %1710 = vmatmul.mubr.msk.bf16.gmra.mxu0 %vm363_vm0, %v1815_v32 }
  0x44   : > { %1675 = vmatprep.mubr.msk.bf16.mxu1 %vm363_vm0, %v1816_v33  ;;  %1713 = vmatprep.mubr.msk.bf16.mxu0 %vm363_vm0, %v1817_v34 }
  0x4b   : > { %1676 = vmatmul.mubr.msk.bf16.gmra.mxu1 %vm363_vm0, %v1818_v35  ;;  %1714 = vmatmul.mubr.msk.bf16.gmra.mxu0 %vm363_vm0, %v1819_v36 }
  0x4c   : > { %1679 = vmatprep.mubr.msk.bf16.mxu1 %vm363_vm0, %v1820_v37  ;;  %1717 = vmatprep.mubr.msk.bf16.mxu0 %vm363_vm0, %v1821_v38 }
  0x53   : > { %1680 = vmatmul.mubr.msk.bf16.gmra.mxu1 %vm363_vm0, %v1822_v39  ;;  %1718 = vmatmul.mubr.msk.bf16.gmra.mxu0 %vm363_vm0, %v1823_v40 }
  0x54   : > { %1683 = vmatprep.mubr.msk.bf16.mxu1 %vm363_vm0, %v1824_v41  ;;  %1721 = vmatprep.mubr.msk.bf16.mxu0 %vm363_vm0, %v1825_v42 }
  0x5b   : > { %1684 = vmatmul.mubr.msk.bf16.gmra.mxu1 %vm363_vm0, %v1826_v43  ;;  %1722 = vmatmul.mubr.msk.bf16.gmra.mxu0 %vm363_vm0, %v1827_v44 }
  0x5c   : > { %1687 = vmatprep.mubr.msk.bf16.mxu1 %vm363_vm0, %v1828_v45  ;;  %1725 = vmatprep.mubr.msk.bf16.mxu0 %vm363_vm0, %v1829_v46 }
  0x63   : > { %1688 = vmatmul.mubr.msk.bf16.gmra.mxu1 %vm363_vm0, %v1830_v47  ;;  %1726 = vmatmul.mubr.msk.bf16.gmra.mxu0 %vm363_vm0, %v1831_v48 }
  0x64   : > { %1691 = vmatprep.mubr.msk.bf16.mxu1 %vm363_vm0, %v1832_v49  ;;  %1729 = vmatprep.mubr.msk.bf16.mxu0 %vm363_vm0, %v1833_v50 }
  0x6b   : > { %1692 = vmatmul.mubr.msk.bf16.gmra.mxu1 %vm363_vm0, %v1834_v51  ;;  %1730 = vmatmul.mubr.msk.bf16.gmra.mxu0 %vm363_vm0, %v1835_v52 }
  0x6c   : > { %1695 = vmatprep.mubr.msk.bf16.mxu1 %vm363_vm0, %v1836_v53  ;;  %1733 = vmatprep.mubr.msk.bf16.mxu0 %vm363_vm0, %v1837_v54 }
  0x73   : > { %1696 = vmatmul.mubr.msk.bf16.gmra.mxu1 %vm363_vm0, %v1838_v55  ;;  %1734 = vmatmul.mubr.msk.bf16.gmra.mxu0 %vm363_vm0, %v1839_v56 }
  0xdb   : > { %v1631_v57 = vpop.f32.mrf.mxu0  ;;  %v2143_v58 = vpop.f32.mrf.mxu1 }
  0xdd   : > { %v446_v59 = vpop.f32.mrf.mxu0  ;;  %v2145_v60 = vpop.f32.mrf.mxu1 }
  0xdf   : > { %v1632_v61 = vpop.f32.mrf.mxu0  ;;  %v2147_v62 = vpop.f32.mrf.mxu1 }
  0xe1   : > { %v449_v63 = vpop.f32.mrf.mxu0  ;;  %v2149_v0 = vpop.f32.mrf.mxu1 }
  0xe3   : > { %v1635_v1 = vpop.f32.mrf.mxu0  ;;  %v2151_v2 = vpop.f32.mrf.mxu1 }
  0xe5   : > { %v462_v3 = vpop.f32.mrf.mxu0  ;;  %v2153_v4 = vpop.f32.mrf.mxu1 }
  0xe7   : > { %v1636_v5 = vpop.f32.mrf.mxu0  ;;  %v2155_v6 = vpop.f32.mrf.mxu1 }
  0xe9   : > { %v2157_v7 = vpop.f32.mrf.mxu0  ;;  %v2159_v8 = vpop.f32.mrf.mxu1 }
  0xeb   : > { %v2161_v9 = vpop.f32.mrf.mxu0  ;;  %v2163_v10 = vpop.f32.mrf.mxu1 }
  0xed   : > { %v2165_v11 = vpop.f32.mrf.mxu0  ;;  %v2167_v12 = vpop.f32.mrf.mxu1 }
  0xef   : > { %v2169_v13 = vpop.f32.mrf.mxu0  ;;  %v2171_v14 = vpop.f32.mrf.mxu1 }
  0xf1   : > { %v2173_v15 = vpop.f32.mrf.mxu0  ;;  %v2175_v16 = vpop.f32.mrf.mxu1 }
  0xf3   : > { %v2177_v17 = vpop.f32.mrf.mxu0  ;;  %v2179_v18 = vpop.f32.mrf.mxu1 }
  0xf5   : > { %v2181_v19 = vpop.f32.mrf.mxu0  ;;  %v2183_v20 = vpop.f32.mrf.mxu1 }
  0xf7   : > { %v2185_v21 = vpop.f32.mrf.mxu0  ;;  %v2187_v22 = vpop.f32.mrf.mxu1 }
  0xf9   : > { %v2189_v23 = vpop.f32.mrf.mxu0  ;;  %v2191_v24 = vpop.f32.mrf.mxu1 }
  0xfb   : > { %v1669_v25 = vpop.f32.mrf.mxu1  ;;  %v1707_v26 = vpop.f32.mrf.mxu0 }
  0xfc   : > { %v762_v27 = vadd.f32 %v1669_v25, %v1631_v57 }
  0xfd   : > { %v753_v29 = vpop.f32.mrf.mxu1  ;;  %v1103_v30 = vpop.f32.mrf.mxu0 }
  0xfe   : > { %v1232_v31 = vadd.f32 %v1707_v26, %v762_v27  ;;  %v754_v32 = vadd.f32 %v753_v29, %v446_v59 }
  0xff   : > { %v1670_v33 = vpop.f32.mrf.mxu1  ;;  %v1708_v34 = vpop.f32.mrf.mxu0 }
 0x100   : > { %v1271_v35 = vadd.f32 %v2198_v28, %v1232_v31  ;;  %v1230_v36 = vadd.f32 %v1103_v30, %v754_v32  ;;  %v765_v37 = vadd.f32 %v1670_v33, %v1632_v61 }
 0x101   : > { %v756_v38 = vpop.f32.mrf.mxu1  ;;  %v1106_v39 = vpop.f32.mrf.mxu0 }
 0x102   : > { %1840 = vtanh.f32 %v1271_v35  ;;  %v1269_v40 = vadd.f32 %v2198_v28, %v1230_v36  ;;  %v1233_v41 = vadd.f32 %v1708_v34, %v765_v37  ;;  %v757_v42 = vadd.f32 %v756_v38, %v449_v63 }
 0x103   : > { %v1673_v43 = vpop.f32.mrf.mxu1  ;;  %v1711_v44 = vpop.f32.mrf.mxu0 }
 0x104   : > { %1842 = vtanh.f32 %v1269_v40  ;;  %v1272_v45 = vadd.f32 %v2198_v28, %v1233_v41  ;;  %v1231_v46 = vadd.f32 %v1106_v39, %v757_v42  ;;  %v778_v47 = vadd.f32 %v1673_v43, %v1635_v1 }
 0x105   : > { %v769_v48 = vpop.f32.mrf.mxu1  ;;  %v1119_v49 = vpop.f32.mrf.mxu0 }
 0x106   : > { %1844 = vtanh.f32 %v1272_v45  ;;  %v1270_v50 = vadd.f32 %v2198_v28, %v1231_v46  ;;  %v1236_v51 = vadd.f32 %v1711_v44, %v778_v47  ;;  %v770_v52 = vadd.f32 %v769_v48, %v462_v3 }
 0x107   : > { %v1674_v53 = vpop.f32.mrf.mxu1  ;;  %v1712_v54 = vpop.f32.mrf.mxu0 }
 0x108   : > { %1846 = vtanh.f32 %v1270_v50  ;;  %v1275_v55 = vadd.f32 %v2198_v28, %v1236_v51  ;;  %v1234_v56 = vadd.f32 %v1119_v49, %v770_v52  ;;  %v781_v57 = vadd.f32 %v1674_v53, %v1636_v5 }
 0x109   : > { %v772_v59 = vpop.f32.mrf.mxu1  ;;  %v1122_v61 = vpop.f32.mrf.mxu0 }
 0x10a   : > { %1848 = vtanh.f32 %v1275_v55  ;;  %v1273_v63 = vadd.f32 %v2198_v28, %v1234_v56  ;;  %v1237_v1 = vadd.f32 %v1712_v54, %v781_v57  ;;  %v773_v25 = vadd.f32 %v772_v59, %v2157_v7 }
 0x10b   : > { %v1677_v26 = vpop.f32.mrf.mxu1  ;;  %v1715_v27 = vpop.f32.mrf.mxu0 }
 0x10c   : > { %1850 = vtanh.f32 %v1273_v63  ;;  %v1276_v3 = vadd.f32 %v2198_v28, %v1237_v1  ;;  %v1235_v29 = vadd.f32 %v1122_v61, %v773_v25  ;;  %v794_v30 = vadd.f32 %v1677_v26, %v2161_v9 }
 0x10d   : > { %v785_v5 = vpop.f32.mrf.mxu1  ;;  %v1135_v31 = vpop.f32.mrf.mxu0 }
 0x10e   : > { %1852 = vtanh.f32 %v1276_v3  ;;  %v1274_v7 = vadd.f32 %v2198_v28, %v1235_v29  ;;  %v1240_v32 = vadd.f32 %v1715_v27, %v794_v30  ;;  %v786_v33 = vadd.f32 %v785_v5, %v2165_v11 }
 0x10f   : > { %v1841_v34 = vpop.eup %1840  ;;  %v1678_v35 = vpop.f32.mrf.mxu1 }
 0x110   : > { %v1716_v36 = vpop.f32.mrf.mxu0  ;;  %1335 = vst [vmem:[%s2212_s23 + $0x10] sm:$0xff] %v1841_v34  ;;  %1854 = vtanh.f32 %v1274_v7  ;;  %v1279_v9 = vadd.f32 %v2198_v28, %v1240_v32  ;;  %v1238_v37 = vadd.f32 %v1135_v31, %v786_v33  ;;  %v797_v38 = vadd.f32 %v1678_v35, %v2169_v13 }
 0x111   : > { %v1843_v39 = vpop.eup %1842  ;;  %v788_v40 = vpop.f32.mrf.mxu1 }
 0x112   : > { %v1138_v41 = vpop.f32.mrf.mxu0  ;;  %1333 = vst [vmem:[%s2212_s23] sm:$0xff] %v1843_v39  ;;  %1856 = vtanh.f32 %v1279_v9  ;;  %v1277_v42 = vadd.f32 %v2198_v28, %v1238_v37  ;;  %v1241_v11 = vadd.f32 %v1716_v36, %v797_v38  ;;  %v789_v43 = vadd.f32 %v788_v40, %v2173_v15 }
 0x113   : > { %v1845_v44 = vpop.eup %1844  ;;  %v1681_v45 = vpop.f32.mrf.mxu1 }
 0x114   : > { %v1719_v46 = vpop.f32.mrf.mxu0  ;;  %1336 = vst [vmem:[%s2212_s23 + $0x18] sm:$0xff] %v1845_v44  ;;  %1858 = vtanh.f32 %v1277_v42  ;;  %v1280_v47 = vadd.f32 %v2198_v28, %v1241_v11  ;;  %v1239_v13 = vadd.f32 %v1138_v41, %v789_v43  ;;  %v810_v48 = vadd.f32 %v1681_v45, %v2177_v17 }
 0x115   : > { %v1847_v49 = vpop.eup %1846  ;;  %v801_v50 = vpop.f32.mrf.mxu1 }
 0x116   : > { %v1151_v51 = vpop.f32.mrf.mxu0  ;;  %1334 = vst [vmem:[%s2212_s23 + $0x8] sm:$0xff] %v1847_v49  ;;  %1860 = vtanh.f32 %v1280_v47  ;;  %v1278_v52 = vadd.f32 %v2198_v28, %v1239_v13  ;;  %v1244_v15 = vadd.f32 %v1719_v46, %v810_v48  ;;  %v802_v53 = vadd.f32 %v801_v50, %v2181_v19 }
 0x117   : > { %v1849_v54 = vpop.eup %1848  ;;  %v1682_v55 = vpop.f32.mrf.mxu1 }
 0x118   : > { %v1720_v56 = vpop.f32.mrf.mxu0  ;;  %1339 = vst [vmem:[%s2212_s23 + $0x30] sm:$0xff] %v1849_v54  ;;  %1862 = vtanh.f32 %v1278_v52  ;;  %v1283_v57 = vadd.f32 %v2198_v28, %v1244_v15  ;;  %v1242_v17 = vadd.f32 %v1151_v51, %v802_v53  ;;  %v813_v59 = vadd.f32 %v1682_v55, %v2185_v21 }
 0x119   : > { %v1851_v61 = vpop.eup %1850  ;;  %v804_v63 = vpop.f32.mrf.mxu1 }
 0x11a   : > { %v1154_v1 = vpop.f32.mrf.mxu0  ;;  %1337 = vst [vmem:[%s2212_s23 + $0x20] sm:$0xff] %v1851_v61  ;;  %1864 = vtanh.f32 %v1283_v57  ;;  %v1281_v25 = vadd.f32 %v2198_v28, %v1242_v17  ;;  %v1245_v19 = vadd.f32 %v1720_v56, %v813_v59  ;;  %v805_v26 = vadd.f32 %v804_v63, %v2189_v23 }
 0x11b   : > { %v1853_v27 = vpop.eup %1852  ;;  %v1685_v3 = vpop.f32.mrf.mxu1 }
 0x11c   : > { %v1723_v29 = vpop.f32.mrf.mxu0  ;;  %1340 = vst [vmem:[%s2212_s23 + $0x38] sm:$0xff] %v1853_v27  ;;  %1866 = vtanh.f32 %v1281_v25  ;;  %v1284_v30 = vadd.f32 %v2198_v28, %v1245_v19  ;;  %v1243_v21 = vadd.f32 %v1154_v1, %v805_v26  ;;  %v826_v5 = vadd.f32 %v1685_v3, %v2143_v58 }
 0x11d   : > { %v1855_v31 = vpop.eup %1854  ;;  %v817_v7 = vpop.f32.mrf.mxu1 }
 0x11e   : > { %v1167_v32 = vpop.f32.mrf.mxu0  ;;  %1338 = vst [vmem:[%s2212_s23 + $0x28] sm:$0xff] %v1855_v31  ;;  %1868 = vtanh.f32 %v1284_v30  ;;  %v1282_v33 = vadd.f32 %v2198_v28, %v1243_v21  ;;  %v1248_v23 = vadd.f32 %v1723_v29, %v826_v5  ;;  %v818_v34 = vadd.f32 %v817_v7, %v2145_v60 }
 0x11f   : > { %v1857_v35 = vpop.eup %1856  ;;  %v1686_v36 = vpop.f32.mrf.mxu1 }
 0x120   : > { %v1724_v9 = vpop.f32.mrf.mxu0  ;;  %1343 = vst [vmem:[%s2212_s23 + $0x50] sm:$0xff] %v1857_v35  ;;  %1870 = vtanh.f32 %v1282_v33  ;;  %v1287_v37 = vadd.f32 %v2198_v28, %v1248_v23  ;;  %v1246_v58 = vadd.f32 %v1167_v32, %v818_v34  ;;  %v829_v38 = vadd.f32 %v1686_v36, %v2147_v62 }
 0x121   : > { %v1859_v39 = vpop.eup %1858  ;;  %v820_v40 = vpop.f32.mrf.mxu1 }
 0x122   : > { %v1170_v41 = vpop.f32.mrf.mxu0  ;;  %1341 = vst [vmem:[%s2212_s23 + $0x40] sm:$0xff] %v1859_v39  ;;  %1872 = vtanh.f32 %v1287_v37  ;;  %v1285_v42 = vadd.f32 %v2198_v28, %v1246_v58  ;;  %v1249_v60 = vadd.f32 %v1724_v9, %v829_v38  ;;  %v821_v11 = vadd.f32 %v820_v40, %v2149_v0 }
 0x123   : > { %v1861_v43 = vpop.eup %1860  ;;  %v1689_v44 = vpop.f32.mrf.mxu1 }
 0x124   : > { %v1727_v45 = vpop.f32.mrf.mxu0  ;;  %1344 = vst [vmem:[%s2212_s23 + $0x58] sm:$0xff] %v1861_v43  ;;  %1874 = vtanh.f32 %v1285_v42  ;;  %v1288_v46 = vadd.f32 %v2198_v28, %v1249_v60  ;;  %v1247_v62 = vadd.f32 %v1170_v41, %v821_v11  ;;  %v842_v47 = vadd.f32 %v1689_v44, %v2151_v2 }
 0x125   : > { %v1863_v13 = vpop.eup %1862  ;;  %v833_v48 = vpop.f32.mrf.mxu1 }
 0x126   : > { %v1183_v49 = vpop.f32.mrf.mxu0  ;;  %1342 = vst [vmem:[%s2212_s23 + $0x48] sm:$0xff] %v1863_v13  ;;  %1876 = vtanh.f32 %v1288_v46  ;;  %v1286_v50 = vadd.f32 %v2198_v28, %v1247_v62  ;;  %v1252_v0 = vadd.f32 %v1727_v45, %v842_v47  ;;  %v834_v51 = vadd.f32 %v833_v48, %v2153_v4 }
 0x127   : > { %v1865_v52 = vpop.eup %1864  ;;  %v1690_v15 = vpop.f32.mrf.mxu1 }
 0x128   : > { %v1728_v53 = vpop.f32.mrf.mxu0  ;;  %1347 = vst [vmem:[%s2212_s23 + $0x70] sm:$0xff] %v1865_v52  ;;  %1878 = vtanh.f32 %v1286_v50  ;;  %v1291_v54 = vadd.f32 %v2198_v28, %v1252_v0  ;;  %v1250_v2 = vadd.f32 %v1183_v49, %v834_v51  ;;  %v845_v55 = vadd.f32 %v1690_v15, %v2155_v6 }
 0x129   : > { %v1867_v56 = vpop.eup %1866  ;;  %v836_v57 = vpop.f32.mrf.mxu1 }
 0x12a   : > { %v1186_v17 = vpop.f32.mrf.mxu0  ;;  %1345 = vst [vmem:[%s2212_s23 + $0x60] sm:$0xff] %v1867_v56  ;;  %1880 = vtanh.f32 %v1291_v54  ;;  %v1289_v59 = vadd.f32 %v2198_v28, %v1250_v2  ;;  %v1253_v4 = vadd.f32 %v1728_v53, %v845_v55  ;;  %v837_v61 = vadd.f32 %v836_v57, %v2159_v8 }
 0x12b   : > { %v1869_v63 = vpop.eup %1868  ;;  %v1693_v1 = vpop.f32.mrf.mxu1 }
 0x12c   : > { %v1731_v25 = vpop.f32.mrf.mxu0  ;;  %1348 = vst [vmem:[%s2212_s23 + $0x78] sm:$0xff] %v1869_v63  ;;  %1882 = vtanh.f32 %v1289_v59  ;;  %v1292_v19 = vadd.f32 %v2198_v28, %v1253_v4  ;;  %v1251_v6 = vadd.f32 %v1186_v17, %v837_v61  ;;  %v858_v26 = vadd.f32 %v1693_v1, %v2163_v10 }
 0x12d   : > { %v1871_v27 = vpop.eup %1870  ;;  %v849_v3 = vpop.f32.mrf.mxu1 }
 0x12e   : > { %v1199_v29 = vpop.f32.mrf.mxu0  ;;  %1346 = vst [vmem:[%s2212_s23 + $0x68] sm:$0xff] %v1871_v27  ;;  %1884 = vtanh.f32 %v1292_v19  ;;  %v1290_v30 = vadd.f32 %v2198_v28, %v1251_v6  ;;  %v1256_v8 = vadd.f32 %v1731_v25, %v858_v26  ;;  %v850_v21 = vadd.f32 %v849_v3, %v2167_v12 }
 0x12f   : > { %v1873_v5 = vpop.eup %1872  ;;  %v1694_v31 = vpop.f32.mrf.mxu1 }
 0x130   : > { %v1732_v7 = vpop.f32.mrf.mxu0  ;;  %1351 = vst [vmem:[%s2212_s23 + $0x90] sm:$0xff] %v1873_v5  ;;  %1886 = vtanh.f32 %v1290_v30  ;;  %v1295_v32 = vadd.f32 %v2198_v28, %v1256_v8  ;;  %v1254_v10 = vadd.f32 %v1199_v29, %v850_v21  ;;  %v861_v33 = vadd.f32 %v1694_v31, %v2171_v14 }
 0x131   : > { %v1875_v23 = vpop.eup %1874  ;;  %v852_v34 = vpop.f32.mrf.mxu1 }
 0x132   : > { %v1202_v35 = vpop.f32.mrf.mxu0  ;;  %1349 = vst [vmem:[%s2212_s23 + $0x80] sm:$0xff] %v1875_v23  ;;  %1888 = vtanh.f32 %v1295_v32  ;;  %v1293_v36 = vadd.f32 %v2198_v28, %v1254_v10  ;;  %v1257_v12 = vadd.f32 %v1732_v7, %v861_v33  ;;  %v853_v9 = vadd.f32 %v852_v34, %v2175_v16 }
 0x133   : > { %v1877_v37 = vpop.eup %1876  ;;  %v1697_v58 = vpop.f32.mrf.mxu1 }
 0x134   : > { %v1735_v38 = vpop.f32.mrf.mxu0  ;;  %1352 = vst [vmem:[%s2212_s23 + $0x98] sm:$0xff] %v1877_v37  ;;  %1890 = vtanh.f32 %v1293_v36  ;;  %v1296_v39 = vadd.f32 %v2198_v28, %v1257_v12  ;;  %v1255_v14 = vadd.f32 %v1202_v35, %v853_v9  ;;  %v874_v40 = vadd.f32 %v1697_v58, %v2179_v18 }
 0x135   : > { %v1879_v41 = vpop.eup %1878  ;;  %v865_v42 = vpop.f32.mrf.mxu1 }
 0x136   : > { %v1215_v60 = vpop.f32.mrf.mxu0  ;;  %1350 = vst [vmem:[%s2212_s23 + $0x88] sm:$0xff] %v1879_v41  ;;  %1892 = vtanh.f32 %v1296_v39  ;;  %v1294_v11 = vadd.f32 %v2198_v28, %v1255_v14  ;;  %v1260_v16 = vadd.f32 %v1735_v38, %v874_v40  ;;  %v866_v43 = vadd.f32 %v865_v42, %v2183_v20 }
 0x137   : > { %v1881_v44 = vpop.eup %1880  ;;  %v1698_v45 = vpop.f32.mrf.mxu1 }
 0x138   : > { %v1736_v46 = vpop.f32.mrf.mxu0  ;;  %1355 = vst [vmem:[%s2212_s23 + $0xb0] sm:$0xff] %v1881_v44  ;;  %1894 = vtanh.f32 %v1294_v11  ;;  %v1299_v62 = vadd.f32 %v2198_v28, %v1260_v16  ;;  %v1258_v18 = vadd.f32 %v1215_v60, %v866_v43  ;;  %v877_v47 = vadd.f32 %v1698_v45, %v2187_v22 }
 0x139   : > { %v1883_v13 = vpop.eup %1882  ;;  %v868_v48 = vpop.f32.mrf.mxu1 }
 0x13a   : > { %1353 = vst [vmem:[%s2212_s23 + $0xa0] sm:$0xff] %v1883_v13  ;;  %1896 = vtanh.f32 %v1299_v62  ;;  %v1297_v49 = vadd.f32 %v2198_v28, %v1258_v18  ;;  %v1261_v20 = vadd.f32 %v1736_v46, %v877_v47  ;;  %v869_v50 = vadd.f32 %v868_v48, %v2191_v24  ;;  %v1218_v51 = vpop.f32.mrf.mxu0 }
 0x13b   : > { %v1885_v0 = vpop.eup %1884 }
 0x13c   : > { %1356 = vst [vmem:[%s2212_s23 + $0xb8] sm:$0xff] %v1885_v0  ;;  %1898 = vtanh.f32 %v1297_v49  ;;  %v1300_v52 = vadd.f32 %v2198_v28, %v1261_v20  ;;  %v1259_v22 = vadd.f32 %v1218_v51, %v869_v50 }
 0x13d   : > { %v1887_v15 = vpop.eup %1886 }
 0x13e   : > { %1354 = vst [vmem:[%s2212_s23 + $0xa8] sm:$0xff] %v1887_v15  ;;  %1900 = vtanh.f32 %v1300_v52  ;;  %v1298_v53 = vadd.f32 %v2198_v28, %v1259_v22 }
 0x13f   : > { %v1889_v54 = vpop.eup %1888 }
 0x140   : > { %1359 = vst [vmem:[%s2212_s23 + $0xd0] sm:$0xff] %v1889_v54  ;;  %1902 = vtanh.f32 %v1298_v53 }
 0x141   : > { %v1891_v24 = vpop.eup %1890 }
 0x142   : > { %1357 = vst [vmem:[%s2212_s23 + $0xc0] sm:$0xff] %v1891_v24 }
 0x143   : > { %v1893_v2 = vpop.eup %1892 }
 0x144   : > { %1360 = vst [vmem:[%s2212_s23 + $0xd8] sm:$0xff] %v1893_v2 }
 0x145   : > { %v1895_v55 = vpop.eup %1894 }
 0x146   : > { %1358 = vst [vmem:[%s2212_s23 + $0xc8] sm:$0xff] %v1895_v55 }
 0x147   : > { %v1897_v56 = vpop.eup %1896 }
 0x148   : > { %1363 = vst [vmem:[%s2212_s23 + $0xf0] sm:$0xff] %v1897_v56 }
 0x149   : > { %v1899_v57 = vpop.eup %1898 }
 0x14a   : > { %1361 = vst [vmem:[%s2212_s23 + $0xe0] sm:$0xff] %v1899_v57 }
 0x14b   : > { %v1901_v17 = vpop.eup %1900 }
 0x14c   : > { %1364 = vst [vmem:[%s2212_s23 + $0xf8] sm:$0xff] %v1901_v17 }
 0x14d   : > { %v1903_v59 = vpop.eup %1902 }
 0x14e   : > { %1362 = vst [vmem:[%s2212_s23 + $0xe8] sm:$0xff] %v1903_v59 }
 0x14f PF: > { %s13_s16 = sadd.s32 1, %s1942_s16   ;;  %s2313_s12 = smov %s1934_s14 }
 0x150   : > { %p10_p6 = scmp.ge.s32.totalorder %s13_s16, 10   ;;  %s2314_s13 = smov %s1938_s15 }
 0x151   : > { %s2315_s14 = smov %s2318_s17  ;;  %s2316_s15 = smov %s2322_s18 }
 0x152   :  { %12 = sbr.rel (!%p10_p6) target bundleno = 3 (0x3), region = 64 }

</bundles_post_ra>
